<compile_context>
chip_gen: v6e
topology: v6e:2x2x1
jax: 0.10.0
libtpu: 0.0.40
codegen_flags: <defaults>
</compile_context>

<pallas_src>
import numpy as np

import jax
import jax.numpy as jnp
from jax.experimental import pallas as pl
from jax.experimental.pallas import tpu as pltpu


TB = 8     # images per grid step (batch tile); batch is zero-padded to a multiple
CP = 128   # lane-dense channel / contraction padding


# ----------------------------------------------------------------------------
# Constant 0/1 selection tensor implementing conv2's spatial gather (k=4, s=2,
# p=1 on an 8x8 input -> 4x4 output).  For tap (kh,kw):
#   G[tap, pos*TB + b, b*64 + s] = 1   where s is the source pixel of output
# position pos in image b (rows with out-of-bounds sources stay all-zero, which
# reproduces the zero padding).  Block-diagonal over the TB images in the tile.
# ----------------------------------------------------------------------------
def _build_conv2_selection(tb):
    g = np.zeros((16, 16 * tb, 64 * tb), dtype=np.float32)
    for kh in range(4):
        for kw in range(4):
            tap = kh * 4 + kw
            for oh in range(4):
                for ow in range(4):
                    sh = 2 * oh + kh - 1      # stride 2, padding 1
                    sw = 2 * ow + kw - 1
                    if 0 <= sh < 8 and 0 <= sw < 8:
                        pos = oh * 4 + ow
                        s = sh * 8 + sw
                        for b in range(tb):
                            g[tap, pos * tb + b, b * 64 + s] = 1.0
    return g


_G2_CACHE = {}


def _get_selection(tb):
    if tb not in _G2_CACHE:
        _G2_CACHE[tb] = jnp.asarray(_build_conv2_selection(tb), dtype=jnp.bfloat16)
    return _G2_CACHE[tb]


# ----------------------------------------------------------------------------
# Fused kernel: conv1 -> relu -> conv2 -> relu -> fc for one batch tile.
# ----------------------------------------------------------------------------
def _fused_kernel(p1_ref, w1_ref, b1_ref, g2_ref, w2_ref, b2_ref,
                  wf_ref, bf_ref, o_ref, h2_scr):
    # ---- conv1: im2col patches (TB*64, 128) @ (128, 128), bias + ReLU ------
    h1 = jnp.dot(p1_ref[...], w1_ref[...], preferred_element_type=jnp.float32)
    h1 = jnp.maximum(h1 + b1_ref[...], 0.0)      # padded columns stay exactly 0
    h1 = h1.astype(jnp.bfloat16)                 # (TB*64, 128) rows = (image, 8x8 pos)

    # ---- conv2 as a sum over the 16 kernel taps -----------------------------
    # Per tap: a constant 0/1 matrix gathers the source pixel of every
    # (position, image) row from h1 (zero rows reproduce padding), then the
    # tap's (Cin -> Cout) weight slice is applied and accumulated.
    acc2 = jnp.zeros((16 * TB, CP), jnp.float32)
    for tap in range(16):
        gathered = jnp.dot(g2_ref[tap], h1,
                           preferred_element_type=jnp.float32)        # (16*TB, 128)
        acc2 = acc2 + jnp.dot(gathered.astype(jnp.bfloat16), w2_ref[tap],
                              preferred_element_type=jnp.float32)
    h2_scr[...] = jnp.maximum(acc2 + b2_ref[...], 0.0)  # rows ordered (pos, image)

    # ---- fc (4x4 conv, no padding) as a sum over the 16 spatial positions ---
    accf = jnp.zeros((TB, CP), jnp.float32)
    for pos in range(16):
        slab = h2_scr[pl.ds(pos * TB, TB), :].astype(jnp.bfloat16)     # (TB, 128)
        accf = accf + jnp.dot(slab, wf_ref[pos],
                              preferred_element_type=jnp.float32)
    o_ref[...] = accf + bf_ref[...]                                    # (TB, 128)


def _fused_forward(p1, w1, b1, g2, w2, b2, wf, bf, *, n_tiles):
    flops = 2 * n_tiles * (
        (TB * 64) * CP * CP                                   # conv1
        + 16 * ((16 * TB) * (64 * TB) * CP + (16 * TB) * CP * CP)  # conv2 taps
        + 16 * TB * CP * CP)                                  # fc positions
    bytes_accessed = (p1.size * 2 + g2.size * 2 + w1.size * 2 + w2.size * 2
                      + wf.size * 2 + (b1.size + b2.size + bf.size) * 4
                      + n_tiles * TB * CP * 4)

    return pl.pallas_call(
        _fused_kernel,
        out_shape=jax.ShapeDtypeStruct((n_tiles * TB, CP), jnp.float32),
        grid_spec=pltpu.PrefetchScalarGridSpec(
            num_scalar_prefetch=0,
            grid=(n_tiles,),
            in_specs=[
                pl.BlockSpec((TB * 64, CP), lambda i: (i, 0)),            # conv1 patches
                pl.BlockSpec((CP, CP), lambda i: (0, 0)),                 # w1 (resident)
                pl.BlockSpec((1, CP), lambda i: (0, 0)),                  # b1
                pl.BlockSpec((16, 16 * TB, 64 * TB), lambda i: (0, 0, 0)),  # tap selection
                pl.BlockSpec((16, CP, CP), lambda i: (0, 0, 0)),          # w2 per tap
                pl.BlockSpec((1, CP), lambda i: (0, 0)),                  # b2
                pl.BlockSpec((16, CP, CP), lambda i: (0, 0, 0)),          # fc w per pos
                pl.BlockSpec((1, CP), lambda i: (0, 0)),                  # fc b
            ],
            out_specs=pl.BlockSpec((TB, CP), lambda i: (i, 0)),
            scratch_shapes=[pltpu.VMEM((16 * TB, CP), jnp.float32)],
        ),
        compiler_params=pltpu.CompilerParams(
            dimension_semantics=("parallel",),
            vmem_limit_bytes=32 * 1024 * 1024,
        ),
        cost_estimate=pl.CostEstimate(
            flops=flops, transcendentals=0, bytes_accessed=bytes_accessed),
    )(p1, w1, b1, g2, w2, b2, wf, bf)


# ----------------------------------------------------------------------------
# Jitted wrapper: layout prep + conv1 im2col (tiny, fused by XLA), then the
# single fused Pallas call.
# ----------------------------------------------------------------------------
def _im2col_conv1(x_nhwc):
    """x: (B, 16, 16, 3) -> patches (B*64, 48), columns in (kh, kw, cin) order."""
    xp = jnp.pad(x_nhwc, ((0, 0), (1, 1), (1, 1), (0, 0)))     # padding = 1
    slabs = []
    for kh in range(4):
        for kw in range(4):
            slabs.append(xp[:, kh:kh + 16:2, kw:kw + 16:2, :])  # stride 2 -> (B,8,8,3)
    patches = jnp.stack(slabs, axis=3)                          # (B, 8, 8, 16, 3)
    return patches.reshape(x_nhwc.shape[0] * 64, 48)


def _forward_impl(params, x_nchw, g2):
    B = x_nchw.shape[0]
    n_tiles = (B + TB - 1) // TB
    b_pad = n_tiles * TB

    x = jnp.transpose(x_nchw, (0, 2, 3, 1))                     # NCHW -> NHWC
    if b_pad != B:
        x = jnp.pad(x, ((0, b_pad - B), (0, 0), (0, 0), (0, 0)))

    # conv1 patches, zero-padded to a lane-dense K of 128, bf16.
    p1 = _im2col_conv1(x)                                       # (b_pad*64, 48)
    p1 = jnp.pad(p1, ((0, 0), (0, CP - 48))).astype(jnp.bfloat16)

    # conv1 weight -> (K=48, N=32), padded to (128, 128); rows in (kh,kw,cin) order.
    w1 = jnp.transpose(params["conv1_w"], (2, 3, 1, 0)).reshape(48, 32)
    w1 = jnp.pad(w1, ((0, CP - 48), (0, CP - 32))).astype(jnp.bfloat16)
    b1 = jnp.pad(params["conv1_b"], (0, CP - 32)).reshape(1, CP).astype(jnp.float32)

    # conv2 weight per tap: (16, Cin=32, Cout=64), padded to (16, 128, 128).
    w2 = jnp.transpose(params["conv2_w"], (2, 3, 1, 0)).reshape(16, 32, 64)
    w2 = jnp.pad(w2, ((0, 0), (0, CP - 32), (0, CP - 64))).astype(jnp.bfloat16)
    b2 = jnp.pad(params["conv2_b"], (0, CP - 64)).reshape(1, CP).astype(jnp.float32)

    # fc weight per spatial position: (16, Cin=64, Cout=10), padded to (16,128,128).
    wf = jnp.transpose(params["fc_w"], (2, 3, 1, 0)).reshape(16, 64, 10)
    wf = jnp.pad(wf, ((0, 0), (0, CP - 64), (0, CP - 10))).astype(jnp.bfloat16)
    bf = jnp.pad(params["fc_b"], (0, CP - 10)).reshape(1, CP).astype(jnp.float32)

    out = _fused_forward(p1, w1, b1, g2, w2, b2, wf, bf, n_tiles=n_tiles)
    return out[:B, :10]


_forward_jit = jax.jit(_forward_impl)


def conv_network_forward(params, x_nchw):
    """x_nchw: (B, 3, 16, 16) float32 -> logits (B, 10) float32."""
    return _forward_jit(params, x_nchw, _get_selection(TB))


# ----------------------------------------------------------------------------
# Params + pure-JAX (lax conv, f32) reference for the correctness check.
# ----------------------------------------------------------------------------
def init_params(key):
    k = jax.random.split(key, 6)
    scale = 0.05
    return {
        "conv1_w": scale * jax.random.normal(k[0], (32, 3, 4, 4), jnp.float32),
        "conv1_b": scale * jax.random.normal(k[1], (32,), jnp.float32),
        "conv2_w": scale * jax.random.normal(k[2], (64, 32, 4, 4), jnp.float32),
        "conv2_b": scale * jax.random.normal(k[3], (64,), jnp.float32),
        "fc_w":    scale * jax.random.normal(k[4], (10, 64, 4, 4), jnp.float32),
        "fc_b":    scale * jax.random.normal(k[5], (10,), jnp.float32),
    }


def _ref_conv(x_nchw, w, b, stride, padding):
    out = jax.lax.conv_general_dilated(
        x_nchw, w, window_strides=(stride, stride),
        padding=((padding, padding), (padding, padding)),
        dimension_numbers=("NCHW", "OIHW", "NCHW"))
    return out + b.reshape(1, -1, 1, 1)


def conv_network_ref(params, x_nchw):
    x = jax.nn.relu(_ref_conv(x_nchw, params["conv1_w"], params["conv1_b"], 2, 1))
    x = jax.nn.relu(_ref_conv(x, params["conv2_w"], params["conv2_b"], 2, 1))
    x = _ref_conv(x, params["fc_w"], params["fc_b"], 1, 0)
    return x.reshape(x.shape[0], -1)


if __name__ == "__main__":
    key = jax.random.PRNGKey(0)
    pkey, xkey = jax.random.split(key)
    params = init_params(pkey)

    # 16x16 RGB input so the final 4x4 fc conv sees exactly a 4x4 map.
    x = jax.random.normal(xkey, (2, 3, 16, 16), jnp.float32)

    out = jax.block_until_ready(conv_network_forward(params, x))
    assert out.shape == (2, 10), out.shape

    ref = jax.block_until_ready(conv_network_ref(params, x))
    max_err = float(jnp.max(jnp.abs(out - ref)))
    # bf16 matmul operands (f32 accumulation) vs. an all-f32 reference.
    assert max_err < 5e-2, f"max abs err {max_err}"

    print("KERNEL_OK")
</pallas_src>

<mosaic_0001>
module attributes {stable_mosaic.version = 11 : i64} {
  func.func @_fused_kernel(%arg0: i32, %arg1: memref<512x128xbf16, #tpu.memory_space<vmem>>, %arg2: memref<128x128xbf16, #tpu.memory_space<vmem>>, %arg3: memref<1x128xf32, #tpu.memory_space<vmem>>, %arg4: memref<16x128x512xbf16, #tpu.memory_space<vmem>>, %arg5: memref<16x128x128xbf16, #tpu.memory_space<vmem>>, %arg6: memref<1x128xf32, #tpu.memory_space<vmem>>, %arg7: memref<16x128x128xbf16, #tpu.memory_space<vmem>>, %arg8: memref<1x128xf32, #tpu.memory_space<vmem>>, %arg9: memref<8x128xf32, #tpu.memory_space<vmem>>, %arg10: memref<128x128xf32, #tpu.memory_space<vmem>>) attributes {dimension_semantics = [#tpu.dimension_semantics<parallel>], iteration_bounds = array<i64: 1>, scalar_prefetch = 0 : i64, scratch_operands = 1 : i64, tpu.core_type = #tpu.core_type<tc>, window_params = [{transform_indices = @transform_0, window_bounds = array<i64: 512, 128>}, {pipeline_mode = #tpu.pipeline_mode<synchronous>, transform_indices = @transform_1, window_bounds = array<i64: 128, 128>}, {pipeline_mode = #tpu.pipeline_mode<synchronous>, transform_indices = @transform_2, window_bounds = array<i64: 1, 128>}, {pipeline_mode = #tpu.pipeline_mode<synchronous>, transform_indices = @transform_3, window_bounds = array<i64: 16, 128, 512>}, {pipeline_mode = #tpu.pipeline_mode<synchronous>, transform_indices = @transform_4, window_bounds = array<i64: 16, 128, 128>}, {pipeline_mode = #tpu.pipeline_mode<synchronous>, transform_indices = @transform_5, window_bounds = array<i64: 1, 128>}, {pipeline_mode = #tpu.pipeline_mode<synchronous>, transform_indices = @transform_6, window_bounds = array<i64: 16, 128, 128>}, {pipeline_mode = #tpu.pipeline_mode<synchronous>, transform_indices = @transform_7, window_bounds = array<i64: 1, 128>}, {transform_indices = @transform_8, window_bounds = array<i64: 8, 128>}]} {
    %c0 = arith.constant 0 : index
    %c0_0 = arith.constant 0 : index
    %0 = vector.load %arg1[%c0, %c0_0] : memref<512x128xbf16, #tpu.memory_space<vmem>>, vector<512x128xbf16>
    %c0_1 = arith.constant 0 : index
    %c0_2 = arith.constant 0 : index
    %1 = vector.load %arg2[%c0_1, %c0_2] : memref<128x128xbf16, #tpu.memory_space<vmem>>, vector<128x128xbf16>
    %cst = arith.constant dense<0.000000e+00> : vector<512x128xf32>
    %2 = tpu.matmul %0, %1, %cst {dimension_numbers = #tpu.dot_dimension_numbers<[1], [0], [0], [1], [0, 0, 1, 1], [], []>} : vector<512x128xbf16>, vector<128x128xbf16>, vector<512x128xf32> -> vector<512x128xf32>
    %c0_3 = arith.constant 0 : index
    %c0_4 = arith.constant 0 : index
    %3 = vector.load %arg3[%c0_3, %c0_4] : memref<1x128xf32, #tpu.memory_space<vmem>>, vector<1x128xf32>
    %4 = vector.broadcast %3 : vector<1x128xf32> to vector<512x128xf32>
    %5 = arith.addf %2, %4 : vector<512x128xf32>
    %cst_5 = arith.constant 0.000000e+00 : f32
    %6 = vector.broadcast %cst_5 : f32 to vector<512x128xf32>
    %7 = arith.maximumf %5, %6 : vector<512x128xf32>
    %8 = arith.truncf %7 : vector<512x128xf32> to vector<512x128xbf16>
    %cst_6 = arith.constant 0.000000e+00 : f32
    %9 = vector.broadcast %cst_6 : f32 to vector<128x128xf32>
    %c0_7 = arith.constant 0 : index
    %c0_8 = arith.constant 0 : index
    %c0_9 = arith.constant 0 : index
    %10 = vector.load %arg4[%c0_7, %c0_8, %c0_9] : memref<16x128x512xbf16, #tpu.memory_space<vmem>>, vector<1x128x512xbf16>
    %11 = vector.shape_cast %10 : vector<1x128x512xbf16> to vector<128x512xbf16>
    %cst_10 = arith.constant dense<0.000000e+00> : vector<128x128xf32>
    %12 = tpu.matmul %11, %8, %cst_10 {dimension_numbers = #tpu.dot_dimension_numbers<[1], [0], [0], [1], [0, 0, 1, 1], [], []>} : vector<128x512xbf16>, vector<512x128xbf16>, vector<128x128xf32> -> vector<128x128xf32>
    %13 = arith.truncf %12 : vector<128x128xf32> to vector<128x128xbf16>
    %c0_11 = arith.constant 0 : index
    %c0_12 = arith.constant 0 : index
    %c0_13 = arith.constant 0 : index
    %14 = vector.load %arg5[%c0_11, %c0_12, %c0_13] : memref<16x128x128xbf16, #tpu.memory_space<vmem>>, vector<1x128x128xbf16>
    %15 = vector.shape_cast %14 : vector<1x128x128xbf16> to vector<128x128xbf16>
    %cst_14 = arith.constant dense<0.000000e+00> : vector<128x128xf32>
    %16 = tpu.matmul %13, %15, %cst_14 {dimension_numbers = #tpu.dot_dimension_numbers<[1], [0], [0], [1], [0, 0, 1, 1], [], []>} : vector<128x128xbf16>, vector<128x128xbf16>, vector<128x128xf32> -> vector<128x128xf32>
    %17 = arith.addf %9, %16 : vector<128x128xf32>
    %c1 = arith.constant 1 : index
    %c0_15 = arith.constant 0 : index
    %c0_16 = arith.constant 0 : index
    %18 = vector.load %arg4[%c1, %c0_15, %c0_16] : memref<16x128x512xbf16, #tpu.memory_space<vmem>>, vector<1x128x512xbf16>
    %19 = vector.shape_cast %18 : vector<1x128x512xbf16> to vector<128x512xbf16>
    %cst_17 = arith.constant dense<0.000000e+00> : vector<128x128xf32>
    %20 = tpu.matmul %19, %8, %cst_17 {dimension_numbers = #tpu.dot_dimension_numbers<[1], [0], [0], [1], [0, 0, 1, 1], [], []>} : vector<128x512xbf16>, vector<512x128xbf16>, vector<128x128xf32> -> vector<128x128xf32>
    %21 = arith.truncf %20 : vector<128x128xf32> to vector<128x128xbf16>
    %c1_18 = arith.constant 1 : index
    %c0_19 = arith.constant 0 : index
    %c0_20 = arith.constant 0 : index
    %22 = vector.load %arg5[%c1_18, %c0_19, %c0_20] : memref<16x128x128xbf16, #tpu.memory_space<vmem>>, vector<1x128x128xbf16>
    %23 = vector.shape_cast %22 : vector<1x128x128xbf16> to vector<128x128xbf16>
    %cst_21 = arith.constant dense<0.000000e+00> : vector<128x128xf32>
    %24 = tpu.matmul %21, %23, %cst_21 {dimension_numbers = #tpu.dot_dimension_numbers<[1], [0], [0], [1], [0, 0, 1, 1], [], []>} : vector<128x128xbf16>, vector<128x128xbf16>, vector<128x128xf32> -> vector<128x128xf32>
    %25 = arith.addf %17, %24 : vector<128x128xf32>
    %c2 = arith.constant 2 : index
    %c0_22 = arith.constant 0 : index
    %c0_23 = arith.constant 0 : index
    %26 = vector.load %arg4[%c2, %c0_22, %c0_23] : memref<16x128x512xbf16, #tpu.memory_space<vmem>>, vector<1x128x512xbf16>
    %27 = vector.shape_cast %26 : vector<1x128x512xbf16> to vector<128x512xbf16>
    %cst_24 = arith.constant dense<0.000000e+00> : vector<128x128xf32>
    %28 = tpu.matmul %27, %8, %cst_24 {dimension_numbers = #tpu.dot_dimension_numbers<[1], [0], [0], [1], [0, 0, 1, 1], [], []>} : vector<128x512xbf16>, vector<512x128xbf16>, vector<128x128xf32> -> vector<128x128xf32>
    %29 = arith.truncf %28 : vector<128x128xf32> to vector<128x128xbf16>
    %c2_25 = arith.constant 2 : index
    %c0_26 = arith.constant 0 : index
    %c0_27 = arith.constant 0 : index
    %30 = vector.load %arg5[%c2_25, %c0_26, %c0_27] : memref<16x128x128xbf16, #tpu.memory_space<vmem>>, vector<1x128x128xbf16>
    %31 = vector.shape_cast %30 : vector<1x128x128xbf16> to vector<128x128xbf16>
    %cst_28 = arith.constant dense<0.000000e+00> : vector<128x128xf32>
    %32 = tpu.matmul %29, %31, %cst_28 {dimension_numbers = #tpu.dot_dimension_numbers<[1], [0], [0], [1], [0, 0, 1, 1], [], []>} : vector<128x128xbf16>, vector<128x128xbf16>, vector<128x128xf32> -> vector<128x128xf32>
    %33 = arith.addf %25, %32 : vector<128x128xf32>
    %c3 = arith.constant 3 : index
    %c0_29 = arith.constant 0 : index
    %c0_30 = arith.constant 0 : index
    %34 = vector.load %arg4[%c3, %c0_29, %c0_30] : memref<16x128x512xbf16, #tpu.memory_space<vmem>>, vector<1x128x512xbf16>
    %35 = vector.shape_cast %34 : vector<1x128x512xbf16> to vector<128x512xbf16>
    %cst_31 = arith.constant dense<0.000000e+00> : vector<128x128xf32>
    %36 = tpu.matmul %35, %8, %cst_31 {dimension_numbers = #tpu.dot_dimension_numbers<[1], [0], [0], [1], [0, 0, 1, 1], [], []>} : vector<128x512xbf16>, vector<512x128xbf16>, vector<128x128xf32> -> vector<128x128xf32>
    %37 = arith.truncf %36 : vector<128x128xf32> to vector<128x128xbf16>
    %c3_32 = arith.constant 3 : index
    %c0_33 = arith.constant 0 : index
    %c0_34 = arith.constant 0 : index
    %38 = vector.load %arg5[%c3_32, %c0_33, %c0_34] : memref<16x128x128xbf16, #tpu.memory_space<vmem>>, vector<1x128x128xbf16>
    %39 = vector.shape_cast %38 : vector<1x128x128xbf16> to vector<128x128xbf16>
    %cst_35 = arith.constant dense<0.000000e+00> : vector<128x128xf32>
    %40 = tpu.matmul %37, %39, %cst_35 {dimension_numbers = #tpu.dot_dimension_numbers<[1], [0], [0], [1], [0, 0, 1, 1], [], []>} : vector<128x128xbf16>, vector<128x128xbf16>, vector<128x128xf32> -> vector<128x128xf32>
    %41 = arith.addf %33, %40 : vector<128x128xf32>
    %c4 = arith.constant 4 : index
    %c0_36 = arith.constant 0 : index
    %c0_37 = arith.constant 0 : index
    %42 = vector.load %arg4[%c4, %c0_36, %c0_37] : memref<16x128x512xbf16, #tpu.memory_space<vmem>>, vector<1x128x512xbf16>
    %43 = vector.shape_cast %42 : vector<1x128x512xbf16> to vector<128x512xbf16>
    %cst_38 = arith.constant dense<0.000000e+00> : vector<128x128xf32>
    %44 = tpu.matmul %43, %8, %cst_38 {dimension_numbers = #tpu.dot_dimension_numbers<[1], [0], [0], [1], [0, 0, 1, 1], [], []>} : vector<128x512xbf16>, vector<512x128xbf16>, vector<128x128xf32> -> vector<128x128xf32>
    %45 = arith.truncf %44 : vector<128x128xf32> to vector<128x128xbf16>
    %c4_39 = arith.constant 4 : index
    %c0_40 = arith.constant 0 : index
    %c0_41 = arith.constant 0 : index
    %46 = vector.load %arg5[%c4_39, %c0_40, %c0_41] : memref<16x128x128xbf16, #tpu.memory_space<vmem>>, vector<1x128x128xbf16>
    %47 = vector.shape_cast %46 : vector<1x128x128xbf16> to vector<128x128xbf16>
    %cst_42 = arith.constant dense<0.000000e+00> : vector<128x128xf32>
    %48 = tpu.matmul %45, %47, %cst_42 {dimension_numbers = #tpu.dot_dimension_numbers<[1], [0], [0], [1], [0, 0, 1, 1], [], []>} : vector<128x128xbf16>, vector<128x128xbf16>, vector<128x128xf32> -> vector<128x128xf32>
    %49 = arith.addf %41, %48 : vector<128x128xf32>
    %c5 = arith.constant 5 : index
    %c0_43 = arith.constant 0 : index
    %c0_44 = arith.constant 0 : index
    %50 = vector.load %arg4[%c5, %c0_43, %c0_44] : memref<16x128x512xbf16, #tpu.memory_space<vmem>>, vector<1x128x512xbf16>
    %51 = vector.shape_cast %50 : vector<1x128x512xbf16> to vector<128x512xbf16>
    %cst_45 = arith.constant dense<0.000000e+00> : vector<128x128xf32>
    %52 = tpu.matmul %51, %8, %cst_45 {dimension_numbers = #tpu.dot_dimension_numbers<[1], [0], [0], [1], [0, 0, 1, 1], [], []>} : vector<128x512xbf16>, vector<512x128xbf16>, vector<128x128xf32> -> vector<128x128xf32>
    %53 = arith.truncf %52 : vector<128x128xf32> to vector<128x128xbf16>
    %c5_46 = arith.constant 5 : index
    %c0_47 = arith.constant 0 : index
    %c0_48 = arith.constant 0 : index
    %54 = vector.load %arg5[%c5_46, %c0_47, %c0_48] : memref<16x128x128xbf16, #tpu.memory_space<vmem>>, vector<1x128x128xbf16>
    %55 = vector.shape_cast %54 : vector<1x128x128xbf16> to vector<128x128xbf16>
    %cst_49 = arith.constant dense<0.000000e+00> : vector<128x128xf32>
    %56 = tpu.matmul %53, %55, %cst_49 {dimension_numbers = #tpu.dot_dimension_numbers<[1], [0], [0], [1], [0, 0, 1, 1], [], []>} : vector<128x128xbf16>, vector<128x128xbf16>, vector<128x128xf32> -> vector<128x128xf32>
    %57 = arith.addf %49, %56 : vector<128x128xf32>
    %c6 = arith.constant 6 : index
    %c0_50 = arith.constant 0 : index
    %c0_51 = arith.constant 0 : index
    %58 = vector.load %arg4[%c6, %c0_50, %c0_51] : memref<16x128x512xbf16, #tpu.memory_space<vmem>>, vector<1x128x512xbf16>
    %59 = vector.shape_cast %58 : vector<1x128x512xbf16> to vector<128x512xbf16>
    %cst_52 = arith.constant dense<0.000000e+00> : vector<128x128xf32>
    %60 = tpu.matmul %59, %8, %cst_52 {dimension_numbers = #tpu.dot_dimension_numbers<[1], [0], [0], [1], [0, 0, 1, 1], [], []>} : vector<128x512xbf16>, vector<512x128xbf16>, vector<128x128xf32> -> vector<128x128xf32>
    %61 = arith.truncf %60 : vector<128x128xf32> to vector<128x128xbf16>
    %c6_53 = arith.constant 6 : index
    %c0_54 = arith.constant 0 : index
    %c0_55 = arith.constant 0 : index
    %62 = vector.load %arg5[%c6_53, %c0_54, %c0_55] : memref<16x128x128xbf16, #tpu.memory_space<vmem>>, vector<1x128x128xbf16>
    %63 = vector.shape_cast %62 : vector<1x128x128xbf16> to vector<128x128xbf16>
    %cst_56 = arith.constant dense<0.000000e+00> : vector<128x128xf32>
    %64 = tpu.matmul %61, %63, %cst_56 {dimension_numbers = #tpu.dot_dimension_numbers<[1], [0], [0], [1], [0, 0, 1, 1], [], []>} : vector<128x128xbf16>, vector<128x128xbf16>, vector<128x128xf32> -> vector<128x128xf32>
    %65 = arith.addf %57, %64 : vector<128x128xf32>
    %c7 = arith.constant 7 : index
    %c0_57 = arith.constant 0 : index
    %c0_58 = arith.constant 0 : index
    %66 = vector.load %arg4[%c7, %c0_57, %c0_58] : memref<16x128x512xbf16, #tpu.memory_space<vmem>>, vector<1x128x512xbf16>
    %67 = vector.shape_cast %66 : vector<1x128x512xbf16> to vector<128x512xbf16>
    %cst_59 = arith.constant dense<0.000000e+00> : vector<128x128xf32>
    %68 = tpu.matmul %67, %8, %cst_59 {dimension_numbers = #tpu.dot_dimension_numbers<[1], [0], [0], [1], [0, 0, 1, 1], [], []>} : vector<128x512xbf16>, vector<512x128xbf16>, vector<128x128xf32> -> vector<128x128xf32>
    %69 = arith.truncf %68 : vector<128x128xf32> to vector<128x128xbf16>
    %c7_60 = arith.constant 7 : index
    %c0_61 = arith.constant 0 : index
    %c0_62 = arith.constant 0 : index
    %70 = vector.load %arg5[%c7_60, %c0_61, %c0_62] : memref<16x128x128xbf16, #tpu.memory_space<vmem>>, vector<1x128x128xbf16>
    %71 = vector.shape_cast %70 : vector<1x128x128xbf16> to vector<128x128xbf16>
    %cst_63 = arith.constant dense<0.000000e+00> : vector<128x128xf32>
    %72 = tpu.matmul %69, %71, %cst_63 {dimension_numbers = #tpu.dot_dimension_numbers<[1], [0], [0], [1], [0, 0, 1, 1], [], []>} : vector<128x128xbf16>, vector<128x128xbf16>, vector<128x128xf32> -> vector<128x128xf32>
    %73 = arith.addf %65, %72 : vector<128x128xf32>
    %c8 = arith.constant 8 : index
    %c0_64 = arith.constant 0 : index
    %c0_65 = arith.constant 0 : index
    %74 = vector.load %arg4[%c8, %c0_64, %c0_65] : memref<16x128x512xbf16, #tpu.memory_space<vmem>>, vector<1x128x512xbf16>
    %75 = vector.shape_cast %74 : vector<1x128x512xbf16> to vector<128x512xbf16>
    %cst_66 = arith.constant dense<0.000000e+00> : vector<128x128xf32>
    %76 = tpu.matmul %75, %8, %cst_66 {dimension_numbers = #tpu.dot_dimension_numbers<[1], [0], [0], [1], [0, 0, 1, 1], [], []>} : vector<128x512xbf16>, vector<512x128xbf16>, vector<128x128xf32> -> vector<128x128xf32>
    %77 = arith.truncf %76 : vector<128x128xf32> to vector<128x128xbf16>
    %c8_67 = arith.constant 8 : index
    %c0_68 = arith.constant 0 : index
    %c0_69 = arith.constant 0 : index
    %78 = vector.load %arg5[%c8_67, %c0_68, %c0_69] : memref<16x128x128xbf16, #tpu.memory_space<vmem>>, vector<1x128x128xbf16>
    %79 = vector.shape_cast %78 : vector<1x128x128xbf16> to vector<128x128xbf16>
    %cst_70 = arith.constant dense<0.000000e+00> : vector<128x128xf32>
    %80 = tpu.matmul %77, %79, %cst_70 {dimension_numbers = #tpu.dot_dimension_numbers<[1], [0], [0], [1], [0, 0, 1, 1], [], []>} : vector<128x128xbf16>, vector<128x128xbf16>, vector<128x128xf32> -> vector<128x128xf32>
    %81 = arith.addf %73, %80 : vector<128x128xf32>
    %c9 = arith.constant 9 : index
    %c0_71 = arith.constant 0 : index
    %c0_72 = arith.constant 0 : index
    %82 = vector.load %arg4[%c9, %c0_71, %c0_72] : memref<16x128x512xbf16, #tpu.memory_space<vmem>>, vector<1x128x512xbf16>
    %83 = vector.shape_cast %82 : vector<1x128x512xbf16> to vector<128x512xbf16>
    %cst_73 = arith.constant dense<0.000000e+00> : vector<128x128xf32>
    %84 = tpu.matmul %83, %8, %cst_73 {dimension_numbers = #tpu.dot_dimension_numbers<[1], [0], [0], [1], [0, 0, 1, 1], [], []>} : vector<128x512xbf16>, vector<512x128xbf16>, vector<128x128xf32> -> vector<128x128xf32>
    %85 = arith.truncf %84 : vector<128x128xf32> to vector<128x128xbf16>
    %c9_74 = arith.constant 9 : index
    %c0_75 = arith.constant 0 : index
    %c0_76 = arith.constant 0 : index
    %86 = vector.load %arg5[%c9_74, %c0_75, %c0_76] : memref<16x128x128xbf16, #tpu.memory_space<vmem>>, vector<1x128x128xbf16>
    %87 = vector.shape_cast %86 : vector<1x128x128xbf16> to vector<128x128xbf16>
    %cst_77 = arith.constant dense<0.000000e+00> : vector<128x128xf32>
    %88 = tpu.matmul %85, %87, %cst_77 {dimension_numbers = #tpu.dot_dimension_numbers<[1], [0], [0], [1], [0, 0, 1, 1], [], []>} : vector<128x128xbf16>, vector<128x128xbf16>, vector<128x128xf32> -> vector<128x128xf32>
    %89 = arith.addf %81, %88 : vector<128x128xf32>
    %c10 = arith.constant 10 : index
    %c0_78 = arith.constant 0 : index
    %c0_79 = arith.constant 0 : index
    %90 = vector.load %arg4[%c10, %c0_78, %c0_79] : memref<16x128x512xbf16, #tpu.memory_space<vmem>>, vector<1x128x512xbf16>
    %91 = vector.shape_cast %90 : vector<1x128x512xbf16> to vector<128x512xbf16>
    %cst_80 = arith.constant dense<0.000000e+00> : vector<128x128xf32>
    %92 = tpu.matmul %91, %8, %cst_80 {dimension_numbers = #tpu.dot_dimension_numbers<[1], [0], [0], [1], [0, 0, 1, 1], [], []>} : vector<128x512xbf16>, vector<512x128xbf16>, vector<128x128xf32> -> vector<128x128xf32>
    %93 = arith.truncf %92 : vector<128x128xf32> to vector<128x128xbf16>
    %c10_81 = arith.constant 10 : index
    %c0_82 = arith.constant 0 : index
    %c0_83 = arith.constant 0 : index
    %94 = vector.load %arg5[%c10_81, %c0_82, %c0_83] : memref<16x128x128xbf16, #tpu.memory_space<vmem>>, vector<1x128x128xbf16>
    %95 = vector.shape_cast %94 : vector<1x128x128xbf16> to vector<128x128xbf16>
    %cst_84 = arith.constant dense<0.000000e+00> : vector<128x128xf32>
    %96 = tpu.matmul %93, %95, %cst_84 {dimension_numbers = #tpu.dot_dimension_numbers<[1], [0], [0], [1], [0, 0, 1, 1], [], []>} : vector<128x128xbf16>, vector<128x128xbf16>, vector<128x128xf32> -> vector<128x128xf32>
    %97 = arith.addf %89, %96 : vector<128x128xf32>
    %c11 = arith.constant 11 : index
    %c0_85 = arith.constant 0 : index
    %c0_86 = arith.constant 0 : index
    %98 = vector.load %arg4[%c11, %c0_85, %c0_86] : memref<16x128x512xbf16, #tpu.memory_space<vmem>>, vector<1x128x512xbf16>
    %99 = vector.shape_cast %98 : vector<1x128x512xbf16> to vector<128x512xbf16>
    %cst_87 = arith.constant dense<0.000000e+00> : vector<128x128xf32>
    %100 = tpu.matmul %99, %8, %cst_87 {dimension_numbers = #tpu.dot_dimension_numbers<[1], [0], [0], [1], [0, 0, 1, 1], [], []>} : vector<128x512xbf16>, vector<512x128xbf16>, vector<128x128xf32> -> vector<128x128xf32>
    %101 = arith.truncf %100 : vector<128x128xf32> to vector<128x128xbf16>
    %c11_88 = arith.constant 11 : index
    %c0_89 = arith.constant 0 : index
    %c0_90 = arith.constant 0 : index
    %102 = vector.load %arg5[%c11_88, %c0_89, %c0_90] : memref<16x128x128xbf16, #tpu.memory_space<vmem>>, vector<1x128x128xbf16>
    %103 = vector.shape_cast %102 : vector<1x128x128xbf16> to vector<128x128xbf16>
    %cst_91 = arith.constant dense<0.000000e+00> : vector<128x128xf32>
    %104 = tpu.matmul %101, %103, %cst_91 {dimension_numbers = #tpu.dot_dimension_numbers<[1], [0], [0], [1], [0, 0, 1, 1], [], []>} : vector<128x128xbf16>, vector<128x128xbf16>, vector<128x128xf32> -> vector<128x128xf32>
    %105 = arith.addf %97, %104 : vector<128x128xf32>
    %c12 = arith.constant 12 : index
    %c0_92 = arith.constant 0 : index
    %c0_93 = arith.constant 0 : index
    %106 = vector.load %arg4[%c12, %c0_92, %c0_93] : memref<16x128x512xbf16, #tpu.memory_space<vmem>>, vector<1x128x512xbf16>
    %107 = vector.shape_cast %106 : vector<1x128x512xbf16> to vector<128x512xbf16>
    %cst_94 = arith.constant dense<0.000000e+00> : vector<128x128xf32>
    %108 = tpu.matmul %107, %8, %cst_94 {dimension_numbers = #tpu.dot_dimension_numbers<[1], [0], [0], [1], [0, 0, 1, 1], [], []>} : vector<128x512xbf16>, vector<512x128xbf16>, vector<128x128xf32> -> vector<128x128xf32>
    %109 = arith.truncf %108 : vector<128x128xf32> to vector<128x128xbf16>
    %c12_95 = arith.constant 12 : index
    %c0_96 = arith.constant 0 : index
    %c0_97 = arith.constant 0 : index
    %110 = vector.load %arg5[%c12_95, %c0_96, %c0_97] : memref<16x128x128xbf16, #tpu.memory_space<vmem>>, vector<1x128x128xbf16>
    %111 = vector.shape_cast %110 : vector<1x128x128xbf16> to vector<128x128xbf16>
    %cst_98 = arith.constant dense<0.000000e+00> : vector<128x128xf32>
    %112 = tpu.matmul %109, %111, %cst_98 {dimension_numbers = #tpu.dot_dimension_numbers<[1], [0], [0], [1], [0, 0, 1, 1], [], []>} : vector<128x128xbf16>, vector<128x128xbf16>, vector<128x128xf32> -> vector<128x128xf32>
    %113 = arith.addf %105, %112 : vector<128x128xf32>
    %c13 = arith.constant 13 : index
    %c0_99 = arith.constant 0 : index
    %c0_100 = arith.constant 0 : index
    %114 = vector.load %arg4[%c13, %c0_99, %c0_100] : memref<16x128x512xbf16, #tpu.memory_space<vmem>>, vector<1x128x512xbf16>
    %115 = vector.shape_cast %114 : vector<1x128x512xbf16> to vector<128x512xbf16>
    %cst_101 = arith.constant dense<0.000000e+00> : vector<128x128xf32>
    %116 = tpu.matmul %115, %8, %cst_101 {dimension_numbers = #tpu.dot_dimension_numbers<[1], [0], [0], [1], [0, 0, 1, 1], [], []>} : vector<128x512xbf16>, vector<512x128xbf16>, vector<128x128xf32> -> vector<128x128xf32>
    %117 = arith.truncf %116 : vector<128x128xf32> to vector<128x128xbf16>
    %c13_102 = arith.constant 13 : index
    %c0_103 = arith.constant 0 : index
    %c0_104 = arith.constant 0 : index
    %118 = vector.load %arg5[%c13_102, %c0_103, %c0_104] : memref<16x128x128xbf16, #tpu.memory_space<vmem>>, vector<1x128x128xbf16>
    %119 = vector.shape_cast %118 : vector<1x128x128xbf16> to vector<128x128xbf16>
    %cst_105 = arith.constant dense<0.000000e+00> : vector<128x128xf32>
    %120 = tpu.matmul %117, %119, %cst_105 {dimension_numbers = #tpu.dot_dimension_numbers<[1], [0], [0], [1], [0, 0, 1, 1], [], []>} : vector<128x128xbf16>, vector<128x128xbf16>, vector<128x128xf32> -> vector<128x128xf32>
    %121 = arith.addf %113, %120 : vector<128x128xf32>
    %c14 = arith.constant 14 : index
    %c0_106 = arith.constant 0 : index
    %c0_107 = arith.constant 0 : index
    %122 = vector.load %arg4[%c14, %c0_106, %c0_107] : memref<16x128x512xbf16, #tpu.memory_space<vmem>>, vector<1x128x512xbf16>
    %123 = vector.shape_cast %122 : vector<1x128x512xbf16> to vector<128x512xbf16>
    %cst_108 = arith.constant dense<0.000000e+00> : vector<128x128xf32>
    %124 = tpu.matmul %123, %8, %cst_108 {dimension_numbers = #tpu.dot_dimension_numbers<[1], [0], [0], [1], [0, 0, 1, 1], [], []>} : vector<128x512xbf16>, vector<512x128xbf16>, vector<128x128xf32> -> vector<128x128xf32>
    %125 = arith.truncf %124 : vector<128x128xf32> to vector<128x128xbf16>
    %c14_109 = arith.constant 14 : index
    %c0_110 = arith.constant 0 : index
    %c0_111 = arith.constant 0 : index
    %126 = vector.load %arg5[%c14_109, %c0_110, %c0_111] : memref<16x128x128xbf16, #tpu.memory_space<vmem>>, vector<1x128x128xbf16>
    %127 = vector.shape_cast %126 : vector<1x128x128xbf16> to vector<128x128xbf16>
    %cst_112 = arith.constant dense<0.000000e+00> : vector<128x128xf32>
    %128 = tpu.matmul %125, %127, %cst_112 {dimension_numbers = #tpu.dot_dimension_numbers<[1], [0], [0], [1], [0, 0, 1, 1], [], []>} : vector<128x128xbf16>, vector<128x128xbf16>, vector<128x128xf32> -> vector<128x128xf32>
    %129 = arith.addf %121, %128 : vector<128x128xf32>
    %c15 = arith.constant 15 : index
    %c0_113 = arith.constant 0 : index
    %c0_114 = arith.constant 0 : index
    %130 = vector.load %arg4[%c15, %c0_113, %c0_114] : memref<16x128x512xbf16, #tpu.memory_space<vmem>>, vector<1x128x512xbf16>
    %131 = vector.shape_cast %130 : vector<1x128x512xbf16> to vector<128x512xbf16>
    %cst_115 = arith.constant dense<0.000000e+00> : vector<128x128xf32>
    %132 = tpu.matmul %131, %8, %cst_115 {dimension_numbers = #tpu.dot_dimension_numbers<[1], [0], [0], [1], [0, 0, 1, 1], [], []>} : vector<128x512xbf16>, vector<512x128xbf16>, vector<128x128xf32> -> vector<128x128xf32>
    %133 = arith.truncf %132 : vector<128x128xf32> to vector<128x128xbf16>
    %c15_116 = arith.constant 15 : index
    %c0_117 = arith.constant 0 : index
    %c0_118 = arith.constant 0 : index
    %134 = vector.load %arg5[%c15_116, %c0_117, %c0_118] : memref<16x128x128xbf16, #tpu.memory_space<vmem>>, vector<1x128x128xbf16>
    %135 = vector.shape_cast %134 : vector<1x128x128xbf16> to vector<128x128xbf16>
    %cst_119 = arith.constant dense<0.000000e+00> : vector<128x128xf32>
    %136 = tpu.matmul %133, %135, %cst_119 {dimension_numbers = #tpu.dot_dimension_numbers<[1], [0], [0], [1], [0, 0, 1, 1], [], []>} : vector<128x128xbf16>, vector<128x128xbf16>, vector<128x128xf32> -> vector<128x128xf32>
    %137 = arith.addf %129, %136 : vector<128x128xf32>
    %c0_120 = arith.constant 0 : index
    %c0_121 = arith.constant 0 : index
    %138 = vector.load %arg6[%c0_120, %c0_121] : memref<1x128xf32, #tpu.memory_space<vmem>>, vector<1x128xf32>
    %139 = vector.broadcast %138 : vector<1x128xf32> to vector<128x128xf32>
    %140 = arith.addf %137, %139 : vector<128x128xf32>
    %cst_122 = arith.constant 0.000000e+00 : f32
    %141 = vector.broadcast %cst_122 : f32 to vector<128x128xf32>
    %142 = arith.maximumf %140, %141 : vector<128x128xf32>
    %c0_123 = arith.constant 0 : index
    %c0_124 = arith.constant 0 : index
    %143 = vector.load %arg10[%c0_123, %c0_124] : memref<128x128xf32, #tpu.memory_space<vmem>>, vector<128x128xf32>
    tpu.vector_store %arg10[%c0_123, %c0_124], %142 {strides = array<i32>} : memref<128x128xf32, #tpu.memory_space<vmem>>, vector<128x128xf32>,
    %cst_125 = arith.constant 0.000000e+00 : f32
    %144 = vector.broadcast %cst_125 : f32 to vector<8x128xf32>
    %c0_126 = arith.constant 0 : index
    %c0_127 = arith.constant 0 : index
    %145 = vector.load %arg10[%c0_126, %c0_127] : memref<128x128xf32, #tpu.memory_space<vmem>>, vector<8x128xf32>
    %146 = arith.truncf %145 : vector<8x128xf32> to vector<8x128xbf16>
    %c0_128 = arith.constant 0 : index
    %c0_129 = arith.constant 0 : index
    %c0_130 = arith.constant 0 : index
    %147 = vector.load %arg7[%c0_128, %c0_129, %c0_130] : memref<16x128x128xbf16, #tpu.memory_space<vmem>>, vector<1x128x128xbf16>
    %148 = vector.shape_cast %147 : vector<1x128x128xbf16> to vector<128x128xbf16>
    %cst_131 = arith.constant dense<0.000000e+00> : vector<8x128xf32>
    %149 = tpu.matmul %146, %148, %cst_131 {dimension_numbers = #tpu.dot_dimension_numbers<[1], [0], [0], [1], [0, 0, 1, 1], [], []>} : vector<8x128xbf16>, vector<128x128xbf16>, vector<8x128xf32> -> vector<8x128xf32>
    %150 = arith.addf %144, %149 : vector<8x128xf32>
    %c8_132 = arith.constant 8 : index
    %c0_133 = arith.constant 0 : index
    %151 = vector.load %arg10[%c8_132, %c0_133] : memref<128x128xf32, #tpu.memory_space<vmem>>, vector<8x128xf32>
    %152 = arith.truncf %151 : vector<8x128xf32> to vector<8x128xbf16>
    %c1_134 = arith.constant 1 : index
    %c0_135 = arith.constant 0 : index
    %c0_136 = arith.constant 0 : index
    %153 = vector.load %arg7[%c1_134, %c0_135, %c0_136] : memref<16x128x128xbf16, #tpu.memory_space<vmem>>, vector<1x128x128xbf16>
    %154 = vector.shape_cast %153 : vector<1x128x128xbf16> to vector<128x128xbf16>
    %cst_137 = arith.constant dense<0.000000e+00> : vector<8x128xf32>
    %155 = tpu.matmul %152, %154, %cst_137 {dimension_numbers = #tpu.dot_dimension_numbers<[1], [0], [0], [1], [0, 0, 1, 1], [], []>} : vector<8x128xbf16>, vector<128x128xbf16>, vector<8x128xf32> -> vector<8x128xf32>
    %156 = arith.addf %150, %155 : vector<8x128xf32>
    %c16 = arith.constant 16 : index
    %c0_138 = arith.constant 0 : index
    %157 = vector.load %arg10[%c16, %c0_138] : memref<128x128xf32, #tpu.memory_space<vmem>>, vector<8x128xf32>
    %158 = arith.truncf %157 : vector<8x128xf32> to vector<8x128xbf16>
    %c2_139 = arith.constant 2 : index
    %c0_140 = arith.constant 0 : index
    %c0_141 = arith.constant 0 : index
    %159 = vector.load %arg7[%c2_139, %c0_140, %c0_141] : memref<16x128x128xbf16, #tpu.memory_space<vmem>>, vector<1x128x128xbf16>
    %160 = vector.shape_cast %159 : vector<1x128x128xbf16> to vector<128x128xbf16>
    %cst_142 = arith.constant dense<0.000000e+00> : vector<8x128xf32>
    %161 = tpu.matmul %158, %160, %cst_142 {dimension_numbers = #tpu.dot_dimension_numbers<[1], [0], [0], [1], [0, 0, 1, 1], [], []>} : vector<8x128xbf16>, vector<128x128xbf16>, vector<8x128xf32> -> vector<8x128xf32>
    %162 = arith.addf %156, %161 : vector<8x128xf32>
    %c24 = arith.constant 24 : index
    %c0_143 = arith.constant 0 : index
    %163 = vector.load %arg10[%c24, %c0_143] : memref<128x128xf32, #tpu.memory_space<vmem>>, vector<8x128xf32>
    %164 = arith.truncf %163 : vector<8x128xf32> to vector<8x128xbf16>
    %c3_144 = arith.constant 3 : index
    %c0_145 = arith.constant 0 : index
    %c0_146 = arith.constant 0 : index
    %165 = vector.load %arg7[%c3_144, %c0_145, %c0_146] : memref<16x128x128xbf16, #tpu.memory_space<vmem>>, vector<1x128x128xbf16>
    %166 = vector.shape_cast %165 : vector<1x128x128xbf16> to vector<128x128xbf16>
    %cst_147 = arith.constant dense<0.000000e+00> : vector<8x128xf32>
    %167 = tpu.matmul %164, %166, %cst_147 {dimension_numbers = #tpu.dot_dimension_numbers<[1], [0], [0], [1], [0, 0, 1, 1], [], []>} : vector<8x128xbf16>, vector<128x128xbf16>, vector<8x128xf32> -> vector<8x128xf32>
    %168 = arith.addf %162, %167 : vector<8x128xf32>
    %c32 = arith.constant 32 : index
    %c0_148 = arith.constant 0 : index
    %169 = vector.load %arg10[%c32, %c0_148] : memref<128x128xf32, #tpu.memory_space<vmem>>, vector<8x128xf32>
    %170 = arith.truncf %169 : vector<8x128xf32> to vector<8x128xbf16>
    %c4_149 = arith.constant 4 : index
    %c0_150 = arith.constant 0 : index
    %c0_151 = arith.constant 0 : index
    %171 = vector.load %arg7[%c4_149, %c0_150, %c0_151] : memref<16x128x128xbf16, #tpu.memory_space<vmem>>, vector<1x128x128xbf16>
    %172 = vector.shape_cast %171 : vector<1x128x128xbf16> to vector<128x128xbf16>
    %cst_152 = arith.constant dense<0.000000e+00> : vector<8x128xf32>
    %173 = tpu.matmul %170, %172, %cst_152 {dimension_numbers = #tpu.dot_dimension_numbers<[1], [0], [0], [1], [0, 0, 1, 1], [], []>} : vector<8x128xbf16>, vector<128x128xbf16>, vector<8x128xf32> -> vector<8x128xf32>
    %174 = arith.addf %168, %173 : vector<8x128xf32>
    %c40 = arith.constant 40 : index
    %c0_153 = arith.constant 0 : index
    %175 = vector.load %arg10[%c40, %c0_153] : memref<128x128xf32, #tpu.memory_space<vmem>>, vector<8x128xf32>
    %176 = arith.truncf %175 : vector<8x128xf32> to vector<8x128xbf16>
    %c5_154 = arith.constant 5 : index
    %c0_155 = arith.constant 0 : index
    %c0_156 = arith.constant 0 : index
    %177 = vector.load %arg7[%c5_154, %c0_155, %c0_156] : memref<16x128x128xbf16, #tpu.memory_space<vmem>>, vector<1x128x128xbf16>
    %178 = vector.shape_cast %177 : vector<1x128x128xbf16> to vector<128x128xbf16>
    %cst_157 = arith.constant dense<0.000000e+00> : vector<8x128xf32>
    %179 = tpu.matmul %176, %178, %cst_157 {dimension_numbers = #tpu.dot_dimension_numbers<[1], [0], [0], [1], [0, 0, 1, 1], [], []>} : vector<8x128xbf16>, vector<128x128xbf16>, vector<8x128xf32> -> vector<8x128xf32>
    %180 = arith.addf %174, %179 : vector<8x128xf32>
    %c48 = arith.constant 48 : index
    %c0_158 = arith.constant 0 : index
    %181 = vector.load %arg10[%c48, %c0_158] : memref<128x128xf32, #tpu.memory_space<vmem>>, vector<8x128xf32>
    %182 = arith.truncf %181 : vector<8x128xf32> to vector<8x128xbf16>
    %c6_159 = arith.constant 6 : index
    %c0_160 = arith.constant 0 : index
    %c0_161 = arith.constant 0 : index
    %183 = vector.load %arg7[%c6_159, %c0_160, %c0_161] : memref<16x128x128xbf16, #tpu.memory_space<vmem>>, vector<1x128x128xbf16>
    %184 = vector.shape_cast %183 : vector<1x128x128xbf16> to vector<128x128xbf16>
    %cst_162 = arith.constant dense<0.000000e+00> : vector<8x128xf32>
    %185 = tpu.matmul %182, %184, %cst_162 {dimension_numbers = #tpu.dot_dimension_numbers<[1], [0], [0], [1], [0, 0, 1, 1], [], []>} : vector<8x128xbf16>, vector<128x128xbf16>, vector<8x128xf32> -> vector<8x128xf32>
    %186 = arith.addf %180, %185 : vector<8x128xf32>
    %c56 = arith.constant 56 : index
    %c0_163 = arith.constant 0 : index
    %187 = vector.load %arg10[%c56, %c0_163] : memref<128x128xf32, #tpu.memory_space<vmem>>, vector<8x128xf32>
    %188 = arith.truncf %187 : vector<8x128xf32> to vector<8x128xbf16>
    %c7_164 = arith.constant 7 : index
    %c0_165 = arith.constant 0 : index
    %c0_166 = arith.constant 0 : index
    %189 = vector.load %arg7[%c7_164, %c0_165, %c0_166] : memref<16x128x128xbf16, #tpu.memory_space<vmem>>, vector<1x128x128xbf16>
    %190 = vector.shape_cast %189 : vector<1x128x128xbf16> to vector<128x128xbf16>
    %cst_167 = arith.constant dense<0.000000e+00> : vector<8x128xf32>
    %191 = tpu.matmul %188, %190, %cst_167 {dimension_numbers = #tpu.dot_dimension_numbers<[1], [0], [0], [1], [0, 0, 1, 1], [], []>} : vector<8x128xbf16>, vector<128x128xbf16>, vector<8x128xf32> -> vector<8x128xf32>
    %192 = arith.addf %186, %191 : vector<8x128xf32>
    %c64 = arith.constant 64 : index
    %c0_168 = arith.constant 0 : index
    %193 = vector.load %arg10[%c64, %c0_168] : memref<128x128xf32, #tpu.memory_space<vmem>>, vector<8x128xf32>
    %194 = arith.truncf %193 : vector<8x128xf32> to vector<8x128xbf16>
    %c8_169 = arith.constant 8 : index
    %c0_170 = arith.constant 0 : index
    %c0_171 = arith.constant 0 : index
    %195 = vector.load %arg7[%c8_169, %c0_170, %c0_171] : memref<16x128x128xbf16, #tpu.memory_space<vmem>>, vector<1x128x128xbf16>
    %196 = vector.shape_cast %195 : vector<1x128x128xbf16> to vector<128x128xbf16>
    %cst_172 = arith.constant dense<0.000000e+00> : vector<8x128xf32>
    %197 = tpu.matmul %194, %196, %cst_172 {dimension_numbers = #tpu.dot_dimension_numbers<[1], [0], [0], [1], [0, 0, 1, 1], [], []>} : vector<8x128xbf16>, vector<128x128xbf16>, vector<8x128xf32> -> vector<8x128xf32>
    %198 = arith.addf %192, %197 : vector<8x128xf32>
    %c72 = arith.constant 72 : index
    %c0_173 = arith.constant 0 : index
    %199 = vector.load %arg10[%c72, %c0_173] : memref<128x128xf32, #tpu.memory_space<vmem>>, vector<8x128xf32>
    %200 = arith.truncf %199 : vector<8x128xf32> to vector<8x128xbf16>
    %c9_174 = arith.constant 9 : index
    %c0_175 = arith.constant 0 : index
    %c0_176 = arith.constant 0 : index
    %201 = vector.load %arg7[%c9_174, %c0_175, %c0_176] : memref<16x128x128xbf16, #tpu.memory_space<vmem>>, vector<1x128x128xbf16>
    %202 = vector.shape_cast %201 : vector<1x128x128xbf16> to vector<128x128xbf16>
    %cst_177 = arith.constant dense<0.000000e+00> : vector<8x128xf32>
    %203 = tpu.matmul %200, %202, %cst_177 {dimension_numbers = #tpu.dot_dimension_numbers<[1], [0], [0], [1], [0, 0, 1, 1], [], []>} : vector<8x128xbf16>, vector<128x128xbf16>, vector<8x128xf32> -> vector<8x128xf32>
    %204 = arith.addf %198, %203 : vector<8x128xf32>
    %c80 = arith.constant 80 : index
    %c0_178 = arith.constant 0 : index
    %205 = vector.load %arg10[%c80, %c0_178] : memref<128x128xf32, #tpu.memory_space<vmem>>, vector<8x128xf32>
    %206 = arith.truncf %205 : vector<8x128xf32> to vector<8x128xbf16>
    %c10_179 = arith.constant 10 : index
    %c0_180 = arith.constant 0 : index
    %c0_181 = arith.constant 0 : index
    %207 = vector.load %arg7[%c10_179, %c0_180, %c0_181] : memref<16x128x128xbf16, #tpu.memory_space<vmem>>, vector<1x128x128xbf16>
    %208 = vector.shape_cast %207 : vector<1x128x128xbf16> to vector<128x128xbf16>
    %cst_182 = arith.constant dense<0.000000e+00> : vector<8x128xf32>
    %209 = tpu.matmul %206, %208, %cst_182 {dimension_numbers = #tpu.dot_dimension_numbers<[1], [0], [0], [1], [0, 0, 1, 1], [], []>} : vector<8x128xbf16>, vector<128x128xbf16>, vector<8x128xf32> -> vector<8x128xf32>
    %210 = arith.addf %204, %209 : vector<8x128xf32>
    %c88 = arith.constant 88 : index
    %c0_183 = arith.constant 0 : index
    %211 = vector.load %arg10[%c88, %c0_183] : memref<128x128xf32, #tpu.memory_space<vmem>>, vector<8x128xf32>
    %212 = arith.truncf %211 : vector<8x128xf32> to vector<8x128xbf16>
    %c11_184 = arith.constant 11 : index
    %c0_185 = arith.constant 0 : index
    %c0_186 = arith.constant 0 : index
    %213 = vector.load %arg7[%c11_184, %c0_185, %c0_186] : memref<16x128x128xbf16, #tpu.memory_space<vmem>>, vector<1x128x128xbf16>
    %214 = vector.shape_cast %213 : vector<1x128x128xbf16> to vector<128x128xbf16>
    %cst_187 = arith.constant dense<0.000000e+00> : vector<8x128xf32>
    %215 = tpu.matmul %212, %214, %cst_187 {dimension_numbers = #tpu.dot_dimension_numbers<[1], [0], [0], [1], [0, 0, 1, 1], [], []>} : vector<8x128xbf16>, vector<128x128xbf16>, vector<8x128xf32> -> vector<8x128xf32>
    %216 = arith.addf %210, %215 : vector<8x128xf32>
    %c96 = arith.constant 96 : index
    %c0_188 = arith.constant 0 : index
    %217 = vector.load %arg10[%c96, %c0_188] : memref<128x128xf32, #tpu.memory_space<vmem>>, vector<8x128xf32>
    %218 = arith.truncf %217 : vector<8x128xf32> to vector<8x128xbf16>
    %c12_189 = arith.constant 12 : index
    %c0_190 = arith.constant 0 : index
    %c0_191 = arith.constant 0 : index
    %219 = vector.load %arg7[%c12_189, %c0_190, %c0_191] : memref<16x128x128xbf16, #tpu.memory_space<vmem>>, vector<1x128x128xbf16>
    %220 = vector.shape_cast %219 : vector<1x128x128xbf16> to vector<128x128xbf16>
    %cst_192 = arith.constant dense<0.000000e+00> : vector<8x128xf32>
    %221 = tpu.matmul %218, %220, %cst_192 {dimension_numbers = #tpu.dot_dimension_numbers<[1], [0], [0], [1], [0, 0, 1, 1], [], []>} : vector<8x128xbf16>, vector<128x128xbf16>, vector<8x128xf32> -> vector<8x128xf32>
    %222 = arith.addf %216, %221 : vector<8x128xf32>
    %c104 = arith.constant 104 : index
    %c0_193 = arith.constant 0 : index
    %223 = vector.load %arg10[%c104, %c0_193] : memref<128x128xf32, #tpu.memory_space<vmem>>, vector<8x128xf32>
    %224 = arith.truncf %223 : vector<8x128xf32> to vector<8x128xbf16>
    %c13_194 = arith.constant 13 : index
    %c0_195 = arith.constant 0 : index
    %c0_196 = arith.constant 0 : index
    %225 = vector.load %arg7[%c13_194, %c0_195, %c0_196] : memref<16x128x128xbf16, #tpu.memory_space<vmem>>, vector<1x128x128xbf16>
    %226 = vector.shape_cast %225 : vector<1x128x128xbf16> to vector<128x128xbf16>
    %cst_197 = arith.constant dense<0.000000e+00> : vector<8x128xf32>
    %227 = tpu.matmul %224, %226, %cst_197 {dimension_numbers = #tpu.dot_dimension_numbers<[1], [0], [0], [1], [0, 0, 1, 1], [], []>} : vector<8x128xbf16>, vector<128x128xbf16>, vector<8x128xf32> -> vector<8x128xf32>
    %228 = arith.addf %222, %227 : vector<8x128xf32>
    %c112 = arith.constant 112 : index
    %c0_198 = arith.constant 0 : index
    %229 = vector.load %arg10[%c112, %c0_198] : memref<128x128xf32, #tpu.memory_space<vmem>>, vector<8x128xf32>
    %230 = arith.truncf %229 : vector<8x128xf32> to vector<8x128xbf16>
    %c14_199 = arith.constant 14 : index
    %c0_200 = arith.constant 0 : index
    %c0_201 = arith.constant 0 : index
    %231 = vector.load %arg7[%c14_199, %c0_200, %c0_201] : memref<16x128x128xbf16, #tpu.memory_space<vmem>>, vector<1x128x128xbf16>
    %232 = vector.shape_cast %231 : vector<1x128x128xbf16> to vector<128x128xbf16>
    %cst_202 = arith.constant dense<0.000000e+00> : vector<8x128xf32>
    %233 = tpu.matmul %230, %232, %cst_202 {dimension_numbers = #tpu.dot_dimension_numbers<[1], [0], [0], [1], [0, 0, 1, 1], [], []>} : vector<8x128xbf16>, vector<128x128xbf16>, vector<8x128xf32> -> vector<8x128xf32>
    %234 = arith.addf %228, %233 : vector<8x128xf32>
    %c120 = arith.constant 120 : index
    %c0_203 = arith.constant 0 : index
    %235 = vector.load %arg10[%c120, %c0_203] : memref<128x128xf32, #tpu.memory_space<vmem>>, vector<8x128xf32>
    %236 = arith.truncf %235 : vector<8x128xf32> to vector<8x128xbf16>
    %c15_204 = arith.constant 15 : index
    %c0_205 = arith.constant 0 : index
    %c0_206 = arith.constant 0 : index
    %237 = vector.load %arg7[%c15_204, %c0_205, %c0_206] : memref<16x128x128xbf16, #tpu.memory_space<vmem>>, vector<1x128x128xbf16>
    %238 = vector.shape_cast %237 : vector<1x128x128xbf16> to vector<128x128xbf16>
    %cst_207 = arith.constant dense<0.000000e+00> : vector<8x128xf32>
    %239 = tpu.matmul %236, %238, %cst_207 {dimension_numbers = #tpu.dot_dimension_numbers<[1], [0], [0], [1], [0, 0, 1, 1], [], []>} : vector<8x128xbf16>, vector<128x128xbf16>, vector<8x128xf32> -> vector<8x128xf32>
    %240 = arith.addf %234, %239 : vector<8x128xf32>
    %c0_208 = arith.constant 0 : index
    %c0_209 = arith.constant 0 : index
    %241 = vector.load %arg8[%c0_208, %c0_209] : memref<1x128xf32, #tpu.memory_space<vmem>>, vector<1x128xf32>
    %242 = vector.broadcast %241 : vector<1x128xf32> to vector<8x128xf32>
    %243 = arith.addf %240, %242 : vector<8x128xf32>
    %c0_210 = arith.constant 0 : index
    %c0_211 = arith.constant 0 : index
    %244 = vector.load %arg9[%c0_210, %c0_211] : memref<8x128xf32, #tpu.memory_space<vmem>>, vector<8x128xf32>
    tpu.vector_store %arg9[%c0_210, %c0_211], %243 {strides = array<i32>} : memref<8x128xf32, #tpu.memory_space<vmem>>, vector<8x128xf32>,
    return
  }
  func.func @transform_0(%arg0: i32) -> (i32, i32) {
    %c0_i32 = arith.constant 0 : i32
    %c0_i32_0 = arith.constant 0 : i32
    return %arg0, %c0_i32 : i32, i32
  }
  func.func @transform_1(%arg0: i32) -> (i32, i32) {
    %c0_i32 = arith.constant 0 : i32
    %c0_i32_0 = arith.constant 0 : i32
    %c0_i32_1 = arith.constant 0 : i32
    return %c0_i32, %c0_i32_0 : i32, i32
  }
  func.func @transform_2(%arg0: i32) -> (i32, i32) {
    %c0_i32 = arith.constant 0 : i32
    %c0_i32_0 = arith.constant 0 : i32
    %c0_i32_1 = arith.constant 0 : i32
    return %c0_i32, %c0_i32_0 : i32, i32
  }
  func.func @transform_3(%arg0: i32) -> (i32, i32, i32) {
    %c0_i32 = arith.constant 0 : i32
    %c0_i32_0 = arith.constant 0 : i32
    %c0_i32_1 = arith.constant 0 : i32
    %c0_i32_2 = arith.constant 0 : i32
    return %c0_i32, %c0_i32_0, %c0_i32_1 : i32, i32, i32
  }
  func.func @transform_4(%arg0: i32) -> (i32, i32, i32) {
    %c0_i32 = arith.constant 0 : i32
    %c0_i32_0 = arith.constant 0 : i32
    %c0_i32_1 = arith.constant 0 : i32
    %c0_i32_2 = arith.constant 0 : i32
    return %c0_i32, %c0_i32_0, %c0_i32_1 : i32, i32, i32
  }
  func.func @transform_5(%arg0: i32) -> (i32, i32) {
    %c0_i32 = arith.constant 0 : i32
    %c0_i32_0 = arith.constant 0 : i32
    %c0_i32_1 = arith.constant 0 : i32
    return %c0_i32, %c0_i32_0 : i32, i32
  }
  func.func @transform_6(%arg0: i32) -> (i32, i32, i32) {
    %c0_i32 = arith.constant 0 : i32
    %c0_i32_0 = arith.constant 0 : i32
    %c0_i32_1 = arith.constant 0 : i32
    %c0_i32_2 = arith.constant 0 : i32
    return %c0_i32, %c0_i32_0, %c0_i32_1 : i32, i32, i32
  }
  func.func @transform_7(%arg0: i32) -> (i32, i32) {
    %c0_i32 = arith.constant 0 : i32
    %c0_i32_0 = arith.constant 0 : i32
    %c0_i32_1 = arith.constant 0 : i32
    return %c0_i32, %c0_i32_0 : i32, i32
  }
  func.func @transform_8(%arg0: i32) -> (i32, i32) {
    %c0_i32 = arith.constant 0 : i32
    %c0_i32_0 = arith.constant 0 : i32
    return %arg0, %c0_i32 : i32, i32
  }
}

</mosaic_0001>

<bundles_post_ra>
// kernel: _forward_impl.1
= control target key start
LH: loop header
LB: loop body
LE: loop exit
PB: predicated region body
PF: predicated region fallthrough
CT: control target
= control target key end

     0   :  { %vm17908_vm0 = vmmov 0   ;;  %s22905_s1 = inlined_call_operand.vmem [shape: bf16[128,128], index: 1, kind: input, shape index: {}]   ;;  %s22906_s0 = inlined_call_operand.vmem [shape: bf16[512,128], index: 0, kind: input, shape index: {}]   ;;  %s22907_s3 = inlined_call_operand.vmem [shape: bf16[16,128,512], index: 3, kind: input, shape index: {}]   ;;  %s22908_s4 = inlined_call_operand.vmem [shape: bf16[16,128,128], index: 4, kind: input, shape index: {}]   ;;  %s22909_s2 = inlined_call_operand.vmem [shape: f32[1,128], index: 2, kind: input, shape index: {}]   ;;  %s22910_s6 = inlined_call_operand.vmem [shape: bf16[16,128,128], index: 6, kind: input, shape index: {}]   ;;  %s22911_s5 = inlined_call_operand.vmem [shape: f32[1,128], index: 5, kind: input, shape index: {}]   ;;  %s22912_s7 = inlined_call_operand.vmem [shape: f32[1,128], index: 7, kind: input, shape index: {}]   ;;  %s22913_s8 = inlined_call_operand.vmem [shape: f32[8,128], index: 8, kind: output, shape index: {}]  }
   0x1   :  { %v16842_v0 = vld [vmem:[%s22905_s1 + $0x38] sm:$0xff]   ;;  %v16843_v1 = vld [vmem:[%s22905_s1 + $0x30] sm:$0xff]   ;;  %v16844_v2 = vld [vmem:[%s22905_s1 + $0x28] sm:$0xff]  }
   0x2   :  { %15928 = vmatprep.subr.bf16.mxu0 %v16842_v0  ;;  %v16845_v3 = vld [vmem:[%s22905_s1 + $0x20] sm:$0xff]   ;;  %v16846_v5 = vld [vmem:[%s22905_s1 + $0x18] sm:$0xff]   ;;  %v16847_v6 = vld [vmem:[%s22905_s1 + $0x10] sm:$0xff]  }
   0x3   :  { %15929 = vmatpush3.bf16.msra.mxu0 %v16842_v0  ;;  %v16850_v4 = vld [vmem:[%s22906_s0] sm:$0xff]   ;;  %v16848_v7 = vld [vmem:[%s22905_s1 + $0x8] sm:$0xff]   ;;  %v16852_v10 = vld [vmem:[%s22906_s0 + $0x10] sm:$0xff]  }
   0x4   :  { %15930 = vmatprep.subr.bf16.mxu0 %v16843_v1  ;;  %15944 = vmatprep.mubr.bf16.mxu0 %v16850_v4  ;;  %v16849_v8 = vld [vmem:[%s22905_s1] sm:$0xff]   ;;  %v16851_v9 = vld [vmem:[%s22906_s0 + $0x8] sm:$0xff]   ;;  %v16853_v11 = vld [vmem:[%s22906_s0 + $0x18] sm:$0xff]  }
   0x5   :  { %v16854_v12 = vld [vmem:[%s22906_s0 + $0x20] sm:$0xff]   ;;  %v16855_v13 = vld [vmem:[%s22906_s0 + $0x28] sm:$0xff]   ;;  %v16856_v14 = vld [vmem:[%s22906_s0 + $0x30] sm:$0xff]  }
   0x6   :  { %v16857_v15 = vld [vmem:[%s22906_s0 + $0x38] sm:$0xff]   ;;  %v16858_v16 = vld [vmem:[%s22906_s0 + $0x40] sm:$0xff]   ;;  %v16859_v17 = vld [vmem:[%s22906_s0 + $0x48] sm:$0xff]  }
   0x7   :  { %15931 = vmatpush3.bf16.msra.mxu0 %v16843_v1  ;;  %v16860_v18 = vld [vmem:[%s22906_s0 + $0x50] sm:$0xff]   ;;  %v16861_v19 = vld [vmem:[%s22906_s0 + $0x58] sm:$0xff]   ;;  %v16862_v20 = vld [vmem:[%s22906_s0 + $0x60] sm:$0xff]  }
   0x8   :  { %15932 = vmatprep.subr.bf16.mxu0 %v16844_v2  ;;  %v16863_v21 = vld [vmem:[%s22906_s0 + $0x68] sm:$0xff]   ;;  %v16864_v22 = vld [vmem:[%s22906_s0 + $0x70] sm:$0xff]   ;;  %v16865_v23 = vld [vmem:[%s22906_s0 + $0x78] sm:$0xff]  }
   0x9   :  { %v16866_v24 = vld [vmem:[%s22906_s0 + $0x80] sm:$0xff]   ;;  %v16867_v25 = vld [vmem:[%s22906_s0 + $0x88] sm:$0xff]   ;;  %v16868_v26 = vld [vmem:[%s22906_s0 + $0x90] sm:$0xff]  }
   0xa   :  { %v16869_v27 = vld [vmem:[%s22906_s0 + $0x98] sm:$0xff]   ;;  %v16870_v28 = vld [vmem:[%s22906_s0 + $0xa0] sm:$0xff]   ;;  %v16871_v29 = vld [vmem:[%s22906_s0 + $0xa8] sm:$0xff]  }
   0xb   :  { %15933 = vmatpush3.bf16.msra.mxu0 %v16844_v2  ;;  %v16872_v30 = vld [vmem:[%s22906_s0 + $0xb0] sm:$0xff]   ;;  %v16873_v31 = vld [vmem:[%s22906_s0 + $0xb8] sm:$0xff]   ;;  %v16874_v32 = vld [vmem:[%s22906_s0 + $0xc0] sm:$0xff]  }
   0xc   :  { %15934 = vmatprep.subr.bf16.mxu0 %v16845_v3  ;;  %v16875_v33 = vld [vmem:[%s22906_s0 + $0xc8] sm:$0xff]   ;;  %v16876_v34 = vld [vmem:[%s22906_s0 + $0xd0] sm:$0xff]   ;;  %v16877_v35 = vld [vmem:[%s22906_s0 + $0xd8] sm:$0xff]  }
   0xd   :  { %v16878_v36 = vld [vmem:[%s22906_s0 + $0xe0] sm:$0xff]   ;;  %v16879_v37 = vld [vmem:[%s22906_s0 + $0xe8] sm:$0xff]   ;;  %v16880_v38 = vld [vmem:[%s22906_s0 + $0xf0] sm:$0xff]  }
   0xe   :  { %v16881_v39 = vld [vmem:[%s22906_s0 + $0xf8] sm:$0xff]   ;;  %v16884_v40 = vld [vmem:[%s22907_s3 + $0x4] ss:$16 sps:$4 sm:$0xff]   ;;  %v18083_v43 = vld [vmem:[%s22909_s2] ss:$0 sm:$0xff] }
   0xf   :  { %15935 = vmatpush3.bf16.msra.mxu0 %v16845_v3  ;;  %966 = vmatprep.mubr.bf16.mxu1 %v16884_v40  ;;  %v16887_v41 = vld [vmem:[%s22907_s3 + $0x104] ss:$16 sps:$4 sm:$0xff]  }
  0x10   :  { %15936 = vmatprep.subr.bf16.mxu0 %v16846_v5 }
  0x13   :  { %15937 = vmatpush3.bf16.msra.mxu0 %v16846_v5 }
  0x14   :  { %15938 = vmatprep.subr.bf16.mxu0 %v16847_v6 }
  0x17   :  { %15939 = vmatpush3.bf16.msra.mxu0 %v16847_v6 }
  0x18   :  { %15940 = vmatprep.subr.bf16.mxu0 %v16848_v7 }
  0x1b   :  { %15941 = vmatpush3.bf16.msra.mxu0 %v16848_v7 }
  0x1c   :  { %15942 = vmatprep.subr.bf16.mxu0 %v16849_v8 }
  0x1f   :  { %15943 = vmatpush3.bf16.msra.mxu0 %v16849_v8 }
  0x22   :  { %15945 = vmatmul.mubr.bf16.vlgmr.msra.gmra.mxu0 %v16851_v9 }
  0x23   :  { %15948 = vmatprep.mubr.bf16.mxu0 %v16852_v10 }
  0x2a   :  { %15949 = vmatmul.mubr.bf16.gmra.mxu0 %v16853_v11 }
  0x2b   :  { %15952 = vmatprep.mubr.bf16.mxu0 %v16854_v12 }
  0x32   :  { %15953 = vmatmul.mubr.bf16.gmra.mxu0 %v16855_v13 }
  0x33   :  { %15956 = vmatprep.mubr.bf16.mxu0 %v16856_v14 }
  0x3a   :  { %15957 = vmatmul.mubr.bf16.gmra.mxu0 %v16857_v15 }
  0x3b   :  { %15960 = vmatprep.mubr.bf16.mxu0 %v16858_v16 }
  0x42   :  { %15961 = vmatmul.mubr.bf16.gmra.mxu0 %v16859_v17 }
  0x43   :  { %15964 = vmatprep.mubr.bf16.mxu0 %v16860_v18 }
  0x4a   :  { %15965 = vmatmul.mubr.bf16.gmra.mxu0 %v16861_v19 }
  0x4b   :  { %15968 = vmatprep.mubr.bf16.mxu0 %v16862_v20 }
  0x52   :  { %15969 = vmatmul.mubr.bf16.gmra.mxu0 %v16863_v21 }
  0x53   :  { %15972 = vmatprep.mubr.bf16.mxu0 %v16864_v22 }
  0x5a   :  { %15973 = vmatmul.mubr.bf16.gmra.mxu0 %v16865_v23 }
  0x5b   :  { %15976 = vmatprep.mubr.bf16.mxu0 %v16866_v24 }
  0x62   :  { %15977 = vmatmul.mubr.bf16.gmra.mxu0 %v16867_v25 }
  0x63   :  { %15980 = vmatprep.mubr.bf16.mxu0 %v16868_v26 }
  0x6a   :  { %15981 = vmatmul.mubr.bf16.gmra.mxu0 %v16869_v27 }
  0x6b   :  { %15984 = vmatprep.mubr.bf16.mxu0 %v16870_v28 }
  0x72   :  { %15985 = vmatmul.mubr.bf16.gmra.mxu0 %v16871_v29 }
  0x73   :  { %15988 = vmatprep.mubr.bf16.mxu0 %v16872_v30 }
  0x7a   :  { %15989 = vmatmul.mubr.bf16.gmra.mxu0 %v16873_v31 }
  0x7b   :  { %15992 = vmatprep.mubr.bf16.mxu0 %v16874_v32 }
  0x82   :  { %15993 = vmatmul.mubr.bf16.gmra.mxu0 %v16875_v33 }
  0x83   :  { %15996 = vmatprep.mubr.bf16.mxu0 %v16876_v34 }
  0x8a   :  { %15997 = vmatmul.mubr.bf16.gmra.mxu0 %v16877_v35 }
  0x8b   :  { %16000 = vmatprep.mubr.bf16.mxu0 %v16878_v36 }
  0x92   :  { %16001 = vmatmul.mubr.bf16.gmra.mxu0 %v16879_v37 }
  0x93   :  { %16004 = vmatprep.mubr.bf16.mxu0 %v16880_v38 }
  0x9a   :  { %16005 = vmatmul.mubr.bf16.gmra.mxu0 %v16881_v39 }
  0x9b   :  { %1377 = vmatprep.mubr.bf16.mxu0 %v16887_v41 }
  0xe2   :  { %v15946_v42 = vpop.f32.mrf.mxu0 }
  0xe3   :  { %v400_v45 = vadd.f32 %v15946_v42, %v18083_v43 }
  0xe4   :  { %v18085_v44 = vpop.f32.mrf.mxu0 }
  0xe5   :  { %v648_v49 = vmax.f32 %v400_v45, 0.0 }
  0xe6   :  { %v15947_v46 = vpop.f32.mrf.mxu0 }
  0xe7   :  { %v403_v47 = vadd.f32 %v15947_v46, %v18083_v43 }
  0xe8   :  { %v18089_v48 = vpop.f32.mrf.mxu0 }
  0xe9   :  { %v649_v50 = vmax.f32 %v403_v47, 0.0 }
  0xea   :  { %v15950_v51 = vpop.f32.mrf.mxu0 }
  0xeb   :  { %v18091_v52 = vpack.c.bf16 %v649_v50, %v648_v49  ;;  %v416_v53 = vadd.f32 %v15950_v51, %v18083_v43 }
  0xec   :  { %v18094_v54 = vpop.f32.mrf.mxu0 }
  0xed   :  { %22946 = vst [vmem:[#allocation3_spill] sm:$0xff] %v18091_v52  ;;  %v652_v57 = vmax.f32 %v416_v53, 0.0 }
  0xee   :  { %v15951_v55 = vpop.f32.mrf.mxu0 }
  0xef   :  { %v419_v56 = vadd.f32 %v15951_v55, %v18083_v43 }
  0xf0   :  { %v18097_v58 = vpop.f32.mrf.mxu0 }
  0xf1   :  { %v653_v59 = vmax.f32 %v419_v56, 0.0 }
  0xf2   :  { %v15954_v60 = vpop.f32.mrf.mxu0 }
  0xf3   :  { %v18099_v61 = vpack.c.bf16 %v653_v59, %v652_v57  ;;  %v432_v50 = vadd.f32 %v15954_v60, %v18083_v43 }
  0xf4   :  { %v18101_v62 = vpop.f32.mrf.mxu0 }
  0xf5   :  { %22947 = vst [vmem:[#allocation4_spill] sm:$0xff] %v18099_v61 }
  0xf6   :  { %v15955_v63 = vpop.f32.mrf.mxu0 }
  0xf7   :  { %v435_v40 = vadd.f32 %v15955_v63, %v18083_v43 }
  0xf8   :  { %v426_v0 = vpop.f32.mrf.mxu0 }
  0xf9   :  { %v657_v59 = vmax.f32 %v435_v40, 0.0  ;;  %v427_v63 = vadd.f32 %v18083_v43, %v426_v0 }
  0xfa   :  { %v15958_v1 = vpop.f32.mrf.mxu0 }
  0xfb   :  { %v448_v22 = vadd.f32 %v15958_v1, %v18083_v43 }
  0xfc   :  { %v439_v2 = vpop.f32.mrf.mxu0 }
  0xfd   :  { %v660_v32 = vmax.f32 %v448_v22, 0.0  ;;  %v440_v33 = vadd.f32 %v18083_v43, %v439_v2 }
  0xfe   :  { %v15959_v3 = vpop.f32.mrf.mxu0 }
  0xff   :  { %v451_v17 = vadd.f32 %v15959_v3, %v18083_v43  ;;  %v658_v51 = vmax.f32 %v440_v33, 0.0 }
 0x100   :  { %v442_v4 = vpop.f32.mrf.mxu0 }
 0x101   :  { %v661_v21 = vmax.f32 %v451_v17, 0.0  ;;  %v443_v23 = vadd.f32 %v18083_v43, %v442_v4  ;;  %v424_v17 = vadd.f32 %v18083_v43, %v18101_v62  ;;  %v655_v62 = vmax.f32 %v427_v63, 0.0 }
 0x102   :  { %v18103_v5 = vpop.f32.mrf.mxu0 }
 0x103   :  { %v659_v34 = vmax.f32 %v443_v23, 0.0  ;;  %v18128_v41 = vpack.c.bf16 %v661_v21, %v660_v32 }
 0x104   :  { %v18105_v6 = vpop.f32.mrf.mxu0 }
 0x105   :  { %v18146_v1 = vpack.c.bf16 %v659_v34, %v658_v51  ;;  %v456_v51 = vadd.f32 %v18083_v43, %v18105_v6 }
 0x106   :  { %v18107_v7 = vpop.f32.mrf.mxu0 }
 0x107   :  { %22948 = vst [vmem:[#allocation5_spill] sm:$0xff] %v18146_v1  ;;  %v467_v33 = vadd.f32 %v18107_v7, %v18083_v43  ;;  %v662_v6 = vmax.f32 %v456_v51, 0.0  ;;  %v16962_v51 = vld [vmem:[%s22907_s3 + $0x164] ss:$16 sps:$4 sm:$0xff]  }
 0x108   :  { %v18109_v8 = vpop.f32.mrf.mxu0 }
 0x10a   :  { %v15966_v9 = vpop.f32.mrf.mxu0 }
 0x10b   :  { %v480_v0 = vadd.f32 %v15966_v9, %v18083_v43 }
 0x10c   :  { %v18111_v10 = vpop.f32.mrf.mxu0 }
 0x10e   :  { %v15967_v11 = vpop.f32.mrf.mxu0 }
 0x10f   :  { %v483_v60 = vadd.f32 %v15967_v11, %v18083_v43 }
 0x110   :  { %v18113_v12 = vpop.f32.mrf.mxu0 }
 0x111   :  { %v475_v11 = vadd.f32 %v18083_v43, %v18113_v12  ;;  %v669_v22 = vmax.f32 %v483_v60, 0.0  ;;  %v668_v12 = vmax.f32 %v480_v0, 0.0  ;;  %v16890_v0 = vld [vmem:[%s22907_s3 + $0x24] ss:$16 sps:$4 sm:$0xff]  }
 0x112   :  { %v15970_v13 = vpop.f32.mrf.mxu0 }
 0x113   :  { %v496_v37 = vadd.f32 %v15970_v13, %v18083_v43  ;;  %v18186_v34 = vpack.c.bf16 %v669_v22, %v668_v12  ;;  %v16893_v22 = vld [vmem:[%s22908_s4 + $0x68] sm:$0xff]  }
 0x114   :  { %v487_v14 = vpop.f32.mrf.mxu0 }
 0x115   :  { %v672_v55 = vmax.f32 %v496_v37, 0.0  ;;  %v488_v56 = vadd.f32 %v18083_v43, %v487_v14  ;;  %22953 = vst [vmem:[#allocation10_spill] sm:$0xff] %v18186_v34  ;;  %v464_v37 = vadd.f32 %v18103_v5, %v18083_v43 }
 0x116   :  { %v15971_v15 = vpop.f32.mrf.mxu0 }
 0x117   :  { %v499_v29 = vadd.f32 %v15971_v15, %v18083_v43  ;;  %v411_v15 = vadd.f32 %v18083_v43, %v18097_v58  ;;  %v664_v5 = vmax.f32 %v464_v37, 0.0  ;;  %v16959_v37 = vld [vmem:[%s22907_s3 + $0x140] ss:$16 sps:$4 sm:$0xff]  }
 0x118   :  { %v490_v16 = vpop.f32.mrf.mxu0 }
 0x119   :  { %v673_v45 = vmax.f32 %v499_v29, 0.0  ;;  %v491_v46 = vadd.f32 %v18083_v43, %v490_v16  ;;  %v656_v16 = vmax.f32 %v432_v50, 0.0 }
 0x11a   :  { %v15974_v18 = vpop.f32.mrf.mxu0 }
 0x11b   :  { %v512_v19 = vadd.f32 %v15974_v18, %v18083_v43  ;;  %v18151_v3 = vpack.c.bf16 %v673_v45, %v672_v55  ;;  %v671_v4 = vmax.f32 %v491_v46, 0.0  ;;  %v18167_v58 = vpack.c.bf16 %v657_v59, %v656_v16 }
 0x11c   :  { %v503_v20 = vpop.f32.mrf.mxu0  ;;  %v665_v45 = vmax.f32 %v467_v33, 0.0  ;;  %v392_v59 = vadd.f32 %v18083_v43, %v18085_v44  ;;  %v16882_v44 = vld [vmem:[%s22907_s3] ss:$16 sps:$4 sm:$0xff]  }
 0x11d   :  { %v504_v24 = vadd.f32 %v18083_v43, %v503_v20  ;;  %v676_v26 = vmax.f32 %v512_v19, 0.0  ;;  %22949 = vst [vmem:[#allocation6_spill] sm:$0xff] %v18151_v3  ;;  %v670_v19 = vmax.f32 %v488_v56, 0.0  ;;  %22950 = vst [vmem:[#allocation7_spill] sm:$0xff] %v18167_v58 }
 0x11e   :  { %v15975_v25 = vpop.f32.mrf.mxu0  ;;  %v18220_v56 = vpack.c.bf16 %v665_v45, %v664_v5 }
 0x11f   :  { %v515_v27 = vadd.f32 %v15975_v25, %v18083_v43  ;;  %v674_v35 = vmax.f32 %v504_v24, 0.0  ;;  %v18171_v23 = vpack.c.bf16 %v671_v4, %v670_v19  ;;  %v651_v24 = vmax.f32 %v411_v15, 0.0  ;;  %v16885_v15 = vld [vmem:[%s22907_s3 + $0x100] ss:$16 sps:$4 sm:$0xff]  }
 0x120   :  { %v506_v28 = vpop.f32.mrf.mxu0  ;;  %v654_v25 = vmax.f32 %v424_v17, 0.0  ;;  %22956 = vst [vmem:[#allocation13_spill] sm:$0xff] %v18220_v56 }
 0x121   :  { %v677_v30 = vmax.f32 %v515_v27, 0.0  ;;  %v507_v31 = vadd.f32 %v18083_v43, %v506_v28  ;;  %22951 = vst [vmem:[#allocation8_spill] sm:$0xff] %v18171_v23  ;;  %v472_v27 = vadd.f32 %v18083_v43, %v18111_v10  ;;  %v667_v28 = vmax.f32 %v475_v11, 0.0 }
 0x122   :  { %v15978_v36 = vpop.f32.mrf.mxu0  ;;  %v408_v10 = vadd.f32 %v18083_v43, %v18094_v54  ;;  %v459_v54 = vadd.f32 %v18083_v43, %v18109_v8  ;;  %v395_v8 = vadd.f32 %v18083_v43, %v18089_v48 }
 0x123   :  { %v18125_v38 = vpack.c.bf16 %v677_v30, %v676_v26  ;;  %v675_v39 = vmax.f32 %v507_v31, 0.0  ;;  %v528_v49 = vadd.f32 %v15978_v36, %v18083_v43  ;;  %v18180_v31 = vpack.c.bf16 %v655_v62, %v654_v25  ;;  %v16951_v25 = vld [vmem:[%s22907_s3 + $0x120] ss:$16 sps:$4 sm:$0xff]  }
 0x124   :  { %v18130_v42 = vpop.f32.mrf.mxu0  ;;  %v647_v48 = vmax.f32 %v395_v8, 0.0 }
 0x125   :  { %v18133_v47 = vpack.c.bf16 %v675_v39, %v674_v35  ;;  %13480 = vmatprep.subr.bf16.mxu1 %v18125_v38  ;;  %13608 = vmatprep.subr.bf16.mxu0 %v18125_v38  ;;  %v680_v13 = vmax.f32 %v528_v49, 0.0  ;;  %22952 = vst [vmem:[#allocation9_spill] sm:$0xff] %v18180_v31  ;;  %v666_v39 = vmax.f32 %v472_v27, 0.0  ;;  %v650_v49 = vmax.f32 %v408_v10, 0.0  ;;  %v16895_v27 = vld [vmem:[%s22907_s3 + $0x44] ss:$16 sps:$4 sm:$0xff]  }
 0x126   :  { %v15979_v53 = vpop.f32.mrf.mxu0  ;;  %13481 = vmatpush3.bf16.msra.mxu1 %v18128_v41  ;;  %13609 = vmatpush3.bf16.msra.mxu0 %v18128_v41  ;;  %v16897_v10 = vld [vmem:[%s22907_s3 + $0x40] ss:$16 sps:$4 sm:$0xff]  }
 0x127   :  { %v531_v57 = vadd.f32 %v15979_v53, %v18083_v43  ;;  %13482 = vmatprep.subr.bf16.mxu1 %v18133_v47  ;;  %13610 = vmatprep.subr.bf16.mxu0 %v18133_v47  ;;  %v18204_v46 = vpack.c.bf16 %v667_v28, %v666_v39  ;;  %v18216_v53 = vpack.c.bf16 %v651_v24, %v650_v49  ;;  %v16892_v24 = vld [vmem:[%s22907_s3 + $0x20] ss:$16 sps:$4 sm:$0xff]  }
 0x128   :  { %v18149_v2 = vpop.f32.mrf.mxu0  ;;  %v16894_v28 = vld [vmem:[%s22908_s4 + $0x60] sm:$0xff]   ;;  %v16899_v49 = vld [vmem:[%s22908_s4 + $0x50] sm:$0xff]  }
 0x129   :  { %v681_v14 = vmax.f32 %v531_v57, 0.0  ;;  %22954 = vst [vmem:[#allocation11_spill] sm:$0xff] %v18204_v46  ;;  %22955 = vst [vmem:[#allocation12_spill] sm:$0xff] %v18216_v53  ;;  %v663_v57 = vmax.f32 %v459_v54, 0.0  ;;  %v16900_v54 = vld [vmem:[%s22907_s3 + $0x64] ss:$16 sps:$4 sm:$0xff]  }
 0x12a   :  { %v15982_v18 = vpop.f32.mrf.mxu0  ;;  %13483 = vmatpush3.bf16.msra.mxu1 %v18146_v1  ;;  %13611 = vmatpush3.bf16.msra.mxu0 %v18146_v1 }
 0x12b   :  { %v18162_v20 = vpack.c.bf16 %v681_v14, %v680_v13  ;;  %v544_v21 = vadd.f32 %v15982_v18, %v18083_v43  ;;  %13484 = vmatprep.subr.bf16.mxu1 %v18151_v3  ;;  %13612 = vmatprep.subr.bf16.mxu0 %v18151_v3  ;;  %v18232_v4 = vpack.c.bf16 %v663_v57, %v662_v6  ;;  %v646_v13 = vmax.f32 %v392_v59, 0.0  ;;  %v16889_v18 = vld [vmem:[%s22908_s4 + $0x70] sm:$0xff]   ;;  %v16903_v57 = vld [vmem:[%s22908_s4 + $0x48] sm:$0xff]  }
 0x12c   :  { %v18169_v9 = vpop.f32.mrf.mxu0  ;;  %v16902_v59 = vld [vmem:[%s22907_s3 + $0x60] ss:$16 sps:$4 sm:$0xff]  }
 0x12d   :  { %v684_v29 = vmax.f32 %v544_v21, 0.0  ;;  %22957 = vst [vmem:[#allocation14_spill] sm:$0xff] %v18232_v4  ;;  %v18249_v16 = vpack.c.bf16 %v647_v48, %v646_v13  ;;  %v16946_v21 = vld [vmem:[%s22907_s3 + $0x124] ss:$16 sps:$4 sm:$0xff]   ;;  %v16967_v6 = vld [vmem:[%s22907_s3 + $0x160] ss:$16 sps:$4 sm:$0xff]  }
 0x12e   :  { %v15983_v26 = vpop.f32.mrf.mxu0  ;;  %13485 = vmatpush3.bf16.msra.mxu1 %v18167_v58  ;;  %13613 = vmatpush3.bf16.msra.mxu0 %v18167_v58 }
 0x12f   :  { %v547_v30 = vadd.f32 %v15983_v26, %v18083_v43  ;;  %13486 = vmatprep.subr.bf16.mxu1 %v18171_v23  ;;  %13614 = vmatprep.subr.bf16.mxu0 %v18171_v23  ;;  %v16888_v43 = vld [vmem:[%s22908_s4 + $0x78] sm:$0xff]   ;;  %22958 = vst [vmem:[#allocation15_spill] sm:$0xff] %v18249_v16 }
 0x130   :  { %v18182_v32 = vpop.f32.mrf.mxu0 }
 0x131   :  { %v685_v35 = vmax.f32 %v547_v30, 0.0  ;;  %v16954_v30 = vld [vmem:[%s22907_s3 + $0x144] ss:$16 sps:$4 sm:$0xff]  }
 0x132   :  { %v18190_v36 = vpop.f32.mrf.mxu0  ;;  %13487 = vmatpush3.bf16.msra.mxu1 %v18180_v31  ;;  %13615 = vmatpush3.bf16.msra.mxu0 %v18180_v31 }
 0x133   :  { %v18196_v40 = vpack.c.bf16 %v685_v35, %v684_v29  ;;  %13488 = vmatprep.subr.bf16.mxu1 %v18186_v34  ;;  %13616 = vmatprep.subr.bf16.mxu0 %v18186_v34  ;;  %v16898_v35 = vld [vmem:[%s22908_s4 + $0x58] sm:$0xff]  }
 0x134   :  { %v18200_v7 = vpop.f32.mrf.mxu0 }
 0x136   :  { %v18206_v50 = vpop.f32.mrf.mxu0  ;;  %13489 = vmatpush3.bf16.msra.mxu1 %v18099_v61  ;;  %13617 = vmatpush3.bf16.msra.mxu0 %v18099_v61 }
 0x137   :  { %13490 = vmatprep.subr.bf16.mxu1 %v18204_v46  ;;  %13618 = vmatprep.subr.bf16.mxu0 %v18204_v46 }
 0x138   :  { %v18218_v55 = vpop.f32.mrf.mxu0 }
 0x13a   :  { %v18224_v63 = vpop.f32.mrf.mxu0  ;;  %13491 = vmatpush3.bf16.msra.mxu1 %v18216_v53  ;;  %13619 = vmatpush3.bf16.msra.mxu0 %v18216_v53 }
 0x13b   :  { %13492 = vmatprep.subr.bf16.mxu1 %v18220_v56  ;;  %13620 = vmatprep.subr.bf16.mxu0 %v18220_v56 }
 0x13c   :  { %v18230_v60 = vpop.f32.mrf.mxu0 }
 0x13e   :  { %v18234_v14 = vpop.f32.mrf.mxu0  ;;  %13493 = vmatpush3.bf16.msra.mxu1 %v18091_v52  ;;  %13621 = vmatpush3.bf16.msra.mxu0 %v18091_v52 }
 0x13f   :  { %13494 = vmatprep.subr.bf16.mxu1 %v18232_v4  ;;  %13622 = vmatprep.subr.bf16.mxu0 %v18232_v4 }
 0x140   :  { %v18251_v17 = vpop.f32.mrf.mxu0 }
 0x142   :  { %v18259_v11 = vpop.f32.mrf.mxu0  ;;  %13495 = vmatpush3.bf16.msra.mxu1 %v18249_v16  ;;  %13623 = vmatpush3.bf16.msra.mxu0 %v18249_v16 }
 0x143   :  { %16008 = vmatprep.subr.bf16.mxu0 %v16888_v43 }
 0x144   :  { %v18263_v19 = vpop.f32.mrf.mxu0 }
 0x145   :  { %967 = vmatmul.mubr.bf16.vlgmr.msra.gmra.mxu1 %v16882_v44  ;;  %1378 = vmatmul.mubr.bf16.vlgmr.msra.gmra.mxu0 %v16885_v15  ;;  %v16904_v44 = vld [vmem:[%s22908_s4 + $0x40] sm:$0xff]  }
 0x146   :  { %v18268_v62 = vpop.f32.mrf.mxu0  ;;  %16009 = vmatpush3.bf16.msra.mxu0 %v16888_v43  ;;  %974 = vmatprep.mubr.bf16.mxu1 %v16890_v0  ;;  %v16905_v43 = vld [vmem:[%s22907_s3 + $0x84] ss:$16 sps:$4 sm:$0xff]   ;;  %v18336_v15 = vld [vmem:[%s22909_s2] ss:$0 sm:$0xff] }
 0x147   :  { %16010 = vmatprep.subr.bf16.mxu0 %v16889_v18  ;;  %1385 = vmatprep.mubr.bf16.mxu0 %v16946_v21  ;;  %v579_v0 = vadd.f32 %v18336_v15, %v18234_v14  ;;  %v16907_v14 = vld [vmem:[%s22907_s3 + $0x80] ss:$16 sps:$4 sm:$0xff]  }
 0x148   :  { %v18279_v12 = vpop.f32.mrf.mxu0 }
 0x14a   :  { %v18281_v26 = vpop.f32.mrf.mxu0  ;;  %16011 = vmatpush3.bf16.msra.mxu0 %v16889_v18 }
 0x14b   :  { %16012 = vmatprep.subr.bf16.mxu0 %v16893_v22 }
 0x14c   :  { %v18289_v29 = vpop.f32.mrf.mxu0 }
 0x14d   :  { %975 = vmatmul.mubr.bf16.gmra.mxu1 %v16892_v24  ;;  %1386 = vmatmul.mubr.bf16.gmra.mxu0 %v16951_v25  ;;  %v576_v24 = vadd.f32 %v18336_v15, %v18224_v63  ;;  %v16908_v63 = vld [vmem:[%s22907_s3 + $0xa4] ss:$16 sps:$4 sm:$0xff]  }
 0x14e   :  { %v18294_v33 = vpop.f32.mrf.mxu0  ;;  %16013 = vmatpush3.bf16.msra.mxu0 %v16893_v22  ;;  %982 = vmatprep.mubr.bf16.mxu1 %v16895_v27  ;;  %v16970_v22 = vld [vmem:[%s22907_s3 + $0x184] ss:$16 sps:$4 sm:$0xff]  }
 0x14f   :  { %16014 = vmatprep.subr.bf16.mxu0 %v16894_v28  ;;  %1393 = vmatprep.mubr.bf16.mxu0 %v16954_v30  ;;  %v693_v30 = vmax.f32 %v579_v0, 0.0  ;;  %v563_v0 = vadd.f32 %v18336_v15, %v18206_v50  ;;  %v555_v50 = vadd.f32 %v18336_v15, %v18218_v55  ;;  %v16911_v55 = vld [vmem:[%s22907_s3 + $0xc4] ss:$16 sps:$4 sm:$0xff]  }
 0x150   :  { %v18305_v39 = vpop.f32.mrf.mxu0 }
 0x152   :  { %v16002_v45 = vpop.f32.mrf.mxu0  ;;  %16015 = vmatpush3.bf16.msra.mxu0 %v16894_v28 }
 0x153   :  { %16016 = vmatprep.subr.bf16.mxu0 %v16898_v35 }
 0x154   :  { %v18313_v5 = vpop.f32.mrf.mxu0 }
 0x155   :  { %983 = vmatmul.mubr.bf16.gmra.mxu1 %v16897_v10  ;;  %1394 = vmatmul.mubr.bf16.gmra.mxu0 %v16959_v37 }
 0x156   :  { %v16003_v8 = vpop.f32.mrf.mxu0  ;;  %16017 = vmatpush3.bf16.msra.mxu0 %v16898_v35  ;;  %990 = vmatprep.mubr.bf16.mxu1 %v16900_v54  ;;  %v571_v35 = vadd.f32 %v18336_v15, %v18251_v17 }
 0x157   :  { %16018 = vmatprep.subr.bf16.mxu0 %v16899_v49  ;;  %1401 = vmatprep.mubr.bf16.mxu0 %v16962_v51  ;;  %v627_v37 = vadd.f32 %v18336_v15, %v16003_v8  ;;  %v16974_v8 = vld [vmem:[%s22907_s3 + $0x180] ss:$16 sps:$4 sm:$0xff]  }
 0x158   :  { %v618_v48 = vpop.f32.mrf.mxu0 }
 0x15a   :  { %v16006_v13 = vpop.f32.mrf.mxu0  ;;  %16019 = vmatpush3.bf16.msra.mxu0 %v16899_v49 }
 0x15b   :  { %16020 = vmatprep.subr.bf16.mxu0 %v16903_v57  ;;  %v640_v21 = vadd.f32 %v18336_v15, %v16006_v13 }
 0x15c   :  { %v631_v18 = vpop.f32.mrf.mxu0 }
 0x15d   :  { %991 = vmatmul.mubr.bf16.gmra.mxu1 %v16902_v59  ;;  %1402 = vmatmul.mubr.bf16.gmra.mxu0 %v16967_v6  ;;  %v632_v27 = vadd.f32 %v18336_v15, %v631_v18  ;;  %v708_v54 = vmax.f32 %v640_v21, 0.0  ;;  %v568_v59 = vadd.f32 %v18336_v15, %v18230_v60  ;;  %v624_v6 = vadd.f32 %v18336_v15, %v16002_v45 }
 0x15e   :  { %v16007_v25 = vpop.f32.mrf.mxu0  ;;  %16021 = vmatpush3.bf16.msra.mxu0 %v16903_v57  ;;  %998 = vmatprep.mubr.bf16.mxu1 %v16905_v43  ;;  %v692_v57 = vmax.f32 %v576_v24, 0.0  ;;  %v691_v21 = vmax.f32 %v571_v35, 0.0  ;;  %v560_v60 = vadd.f32 %v18336_v15, %v18190_v36  ;;  %v705_v45 = vmax.f32 %v627_v37, 0.0  ;;  %v16976_v24 = vld [vmem:[%s22907_s3 + $0x1a4] ss:$16 sps:$4 sm:$0xff]  }
 0x15f   :  { %v643_v28 = vadd.f32 %v18336_v15, %v16007_v25  ;;  %16022 = vmatprep.subr.bf16.mxu0 %v16904_v44  ;;  %1409 = vmatprep.mubr.bf16.mxu0 %v16970_v22  ;;  %v706_v13 = vmax.f32 %v632_v27, 0.0  ;;  %v690_v25 = vmax.f32 %v568_v59, 0.0  ;;  %v616_v27 = vadd.f32 %v18336_v15, %v18313_v5 }
 0x160   :  { %v634_v10 = vpop.f32.mrf.mxu0  ;;  %v18369_v18 = vpack.c.bf16 %v693_v30, %v692_v57  ;;  %v704_v36 = vmax.f32 %v624_v6, 0.0  ;;  %v688_v5 = vmax.f32 %v560_v60, 0.0  ;;  %v611_v30 = vadd.f32 %v18336_v15, %v18294_v33 }
 0x161   :  { %v709_v49 = vmax.f32 %v643_v28, 0.0  ;;  %v635_v51 = vadd.f32 %v18336_v15, %v634_v10  ;;  %v689_v28 = vmax.f32 %v563_v0, 0.0  ;;  %v552_v37 = vadd.f32 %v18336_v15, %v18200_v7  ;;  %v16982_v7 = vld [vmem:[%s22907_s3 + $0x1c4] ss:$16 sps:$4 sm:$0xff]  }
 0x162   :  { %16023 = vmatpush3.bf16.msra.mxu0 %v16904_v44  ;;  %v619_v44 = vadd.f32 %v18336_v15, %v618_v48  ;;  %v16910_v48 = vld [vmem:[%s22907_s3 + $0xa0] ss:$16 sps:$4 sm:$0xff]   ;;  %v18396_v35 = vpack.c.bf16 %v705_v45, %v704_v36  ;;  %v701_v57 = vmax.f32 %v611_v30, 0.0  ;;  %v603_v59 = vadd.f32 %v18336_v15, %v18305_v39  ;;  %v16919_v30 = vld [vmem:[%s22907_s3 + $0xc] ss:$16 sps:$4 sm:$0xff]  }
 0x163   :  { %v18361_v17 = vpack.c.bf16 %v709_v49, %v708_v54  ;;  %v707_v43 = vmax.f32 %v635_v51, 0.0  ;;  %13768 = vmatprep.subr.bf16.mxu0 %v18125_v38  ;;  %v687_v54 = vmax.f32 %v555_v50, 0.0  ;;  %v608_v49 = vadd.f32 %v18336_v15, %v18281_v26  ;;  %v16913_v39 = vld [vmem:[%s22907_s3 + $0xc0] ss:$16 sps:$4 sm:$0xff]  }
 0x164   :  { %v703_v10 = vmax.f32 %v619_v44, 0.0  ;;  %v702_v51 = vmax.f32 %v616_v27, 0.0  ;;  %v18407_v33 = vpack.c.bf16 %v689_v28, %v688_v5  ;;  %v699_v45 = vmax.f32 %v603_v59, 0.0  ;;  %v16986_v44 = vld [vmem:[%s22907_s3 + $0x1c0] ss:$16 sps:$4 sm:$0xff]  }
 0x165   :  { %22959 = vst [vmem:[#allocation16_spill] sm:$0xff] %v18361_v17  ;;  %v18374_v22 = vpack.c.bf16 %v707_v43, %v706_v13  ;;  %999 = vmatmul.mubr.bf16.gmra.mxu1 %v16907_v14  ;;  %13544 = vmatprep.subr.bf16.mxu1 %v18361_v17  ;;  %v18389_v14 = vpack.c.bf16 %v691_v21, %v690_v25  ;;  %v686_v13 = vmax.f32 %v552_v37, 0.0  ;;  %v700_v26 = vmax.f32 %v608_v49, 0.0  ;;  %v16914_v21 = vld [vmem:[%s22907_s3 + $0xe4] ss:$16 sps:$4 sm:$0xff]  }
 0x166   :  { %13545 = vmatpush3.bf16.msra.mxu1 %v18369_v18  ;;  %1006 = vmatprep.mubr.bf16.mxu1 %v16908_v63  ;;  %v16980_v63 = vld [vmem:[%s22907_s3 + $0x1a0] ss:$16 sps:$4 sm:$0xff]   ;;  %v18411_v6 = vpack.c.bf16 %v703_v10, %v702_v51  ;;  %v600_v43 = vadd.f32 %v18336_v15, %v18289_v29  ;;  %v595_v29 = vadd.f32 %v18336_v15, %v18268_v62  ;;  %v16922_v59 = vld [vmem:[%s22907_s3 + $0x28] ss:$16 sps:$4 sm:$0xff]  }
 0x167   :  { %13546 = vmatprep.subr.bf16.mxu1 %v18374_v22  ;;  %1410 = vmatmul.mubr.bf16.gmra.mxu0 %v16974_v8  ;;  %v539_v8 = vadd.f32 %v18336_v15, %v18182_v32  ;;  %v18425_v0 = vpack.c.bf16 %v687_v54, %v686_v13  ;;  %v18432_v60 = vpack.c.bf16 %v701_v57, %v700_v26  ;;  %v16992_v37 = vld [vmem:[%s22907_s3 + $0x1e0] ss:$16 sps:$4 sm:$0xff]   ;;  %v16920_v57 = vld [vmem:[%s22907_s3 + $0x2c] ss:$16 sps:$4 sm:$0xff]   ;;  %v16925_v13 = vld [vmem:[%s22907_s3 + $0x48] ss:$16 sps:$4 sm:$0xff]  }
 0x168   :  { %1417 = vmatprep.mubr.bf16.mxu0 %v16976_v24  ;;  %v536_v32 = vadd.f32 %v18336_v15, %v18169_v9  ;;  %v592_v24 = vadd.f32 %v18336_v15, %v18259_v11  ;;  %v698_v50 = vmax.f32 %v600_v43, 0.0  ;;  %v697_v62 = vmax.f32 %v595_v29, 0.0  ;;  %v16988_v9 = vld [vmem:[%s22907_s3 + $0x1e4] ss:$16 sps:$4 sm:$0xff]   ;;  %v16926_v26 = vld [vmem:[%s22907_s3 + $0x6c] ss:$16 sps:$4 sm:$0xff]  }
 0x169   :  { %v683_v25 = vmax.f32 %v539_v8, 0.0  ;;  %v587_v27 = vadd.f32 %v18336_v15, %v18279_v12  ;;  %v584_v28 = vadd.f32 %v18336_v15, %v18263_v19  ;;  %v16916_v12 = vld [vmem:[%s22907_s3 + $0xe0] ss:$16 sps:$4 sm:$0xff]   ;;  %v520_v19 = vadd.f32 %v18336_v15, %v18130_v42  ;;  %v16917_v42 = vld [vmem:[%s22907_s3 + $0x8] ss:$16 sps:$4 sm:$0xff]  }
 0x16a   :  { %13547 = vmatpush3.bf16.msra.mxu1 %v18389_v14  ;;  %v18445_v36 = vpack.c.bf16 %v699_v45, %v698_v50  ;;  %v696_v11 = vmax.f32 %v592_v24, 0.0  ;;  %v16928_v43 = vld [vmem:[%s22907_s3 + $0x68] ss:$16 sps:$4 sm:$0xff]   ;;  %v16932_v29 = vld [vmem:[%s22907_s3 + $0xac] ss:$16 sps:$4 sm:$0xff]  }
 0x16b   :  { %13548 = vmatprep.subr.bf16.mxu1 %v18396_v35  ;;  %v678_v49 = vmax.f32 %v520_v19, 0.0  ;;  %v16944_v8 = vld [vmem:[%s22908_s4 + $0x38] sm:$0xff]  }
 0x16c   :  { %v18466_v10 = vpack.c.bf16 %v697_v62, %v696_v11  ;;  %v16934_v45 = vld [vmem:[%s22907_s3 + $0xa8] ss:$16 sps:$4 sm:$0xff]   ;;  %v16938_v24 = vld [vmem:[%s22907_s3 + $0xec] ss:$16 sps:$4 sm:$0xff]  }
 0x16d   :  { %1007 = vmatmul.mubr.bf16.gmra.mxu1 %v16910_v48  ;;  %v682_v48 = vmax.f32 %v536_v32, 0.0  ;;  %v16937_v32 = vld [vmem:[%s22907_s3 + $0xc8] ss:$16 sps:$4 sm:$0xff]   ;;  %v16964_v19 = vld [vmem:[%s22907_s3 + $0x16c] ss:$16 sps:$4 sm:$0xff]  }
 0x16e   :  { %13549 = vmatpush3.bf16.msra.mxu1 %v18407_v33  ;;  %1014 = vmatprep.mubr.bf16.mxu1 %v16911_v55  ;;  %v523_v55 = vadd.f32 %v18336_v15, %v18149_v2  ;;  %v694_v2 = vmax.f32 %v584_v28, 0.0  ;;  %v16940_v50 = vld [vmem:[%s22907_s3 + $0xe8] ss:$16 sps:$4 sm:$0xff]   ;;  %v16956_v28 = vld [vmem:[%s22907_s3 + $0x14c] ss:$16 sps:$4 sm:$0xff]  }
 0x16f   :  { %13550 = vmatprep.subr.bf16.mxu1 %v18411_v6  ;;  %1418 = vmatmul.mubr.bf16.gmra.mxu0 %v16980_v63  ;;  %v18459_v5 = vpack.c.bf16 %v683_v25, %v682_v48  ;;  %v695_v63 = vmax.f32 %v587_v27, 0.0  ;;  %v16943_v25 = vld [vmem:[%s22907_s3 + $0x10c] ss:$16 sps:$4 sm:$0xff]   ;;  %v16941_v62 = vld [vmem:[%s22907_s3 + $0x108] ss:$16 sps:$4 sm:$0xff]  }
 0x170   :  { %1425 = vmatprep.mubr.bf16.mxu0 %v16982_v7  ;;  %v679_v54 = vmax.f32 %v523_v55, 0.0  ;;  %v16923_v7 = vld [vmem:[%s22907_s3 + $0x4c] ss:$16 sps:$4 sm:$0xff]   ;;  %v16952_v11 = vld [vmem:[%s22907_s3 + $0x128] ss:$16 sps:$4 sm:$0xff]  }
 0x171   :  { %v18473_v51 = vpack.c.bf16 %v695_v63, %v694_v2  ;;  %v16948_v27 = vld [vmem:[%s22907_s3 + $0x12c] ss:$16 sps:$4 sm:$0xff]   ;;  %v16961_v63 = vld [vmem:[%s22908_s4 + $0x10] sm:$0xff]   ;;  %v16968_v2 = vld [vmem:[%s22907_s3 + $0x168] ss:$16 sps:$4 sm:$0xff]  }
 0x172   :  { %13551 = vmatpush3.bf16.msra.mxu1 %v18425_v0  ;;  %v18480_v15 = vpack.c.bf16 %v679_v54, %v678_v49  ;;  %v16950_v48 = vld [vmem:[%s22908_s4 + $0x28] sm:$0xff]   ;;  %v16958_v55 = vld [vmem:[%s22908_s4 + $0x18] sm:$0xff]   ;;  %v16969_v49 = vld [vmem:[%s22908_s4] sm:$0xff]  }
 0x173   :  { %13552 = vmatprep.subr.bf16.mxu1 %v18432_v60  ;;  %v16972_v54 = vld [vmem:[%s22907_s3 + $0x18c] ss:$16 sps:$4 sm:$0xff]  }
 0x175   :  { %1015 = vmatmul.mubr.bf16.gmra.mxu1 %v16913_v39  ;;  %v16929_v39 = vld [vmem:[%s22907_s3 + $0x8c] ss:$16 sps:$4 sm:$0xff]  }
 0x176   :  { %13553 = vmatpush3.bf16.msra.mxu1 %v18196_v40  ;;  %1022 = vmatprep.mubr.bf16.mxu1 %v16914_v21  ;;  %v16931_v21 = vld [vmem:[%s22907_s3 + $0x88] ss:$16 sps:$4 sm:$0xff]  }
 0x177   :  { %13554 = vmatprep.subr.bf16.mxu1 %v18445_v36  ;;  %1426 = vmatmul.mubr.bf16.gmra.mxu0 %v16986_v44  ;;  %v16935_v44 = vld [vmem:[%s22907_s3 + $0xcc] ss:$16 sps:$4 sm:$0xff]  }
 0x178   :  { %1433 = vmatprep.mubr.bf16.mxu0 %v16988_v9  ;;  %v16945_v9 = vld [vmem:[%s22908_s4 + $0x30] sm:$0xff]  }
 0x17a   :  { %13555 = vmatpush3.bf16.msra.mxu1 %v18459_v5 }
 0x17b   :  { %13556 = vmatprep.subr.bf16.mxu1 %v18466_v10 }
 0x17d   :  { %1023 = vmatmul.mubr.bf16.gmra.mxu1 %v16916_v12  ;;  %v16953_v12 = vld [vmem:[%s22908_s4 + $0x20] sm:$0xff]  }
 0x17e   :  { %13557 = vmatpush3.bf16.msra.mxu1 %v18162_v20  ;;  %1063 = vmatprep.mubr.bf16.mxu1 %v16919_v30  ;;  %v16960_v30 = vld [vmem:[%s22907_s3 + $0x148] ss:$16 sps:$4 sm:$0xff]  }
 0x17f   :  { %13558 = vmatprep.subr.bf16.mxu1 %v18473_v51  ;;  %1434 = vmatmul.mubr.bf16.gmra.mxu0 %v16992_v37  ;;  %v16966_v37 = vld [vmem:[%s22908_s4 + $0x8] sm:$0xff]  }
 0x182   :  { %13559 = vmatpush3.bf16.msra.mxu1 %v18480_v15 }
 0x183   :  { %13672 = vmatprep.subr.bf16.mxu1 %v18361_v17 }
 0x185   :  { %1064 = vmatmul.mubr.bf16.vlgmr.msra.gmra.mxu1 %v16917_v42  ;;  %v16975_v42 = vld [vmem:[%s22907_s3 + $0x188] ss:$16 sps:$4 sm:$0xff]  }
 0x186   :  { %13673 = vmatpush3.bf16.msra.mxu1 %v18369_v18  ;;  %1071 = vmatprep.mubr.bf16.mxu1 %v16920_v57  ;;  %v16978_v57 = vld [vmem:[%s22907_s3 + $0x1ac] ss:$16 sps:$4 sm:$0xff]  }
 0x187   :  { %13674 = vmatprep.subr.bf16.mxu1 %v18374_v22 }
 0x18a   :  { %13675 = vmatpush3.bf16.msra.mxu1 %v18389_v14 }
 0x18b   :  { %13676 = vmatprep.subr.bf16.mxu1 %v18396_v35 }
 0x18d   :  { %1072 = vmatmul.mubr.bf16.gmra.mxu1 %v16922_v59  ;;  %v16981_v59 = vld [vmem:[%s22907_s3 + $0x1a8] ss:$16 sps:$4 sm:$0xff]  }
 0x18e   :  { %13677 = vmatpush3.bf16.msra.mxu1 %v18407_v33  ;;  %1079 = vmatprep.mubr.bf16.mxu1 %v16923_v7  ;;  %v16984_v7 = vld [vmem:[%s22907_s3 + $0x1cc] ss:$16 sps:$4 sm:$0xff]  }
 0x18f   :  { %13678 = vmatprep.subr.bf16.mxu1 %v18411_v6 }
 0x192   :  { %13679 = vmatpush3.bf16.msra.mxu1 %v18425_v0 }
 0x193   :  { %13680 = vmatprep.subr.bf16.mxu1 %v18432_v60 }
 0x195   :  { %1080 = vmatmul.mubr.bf16.gmra.mxu1 %v16925_v13  ;;  %v16987_v13 = vld [vmem:[%s22907_s3 + $0x1c8] ss:$16 sps:$4 sm:$0xff]  }
 0x196   :  { %13681 = vmatpush3.bf16.msra.mxu1 %v18196_v40  ;;  %1087 = vmatprep.mubr.bf16.mxu1 %v16926_v26  ;;  %v16990_v26 = vld [vmem:[%s22907_s3 + $0x1ec] ss:$16 sps:$4 sm:$0xff]  }
 0x197   :  { %13682 = vmatprep.subr.bf16.mxu1 %v18445_v36 }
 0x19a   :  { %13683 = vmatpush3.bf16.msra.mxu1 %v18459_v5 }
 0x19b   :  { %13684 = vmatprep.subr.bf16.mxu1 %v18466_v10 }
 0x19d   :  { %1088 = vmatmul.mubr.bf16.gmra.mxu1 %v16928_v43  ;;  %v16993_v43 = vld [vmem:[%s22907_s3 + $0x1e8] ss:$16 sps:$4 sm:$0xff]  }
 0x19e   :  { %13685 = vmatpush3.bf16.msra.mxu1 %v18162_v20  ;;  %1095 = vmatprep.mubr.bf16.mxu1 %v16929_v39 }
 0x19f   :  { %13686 = vmatprep.subr.bf16.mxu1 %v18473_v51 }
 0x1a2   :  { %13687 = vmatpush3.bf16.msra.mxu1 %v18480_v15 }
 0x1a3   :  { %16040 = vmatprep.subr.bf16.mxu1 %v16944_v8 }
 0x1a5   :  { %1096 = vmatmul.mubr.bf16.gmra.mxu1 %v16931_v21 }
 0x1a6   :  { %1103 = vmatprep.mubr.bf16.mxu1 %v16932_v29 }
 0x1ad   :  { %1104 = vmatmul.mubr.bf16.gmra.mxu1 %v16934_v45 }
 0x1ae   :  { %1111 = vmatprep.mubr.bf16.mxu1 %v16935_v44 }
 0x1b5   :  { %1112 = vmatmul.mubr.bf16.gmra.mxu1 %v16937_v32 }
 0x1b6   :  { %1119 = vmatprep.mubr.bf16.mxu1 %v16938_v24 }
 0x1bd   :  { %1120 = vmatmul.mubr.bf16.gmra.mxu1 %v16940_v50 }
 0x1be   :  { %1474 = vmatprep.mubr.bf16.mxu1 %v16943_v25 }
 0x1c5   :  { %1475 = vmatmul.mubr.bf16.vlgmr.msra.gmra.mxu1 %v16941_v62 }
 0x1c6   :  { %16041 = vmatpush3.bf16.msra.mxu1 %v16944_v8  ;;  %1482 = vmatprep.mubr.bf16.mxu1 %v16948_v27 }
 0x1c7   :  { %16042 = vmatprep.subr.bf16.mxu1 %v16945_v9 }
 0x1ca   :  { %16043 = vmatpush3.bf16.msra.mxu1 %v16945_v9 }
 0x1cb   :  { %16044 = vmatprep.subr.bf16.mxu1 %v16950_v48 }
 0x1cd   :  { %1483 = vmatmul.mubr.bf16.gmra.mxu1 %v16952_v11 }
 0x1ce   :  { %16045 = vmatpush3.bf16.msra.mxu1 %v16950_v48  ;;  %1490 = vmatprep.mubr.bf16.mxu1 %v16956_v28 }
 0x1cf   :  { %16046 = vmatprep.subr.bf16.mxu1 %v16953_v12 }
 0x1d2   :  { %16047 = vmatpush3.bf16.msra.mxu1 %v16953_v12 }
 0x1d3   :  { %16048 = vmatprep.subr.bf16.mxu1 %v16958_v55 }
 0x1d5   :  { %1491 = vmatmul.mubr.bf16.gmra.mxu1 %v16960_v30 }
 0x1d6   :  { %16049 = vmatpush3.bf16.msra.mxu1 %v16958_v55  ;;  %1498 = vmatprep.mubr.bf16.mxu1 %v16964_v19 }
 0x1d7   :  { %16050 = vmatprep.subr.bf16.mxu1 %v16961_v63 }
 0x1da   :  { %16051 = vmatpush3.bf16.msra.mxu1 %v16961_v63 }
 0x1db   :  { %16052 = vmatprep.subr.bf16.mxu1 %v16966_v37 }
 0x1dd   :  { %1499 = vmatmul.mubr.bf16.gmra.mxu1 %v16968_v2 }
 0x1de   :  { %16053 = vmatpush3.bf16.msra.mxu1 %v16966_v37  ;;  %1506 = vmatprep.mubr.bf16.mxu1 %v16972_v54 }
 0x1df   :  { %16054 = vmatprep.subr.bf16.mxu1 %v16969_v49 }
 0x1e2   :  { %16055 = vmatpush3.bf16.msra.mxu1 %v16969_v49 }
 0x1e3   :  { %13832 = vmatprep.subr.bf16.mxu1 %v18361_v17 }
 0x1e5   :  { %1507 = vmatmul.mubr.bf16.gmra.mxu1 %v16975_v42 }
 0x1e6   :  { %1514 = vmatprep.mubr.bf16.mxu1 %v16978_v57 }
 0x1ed   :  { %1515 = vmatmul.mubr.bf16.gmra.mxu1 %v16981_v59 }
 0x1ee   :  { %1522 = vmatprep.mubr.bf16.mxu1 %v16984_v7 }
 0x1f5   :  { %1523 = vmatmul.mubr.bf16.gmra.mxu1 %v16987_v13 }
 0x1f6   :  { %1530 = vmatprep.mubr.bf16.mxu1 %v16990_v26 }
 0x1fd   :  { %1531 = vmatmul.mubr.bf16.gmra.mxu1 %v16993_v43 }
 0x205   :  { %v13496_v39 = vpop.f32.mrf.mxu1 }
 0x207   :  { %v13497_v8 = vpop.f32.mrf.mxu1 }
 0x208   :  { %v13498_v21 = vadd.f32 %v13497_v8, %v13496_v39 }
 0x209   :  { %v13499_v29 = vpop.f32.mrf.mxu1 }
 0x20b   :  { %v13500_v45 = vpop.f32.mrf.mxu1 }
 0x20c   :  { %v13501_v16 = vadd.f32 %v13500_v45, %v13499_v29 }
 0x20d   :  { %v13502_v44 = vpop.f32.mrf.mxu1 }
 0x20f   :  { %v13503_v32 = vpop.f32.mrf.mxu1 }
 0x210   :  { %v13504_v24 = vadd.f32 %v13503_v32, %v13502_v44 }
 0x211   :  { %v13505_v50 = vpop.f32.mrf.mxu1 }
 0x213   :  { %v13506_v25 = vpop.f32.mrf.mxu1 }
 0x214   :  { %v13507_v58 = vadd.f32 %v13506_v25, %v13505_v50 }
 0x215   :  { %v13508_v62 = vpop.f32.mrf.mxu1 }
 0x217   :  { %v13509_v27 = vpop.f32.mrf.mxu1 }
 0x218   :  { %v18614_v9 = vadd.f32 %v13509_v27, %v13508_v62 }
 0x219   :  { %v13511_v48 = vpop.f32.mrf.mxu1 }
 0x21b   :  { %v13512_v11 = vpop.f32.mrf.mxu1 }
 0x21d   :  { %v13514_v28 = vpop.f32.mrf.mxu1 }
 0x21f   :  { %v13515_v12 = vpop.f32.mrf.mxu1 }
 0x220   :  { %v18616_v55 = vadd.f32 %v13515_v12, %v13514_v28 }
 0x221   :  { %v18618_v30 = vpop.f32.mrf.mxu1 }
 0x223   :  { %v18620_v19 = vpop.f32.mrf.mxu1 }
 0x225   :  { %v13520_v63 = vpop.f32.mrf.mxu1 }
 0x227   :  { %v13521_v37 = vpop.f32.mrf.mxu1 }
 0x228   :  { %v18622_v2 = vadd.f32 %v13521_v37, %v13520_v63  ;;  %v18646_v37 = vpop.f32.mrf.mxu0 }
 0x229   :  { %v18624_v54 = vpop.f32.mrf.mxu1 }
 0x22a   :  { %v18648_v17 = vpop.f32.mrf.mxu0 }
 0x22b   :  { %v18626_v49 = vpop.f32.mrf.mxu1 }
 0x22c   :  { %v18650_v56 = vpop.f32.mrf.mxu0 }
 0x22d   :  { %v13526_v42 = vpop.f32.mrf.mxu1 }
 0x22e   :  { %v18652_v34 = vpop.f32.mrf.mxu0 }
 0x22f   :  { %v13527_v57 = vpop.f32.mrf.mxu1 }
 0x230   :  { %v18628_v59 = vadd.f32 %v13527_v57, %v13526_v42 }
 0x231   :  { %v18630_v7 = vpop.f32.mrf.mxu1 }
 0x233   :  { %v18632_v13 = vpop.f32.mrf.mxu1 }
 0x235   :  { %v13532_v26 = vpop.f32.mrf.mxu1 }
 0x237   :  { %v13533_v43 = vpop.f32.mrf.mxu1 }
 0x238   :  { %v18634_v39 = vadd.f32 %v13533_v43, %v13532_v26 }
 0x239   :  { %v18636_v8 = vpop.f32.mrf.mxu1 }
 0x23b   :  { %v18638_v44 = vpop.f32.mrf.mxu1 }
 0x23d   :  { %v13538_v32 = vpop.f32.mrf.mxu1 }
 0x23f   :  { %v13539_v62 = vpop.f32.mrf.mxu1 }
 0x240   :  { %v18640_v27 = vadd.f32 %v13539_v62, %v13538_v32 }
 0x241   :  { %v18642_v28 = vpop.f32.mrf.mxu1 }
 0x243   :  { %v18644_v12 = vpop.f32.mrf.mxu1 }
 0x245   :  { %v13560_v63 = vpop.f32.mrf.mxu1 }
 0x247   :  { %v13561_v42 = vpop.f32.mrf.mxu1 }
 0x248   :  { %v13562_v26 = vadd.f32 %v13561_v42, %v13560_v63  ;;  %v18654_v63 = vpop.f32.mrf.mxu0 }
 0x249   :  { %v13563_v57 = vpop.f32.mrf.mxu1 }
 0x24a   :  { %v1066_v32 = vadd.f32 %v13562_v26, %v13498_v21  ;;  %v18656_v21 = vpop.f32.mrf.mxu0 }
 0x24b   :  { %v13564_v43 = vpop.f32.mrf.mxu1 }
 0x24c   :  { %v13565_v4 = vadd.f32 %v13564_v43, %v13563_v57 }
 0x24d   :  { %v13566_v52 = vpop.f32.mrf.mxu1 }
 0x24e   :  { %v1069_v62 = vadd.f32 %v13565_v4, %v13501_v16 }
 0x24f   :  { %v13567_v53 = vpop.f32.mrf.mxu1 }
 0x250   :  { %v1128_v46 = vpack.c.bf16 %v1069_v62, %v1066_v32  ;;  %v13568_v31 = vadd.f32 %v13567_v53, %v13566_v52  ;;  %v13513_v52 = vadd.f32 %v13512_v11, %v13511_v48  ;;  %v13519_v48 = vadd.f32 %v18620_v19, %v18618_v30 }
 0x251   :  { %v13569_v61 = vpop.f32.mrf.mxu1  ;;  %v13525_v19 = vadd.f32 %v18626_v49, %v18624_v54  ;;  %v13531_v49 = vadd.f32 %v18632_v13, %v18630_v7  ;;  %v13537_v13 = vadd.f32 %v18638_v44, %v18636_v8 }
 0x252   :  { %16056 = vmatprep.mubr.bf16.mxu1 %v1128_v46  ;;  %v1074_v29 = vadd.f32 %v13568_v31, %v13504_v24 }
 0x253   :  { %v13570_v23 = vpop.f32.mrf.mxu1 }
 0x254   :  { %v13571_v3 = vadd.f32 %v13570_v23, %v13569_v61  ;;  %v18660_v23 = vpop.f32.mrf.mxu0 }
 0x255   :  { %v13572_v1 = vpop.f32.mrf.mxu1 }
 0x256   :  { %v1077_v45 = vadd.f32 %v13571_v3, %v13507_v58  ;;  %v18665_v24 = vpop.f32.mrf.mxu0 }
 0x257   :  { %v13573_v42 = vpop.f32.mrf.mxu1 }
 0x258   :  { %v1129_v57 = vpack.c.bf16 %v1077_v45, %v1074_v29  ;;  %v13574_v4 = vadd.f32 %v13573_v42, %v13572_v1  ;;  %v18671_v26 = vpop.f32.mrf.mxu0 }
 0x259   :  { %v13575_v43 = vpop.f32.mrf.mxu1 }
 0x25a   :  { %16057 = vmatmul.mubr.bf16.vlgmr.msra.gmra.mxu1 %v1129_v57  ;;  %v1082_v31 = vadd.f32 %v13574_v4, %v18614_v9  ;;  %v18676_v57 = vpop.f32.mrf.mxu0 }
 0x25b   :  { %13833 = vmatpush3.bf16.msra.mxu1 %v18369_v18  ;;  %v13576_v16 = vpop.f32.mrf.mxu1 }
 0x25c   :  { %v13577_v46 = vadd.f32 %v13576_v16, %v13575_v43  ;;  %13834 = vmatprep.subr.bf16.mxu1 %v18374_v22  ;;  %v18682_v16 = vpop.f32.mrf.mxu0 }
 0x25d   :  { %v13578_v61 = vpop.f32.mrf.mxu1 }
 0x25e   :  { %v1085_v3 = vadd.f32 %v13577_v46, %v13513_v52 }
 0x25f   :  { %13835 = vmatpush3.bf16.msra.mxu1 %v18389_v14  ;;  %v13579_v58 = vpop.f32.mrf.mxu1 }
 0x260   :  { %13836 = vmatprep.subr.bf16.mxu1 %v18396_v35  ;;  %v1130_v1 = vpack.c.bf16 %v1085_v3, %v1082_v31  ;;  %v13580_v50 = vadd.f32 %v13579_v58, %v13578_v61  ;;  %v18687_v58 = vpop.f32.mrf.mxu0 }
 0x261   :  { %v13581_v53 = vpop.f32.mrf.mxu1 }
 0x262   :  { %16060 = vmatprep.mubr.bf16.mxu1 %v1130_v1  ;;  %v1090_v32 = vadd.f32 %v13580_v50, %v18616_v55  ;;  %v18693_v50 = vpop.f32.mrf.mxu0 }
 0x263   :  { %13837 = vmatpush3.bf16.msra.mxu1 %v18407_v33  ;;  %v13582_v25 = vpop.f32.mrf.mxu1 }
 0x264   :  { %v13583_v11 = vadd.f32 %v13582_v25, %v13581_v53  ;;  %13838 = vmatprep.subr.bf16.mxu1 %v18411_v6 }
 0x265   :  { %v13584_v9 = vpop.f32.mrf.mxu1 }
 0x266   :  { %v1093_v62 = vadd.f32 %v13583_v11, %v13519_v48 }
 0x267   :  { %13839 = vmatpush3.bf16.msra.mxu1 %v18425_v0  ;;  %v13585_v29 = vpop.f32.mrf.mxu1 }
 0x268   :  { %13840 = vmatprep.subr.bf16.mxu1 %v18432_v60  ;;  %v1131_v45 = vpack.c.bf16 %v1093_v62, %v1090_v32  ;;  %v13586_v43 = vadd.f32 %v13585_v29, %v13584_v9  ;;  %v18698_v62 = vpop.f32.mrf.mxu0 }
 0x269   :  { %v13587_v42 = vpop.f32.mrf.mxu1 }
 0x26a   :  { %16061 = vmatmul.mubr.bf16.gmra.mxu1 %v1131_v45  ;;  %v1098_v52 = vadd.f32 %v13586_v43, %v18622_v2  ;;  %v18702_v43 = vpop.f32.mrf.mxu0 }
 0x26b   :  { %13841 = vmatpush3.bf16.msra.mxu1 %v18196_v40  ;;  %v13588_v30 = vpop.f32.mrf.mxu1 }
 0x26c   :  { %v13589_v4 = vadd.f32 %v13588_v30, %v13587_v42  ;;  %13842 = vmatprep.subr.bf16.mxu1 %v18445_v36 }
 0x26d   :  { %v13590_v55 = vpop.f32.mrf.mxu1 }
 0x26e   :  { %v1101_v46 = vadd.f32 %v13589_v4, %v13525_v19 }
 0x26f   :  { %13843 = vmatpush3.bf16.msra.mxu1 %v18459_v5  ;;  %v13591_v61 = vpop.f32.mrf.mxu1 }
 0x270   :  { %13844 = vmatprep.subr.bf16.mxu1 %v18466_v10  ;;  %v1132_v31 = vpack.c.bf16 %v1101_v46, %v1098_v52  ;;  %v13592_v1 = vadd.f32 %v13591_v61, %v13590_v55  ;;  %v18705_v52 = vpop.f32.mrf.mxu0 }
 0x271   :  { %v13593_v3 = vpop.f32.mrf.mxu1 }
 0x272   :  { %16064 = vmatprep.mubr.bf16.mxu1 %v1132_v31  ;;  %v1106_v25 = vadd.f32 %v13592_v1, %v18628_v59  ;;  %v13543_v31 = vadd.f32 %v18644_v12, %v18642_v28  ;;  %v18709_v44 = vpop.f32.mrf.mxu0  ;;  %v13626_v28 = vadd.f32 %v18648_v17, %v18646_v37 }
 0x273   :  { %13845 = vmatpush3.bf16.msra.mxu1 %v18162_v20  ;;  %v13594_v54 = vpop.f32.mrf.mxu1 }
 0x274   :  { %v13595_v53 = vadd.f32 %v13594_v54, %v13593_v3  ;;  %13846 = vmatprep.subr.bf16.mxu1 %v18473_v51 }
 0x275   :  { %v13596_v2 = vpop.f32.mrf.mxu1 }
 0x276   :  { %v1109_v48 = vadd.f32 %v13595_v53, %v13531_v49  ;;  %v16996_v49 = vld [vmem:[%s22907_s3 + $0x20c] ss:$16 sps:$4 sm:$0xff]  }
 0x277   :  { %13847 = vmatpush3.bf16.msra.mxu1 %v18480_v15  ;;  %v13597_v11 = vpop.f32.mrf.mxu1 }
 0x278   :  { %13912 = vmatprep.subr.bf16.mxu1 %v18125_v38  ;;  %v1133_v9 = vpack.c.bf16 %v1109_v48, %v1106_v25  ;;  %v13598_v29 = vadd.f32 %v13597_v11, %v13596_v2  ;;  %v18715_v25 = vpop.f32.mrf.mxu0 }
 0x279   :  { %v13599_v32 = vpop.f32.mrf.mxu1 }
 0x27a   :  { %16065 = vmatmul.mubr.bf16.gmra.mxu1 %v1133_v9  ;;  %v1114_v59 = vadd.f32 %v13598_v29, %v18634_v39 }
 0x27b   :  { %v13600_v7 = vpop.f32.mrf.mxu1 }
 0x27c   :  { %v13601_v45 = vadd.f32 %v13600_v7, %v13599_v32  ;;  %v18721_v32 = vpop.f32.mrf.mxu0 }
 0x27d   :  { %v13602_v42 = vpop.f32.mrf.mxu1 }
 0x27e   :  { %v1117_v30 = vadd.f32 %v13601_v45, %v13537_v13  ;;  %v16994_v13 = vld [vmem:[%s22907_s3 + $0x208] ss:$16 sps:$4 sm:$0xff]   ;;  %v18729_v37 = vpop.f32.mrf.mxu0 }
 0x27f   :  { %v13603_v19 = vpop.f32.mrf.mxu1 }
 0x280   :  { %v1134_v4 = vpack.c.bf16 %v1117_v30, %v1114_v59  ;;  %v13604_v46 = vadd.f32 %v13603_v19, %v13602_v42  ;;  %v16999_v42 = vld [vmem:[%s22907_s3 + $0x22c] ss:$16 sps:$4 sm:$0xff]   ;;  %v13632_v30 = vadd.f32 %v18656_v21, %v18654_v63  ;;  %v13635_v19 = vadd.f32 %v18665_v24, %v18660_v23 }
 0x281   :  { %v13605_v55 = vpop.f32.mrf.mxu1  ;;  %v22961_v63 = vld [vmem:[#allocation6_spill] sm:$0xff] }
 0x282   :  { %16068 = vmatprep.mubr.bf16.mxu1 %v1134_v4  ;;  %v1122_v1 = vadd.f32 %v13604_v46, %v18640_v27  ;;  %v13629_v27 = vadd.f32 %v18652_v34, %v18650_v56  ;;  %v18737_v46 = vpop.f32.mrf.mxu0  ;;  %v17002_v23 = vld [vmem:[%s22907_s3 + $0x24c] ss:$16 sps:$4 sm:$0xff]  }
 0x283   :  { %v13606_v61 = vpop.f32.mrf.mxu1 }
 0x284   :  { %v13607_v3 = vadd.f32 %v13606_v61, %v13605_v55  ;;  %v18747_v24 = vpop.f32.mrf.mxu0 }
 0x285   :  { %v13688_v8 = vpop.f32.mrf.mxu1 }
 0x286   :  { %v1125_v54 = vadd.f32 %v13607_v3, %v13543_v31  ;;  %v16997_v3 = vld [vmem:[%s22907_s3 + $0x228] ss:$16 sps:$4 sm:$0xff]  }
 0x287   :  { %v13689_v39 = vpop.f32.mrf.mxu1 }
 0x288   :  { %v1135_v53 = vpack.c.bf16 %v1125_v54, %v1122_v1  ;;  %v13690_v48 = vadd.f32 %v13689_v39, %v13688_v8  ;;  %v22960_v8 = vld [vmem:[#allocation5_spill] sm:$0xff] }
 0x289   :  { %v13691_v2 = vpop.f32.mrf.mxu1 }
 0x28a   :  { %16069 = vmatmul.mubr.bf16.gmra.mxu1 %v1135_v53  ;;  %v1477_v29 = vadd.f32 %v13690_v48, %v13626_v28  ;;  %v13641_v48 = vadd.f32 %v18687_v58, %v18682_v16  ;;  %v22963_v28 = vld [vmem:[#allocation8_spill] sm:$0xff]  ;;  %v22965_v16 = vld [vmem:[#allocation10_spill] sm:$0xff] }
 0x28b   :  { %v13692_v11 = vpop.f32.mrf.mxu1  ;;  %2176 = vmatprep.mubr.bf16.mxu1 %v16996_v49  ;;  %v22962_v49 = vld [vmem:[#allocation7_spill] sm:$0xff] }
 0x28c   :  { %v13693_v12 = vadd.f32 %v13692_v11, %v13691_v2  ;;  %v13638_v2 = vadd.f32 %v18676_v57, %v18671_v26  ;;  %v22964_v26 = vld [vmem:[#allocation9_spill] sm:$0xff] }
 0x28d   :  { %v13694_v9 = vpop.f32.mrf.mxu1 }
 0x28e   :  { %v1480_v7 = vadd.f32 %v13693_v12, %v13629_v27  ;;  %v18757_v12 = vpop.f32.mrf.mxu0 }
 0x28f   :  { %v13695_v45 = vpop.f32.mrf.mxu1 }
 0x290   :  { %v1539_v59 = vpack.c.bf16 %v1480_v7, %v1477_v29  ;;  %v13696_v34 = vadd.f32 %v13695_v45, %v13694_v9  ;;  %v17000_v7 = vld [vmem:[%s22907_s3 + $0x248] ss:$16 sps:$4 sm:$0xff]   ;;  %v17005_v45 = vld [vmem:[%s22907_s3 + $0x26c] ss:$16 sps:$4 sm:$0xff]  }
 0x291   :  { %v13697_v17 = vpop.f32.mrf.mxu1 }
 0x292   :  { %2177 = vmatmul.mubr.bf16.vlgmr.msra.gmra.mxu1 %v16994_v13  ;;  %16024 = vmatprep.mubr.bf16.mxu0 %v1539_v59  ;;  %v1485_v61 = vadd.f32 %v13696_v34, %v13632_v30  ;;  %v13647_v30 = vadd.f32 %v18705_v52, %v18702_v43  ;;  %v22969_v43 = vld [vmem:[#allocation13_spill] sm:$0xff] }
 0x293   :  { %13913 = vmatpush3.bf16.msra.mxu1 %v18128_v41  ;;  %v13698_v56 = vpop.f32.mrf.mxu1  ;;  %2184 = vmatprep.mubr.bf16.mxu1 %v16999_v42  ;;  %v13658_v42 = vpop.f32.mrf.mxu0 }
 0x294   :  { %v13699_v4 = vadd.f32 %v13698_v56, %v13697_v17  ;;  %13914 = vmatprep.subr.bf16.mxu1 %v18133_v47  ;;  %v22966_v17 = vld [vmem:[#allocation4_spill] sm:$0xff]  ;;  %v13644_v56 = vadd.f32 %v18698_v62, %v18693_v50 }
 0x295   :  { %v13700_v55 = vpop.f32.mrf.mxu1  ;;  %v22968_v50 = vld [vmem:[#allocation12_spill] sm:$0xff] }
 0x296   :  { %v1488_v31 = vadd.f32 %v13699_v4, %v13635_v19  ;;  %v22967_v4 = vld [vmem:[#allocation11_spill] sm:$0xff] }
 0x297   :  { %13915 = vmatpush3.bf16.msra.mxu1 %v22960_v8  ;;  %v13701_v1 = vpop.f32.mrf.mxu1 }
 0x298   :  { %v1540_v54 = vpack.c.bf16 %v1488_v31, %v1485_v61  ;;  %13916 = vmatprep.subr.bf16.mxu1 %v22961_v63  ;;  %v13702_v39 = vadd.f32 %v13701_v1, %v13700_v55  ;;  %v18777_v61 = vpop.f32.mrf.mxu0  ;;  %v17003_v1 = vld [vmem:[%s22907_s3 + $0x268] ss:$16 sps:$4 sm:$0xff]  }
 0x299   :  { %v13703_v21 = vpop.f32.mrf.mxu1 }
 0x29a   :  { %16025 = vmatmul.mubr.bf16.vlgmr.msra.gmra.mxu0 %v1540_v54  ;;  %2185 = vmatmul.mubr.bf16.gmra.mxu1 %v16997_v3  ;;  %v1493_v9 = vadd.f32 %v13702_v39, %v13638_v2 }
 0x29b   :  { %13769 = vmatpush3.bf16.msra.mxu0 %v18128_v41  ;;  %13917 = vmatpush3.bf16.msra.mxu1 %v22962_v49  ;;  %v13704_v53 = vpop.f32.mrf.mxu1 }
 0x29c   :  { %v13705_v11 = vadd.f32 %v13704_v53, %v13703_v21  ;;  %13770 = vmatprep.subr.bf16.mxu0 %v18133_v47  ;;  %13918 = vmatprep.subr.bf16.mxu1 %v22963_v28  ;;  %v17008_v21 = vld [vmem:[%s22907_s3 + $0x28c] ss:$16 sps:$4 sm:$0xff]   ;;  %v22970_v53 = vld [vmem:[#allocation3_spill] sm:$0xff] }
 0x29d   :  { %v13706_v27 = vpop.f32.mrf.mxu1  ;;  %2192 = vmatprep.mubr.bf16.mxu1 %v17002_v23  ;;  %v13661_v23 = vpop.f32.mrf.mxu0 }
 0x29e   :  { %v1496_v29 = vadd.f32 %v13705_v11, %v13641_v48  ;;  %v13650_v48 = vadd.f32 %v18715_v25, %v18709_v44  ;;  %v13653_v11 = vadd.f32 %v18729_v37, %v18721_v32  ;;  %v17006_v44 = vld [vmem:[%s22907_s3 + $0x288] ss:$16 sps:$4 sm:$0xff]   ;;  %v22972_v25 = vld [vmem:[#allocation15_spill] sm:$0xff]  ;;  %v17011_v37 = vld [vmem:[%s22907_s3 + $0x2ac] ss:$16 sps:$4 sm:$0xff]  }
 0x29f   :  { %13771 = vmatpush3.bf16.msra.mxu0 %v22960_v8  ;;  %13919 = vmatpush3.bf16.msra.mxu1 %v22964_v26  ;;  %v13707_v57 = vpop.f32.mrf.mxu1 }
 0x2a0   :  { %13772 = vmatprep.subr.bf16.mxu0 %v22961_v63  ;;  %13920 = vmatprep.subr.bf16.mxu1 %v22965_v16  ;;  %v1541_v58 = vpack.c.bf16 %v1496_v29, %v1493_v9  ;;  %v13708_v59 = vadd.f32 %v13707_v57, %v13706_v27  ;;  %v22971_v9 = vld [vmem:[#allocation14_spill] sm:$0xff]  ;;  %v13663_v57 = vpop.f32.mrf.mxu0 }
 0x2a1   :  { %v13709_v13 = vpop.f32.mrf.mxu1  ;;  %v18800_v29 = vld [vmem:[%s22908_s4 + $0xf8] sm:$0xff]  }
 0x2a2   :  { %2193 = vmatmul.mubr.bf16.gmra.mxu1 %v17000_v7  ;;  %16028 = vmatprep.mubr.bf16.mxu0 %v1541_v58  ;;  %v1501_v31 = vadd.f32 %v13708_v59, %v13644_v56 }
 0x2a3   :  { %13773 = vmatpush3.bf16.msra.mxu0 %v22962_v49  ;;  %13921 = vmatpush3.bf16.msra.mxu1 %v22966_v17  ;;  %v13710_v34 = vpop.f32.mrf.mxu1 }
 0x2a4   :  { %v13711_v19 = vadd.f32 %v13710_v34, %v13709_v13  ;;  %13774 = vmatprep.subr.bf16.mxu0 %v22963_v28  ;;  %13922 = vmatprep.subr.bf16.mxu1 %v22967_v4  ;;  %v13664_v34 = vpop.f32.mrf.mxu0 }
 0x2a5   :  { %v13712_v55 = vpop.f32.mrf.mxu1  ;;  %2200 = vmatprep.mubr.bf16.mxu1 %v17005_v45 }
 0x2a6   :  { %v1504_v3 = vadd.f32 %v13711_v19, %v13647_v30  ;;  %v13656_v19 = vadd.f32 %v18747_v24, %v18737_v46  ;;  %v17014_v24 = vld [vmem:[%s22907_s3 + $0x2cc] ss:$16 sps:$4 sm:$0xff]  }
 0x2a7   :  { %13775 = vmatpush3.bf16.msra.mxu0 %v22964_v26  ;;  %13923 = vmatpush3.bf16.msra.mxu1 %v22968_v50  ;;  %v13713_v62 = vpop.f32.mrf.mxu1 }
 0x2a8   :  { %13776 = vmatprep.subr.bf16.mxu0 %v22965_v16  ;;  %13924 = vmatprep.subr.bf16.mxu1 %v22969_v43  ;;  %v1542_v52 = vpack.c.bf16 %v1504_v3, %v1501_v31  ;;  %v13714_v39 = vadd.f32 %v13713_v62, %v13712_v55  ;;  %v13659_v55 = vadd.f32 %v13658_v42, %v18757_v12  ;;  %v17021_v3 = vld [vmem:[%s22908_s4 + $0xb8] sm:$0xff]   ;;  %v13666_v62 = vpop.f32.mrf.mxu0 }
 0x2a9   :  { %v13715_v54 = vpop.f32.mrf.mxu1 }
 0x2aa   :  { %16029 = vmatmul.mubr.bf16.gmra.mxu0 %v1542_v52  ;;  %2201 = vmatmul.mubr.bf16.gmra.mxu1 %v17003_v1  ;;  %v1509_v58 = vadd.f32 %v13714_v39, %v13650_v48  ;;  %v13667_v39 = vpop.f32.mrf.mxu0 }
 0x2ab   :  { %13777 = vmatpush3.bf16.msra.mxu0 %v22966_v17  ;;  %13925 = vmatpush3.bf16.msra.mxu1 %v22970_v53  ;;  %v13716_v2 = vpop.f32.mrf.mxu1 }
 0x2ac   :  { %v13717_v27 = vadd.f32 %v13716_v2, %v13715_v54  ;;  %13778 = vmatprep.subr.bf16.mxu0 %v22967_v4  ;;  %13926 = vmatprep.subr.bf16.mxu1 %v22971_v9 }
 0x2ad   :  { %v13718_v7 = vpop.f32.mrf.mxu1  ;;  %2208 = vmatprep.mubr.bf16.mxu1 %v17008_v21  ;;  %v17009_v21 = vld [vmem:[%s22907_s3 + $0x2a8] ss:$16 sps:$4 sm:$0xff]  }
 0x2ae   :  { %v1512_v13 = vadd.f32 %v13717_v27, %v13653_v11  ;;  %v13662_v11 = vadd.f32 %v13661_v23, %v18777_v61  ;;  %v13665_v27 = vadd.f32 %v13664_v34, %v13663_v57  ;;  %v13668_v23 = vadd.f32 %v13667_v39, %v13666_v62  ;;  %v17018_v62 = vld [vmem:[%s22907_s3 + $0x200] ss:$16 sps:$4 sm:$0xff]   ;;  %v17030_v39 = vld [vmem:[%s22907_s3 + $0x224] ss:$16 sps:$4 sm:$0xff]  }
 0x2af   :  { %13779 = vmatpush3.bf16.msra.mxu0 %v22968_v50  ;;  %13927 = vmatpush3.bf16.msra.mxu1 %v22972_v25  ;;  %v13719_v32 = vpop.f32.mrf.mxu1 }
 0x2b0   :  { %13780 = vmatprep.subr.bf16.mxu0 %v22969_v43  ;;  %v1543_v45 = vpack.c.bf16 %v1512_v13, %v1509_v58  ;;  %16104 = vmatprep.subr.bf16.mxu1 %v18800_v29  ;;  %v13720_v56 = vadd.f32 %v13719_v32, %v13718_v7  ;;  %v13669_v13 = vpop.f32.mrf.mxu0 }
 0x2b1   :  { %v13721_v59 = vpop.f32.mrf.mxu1 }
 0x2b2   :  { %2209 = vmatmul.mubr.bf16.gmra.mxu1 %v17006_v44  ;;  %16032 = vmatprep.mubr.bf16.mxu0 %v1543_v45  ;;  %v1517_v52 = vadd.f32 %v13720_v56, %v13656_v19  ;;  %v13670_v19 = vpop.f32.mrf.mxu0 }
 0x2b3   :  { %13781 = vmatpush3.bf16.msra.mxu0 %v22970_v53  ;;  %v13722_v30 = vpop.f32.mrf.mxu1  ;;  %2216 = vmatprep.mubr.bf16.mxu1 %v17011_v37  ;;  %v17012_v37 = vld [vmem:[%s22907_s3 + $0x2c8] ss:$16 sps:$4 sm:$0xff]   ;;  %v13671_v57 = vadd.f32 %v13670_v19, %v13669_v13  ;;  %v17035_v13 = vld [vmem:[%s22907_s3 + $0x240] ss:$16 sps:$4 sm:$0xff]  }
 0x2b4   :  { %v13723_v31 = vadd.f32 %v13722_v30, %v13721_v59  ;;  %13782 = vmatprep.subr.bf16.mxu0 %v22971_v9  ;;  %v17017_v59 = vld [vmem:[%s22907_s3 + $0x2ec] ss:$16 sps:$4 sm:$0xff]   ;;  %v17048_v19 = vld [vmem:[%s22908_s4 + $0xc0] sm:$0xff]  }
 0x2b5   :  { %v13724_v1 = vpop.f32.mrf.mxu1 }
 0x2b6   :  { %v1520_v54 = vadd.f32 %v13723_v31, %v13659_v55 }
 0x2b7   :  { %13783 = vmatpush3.bf16.msra.mxu0 %v22972_v25  ;;  %v13725_v46 = vpop.f32.mrf.mxu1 }
 0x2b8   :  { %v1544_v12 = vpack.c.bf16 %v1520_v54, %v1517_v52  ;;  %16072 = vmatprep.subr.bf16.mxu0 %v17021_v3  ;;  %v13726_v2 = vadd.f32 %v13725_v46, %v13724_v1  ;;  %v17015_v52 = vld [vmem:[%s22907_s3 + $0x2e8] ss:$16 sps:$4 sm:$0xff]   ;;  %v17020_v54 = vld [vmem:[%s22907_s3 + $0x204] ss:$16 sps:$4 sm:$0xff]  }
 0x2b9   :  { %v13727_v42 = vpop.f32.mrf.mxu1 }
 0x2ba   :  { %16033 = vmatmul.mubr.bf16.gmra.mxu0 %v1544_v12  ;;  %2217 = vmatmul.mubr.bf16.gmra.mxu1 %v17009_v21  ;;  %v1525_v44 = vadd.f32 %v13726_v2, %v13662_v11  ;;  %v17024_v21 = vld [vmem:[%s22907_s3 + $0x304] ss:$16 sps:$4 sm:$0xff]   ;;  %v17031_v2 = vld [vmem:[%s22908_s4 + $0xa8] sm:$0xff]   ;;  %v17028_v11 = vld [vmem:[%s22907_s3 + $0x220] ss:$16 sps:$4 sm:$0xff]  }
 0x2bb   :  { %v13728_v48 = vpop.f32.mrf.mxu1  ;;  %2224 = vmatprep.mubr.bf16.mxu1 %v17014_v24  ;;  %v17022_v24 = vld [vmem:[%s22907_s3 + $0x300] ss:$16 sps:$4 sm:$0xff]  }
 0x2bc   :  { %v13729_v7 = vadd.f32 %v13728_v48, %v13727_v42  ;;  %v17026_v12 = vld [vmem:[%s22908_s4 + $0xb0] sm:$0xff]   ;;  %v17032_v48 = vld [vmem:[%s22908_s4 + $0xe8] sm:$0xff]  }
 0x2bd   :  { %v13730_v58 = vpop.f32.mrf.mxu1  ;;  %v17027_v42 = vld [vmem:[%s22908_s4 + $0xf0] sm:$0xff]  }
 0x2be   :  { %v1528_v32 = vadd.f32 %v13729_v7, %v13665_v27  ;;  %v17037_v27 = vld [vmem:[%s22907_s3 + $0x244] ss:$16 sps:$4 sm:$0xff]   ;;  %v17038_v7 = vld [vmem:[%s22908_s4 + $0x98] sm:$0xff]  }
 0x2bf   :  { %v13731_v45 = vpop.f32.mrf.mxu1 }
 0x2c0   :  { %v1545_v56 = vpack.c.bf16 %v1528_v32, %v1525_v44  ;;  %v13732_v55 = vadd.f32 %v13731_v45, %v13730_v58  ;;  %v17039_v58 = vld [vmem:[%s22908_s4 + $0xd8] sm:$0xff]   ;;  %v17040_v44 = vld [vmem:[%s22908_s4 + $0x90] sm:$0xff]   ;;  %v17045_v45 = vld [vmem:[%s22908_s4 + $0x88] sm:$0xff]  }
 0x2c1   :  { %v13733_v30 = vpop.f32.mrf.mxu1  ;;  %v17041_v32 = vld [vmem:[%s22908_s4 + $0xd0] sm:$0xff]  }
 0x2c2   :  { %2225 = vmatmul.mubr.bf16.gmra.mxu1 %v17012_v37  ;;  %16036 = vmatprep.mubr.bf16.mxu0 %v1545_v56  ;;  %v1533_v31 = vadd.f32 %v13732_v55, %v13668_v23  ;;  %v17044_v37 = vld [vmem:[%s22907_s3 + $0x264] ss:$16 sps:$4 sm:$0xff]   ;;  %v17042_v56 = vld [vmem:[%s22907_s3 + $0x260] ss:$16 sps:$4 sm:$0xff]  }
 0x2c3   :  { %v13734_v61 = vpop.f32.mrf.mxu1  ;;  %2232 = vmatprep.mubr.bf16.mxu1 %v17017_v59  ;;  %v17046_v59 = vld [vmem:[%s22908_s4 + $0xc8] sm:$0xff]   ;;  %v17051_v55 = vld [vmem:[%s22907_s3 + $0x284] ss:$16 sps:$4 sm:$0xff]  }
 0x2c4   :  { %v13735_v34 = vadd.f32 %v13734_v61, %v13733_v30  ;;  %v17047_v30 = vld [vmem:[%s22908_s4 + $0x80] sm:$0xff]  }
 0x2c5   :  { %v17049_v61 = vld [vmem:[%s22907_s3 + $0x280] ss:$16 sps:$4 sm:$0xff]   ;;  %v17054_v23 = vld [vmem:[%s22907_s3 + $0x2a4] ss:$16 sps:$4 sm:$0xff]  }
 0x2c6   :  { %v1536_v1 = vadd.f32 %v13735_v34, %v13671_v57  ;;  %v22973_v57 = vld [vmem:[#allocation16_spill] sm:$0xff]  ;;  %v17052_v34 = vld [vmem:[%s22907_s3 + $0x2a0] ss:$16 sps:$4 sm:$0xff]  }
 0x2c8   :  { %v1546_v46 = vpack.c.bf16 %v1536_v1, %v1533_v31  ;;  %v17057_v31 = vld [vmem:[%s22907_s3 + $0x2c4] ss:$16 sps:$4 sm:$0xff]   ;;  %v17055_v1 = vld [vmem:[%s22907_s3 + $0x2c0] ss:$16 sps:$4 sm:$0xff]  }
 0x2ca   :  { %16037 = vmatmul.mubr.bf16.gmra.mxu0 %v1546_v46  ;;  %2233 = vmatmul.mubr.bf16.gmra.mxu1 %v17015_v52  ;;  %v17060_v52 = vld [vmem:[%s22907_s3 + $0x2e4] ss:$16 sps:$4 sm:$0xff]  }
 0x2cb   :  { %2079 = vmatprep.mubr.bf16.mxu0 %v17020_v54  ;;  %2652 = vmatprep.mubr.bf16.mxu1 %v17024_v21  ;;  %v17058_v54 = vld [vmem:[%s22907_s3 + $0x2e0] ss:$16 sps:$4 sm:$0xff]  }
 0x2d2   :  { %2080 = vmatmul.mubr.bf16.vlgmr.msra.gmra.mxu0 %v17018_v62  ;;  %2653 = vmatmul.mubr.bf16.vlgmr.msra.gmra.mxu1 %v17022_v24 }
 0x2d3   :  { %16073 = vmatpush3.bf16.msra.mxu0 %v17021_v3  ;;  %16105 = vmatpush3.bf16.msra.mxu1 %v18800_v29  ;;  %v17033_v29 = vld [vmem:[%s22908_s4 + $0xa0] sm:$0xff]  }
 0x2d4   :  { %16074 = vmatprep.subr.bf16.mxu0 %v17026_v12  ;;  %16106 = vmatprep.subr.bf16.mxu1 %v17027_v42  ;;  %v17034_v3 = vld [vmem:[%s22908_s4 + $0xe0] sm:$0xff]  }
 0x2d5   :  { %2087 = vmatprep.mubr.bf16.mxu0 %v17030_v39 }
 0x2d7   :  { %16075 = vmatpush3.bf16.msra.mxu0 %v17026_v12  ;;  %16107 = vmatpush3.bf16.msra.mxu1 %v17027_v42 }
 0x2d8   :  { %16076 = vmatprep.subr.bf16.mxu0 %v17031_v2  ;;  %16108 = vmatprep.subr.bf16.mxu1 %v17032_v48 }
 0x2da   :  { %2088 = vmatmul.mubr.bf16.gmra.mxu0 %v17028_v11 }
 0x2db   :  { %16077 = vmatpush3.bf16.msra.mxu0 %v17031_v2  ;;  %16109 = vmatpush3.bf16.msra.mxu1 %v17032_v48 }
 0x2dc   :  { %16078 = vmatprep.subr.bf16.mxu0 %v17033_v29  ;;  %16110 = vmatprep.subr.bf16.mxu1 %v17034_v3 }
 0x2dd   :  { %2095 = vmatprep.mubr.bf16.mxu0 %v17037_v27 }
 0x2df   :  { %16079 = vmatpush3.bf16.msra.mxu0 %v17033_v29  ;;  %16111 = vmatpush3.bf16.msra.mxu1 %v17034_v3 }
 0x2e0   :  { %16080 = vmatprep.subr.bf16.mxu0 %v17038_v7  ;;  %16112 = vmatprep.subr.bf16.mxu1 %v17039_v58 }
 0x2e2   :  { %2096 = vmatmul.mubr.bf16.gmra.mxu0 %v17035_v13 }
 0x2e3   :  { %16081 = vmatpush3.bf16.msra.mxu0 %v17038_v7  ;;  %16113 = vmatpush3.bf16.msra.mxu1 %v17039_v58 }
 0x2e4   :  { %16082 = vmatprep.subr.bf16.mxu0 %v17040_v44  ;;  %16114 = vmatprep.subr.bf16.mxu1 %v17041_v32 }
 0x2e5   :  { %2103 = vmatprep.mubr.bf16.mxu0 %v17044_v37 }
 0x2e7   :  { %16083 = vmatpush3.bf16.msra.mxu0 %v17040_v44  ;;  %16115 = vmatpush3.bf16.msra.mxu1 %v17041_v32 }
 0x2e8   :  { %16084 = vmatprep.subr.bf16.mxu0 %v17045_v45  ;;  %16116 = vmatprep.subr.bf16.mxu1 %v17046_v59 }
 0x2ea   :  { %2104 = vmatmul.mubr.bf16.gmra.mxu0 %v17042_v56 }
 0x2eb   :  { %16085 = vmatpush3.bf16.msra.mxu0 %v17045_v45  ;;  %16117 = vmatpush3.bf16.msra.mxu1 %v17046_v59 }
 0x2ec   :  { %16086 = vmatprep.subr.bf16.mxu0 %v17047_v30  ;;  %16118 = vmatprep.subr.bf16.mxu1 %v17048_v19 }
 0x2ed   :  { %2111 = vmatprep.mubr.bf16.mxu0 %v17051_v55 }
 0x2ef   :  { %16087 = vmatpush3.bf16.msra.mxu0 %v17047_v30  ;;  %16119 = vmatpush3.bf16.msra.mxu1 %v17048_v19 }
 0x2f0   :  { %13976 = vmatprep.subr.bf16.mxu0 %v22973_v57  ;;  %14120 = vmatprep.subr.bf16.mxu1 %v22973_v57 }
 0x2f2   :  { %2112 = vmatmul.mubr.bf16.gmra.mxu0 %v17049_v61 }
 0x2f3   :  { %2119 = vmatprep.mubr.bf16.mxu0 %v17054_v23  ;;  %v17066_v23 = vld [vmem:[%s22907_s3 + $0x324] ss:$16 sps:$4 sm:$0xff]  }
 0x2f4   :  { %2660 = vmatprep.mubr.bf16.mxu1 %v17066_v23 }
 0x2fa   :  { %2120 = vmatmul.mubr.bf16.gmra.mxu0 %v17052_v34  ;;  %v17064_v34 = vld [vmem:[%s22907_s3 + $0x320] ss:$16 sps:$4 sm:$0xff]  }
 0x2fb   :  { %2127 = vmatprep.mubr.bf16.mxu0 %v17057_v31  ;;  %2661 = vmatmul.mubr.bf16.gmra.mxu1 %v17064_v34 }
 0x302   :  { %2128 = vmatmul.mubr.bf16.gmra.mxu0 %v17055_v1 }
 0x303   :  { %2135 = vmatprep.mubr.bf16.mxu0 %v17060_v52  ;;  %v17072_v52 = vld [vmem:[%s22907_s3 + $0x344] ss:$16 sps:$4 sm:$0xff]  }
 0x304   :  { %2668 = vmatprep.mubr.bf16.mxu1 %v17072_v52  ;;  %v17076_v52 = vld [vmem:[%s22907_s3 + $0x360] ss:$16 sps:$4 sm:$0xff]  }
 0x30a   :  { %2136 = vmatmul.mubr.bf16.gmra.mxu0 %v17058_v54 }
 0x31a   :  { %v16058_v21 = vpop.f32.mrf.mxu1 }
 0x31c   :  { %v1791_v46 = vpop.f32.mrf.mxu1 }
 0x31e   :  { %v16059_v62 = vpop.f32.mrf.mxu1 }
 0x320   :  { %v18936_v24 = vpop.f32.mrf.mxu1 }
 0x321   :  { %22974 = vst [vmem:[#allocation5_spill] sm:$0xff] %v18936_v24 }
 0x32a   :  { %v16062_v12 = vpop.f32.mrf.mxu1 }
 0x32c   :  { %v1807_v42 = vpop.f32.mrf.mxu1 }
 0x32e   :  { %v16063_v39 = vpop.f32.mrf.mxu1 }
 0x330   :  { %v18938_v2 = vpop.f32.mrf.mxu1 }
 0x331   :  { %22975 = vst [vmem:[#allocation6_spill] sm:$0xff] %v18938_v2 }
 0x33a   :  { %v16066_v48 = vpop.f32.mrf.mxu1 }
 0x33c   :  { %v1823_v11 = vpop.f32.mrf.mxu1 }
 0x33e   :  { %v16067_v29 = vpop.f32.mrf.mxu1 }
 0x340   :  { %v18940_v3 = vpop.f32.mrf.mxu1 }
 0x341   :  { %22976 = vst [vmem:[#allocation7_spill] sm:$0xff] %v18940_v3  ;;  %v17078_v3 = vld [vmem:[%s22907_s3 + $0x364] ss:$16 sps:$4 sm:$0xff]  }
 0x34a   :  { %v18942_v27 = vpop.f32.mrf.mxu1 }
 0x34c   :  { %v18944_v7 = vpop.f32.mrf.mxu1 }
 0x34e   :  { %v18946_v58 = vpop.f32.mrf.mxu1 }
 0x350   :  { %v18948_v13 = vpop.f32.mrf.mxu1 }
 0x351   :  { %22977 = vst [vmem:[#allocation8_spill] sm:$0xff] %v18948_v13 }
 0x352   :  { %v18950_v44 = vpop.f32.mrf.mxu1 }
 0x354   :  { %v18952_v32 = vpop.f32.mrf.mxu1 }
 0x356   :  { %v18954_v45 = vpop.f32.mrf.mxu1 }
 0x358   :  { %v18960_v55 = vpop.f32.mrf.mxu1 }
 0x35a   :  { %v16026_v37 = vpop.f32.mrf.mxu0  ;;  %v18970_v31 = vpop.f32.mrf.mxu1 }
 0x35b   :  { %v18956_v59 = vadd.f32 %v16058_v21, %v16026_v37  ;;  %v17070_v21 = vld [vmem:[%s22907_s3 + $0x340] ss:$16 sps:$4 sm:$0xff]  }
 0x35c   :  { %v1646_v56 = vpop.f32.mrf.mxu0  ;;  %v18972_v1 = vpop.f32.mrf.mxu1  ;;  %2669 = vmatmul.mubr.bf16.gmra.mxu1 %v17070_v21 }
 0x35d   :  { %22978 = vst [vmem:[#allocation9_spill] sm:$0xff] %v18956_v59  ;;  %v18958_v30 = vadd.f32 %v1791_v46, %v1646_v56  ;;  %2676 = vmatprep.mubr.bf16.mxu1 %v17078_v3 }
 0x35e   :  { %v16027_v19 = vpop.f32.mrf.mxu0 }
 0x35f   :  { %22979 = vst [vmem:[#allocation10_spill] sm:$0xff] %v18958_v30  ;;  %v18962_v61 = vadd.f32 %v16059_v62, %v16027_v19  ;;  %v18982_v62 = vpop.f32.mrf.mxu1 }
 0x360   :  { %v18977_v54 = vpop.f32.mrf.mxu0 }
 0x361   :  { %22980 = vst [vmem:[#allocation4_spill] sm:$0xff] %v18962_v61  ;;  %22981 = vst [vmem:[#allocation11_spill] sm:$0xff] %v18977_v54  ;;  %v18988_v34 = vpop.f32.mrf.mxu1 }
 0x363   :  { %v18998_v21 = vpop.f32.mrf.mxu1 }
 0x364   :  { %2677 = vmatmul.mubr.bf16.gmra.mxu1 %v17076_v52 }
 0x36a   :  { %v16030_v46 = vpop.f32.mrf.mxu0 }
 0x36b   :  { %v18984_v37 = vadd.f32 %v16062_v12, %v16030_v46  ;;  %v19000_v12 = vpop.f32.mrf.mxu1  ;;  %v17082_v46 = vld [vmem:[%s22907_s3 + $0x380] ss:$16 sps:$4 sm:$0xff]  }
 0x36c   :  { %v1662_v56 = vpop.f32.mrf.mxu0 }
 0x36d   :  { %22982 = vst [vmem:[#allocation12_spill] sm:$0xff] %v18984_v37  ;;  %v18986_v19 = vadd.f32 %v1807_v42, %v1662_v56  ;;  %v17084_v42 = vld [vmem:[%s22907_s3 + $0x384] ss:$16 sps:$4 sm:$0xff]   ;;  %v13853_v37 = vadd.f32 %v18960_v55, %v18954_v45 }
 0x36e   :  { %v16031_v23 = vpop.f32.mrf.mxu0  ;;  %2684 = vmatprep.mubr.bf16.mxu1 %v17084_v42  ;;  %v17090_v42 = vld [vmem:[%s22907_s3 + $0x3a4] ss:$16 sps:$4 sm:$0xff]  }
 0x36f   :  { %22983 = vst [vmem:[#allocation13_spill] sm:$0xff] %v18986_v19  ;;  %v18990_v13 = vadd.f32 %v16063_v39, %v16031_v23  ;;  %v19010_v23 = vpop.f32.mrf.mxu1  ;;  %2685 = vmatmul.mubr.bf16.gmra.mxu1 %v17082_v46 }
 0x370   :  { %v19005_v39 = vpop.f32.mrf.mxu0  ;;  %2692 = vmatprep.mubr.bf16.mxu1 %v17090_v42 }
 0x371   :  { %22984 = vst [vmem:[#allocation17_spill] sm:$0xff] %v18990_v13  ;;  %22985 = vst [vmem:[#allocation18_spill] sm:$0xff] %v19005_v39  ;;  %v19016_v54 = vpop.f32.mrf.mxu1  ;;  %v17088_v39 = vld [vmem:[%s22907_s3 + $0x3a0] ss:$16 sps:$4 sm:$0xff]  }
 0x373   :  { %v19026_v46 = vpop.f32.mrf.mxu1 }
 0x377   :  { %2693 = vmatmul.mubr.bf16.gmra.mxu1 %v17088_v39 }
 0x37a   :  { %v16034_v56 = vpop.f32.mrf.mxu0 }
 0x37b   :  { %v19012_v3 = vadd.f32 %v16066_v48, %v16034_v56  ;;  %v19028_v48 = vpop.f32.mrf.mxu1 }
 0x37c   :  { %v1678_v52 = vpop.f32.mrf.mxu0 }
 0x37d   :  { %22986 = vst [vmem:[#allocation19_spill] sm:$0xff] %v19012_v3  ;;  %v19014_v2 = vadd.f32 %v1823_v11, %v1678_v52  ;;  %v17094_v11 = vld [vmem:[%s22907_s3 + $0x3c0] ss:$16 sps:$4 sm:$0xff]   ;;  %v19038_v52 = vpop.f32.mrf.mxu1 }
 0x37e   :  { %v16035_v24 = vpop.f32.mrf.mxu0 }
 0x37f   :  { %22987 = vst [vmem:[#allocation20_spill] sm:$0xff] %v19014_v2  ;;  %v19018_v13 = vadd.f32 %v16067_v29, %v16035_v24  ;;  %v17096_v24 = vld [vmem:[%s22907_s3 + $0x3c4] ss:$16 sps:$4 sm:$0xff]   ;;  %v19046_v3 = vpop.f32.mrf.mxu1 }
 0x380   :  { %v19036_v29 = vpop.f32.mrf.mxu0  ;;  %2700 = vmatprep.mubr.bf16.mxu1 %v17096_v24  ;;  %v17100_v24 = vld [vmem:[%s22907_s3 + $0x3e0] ss:$16 sps:$4 sm:$0xff]  }
 0x381   :  { %22988 = vst [vmem:[#allocation21_spill] sm:$0xff] %v19018_v13  ;;  %22989 = vst [vmem:[#allocation22_spill] sm:$0xff] %v19036_v29  ;;  %2701 = vmatmul.mubr.bf16.gmra.mxu1 %v17094_v11  ;;  %v17102_v11 = vld [vmem:[%s22907_s3 + $0x3e4] ss:$16 sps:$4 sm:$0xff]  }
 0x382   :  { %2708 = vmatprep.mubr.bf16.mxu1 %v17102_v11 }
 0x389   :  { %2709 = vmatmul.mubr.bf16.gmra.mxu1 %v17100_v24 }
 0x38a   :  { %v16038_v56 = vpop.f32.mrf.mxu0 }
 0x38b   :  { %v19041_v42 = vadd.f32 %v18942_v27, %v16038_v56 }
 0x38c   :  { %v1694_v39 = vpop.f32.mrf.mxu0 }
 0x38d   :  { %22990 = vst [vmem:[#allocation23_spill] sm:$0xff] %v19041_v42  ;;  %v19044_v13 = vadd.f32 %v18944_v7, %v1694_v39  ;;  %v19059_v7 = vpop.f32.mrf.mxu1 }
 0x38e   :  { %v16039_v2 = vpop.f32.mrf.mxu0 }
 0x38f   :  { %22991 = vst [vmem:[#allocation24_spill] sm:$0xff] %v19044_v13  ;;  %v19049_v19 = vadd.f32 %v18946_v58, %v16039_v2  ;;  %v19061_v13 = vpop.f32.mrf.mxu1 }
 0x390   :  { %v19057_v27 = vpop.f32.mrf.mxu0 }
 0x391   :  { %22992 = vst [vmem:[#allocation25_spill] sm:$0xff] %v19049_v19  ;;  %22993 = vst [vmem:[#allocation26_spill] sm:$0xff] %v19057_v27  ;;  %v13850_v19 = vadd.f32 %v18952_v32, %v18950_v44  ;;  %v19067_v27 = vpop.f32.mrf.mxu1  ;;  %v13859_v32 = vadd.f32 %v18988_v34, %v18982_v62 }
 0x392   :  { %v13784_v56 = vpop.f32.mrf.mxu0 }
 0x393   :  { %v13876_v25 = vpop.f32.mrf.mxu1 }
 0x394   :  { %v13785_v39 = vpop.f32.mrf.mxu0 }
 0x395   :  { %v13786_v2 = vadd.f32 %v13785_v39, %v13784_v56  ;;  %v13856_v39 = vadd.f32 %v18972_v1, %v18970_v31  ;;  %v19073_v55 = vpop.f32.mrf.mxu1  ;;  %v13865_v31 = vadd.f32 %v19016_v54, %v19010_v23  ;;  %v13868_v54 = vadd.f32 %v19028_v48, %v19026_v46 }
 0x396   :  { %v13787_v29 = vpop.f32.mrf.mxu0  ;;  %v13871_v23 = vadd.f32 %v19046_v3, %v19038_v52  ;;  %v13874_v3 = vadd.f32 %v19061_v13, %v19059_v7  ;;  %v13877_v52 = vadd.f32 %v13876_v25, %v19067_v27 }
 0x397   :  { %v2179_v11 = vadd.f32 %v13850_v19, %v13786_v2  ;;  %v13879_v2 = vpop.f32.mrf.mxu1 }
 0x398   :  { %v13788_v58 = vpop.f32.mrf.mxu0  ;;  %v13880_v25 = vadd.f32 %v13879_v2, %v19073_v55 }
 0x399   :  { %v13789_v42 = vadd.f32 %v13788_v58, %v13787_v29  ;;  %v13881_v1 = vpop.f32.mrf.mxu1 }
 0x39a   :  { %v13790_v61 = vpop.f32.mrf.mxu0 }
 0x39b   :  { %v2182_v30 = vadd.f32 %v13853_v37, %v13789_v42 }
 0x39c   :  { %v13791_v59 = vpop.f32.mrf.mxu0 }
 0x39d   :  { %v2241_v24 = vpack.c.bf16 %v2182_v30, %v2179_v11  ;;  %v13792_v9 = vadd.f32 %v13791_v59, %v13790_v61 }
 0x39e   :  { %v13793_v57 = vpop.f32.mrf.mxu0 }
 0x39f   :  { %16088 = vmatprep.mubr.bf16.mxu0 %v2241_v24  ;;  %v2187_v29 = vadd.f32 %v13856_v39, %v13792_v9  ;;  %v13882_v39 = vpop.f32.mrf.mxu1 }
 0x3a0   :  { %v13794_v56 = vpop.f32.mrf.mxu0  ;;  %v13883_v7 = vadd.f32 %v13882_v39, %v13881_v1 }
 0x3a1   :  { %v13795_v44 = vadd.f32 %v13794_v56, %v13793_v57  ;;  %v13862_v57 = vadd.f32 %v19000_v12, %v18998_v21 }
 0x3a2   :  { %v13796_v45 = vpop.f32.mrf.mxu0 }
 0x3a3   :  { %v2190_v19 = vadd.f32 %v13859_v32, %v13795_v44 }
 0x3a4   :  { %v13797_v37 = vpop.f32.mrf.mxu0 }
 0x3a5   :  { %v2242_v42 = vpack.c.bf16 %v2190_v19, %v2187_v29  ;;  %v13798_v58 = vadd.f32 %v13797_v37, %v13796_v45  ;;  %v13884_v45 = vpop.f32.mrf.mxu1 }
 0x3a6   :  { %v13799_v30 = vpop.f32.mrf.mxu0 }
 0x3a7   :  { %16089 = vmatmul.mubr.bf16.vlgmr.msra.gmra.mxu0 %v2242_v42  ;;  %v2195_v62 = vadd.f32 %v13862_v57, %v13798_v58  ;;  %v13885_v58 = vpop.f32.mrf.mxu1 }
 0x3a8   :  { %13977 = vmatpush3.bf16.msra.mxu0 %v18369_v18  ;;  %v13800_v59 = vpop.f32.mrf.mxu0  ;;  %v13886_v55 = vadd.f32 %v13885_v58, %v13884_v45  ;;  %v17063_v45 = vld [vmem:[%s22907_s3 + $0x30c] ss:$16 sps:$4 sm:$0xff]  }
 0x3a9   :  { %v13801_v61 = vadd.f32 %v13800_v59, %v13799_v30  ;;  %13978 = vmatprep.subr.bf16.mxu0 %v18374_v22 }
 0x3aa   :  { %v13802_v9 = vpop.f32.mrf.mxu0 }
 0x3ab   :  { %v2198_v34 = vadd.f32 %v13865_v31, %v13801_v61  ;;  %v13887_v61 = vpop.f32.mrf.mxu1 }
 0x3ac   :  { %13979 = vmatpush3.bf16.msra.mxu0 %v18389_v14  ;;  %v13803_v11 = vpop.f32.mrf.mxu0 }
 0x3ad   :  { %13980 = vmatprep.subr.bf16.mxu0 %v18396_v35  ;;  %v2243_v24 = vpack.c.bf16 %v2198_v34, %v2195_v62  ;;  %v13804_v44 = vadd.f32 %v13803_v11, %v13802_v9 }
 0x3ae   :  { %v13805_v56 = vpop.f32.mrf.mxu0 }
 0x3af   :  { %16092 = vmatprep.mubr.bf16.mxu0 %v2243_v24  ;;  %v2203_v29 = vadd.f32 %v13868_v54, %v13804_v44  ;;  %v13888_v24 = vpop.f32.mrf.mxu1 }
 0x3b0   :  { %13981 = vmatpush3.bf16.msra.mxu0 %v18407_v33  ;;  %v13806_v21 = vpop.f32.mrf.mxu0  ;;  %v13889_v1 = vadd.f32 %v13888_v24, %v13887_v61  ;;  %v17061_v61 = vld [vmem:[%s22907_s3 + $0x308] ss:$16 sps:$4 sm:$0xff]   ;;  %v17069_v24 = vld [vmem:[%s22907_s3 + $0x32c] ss:$16 sps:$4 sm:$0xff]  }
 0x3b1   :  { %v13807_v12 = vadd.f32 %v13806_v21, %v13805_v56  ;;  %13982 = vmatprep.subr.bf16.mxu0 %v18411_v6  ;;  %v13890_v21 = vpop.f32.mrf.mxu1 }
 0x3b2   :  { %v13808_v32 = vpop.f32.mrf.mxu0 }
 0x3b3   :  { %v2206_v19 = vadd.f32 %v13871_v23, %v13807_v12 }
 0x3b4   :  { %13983 = vmatpush3.bf16.msra.mxu0 %v18425_v0  ;;  %v13809_v37 = vpop.f32.mrf.mxu0 }
 0x3b5   :  { %v2244_v42 = vpack.c.bf16 %v2206_v19, %v2203_v29  ;;  %13984 = vmatprep.subr.bf16.mxu0 %v18432_v60  ;;  %v13810_v59 = vadd.f32 %v13809_v37, %v13808_v32  ;;  %v13891_v19 = vpop.f32.mrf.mxu1 }
 0x3b6   :  { %v13811_v30 = vpop.f32.mrf.mxu0 }
 0x3b7   :  { %16093 = vmatmul.mubr.bf16.gmra.mxu0 %v2244_v42  ;;  %v2211_v31 = vadd.f32 %v13874_v3, %v13810_v59 }
 0x3b8   :  { %13985 = vmatpush3.bf16.msra.mxu0 %v18196_v40  ;;  %v13812_v46 = vpop.f32.mrf.mxu0 }
 0x3b9   :  { %v13813_v48 = vadd.f32 %v13812_v46, %v13811_v30  ;;  %13986 = vmatprep.subr.bf16.mxu0 %v18445_v36  ;;  %v13893_v30 = vpop.f32.mrf.mxu1 }
 0x3ba   :  { %v13814_v57 = vpop.f32.mrf.mxu0 }
 0x3bb   :  { %v2214_v9 = vadd.f32 %v13877_v52, %v13813_v48 }
 0x3bc   :  { %13987 = vmatpush3.bf16.msra.mxu0 %v18459_v5  ;;  %v13815_v62 = vpop.f32.mrf.mxu0 }
 0x3bd   :  { %13988 = vmatprep.subr.bf16.mxu0 %v18466_v10  ;;  %v2245_v34 = vpack.c.bf16 %v2214_v9, %v2211_v31  ;;  %v13816_v56 = vadd.f32 %v13815_v62, %v13814_v57  ;;  %v13894_v57 = vpop.f32.mrf.mxu1  ;;  %v13892_v62 = vadd.f32 %v13891_v19, %v13890_v21  ;;  %v17079_v21 = vld [vmem:[%s22907_s3 + $0x368] ss:$16 sps:$4 sm:$0xff]   ;;  %v17093_v19 = vld [vmem:[%s22907_s3 + $0x3ac] ss:$16 sps:$4 sm:$0xff]  }
 0x3be   :  { %v13817_v11 = vpop.f32.mrf.mxu0 }
 0x3bf   :  { %16096 = vmatprep.mubr.bf16.mxu0 %v2245_v34  ;;  %v2219_v54 = vadd.f32 %v13880_v25, %v13816_v56  ;;  %v17067_v25 = vld [vmem:[%s22907_s3 + $0x328] ss:$16 sps:$4 sm:$0xff]  }
 0x3c0   :  { %13989 = vmatpush3.bf16.msra.mxu0 %v18162_v20  ;;  %v13818_v13 = vpop.f32.mrf.mxu0 }
 0x3c1   :  { %v13819_v27 = vadd.f32 %v13818_v13, %v13817_v11  ;;  %13990 = vmatprep.subr.bf16.mxu0 %v18473_v51  ;;  %v13895_v11 = vadd.f32 %v13894_v57, %v13893_v30  ;;  %v17106_v30 = vld [vmem:[%s22907_s3 + $0x400] ss:$16 sps:$4 sm:$0xff]   ;;  %v17115_v57 = vld [vmem:[%s22908_s4 + $0x108] sm:$0xff]  }
 0x3c2   :  { %v13820_v44 = vpop.f32.mrf.mxu0 }
 0x3c3   :  { %v2222_v12 = vadd.f32 %v13883_v7, %v13819_v27  ;;  %v17075_v27 = vld [vmem:[%s22907_s3 + $0x34c] ss:$16 sps:$4 sm:$0xff]   ;;  %v17073_v7 = vld [vmem:[%s22907_s3 + $0x348] ss:$16 sps:$4 sm:$0xff]  }
 0x3c4   :  { %13991 = vmatpush3.bf16.msra.mxu0 %v18480_v15  ;;  %v13821_v23 = vpop.f32.mrf.mxu0 }
 0x3c5   :  { %v2246_v32 = vpack.c.bf16 %v2222_v12, %v2219_v54  ;;  %14056 = vmatprep.subr.bf16.mxu0 %v18125_v38  ;;  %v13822_v37 = vadd.f32 %v13821_v23, %v13820_v44  ;;  %v17081_v44 = vld [vmem:[%s22907_s3 + $0x36c] ss:$16 sps:$4 sm:$0xff]  }
 0x3c6   :  { %v13823_v29 = vpop.f32.mrf.mxu0  ;;  %v17087_v54 = vld [vmem:[%s22907_s3 + $0x38c] ss:$16 sps:$4 sm:$0xff]  }
 0x3c7   :  { %16097 = vmatmul.mubr.bf16.gmra.mxu0 %v2246_v32  ;;  %v2227_v59 = vadd.f32 %v13886_v55, %v13822_v37  ;;  %v22994_v12 = vld [vmem:[#allocation14_spill] sm:$0xff] }
 0x3c8   :  { %v13824_v42 = vpop.f32.mrf.mxu0  ;;  %v17109_v23 = vld [vmem:[%s22908_s4 + $0x138] sm:$0xff]  }
 0x3c9   :  { %v13825_v2 = vadd.f32 %v13824_v42, %v13823_v29  ;;  %v17085_v32 = vld [vmem:[%s22907_s3 + $0x388] ss:$16 sps:$4 sm:$0xff]   ;;  %v22995_v29 = vld [vmem:[#allocation15_spill] sm:$0xff]  ;;  %v17099_v42 = vld [vmem:[%s22907_s3 + $0x3cc] ss:$16 sps:$4 sm:$0xff]  }
 0x3ca   :  { %v13826_v39 = vpop.f32.mrf.mxu0  ;;  %v17091_v37 = vld [vmem:[%s22907_s3 + $0x3a8] ss:$16 sps:$4 sm:$0xff]  }
 0x3cb   :  { %v2230_v46 = vadd.f32 %v13889_v1, %v13825_v2  ;;  %v17097_v55 = vld [vmem:[%s22907_s3 + $0x3c8] ss:$16 sps:$4 sm:$0xff]   ;;  %v17105_v2 = vld [vmem:[%s22907_s3 + $0x3ec] ss:$16 sps:$4 sm:$0xff]  }
 0x3cc   :  { %v13827_v3 = vpop.f32.mrf.mxu0  ;;  %v17103_v1 = vld [vmem:[%s22907_s3 + $0x3e8] ss:$16 sps:$4 sm:$0xff]  }
 0x3cd   :  { %v2247_v48 = vpack.c.bf16 %v2230_v46, %v2227_v59  ;;  %v13828_v31 = vadd.f32 %v13827_v3, %v13826_v39  ;;  %v17108_v39 = vld [vmem:[%s22907_s3 + $0x404] ss:$16 sps:$4 sm:$0xff]   ;;  %v17111_v46 = vld [vmem:[%s22908_s4 + $0x128] sm:$0xff]  }
 0x3ce   :  { %v13829_v52 = vpop.f32.mrf.mxu0  ;;  %v17110_v59 = vld [vmem:[%s22908_s4 + $0x130] sm:$0xff]   ;;  %v17112_v3 = vld [vmem:[%s22908_s4 + $0x120] sm:$0xff]  }
 0x3cf   :  { %16100 = vmatprep.mubr.bf16.mxu0 %v2247_v48  ;;  %v2235_v56 = vadd.f32 %v13892_v62, %v13828_v31  ;;  %v17113_v48 = vld [vmem:[%s22908_s4 + $0x118] sm:$0xff]   ;;  %v17116_v31 = vld [vmem:[%s22908_s4 + $0x100] sm:$0xff]   ;;  %v19197_v62 = vpop.f32.mrf.mxu1 }
 0x3d0   :  { %v13830_v9 = vpop.f32.mrf.mxu0 }
 0x3d1   :  { %v13831_v34 = vadd.f32 %v13830_v9, %v13829_v52  ;;  %v17114_v52 = vld [vmem:[%s22908_s4 + $0x110] sm:$0xff]   ;;  %v22996_v9 = vld [vmem:[#allocation16_spill] sm:$0xff] }
 0x3d3   :  { %v2238_v13 = vadd.f32 %v13895_v11, %v13831_v34  ;;  %v19199_v34 = vpop.f32.mrf.mxu1 }
 0x3d5   :  { %v2248_v58 = vpack.c.bf16 %v2238_v13, %v2235_v56  ;;  %v19201_v56 = vpop.f32.mrf.mxu1  ;;  %v22997_v13 = vld [vmem:[#allocation9_spill] sm:$0xff] }
 0x3d7   :  { %16101 = vmatmul.mubr.bf16.gmra.mxu0 %v2248_v58 }
 0x3d8   :  { %2749 = vmatprep.mubr.bf16.mxu0 %v17063_v45 }
 0x3df   :  { %2750 = vmatmul.mubr.bf16.vlgmr.msra.gmra.mxu0 %v17061_v61  ;;  %v22999_v61 = vld [vmem:[#allocation10_spill] sm:$0xff] }
 0x3e0   :  { %14057 = vmatpush3.bf16.msra.mxu0 %v18128_v41  ;;  %2757 = vmatprep.mubr.bf16.mxu0 %v17069_v24 }
 0x3e1   :  { %14058 = vmatprep.subr.bf16.mxu0 %v18133_v47 }
 0x3e4   :  { %14059 = vmatpush3.bf16.msra.mxu0 %v22960_v8 }
 0x3e5   :  { %14060 = vmatprep.subr.bf16.mxu0 %v22961_v63 }
 0x3e7   :  { %2758 = vmatmul.mubr.bf16.gmra.mxu0 %v17067_v25 }
 0x3e8   :  { %14061 = vmatpush3.bf16.msra.mxu0 %v22962_v49  ;;  %2765 = vmatprep.mubr.bf16.mxu0 %v17075_v27  ;;  %v19209_v27 = vpop.f32.mrf.mxu1 }
 0x3e9   :  { %14062 = vmatprep.subr.bf16.mxu0 %v22963_v28 }
 0x3ec   :  { %14063 = vmatpush3.bf16.msra.mxu0 %v22964_v26 }
 0x3ed   :  { %14064 = vmatprep.subr.bf16.mxu0 %v22965_v16 }
 0x3ef   :  { %2766 = vmatmul.mubr.bf16.gmra.mxu0 %v17073_v7  ;;  %v23001_v7 = vld [vmem:[#allocation4_spill] sm:$0xff] }
 0x3f0   :  { %14065 = vmatpush3.bf16.msra.mxu0 %v22966_v17  ;;  %2773 = vmatprep.mubr.bf16.mxu0 %v17081_v44 }
 0x3f1   :  { %14066 = vmatprep.subr.bf16.mxu0 %v22967_v4 }
 0x3f4   :  { %14067 = vmatpush3.bf16.msra.mxu0 %v22968_v50 }
 0x3f5   :  { %14068 = vmatprep.subr.bf16.mxu0 %v22969_v43 }
 0x3f7   :  { %2774 = vmatmul.mubr.bf16.gmra.mxu0 %v17079_v21  ;;  %v17122_v21 = vld [vmem:[%s22907_s3 + $0x424] ss:$16 sps:$4 sm:$0xff]  }
 0x3f8   :  { %14069 = vmatpush3.bf16.msra.mxu0 %v22970_v53  ;;  %2781 = vmatprep.mubr.bf16.mxu0 %v17087_v54  ;;  %v17120_v54 = vld [vmem:[%s22907_s3 + $0x420] ss:$16 sps:$4 sm:$0xff]  }
 0x3f9   :  { %14070 = vmatprep.subr.bf16.mxu0 %v22994_v12 }
 0x3fc   :  { %14071 = vmatpush3.bf16.msra.mxu0 %v22995_v29 }
 0x3fd   :  { %16136 = vmatprep.subr.bf16.mxu0 %v17109_v23 }
 0x3ff   :  { %2782 = vmatmul.mubr.bf16.gmra.mxu0 %v17085_v32 }
 0x400   :  { %2789 = vmatprep.mubr.bf16.mxu0 %v17093_v19  ;;  %v17128_v19 = vld [vmem:[%s22907_s3 + $0x444] ss:$16 sps:$4 sm:$0xff]  }
 0x407   :  { %2790 = vmatmul.mubr.bf16.gmra.mxu0 %v17091_v37 }
 0x408   :  { %2797 = vmatprep.mubr.bf16.mxu0 %v17099_v42  ;;  %v17126_v42 = vld [vmem:[%s22907_s3 + $0x440] ss:$16 sps:$4 sm:$0xff]  }
 0x40f   :  { %2798 = vmatmul.mubr.bf16.gmra.mxu0 %v17097_v55 }
 0x410   :  { %2805 = vmatprep.mubr.bf16.mxu0 %v17105_v2 }
 0x417   :  { %2806 = vmatmul.mubr.bf16.gmra.mxu0 %v17103_v1  ;;  %v23004_v1 = vld [vmem:[#allocation12_spill] sm:$0xff] }
 0x418   :  { %3225 = vmatprep.mubr.bf16.mxu0 %v17108_v39 }
 0x41f   :  { %3226 = vmatmul.mubr.bf16.vlgmr.msra.gmra.mxu0 %v17106_v30 }
 0x420   :  { %16137 = vmatpush3.bf16.msra.mxu0 %v17109_v23  ;;  %3233 = vmatprep.mubr.bf16.mxu0 %v17122_v21  ;;  %v19220_v23 = vpop.f32.mrf.mxu1 }
 0x421   :  { %16138 = vmatprep.subr.bf16.mxu0 %v17110_v59 }
 0x422   :  { %v19222_v32 = vpop.f32.mrf.mxu1 }
 0x424   :  { %16139 = vmatpush3.bf16.msra.mxu0 %v17110_v59  ;;  %v19232_v2 = vpop.f32.mrf.mxu1  ;;  %v23006_v59 = vld [vmem:[#allocation13_spill] sm:$0xff] }
 0x425   :  { %16140 = vmatprep.subr.bf16.mxu0 %v17111_v46 }
 0x427   :  { %3234 = vmatmul.mubr.bf16.gmra.mxu0 %v17120_v54 }
 0x428   :  { %16141 = vmatpush3.bf16.msra.mxu0 %v17111_v46  ;;  %3241 = vmatprep.mubr.bf16.mxu0 %v17128_v19  ;;  %v23011_v19 = vld [vmem:[#allocation19_spill] sm:$0xff] }
 0x429   :  { %16142 = vmatprep.subr.bf16.mxu0 %v17112_v3 }
 0x42c   :  { %16143 = vmatpush3.bf16.msra.mxu0 %v17112_v3 }
 0x42d   :  { %16144 = vmatprep.subr.bf16.mxu0 %v17113_v48 }
 0x42f   :  { %3242 = vmatmul.mubr.bf16.gmra.mxu0 %v17126_v42 }
 0x430   :  { %16145 = vmatpush3.bf16.msra.mxu0 %v17113_v48  ;;  %v19240_v48 = vpop.f32.mrf.mxu1 }
 0x431   :  { %16146 = vmatprep.subr.bf16.mxu0 %v17114_v52 }
 0x434   :  { %16147 = vmatpush3.bf16.msra.mxu0 %v17114_v52  ;;  %v23008_v52 = vld [vmem:[#allocation17_spill] sm:$0xff] }
 0x435   :  { %16148 = vmatprep.subr.bf16.mxu0 %v17115_v57 }
 0x438   :  { %16149 = vmatpush3.bf16.msra.mxu0 %v17115_v57 }
 0x439   :  { %16150 = vmatprep.subr.bf16.mxu0 %v17116_v31 }
 0x43c   :  { %16151 = vmatpush3.bf16.msra.mxu0 %v17116_v31  ;;  %v17134_v31 = vld [vmem:[%s22907_s3 + $0x464] ss:$16 sps:$4 sm:$0xff]  }
 0x43d   :  { %14264 = vmatprep.subr.bf16.mxu0 %v22996_v9  ;;  %3249 = vmatprep.mubr.bf16.mxu0 %v17134_v31 }
 0x467   :  { %v16090_v11 = vpop.f32.mrf.mxu0 }
 0x468   :  { %v19204_v45 = vadd.f32 %v16090_v11, %v22997_v13  ;;  %v17132_v11 = vld [vmem:[%s22907_s3 + $0x460] ss:$16 sps:$4 sm:$0xff]   ;;  %v19251_v13 = vpop.f32.mrf.mxu1 }
 0x469   :  { %v2348_v58 = vpop.f32.mrf.mxu0  ;;  %3250 = vmatmul.mubr.bf16.gmra.mxu0 %v17132_v11  ;;  %v17144_v11 = vld [vmem:[%s22907_s3 + $0x4a0] ss:$16 sps:$4 sm:$0xff]  }
 0x46a   :  { %22998 = vst [vmem:[#allocation9_spill] sm:$0xff] %v19204_v45  ;;  %v19207_v24 = vadd.f32 %v2348_v58, %v22999_v61  ;;  %v19253_v58 = vpop.f32.mrf.mxu1  ;;  %v17140_v61 = vld [vmem:[%s22907_s3 + $0x484] ss:$16 sps:$4 sm:$0xff]  }
 0x46b   :  { %v16091_v25 = vpop.f32.mrf.mxu0  ;;  %3257 = vmatprep.mubr.bf16.mxu0 %v17140_v61  ;;  %v17146_v61 = vld [vmem:[%s22907_s3 + $0x4a4] ss:$16 sps:$4 sm:$0xff]  }
 0x46c   :  { %23000 = vst [vmem:[#allocation10_spill] sm:$0xff] %v19207_v24  ;;  %v19212_v44 = vadd.f32 %v16091_v25, %v23001_v7  ;;  %v17138_v7 = vld [vmem:[%s22907_s3 + $0x480] ss:$16 sps:$4 sm:$0xff]   ;;  %v19263_v54 = vpop.f32.mrf.mxu1 }
 0x46d   :  { %v19227_v37 = vpop.f32.mrf.mxu0 }
 0x46e   :  { %23002 = vst [vmem:[#allocation4_spill] sm:$0xff] %v19212_v44  ;;  %23003 = vst [vmem:[#allocation27_spill] sm:$0xff] %v19227_v37  ;;  %v23020_v37 = vld [vmem:[#allocation24_spill] sm:$0xff] }
 0x471   :  { %3258 = vmatmul.mubr.bf16.gmra.mxu0 %v17138_v7 }
 0x472   :  { %3265 = vmatprep.mubr.bf16.mxu0 %v17146_v61  ;;  %v23018_v61 = vld [vmem:[#allocation23_spill] sm:$0xff] }
 0x477   :  { %v16094_v55 = vpop.f32.mrf.mxu0 }
 0x478   :  { %v19235_v39 = vadd.f32 %v16094_v55, %v23004_v1  ;;  %v23013_v1 = vld [vmem:[#allocation20_spill] sm:$0xff] }
 0x479   :  { %v2364_v30 = vpop.f32.mrf.mxu0  ;;  %3266 = vmatmul.mubr.bf16.gmra.mxu0 %v17144_v11 }
 0x47a   :  { %23005 = vst [vmem:[#allocation12_spill] sm:$0xff] %v19235_v39  ;;  %v19238_v46 = vadd.f32 %v2364_v30, %v23006_v59 }
 0x47b   :  { %v16095_v3 = vpop.f32.mrf.mxu0 }
 0x47c   :  { %23007 = vst [vmem:[#allocation13_spill] sm:$0xff] %v19238_v46  ;;  %v19243_v57 = vadd.f32 %v16095_v3, %v23008_v52  ;;  %v19271_v3 = vpop.f32.mrf.mxu1  ;;  %v23015_v52 = vld [vmem:[#allocation21_spill] sm:$0xff] }
 0x47d   :  { %v19258_v25 = vpop.f32.mrf.mxu0 }
 0x47e   :  { %23009 = vst [vmem:[#allocation17_spill] sm:$0xff] %v19243_v57  ;;  %23010 = vst [vmem:[#allocation28_spill] sm:$0xff] %v19258_v25  ;;  %v19282_v7 = vpop.f32.mrf.mxu1  ;;  %v23022_v57 = vld [vmem:[#allocation25_spill] sm:$0xff] }
 0x487   :  { %v16098_v21 = vpop.f32.mrf.mxu0 }
 0x488   :  { %v19266_v42 = vadd.f32 %v16098_v21, %v23011_v19  ;;  %v19284_v21 = vpop.f32.mrf.mxu1  ;;  %v17150_v19 = vld [vmem:[%s22907_s3 + $0x4c0] ss:$16 sps:$4 sm:$0xff]  }
 0x489   :  { %v2380_v55 = vpop.f32.mrf.mxu0 }
 0x48a   :  { %23012 = vst [vmem:[#allocation19_spill] sm:$0xff] %v19266_v42  ;;  %v19269_v30 = vadd.f32 %v2380_v55, %v23013_v1  ;;  %v17152_v55 = vld [vmem:[%s22907_s3 + $0x4c4] ss:$16 sps:$4 sm:$0xff]  }
 0x48b   :  { %v16099_v59 = vpop.f32.mrf.mxu0  ;;  %3273 = vmatprep.mubr.bf16.mxu0 %v17152_v55  ;;  %v17156_v55 = vld [vmem:[%s22907_s3 + $0x4e0] ss:$16 sps:$4 sm:$0xff]  }
 0x48c   :  { %23014 = vst [vmem:[#allocation20_spill] sm:$0xff] %v19269_v30  ;;  %v19274_v31 = vadd.f32 %v16099_v59, %v23015_v52  ;;  %v19294_v52 = vpop.f32.mrf.mxu1  ;;  %3274 = vmatmul.mubr.bf16.gmra.mxu0 %v17150_v19  ;;  %v17158_v19 = vld [vmem:[%s22907_s3 + $0x4e4] ss:$16 sps:$4 sm:$0xff]  }
 0x48d   :  { %v19292_v1 = vpop.f32.mrf.mxu0  ;;  %3281 = vmatprep.mubr.bf16.mxu0 %v17158_v19 }
 0x48e   :  { %23016 = vst [vmem:[#allocation21_spill] sm:$0xff] %v19274_v31  ;;  %23017 = vst [vmem:[#allocation29_spill] sm:$0xff] %v19292_v1  ;;  %v13950_v42 = vpop.f32.mrf.mxu1 }
 0x494   :  { %3282 = vmatmul.mubr.bf16.gmra.mxu0 %v17156_v55 }
 0x497   :  { %v16102_v59 = vpop.f32.mrf.mxu0 }
 0x498   :  { %v19297_v25 = vadd.f32 %v16102_v59, %v23018_v61  ;;  %v19313_v61 = vpop.f32.mrf.mxu1 }
 0x499   :  { %v2396_v11 = vpop.f32.mrf.mxu0 }
 0x49a   :  { %23019 = vst [vmem:[#allocation23_spill] sm:$0xff] %v19297_v25  ;;  %v19300_v31 = vadd.f32 %v2396_v11, %v23020_v37  ;;  %v13933_v25 = vadd.f32 %v19209_v27, %v19201_v56 }
 0x49b   :  { %v16103_v30 = vpop.f32.mrf.mxu0 }
 0x49c   :  { %23021 = vst [vmem:[#allocation24_spill] sm:$0xff] %v19300_v31  ;;  %v19303_v46 = vadd.f32 %v16103_v30, %v23022_v57  ;;  %v19315_v31 = vpop.f32.mrf.mxu1 }
 0x49d   :  { %v19311_v1 = vpop.f32.mrf.mxu0 }
 0x49e   :  { %23023 = vst [vmem:[#allocation25_spill] sm:$0xff] %v19303_v46  ;;  %23024 = vst [vmem:[#allocation30_spill] sm:$0xff] %v19311_v1  ;;  %v13930_v46 = vadd.f32 %v19199_v34, %v19197_v62  ;;  %v13955_v1 = vpop.f32.mrf.mxu1  ;;  %v13939_v62 = vadd.f32 %v19240_v48, %v19232_v2 }
 0x49f   :  { %v13992_v59 = vpop.f32.mrf.mxu0 }
 0x4a0   :  { %v13956_v29 = vpop.f32.mrf.mxu1 }
 0x4a1   :  { %v13993_v37 = vpop.f32.mrf.mxu0 }
 0x4a2   :  { %v13994_v57 = vadd.f32 %v13993_v37, %v13992_v59  ;;  %v13936_v59 = vadd.f32 %v19222_v32, %v19220_v23  ;;  %v19325_v27 = vpop.f32.mrf.mxu1 }
 0x4a3   :  { %v13995_v11 = vpop.f32.mrf.mxu0 }
 0x4a4   :  { %v2752_v19 = vadd.f32 %v13994_v57, %v13930_v46 }
 0x4a5   :  { %v13996_v30 = vpop.f32.mrf.mxu0 }
 0x4a6   :  { %v13997_v39 = vadd.f32 %v13996_v30, %v13995_v11  ;;  %v13959_v11 = vpop.f32.mrf.mxu1 }
 0x4a7   :  { %v13998_v44 = vpop.f32.mrf.mxu0 }
 0x4a8   :  { %v2755_v24 = vadd.f32 %v13997_v39, %v13933_v25  ;;  %v13961_v23 = vpop.f32.mrf.mxu1 }
 0x4a9   :  { %v13999_v45 = vpop.f32.mrf.mxu0 }
 0x4aa   :  { %v2814_v9 = vpack.c.bf16 %v2755_v24, %v2752_v19  ;;  %v14000_v12 = vadd.f32 %v13999_v45, %v13998_v44  ;;  %v13942_v45 = vadd.f32 %v19253_v58, %v19251_v13  ;;  %v13948_v58 = vadd.f32 %v19284_v21, %v19282_v7 }
 0x4ab   :  { %v14001_v55 = vpop.f32.mrf.mxu0  ;;  %v13954_v7 = vadd.f32 %v19315_v31, %v19313_v61  ;;  %v13957_v21 = vadd.f32 %v13956_v29, %v13955_v1  ;;  %v13960_v31 = vadd.f32 %v13959_v11, %v19325_v27 }
 0x4ac   :  { %16120 = vmatprep.mubr.bf16.mxu1 %v2814_v9  ;;  %v2760_v37 = vadd.f32 %v14000_v12, %v13936_v59 }
 0x4ad   :  { %v14002_v53 = vpop.f32.mrf.mxu0 }
 0x4ae   :  { %v14003_v34 = vadd.f32 %v14002_v53, %v14001_v55  ;;  %v13945_v53 = vadd.f32 %v19271_v3, %v19263_v54  ;;  %v13962_v55 = vpop.f32.mrf.mxu1  ;;  %v13951_v54 = vadd.f32 %v13950_v42, %v19294_v52 }
 0x4af   :  { %v14004_v56 = vpop.f32.mrf.mxu0  ;;  %v13963_v1 = vadd.f32 %v13962_v55, %v13961_v23 }
 0x4b0   :  { %v2763_v46 = vadd.f32 %v14003_v34, %v13939_v62  ;;  %v13964_v34 = vpop.f32.mrf.mxu1 }
 0x4b1   :  { %v14005_v39 = vpop.f32.mrf.mxu0 }
 0x4b2   :  { %v2815_v25 = vpack.c.bf16 %v2763_v46, %v2760_v37  ;;  %v14006_v57 = vadd.f32 %v14005_v39, %v14004_v56 }
 0x4b3   :  { %v14007_v24 = vpop.f32.mrf.mxu0 }
 0x4b4   :  { %16121 = vmatmul.mubr.bf16.vlgmr.msra.gmra.mxu1 %v2815_v25  ;;  %v2768_v32 = vadd.f32 %v14006_v57, %v13942_v45 }
 0x4b5   :  { %14121 = vmatpush3.bf16.msra.mxu1 %v18369_v18  ;;  %v14008_v9 = vpop.f32.mrf.mxu0 }
 0x4b6   :  { %v14009_v44 = vadd.f32 %v14008_v9, %v14007_v24  ;;  %14122 = vmatprep.subr.bf16.mxu1 %v18374_v22  ;;  %v13965_v24 = vpop.f32.mrf.mxu1 }
 0x4b7   :  { %v14010_v12 = vpop.f32.mrf.mxu0  ;;  %v13966_v27 = vadd.f32 %v13965_v24, %v13964_v34  ;;  %v17119_v34 = vld [vmem:[%s22907_s3 + $0x40c] ss:$16 sps:$4 sm:$0xff]  }
 0x4b8   :  { %v2771_v2 = vadd.f32 %v14009_v44, %v13945_v53  ;;  %v13967_v45 = vpop.f32.mrf.mxu1 }
 0x4b9   :  { %14123 = vmatpush3.bf16.msra.mxu1 %v18389_v14  ;;  %v14011_v48 = vpop.f32.mrf.mxu0 }
 0x4ba   :  { %14124 = vmatprep.subr.bf16.mxu1 %v18396_v35  ;;  %v2816_v30 = vpack.c.bf16 %v2771_v2, %v2768_v32  ;;  %v14012_v59 = vadd.f32 %v14011_v48, %v14010_v12  ;;  %v13968_v48 = vpop.f32.mrf.mxu1 }
 0x4bb   :  { %v14013_v19 = vpop.f32.mrf.mxu0  ;;  %v13969_v11 = vadd.f32 %v13968_v48, %v13967_v45  ;;  %v17117_v45 = vld [vmem:[%s22907_s3 + $0x408] ss:$16 sps:$4 sm:$0xff]   ;;  %v17125_v48 = vld [vmem:[%s22907_s3 + $0x42c] ss:$16 sps:$4 sm:$0xff]  }
 0x4bc   :  { %16124 = vmatprep.mubr.bf16.mxu1 %v2816_v30  ;;  %v2776_v56 = vadd.f32 %v14012_v59, %v13948_v58  ;;  %v13970_v59 = vpop.f32.mrf.mxu1 }
 0x4bd   :  { %14125 = vmatpush3.bf16.msra.mxu1 %v18407_v33  ;;  %v14014_v13 = vpop.f32.mrf.mxu0 }
 0x4be   :  { %v14015_v3 = vadd.f32 %v14014_v13, %v14013_v19  ;;  %14126 = vmatprep.subr.bf16.mxu1 %v18411_v6 }
 0x4bf   :  { %v14016_v62 = vpop.f32.mrf.mxu0 }
 0x4c0   :  { %v2779_v37 = vadd.f32 %v14015_v3, %v13951_v54 }
 0x4c1   :  { %14127 = vmatpush3.bf16.msra.mxu1 %v18425_v0  ;;  %v14017_v46 = vpop.f32.mrf.mxu0 }
 0x4c2   :  { %v2817_v39 = vpack.c.bf16 %v2779_v37, %v2776_v56  ;;  %14128 = vmatprep.subr.bf16.mxu1 %v18432_v60  ;;  %v14018_v57 = vadd.f32 %v14017_v46, %v14016_v62  ;;  %v13971_v56 = vpop.f32.mrf.mxu1 }
 0x4c3   :  { %v14019_v25 = vpop.f32.mrf.mxu0 }
 0x4c4   :  { %16125 = vmatmul.mubr.bf16.gmra.mxu1 %v2817_v39  ;;  %v2784_v53 = vadd.f32 %v14018_v57, %v13954_v7  ;;  %v13973_v39 = vpop.f32.mrf.mxu1 }
 0x4c5   :  { %14129 = vmatpush3.bf16.msra.mxu1 %v18196_v40  ;;  %v14020_v42 = vpop.f32.mrf.mxu0 }
 0x4c6   :  { %v14021_v52 = vadd.f32 %v14020_v42, %v14019_v25  ;;  %14130 = vmatprep.subr.bf16.mxu1 %v18445_v36 }
 0x4c7   :  { %v14022_v9 = vpop.f32.mrf.mxu0 }
 0x4c8   :  { %v2787_v44 = vadd.f32 %v14021_v52, %v13957_v21  ;;  %v13974_v52 = vpop.f32.mrf.mxu1 }
 0x4c9   :  { %14131 = vmatpush3.bf16.msra.mxu1 %v18459_v5  ;;  %v14023_v12 = vpop.f32.mrf.mxu0 }
 0x4ca   :  { %14132 = vmatprep.subr.bf16.mxu1 %v18466_v10  ;;  %v2818_v32 = vpack.c.bf16 %v2787_v44, %v2784_v53  ;;  %v14024_v30 = vadd.f32 %v14023_v12, %v14022_v9  ;;  %v13972_v44 = vadd.f32 %v13971_v56, %v13970_v59  ;;  %v13975_v12 = vadd.f32 %v13974_v52, %v13973_v39  ;;  %v17143_v59 = vld [vmem:[%s22907_s3 + $0x48c] ss:$16 sps:$4 sm:$0xff]   ;;  %v17162_v39 = vld [vmem:[%s22907_s3 + $0x500] ss:$16 sps:$4 sm:$0xff]  }
 0x4cb   :  { %v14025_v2 = vpop.f32.mrf.mxu0  ;;  %v17149_v56 = vld [vmem:[%s22907_s3 + $0x4ac] ss:$16 sps:$4 sm:$0xff]  }
 0x4cc   :  { %16128 = vmatprep.mubr.bf16.mxu1 %v2818_v32  ;;  %v2792_v13 = vadd.f32 %v14024_v30, %v13960_v31  ;;  %v17131_v31 = vld [vmem:[%s22907_s3 + $0x44c] ss:$16 sps:$4 sm:$0xff]  }
 0x4cd   :  { %14133 = vmatpush3.bf16.msra.mxu1 %v18162_v20  ;;  %v14026_v29 = vpop.f32.mrf.mxu0  ;;  %v17171_v52 = vld [vmem:[%s22908_s4 + $0x148] sm:$0xff]  }
 0x4ce   :  { %v14027_v61 = vadd.f32 %v14026_v29, %v14025_v2  ;;  %14134 = vmatprep.subr.bf16.mxu1 %v18473_v51  ;;  %v17123_v29 = vld [vmem:[%s22907_s3 + $0x428] ss:$16 sps:$4 sm:$0xff]  }
 0x4cf   :  { %v14028_v19 = vpop.f32.mrf.mxu0 }
 0x4d0   :  { %v2795_v58 = vadd.f32 %v14027_v61, %v13963_v1  ;;  %v17129_v1 = vld [vmem:[%s22907_s3 + $0x448] ss:$16 sps:$4 sm:$0xff]   ;;  %v17137_v61 = vld [vmem:[%s22907_s3 + $0x46c] ss:$16 sps:$4 sm:$0xff]  }
 0x4d1   :  { %14135 = vmatpush3.bf16.msra.mxu1 %v18480_v15  ;;  %v14029_v54 = vpop.f32.mrf.mxu0 }
 0x4d2   :  { %v2819_v3 = vpack.c.bf16 %v2795_v58, %v2792_v13  ;;  %14200 = vmatprep.subr.bf16.mxu1 %v18125_v38  ;;  %v14030_v37 = vadd.f32 %v14029_v54, %v14028_v19  ;;  %v17135_v19 = vld [vmem:[%s22907_s3 + $0x468] ss:$16 sps:$4 sm:$0xff]   ;;  %v23025_v13 = vld [vmem:[#allocation3_spill] sm:$0xff] }
 0x4d3   :  { %v14031_v62 = vpop.f32.mrf.mxu0  ;;  %v23026_v58 = vld [vmem:[#allocation14_spill] sm:$0xff] }
 0x4d4   :  { %16129 = vmatmul.mubr.bf16.gmra.mxu1 %v2819_v3  ;;  %v2800_v25 = vadd.f32 %v14030_v37, %v13966_v27  ;;  %v17165_v54 = vld [vmem:[%s22908_s4 + $0x178] sm:$0xff]  }
 0x4d5   :  { %v14032_v46 = vpop.f32.mrf.mxu0  ;;  %v17141_v3 = vld [vmem:[%s22907_s3 + $0x488] ss:$16 sps:$4 sm:$0xff]  }
 0x4d6   :  { %v14033_v23 = vadd.f32 %v14032_v46, %v14031_v62  ;;  %v23027_v62 = vld [vmem:[#allocation15_spill] sm:$0xff]  ;;  %v17147_v37 = vld [vmem:[%s22907_s3 + $0x4a8] ss:$16 sps:$4 sm:$0xff]   ;;  %v17155_v46 = vld [vmem:[%s22907_s3 + $0x4cc] ss:$16 sps:$4 sm:$0xff]  }
 0x4d7   :  { %v14034_v55 = vpop.f32.mrf.mxu0  ;;  %v17153_v27 = vld [vmem:[%s22907_s3 + $0x4c8] ss:$16 sps:$4 sm:$0xff]  }
 0x4d8   :  { %v2803_v57 = vadd.f32 %v14033_v23, %v13969_v11  ;;  %v17161_v11 = vld [vmem:[%s22907_s3 + $0x4ec] ss:$16 sps:$4 sm:$0xff]   ;;  %v17159_v23 = vld [vmem:[%s22907_s3 + $0x4e8] ss:$16 sps:$4 sm:$0xff]  }
 0x4d9   :  { %v14035_v42 = vpop.f32.mrf.mxu0 }
 0x4da   :  { %v2820_v7 = vpack.c.bf16 %v2803_v57, %v2800_v25  ;;  %v14036_v9 = vadd.f32 %v14035_v42, %v14034_v55  ;;  %v17164_v55 = vld [vmem:[%s22907_s3 + $0x504] ss:$16 sps:$4 sm:$0xff]   ;;  %v17167_v57 = vld [vmem:[%s22908_s4 + $0x168] sm:$0xff]  }
 0x4db   :  { %v14037_v21 = vpop.f32.mrf.mxu0  ;;  %v17166_v25 = vld [vmem:[%s22908_s4 + $0x170] sm:$0xff]   ;;  %v17168_v42 = vld [vmem:[%s22908_s4 + $0x160] sm:$0xff]  }
 0x4dc   :  { %16132 = vmatprep.mubr.bf16.mxu1 %v2820_v7  ;;  %v2808_v2 = vadd.f32 %v14036_v9, %v13972_v44  ;;  %v17169_v7 = vld [vmem:[%s22908_s4 + $0x158] sm:$0xff]   ;;  %v17172_v9 = vld [vmem:[%s22908_s4 + $0x140] sm:$0xff]  }
 0x4dd   :  { %v14038_v53 = vpop.f32.mrf.mxu0 }
 0x4de   :  { %v14039_v32 = vadd.f32 %v14038_v53, %v14037_v21  ;;  %v17170_v21 = vld [vmem:[%s22908_s4 + $0x150] sm:$0xff]   ;;  %v23028_v53 = vld [vmem:[#allocation16_spill] sm:$0xff] }
 0x4df   :  { %v19447_v44 = vpop.f32.mrf.mxu0 }
 0x4e0   :  { %v2811_v30 = vadd.f32 %v14039_v32, %v13975_v12 }
 0x4e1   :  { %v19449_v12 = vpop.f32.mrf.mxu0 }
 0x4e2   :  { %v2821_v24 = vpack.c.bf16 %v2811_v30, %v2808_v2  ;;  %v23029_v30 = vld [vmem:[#allocation9_spill] sm:$0xff] }
 0x4e3   :  { %v19451_v2 = vpop.f32.mrf.mxu0 }
 0x4e4   :  { %16133 = vmatmul.mubr.bf16.gmra.mxu1 %v2821_v24 }
 0x4e5   :  { %3322 = vmatprep.mubr.bf16.mxu1 %v17119_v34 }
 0x4ec   :  { %3323 = vmatmul.mubr.bf16.vlgmr.msra.gmra.mxu1 %v17117_v45  ;;  %v23031_v45 = vld [vmem:[#allocation10_spill] sm:$0xff] }
 0x4ed   :  { %14201 = vmatpush3.bf16.msra.mxu1 %v18128_v41  ;;  %3330 = vmatprep.mubr.bf16.mxu1 %v17125_v48 }
 0x4ee   :  { %14202 = vmatprep.subr.bf16.mxu1 %v18133_v47 }
 0x4f1   :  { %14203 = vmatpush3.bf16.msra.mxu1 %v22960_v8 }
 0x4f2   :  { %14204 = vmatprep.subr.bf16.mxu1 %v22961_v63 }
 0x4f4   :  { %3331 = vmatmul.mubr.bf16.gmra.mxu1 %v17123_v29 }
 0x4f5   :  { %14205 = vmatpush3.bf16.msra.mxu1 %v22962_v49  ;;  %3338 = vmatprep.mubr.bf16.mxu1 %v17131_v31  ;;  %v19459_v31 = vpop.f32.mrf.mxu0 }
 0x4f6   :  { %14206 = vmatprep.subr.bf16.mxu1 %v22963_v28 }
 0x4f9   :  { %14207 = vmatpush3.bf16.msra.mxu1 %v22964_v26 }
 0x4fa   :  { %14208 = vmatprep.subr.bf16.mxu1 %v22965_v16 }
 0x4fc   :  { %3339 = vmatmul.mubr.bf16.gmra.mxu1 %v17129_v1  ;;  %v23033_v1 = vld [vmem:[#allocation4_spill] sm:$0xff] }
 0x4fd   :  { %14209 = vmatpush3.bf16.msra.mxu1 %v22966_v17  ;;  %3346 = vmatprep.mubr.bf16.mxu1 %v17137_v61 }
 0x4fe   :  { %14210 = vmatprep.subr.bf16.mxu1 %v22967_v4 }
 0x501   :  { %14211 = vmatpush3.bf16.msra.mxu1 %v22968_v50 }
 0x502   :  { %14212 = vmatprep.subr.bf16.mxu1 %v22969_v43 }
 0x504   :  { %3347 = vmatmul.mubr.bf16.gmra.mxu1 %v17135_v19  ;;  %v17178_v19 = vld [vmem:[%s22907_s3 + $0x524] ss:$16 sps:$4 sm:$0xff]  }
 0x505   :  { %14213 = vmatpush3.bf16.msra.mxu1 %v23025_v13  ;;  %3354 = vmatprep.mubr.bf16.mxu1 %v17143_v59  ;;  %v17176_v59 = vld [vmem:[%s22907_s3 + $0x520] ss:$16 sps:$4 sm:$0xff]  }
 0x506   :  { %14214 = vmatprep.subr.bf16.mxu1 %v23026_v58 }
 0x509   :  { %14215 = vmatpush3.bf16.msra.mxu1 %v23027_v62 }
 0x50a   :  { %16168 = vmatprep.subr.bf16.mxu1 %v17165_v54 }
 0x50c   :  { %3355 = vmatmul.mubr.bf16.gmra.mxu1 %v17141_v3 }
 0x50d   :  { %3362 = vmatprep.mubr.bf16.mxu1 %v17149_v56  ;;  %v17184_v56 = vld [vmem:[%s22907_s3 + $0x544] ss:$16 sps:$4 sm:$0xff]  }
 0x514   :  { %3363 = vmatmul.mubr.bf16.gmra.mxu1 %v17147_v37 }
 0x515   :  { %3370 = vmatprep.mubr.bf16.mxu1 %v17155_v46  ;;  %v17182_v46 = vld [vmem:[%s22907_s3 + $0x540] ss:$16 sps:$4 sm:$0xff]  }
 0x51c   :  { %3371 = vmatmul.mubr.bf16.gmra.mxu1 %v17153_v27 }
 0x51d   :  { %3378 = vmatprep.mubr.bf16.mxu1 %v17161_v11 }
 0x524   :  { %3379 = vmatmul.mubr.bf16.gmra.mxu1 %v17159_v23  ;;  %v23036_v23 = vld [vmem:[#allocation12_spill] sm:$0xff] }
 0x525   :  { %3798 = vmatprep.mubr.bf16.mxu1 %v17164_v55 }
 0x52c   :  { %3799 = vmatmul.mubr.bf16.vlgmr.msra.gmra.mxu1 %v17162_v39 }
 0x52d   :  { %16169 = vmatpush3.bf16.msra.mxu1 %v17165_v54  ;;  %3806 = vmatprep.mubr.bf16.mxu1 %v17178_v19  ;;  %v19470_v54 = vpop.f32.mrf.mxu0 }
 0x52e   :  { %16170 = vmatprep.subr.bf16.mxu1 %v17166_v25 }
 0x52f   :  { %v19472_v3 = vpop.f32.mrf.mxu0 }
 0x531   :  { %16171 = vmatpush3.bf16.msra.mxu1 %v17166_v25  ;;  %v19482_v11 = vpop.f32.mrf.mxu0  ;;  %v23038_v25 = vld [vmem:[#allocation13_spill] sm:$0xff] }
 0x532   :  { %16172 = vmatprep.subr.bf16.mxu1 %v17167_v57 }
 0x534   :  { %3807 = vmatmul.mubr.bf16.gmra.mxu1 %v17176_v59 }
 0x535   :  { %16173 = vmatpush3.bf16.msra.mxu1 %v17167_v57  ;;  %3814 = vmatprep.mubr.bf16.mxu1 %v17184_v56  ;;  %v23043_v56 = vld [vmem:[#allocation19_spill] sm:$0xff] }
 0x536   :  { %16174 = vmatprep.subr.bf16.mxu1 %v17168_v42 }
 0x539   :  { %16175 = vmatpush3.bf16.msra.mxu1 %v17168_v42 }
 0x53a   :  { %16176 = vmatprep.subr.bf16.mxu1 %v17169_v7 }
 0x53c   :  { %3815 = vmatmul.mubr.bf16.gmra.mxu1 %v17182_v46 }
 0x53d   :  { %16177 = vmatpush3.bf16.msra.mxu1 %v17169_v7  ;;  %v19490_v7 = vpop.f32.mrf.mxu0 }
 0x53e   :  { %16178 = vmatprep.subr.bf16.mxu1 %v17170_v21 }
 0x541   :  { %16179 = vmatpush3.bf16.msra.mxu1 %v17170_v21  ;;  %v23040_v21 = vld [vmem:[#allocation17_spill] sm:$0xff] }
 0x542   :  { %16180 = vmatprep.subr.bf16.mxu1 %v17171_v52 }
 0x545   :  { %16181 = vmatpush3.bf16.msra.mxu1 %v17171_v52 }
 0x546   :  { %16182 = vmatprep.subr.bf16.mxu1 %v17172_v9 }
 0x549   :  { %16183 = vmatpush3.bf16.msra.mxu1 %v17172_v9  ;;  %v17190_v9 = vld [vmem:[%s22907_s3 + $0x564] ss:$16 sps:$4 sm:$0xff]  }
 0x54a   :  { %14408 = vmatprep.subr.bf16.mxu1 %v23028_v53  ;;  %3822 = vmatprep.mubr.bf16.mxu1 %v17190_v9 }
 0x574   :  { %v16122_v32 = vpop.f32.mrf.mxu1 }
 0x575   :  { %v19454_v34 = vadd.f32 %v16122_v32, %v23029_v30  ;;  %v17188_v32 = vld [vmem:[%s22907_s3 + $0x560] ss:$16 sps:$4 sm:$0xff]   ;;  %v19501_v30 = vpop.f32.mrf.mxu0 }
 0x576   :  { %v2921_v24 = vpop.f32.mrf.mxu1  ;;  %3823 = vmatmul.mubr.bf16.gmra.mxu1 %v17188_v32  ;;  %v17200_v32 = vld [vmem:[%s22907_s3 + $0x5a0] ss:$16 sps:$4 sm:$0xff]  }
 0x577   :  { %23030 = vst [vmem:[#allocation9_spill] sm:$0xff] %v19454_v34  ;;  %v19457_v48 = vadd.f32 %v2921_v24, %v23031_v45  ;;  %v19503_v24 = vpop.f32.mrf.mxu0  ;;  %v17196_v45 = vld [vmem:[%s22907_s3 + $0x584] ss:$16 sps:$4 sm:$0xff]  }
 0x578   :  { %v16123_v29 = vpop.f32.mrf.mxu1  ;;  %3830 = vmatprep.mubr.bf16.mxu1 %v17196_v45  ;;  %v17202_v45 = vld [vmem:[%s22907_s3 + $0x5a4] ss:$16 sps:$4 sm:$0xff]  }
 0x579   :  { %23032 = vst [vmem:[#allocation10_spill] sm:$0xff] %v19457_v48  ;;  %v19462_v61 = vadd.f32 %v16123_v29, %v23033_v1  ;;  %v17194_v1 = vld [vmem:[%s22907_s3 + $0x580] ss:$16 sps:$4 sm:$0xff]   ;;  %v19513_v59 = vpop.f32.mrf.mxu0 }
 0x57a   :  { %v19477_v37 = vpop.f32.mrf.mxu1 }
 0x57b   :  { %23034 = vst [vmem:[#allocation4_spill] sm:$0xff] %v19462_v61  ;;  %23035 = vst [vmem:[#allocation31_spill] sm:$0xff] %v19477_v37  ;;  %v23052_v37 = vld [vmem:[#allocation24_spill] sm:$0xff] }
 0x57e   :  { %3831 = vmatmul.mubr.bf16.gmra.mxu1 %v17194_v1 }
 0x57f   :  { %3838 = vmatprep.mubr.bf16.mxu1 %v17202_v45  ;;  %v23050_v45 = vld [vmem:[#allocation23_spill] sm:$0xff] }
 0x584   :  { %v16126_v27 = vpop.f32.mrf.mxu1 }
 0x585   :  { %v19485_v55 = vadd.f32 %v16126_v27, %v23036_v23  ;;  %v23045_v23 = vld [vmem:[#allocation20_spill] sm:$0xff] }
 0x586   :  { %v2937_v39 = vpop.f32.mrf.mxu1  ;;  %3839 = vmatmul.mubr.bf16.gmra.mxu1 %v17200_v32 }
 0x587   :  { %23037 = vst [vmem:[#allocation12_spill] sm:$0xff] %v19485_v55  ;;  %v19488_v57 = vadd.f32 %v2937_v39, %v23038_v25 }
 0x588   :  { %v16127_v42 = vpop.f32.mrf.mxu1 }
 0x589   :  { %23039 = vst [vmem:[#allocation13_spill] sm:$0xff] %v19488_v57  ;;  %v19493_v52 = vadd.f32 %v16127_v42, %v23040_v21  ;;  %v19521_v42 = vpop.f32.mrf.mxu0  ;;  %v23047_v21 = vld [vmem:[#allocation21_spill] sm:$0xff] }
 0x58a   :  { %v19508_v29 = vpop.f32.mrf.mxu1 }
 0x58b   :  { %23041 = vst [vmem:[#allocation17_spill] sm:$0xff] %v19493_v52  ;;  %23042 = vst [vmem:[#allocation32_spill] sm:$0xff] %v19508_v29  ;;  %v19532_v1 = vpop.f32.mrf.mxu0  ;;  %v23054_v52 = vld [vmem:[#allocation25_spill] sm:$0xff] }
 0x594   :  { %v16130_v19 = vpop.f32.mrf.mxu1 }
 0x595   :  { %v19516_v46 = vadd.f32 %v16130_v19, %v23043_v56  ;;  %v19534_v19 = vpop.f32.mrf.mxu0  ;;  %v17206_v56 = vld [vmem:[%s22907_s3 + $0x5c0] ss:$16 sps:$4 sm:$0xff]  }
 0x596   :  { %v2953_v27 = vpop.f32.mrf.mxu1 }
 0x597   :  { %23044 = vst [vmem:[#allocation19_spill] sm:$0xff] %v19516_v46  ;;  %v19519_v39 = vadd.f32 %v2953_v27, %v23045_v23  ;;  %v17208_v27 = vld [vmem:[%s22907_s3 + $0x5c4] ss:$16 sps:$4 sm:$0xff]  }
 0x598   :  { %v16131_v25 = vpop.f32.mrf.mxu1  ;;  %3846 = vmatprep.mubr.bf16.mxu1 %v17208_v27  ;;  %v17212_v27 = vld [vmem:[%s22907_s3 + $0x5e0] ss:$16 sps:$4 sm:$0xff]  }
 0x599   :  { %23046 = vst [vmem:[#allocation20_spill] sm:$0xff] %v19519_v39  ;;  %v19524_v9 = vadd.f32 %v16131_v25, %v23047_v21  ;;  %v19544_v21 = vpop.f32.mrf.mxu0  ;;  %3847 = vmatmul.mubr.bf16.gmra.mxu1 %v17206_v56  ;;  %v17214_v56 = vld [vmem:[%s22907_s3 + $0x5e4] ss:$16 sps:$4 sm:$0xff]  }
 0x59a   :  { %v19542_v23 = vpop.f32.mrf.mxu1  ;;  %3854 = vmatprep.mubr.bf16.mxu1 %v17214_v56 }
 0x59b   :  { %23048 = vst [vmem:[#allocation21_spill] sm:$0xff] %v19524_v9  ;;  %23049 = vst [vmem:[#allocation33_spill] sm:$0xff] %v19542_v23  ;;  %v14094_v46 = vpop.f32.mrf.mxu0 }
 0x5a1   :  { %3855 = vmatmul.mubr.bf16.gmra.mxu1 %v17212_v27 }
 0x5a4   :  { %v16134_v25 = vpop.f32.mrf.mxu1 }
 0x5a5   :  { %v19547_v29 = vadd.f32 %v16134_v25, %v23050_v45  ;;  %v19563_v45 = vpop.f32.mrf.mxu0 }
 0x5a6   :  { %v2969_v32 = vpop.f32.mrf.mxu1 }
 0x5a7   :  { %23051 = vst [vmem:[#allocation23_spill] sm:$0xff] %v19547_v29  ;;  %v19550_v9 = vadd.f32 %v2969_v32, %v23052_v37  ;;  %v14077_v29 = vadd.f32 %v19459_v31, %v19451_v2 }
 0x5a8   :  { %v16135_v39 = vpop.f32.mrf.mxu1 }
 0x5a9   :  { %23053 = vst [vmem:[#allocation24_spill] sm:$0xff] %v19550_v9  ;;  %v19553_v57 = vadd.f32 %v16135_v39, %v23054_v52  ;;  %v19565_v9 = vpop.f32.mrf.mxu0 }
 0x5aa   :  { %v19561_v23 = vpop.f32.mrf.mxu1 }
 0x5ab   :  { %23055 = vst [vmem:[#allocation25_spill] sm:$0xff] %v19553_v57  ;;  %23056 = vst [vmem:[#allocation34_spill] sm:$0xff] %v19561_v23  ;;  %v14074_v57 = vadd.f32 %v19449_v12, %v19447_v44  ;;  %v14099_v23 = vpop.f32.mrf.mxu0  ;;  %v14083_v44 = vadd.f32 %v19490_v7, %v19482_v11 }
 0x5ac   :  { %v14136_v25 = vpop.f32.mrf.mxu1 }
 0x5ad   :  { %v14100_v62 = vpop.f32.mrf.mxu0 }
 0x5ae   :  { %v14137_v37 = vpop.f32.mrf.mxu1 }
 0x5af   :  { %v14138_v52 = vadd.f32 %v14137_v37, %v14136_v25  ;;  %v14080_v25 = vadd.f32 %v19472_v3, %v19470_v54  ;;  %v19575_v31 = vpop.f32.mrf.mxu0 }
 0x5b0   :  { %v14139_v32 = vpop.f32.mrf.mxu1 }
 0x5b1   :  { %v3325_v56 = vadd.f32 %v14138_v52, %v14074_v57 }
 0x5b2   :  { %v14140_v39 = vpop.f32.mrf.mxu1 }
 0x5b3   :  { %v14141_v55 = vadd.f32 %v14140_v39, %v14139_v32  ;;  %v14103_v32 = vpop.f32.mrf.mxu0 }
 0x5b4   :  { %v14142_v61 = vpop.f32.mrf.mxu1 }
 0x5b5   :  { %v3328_v48 = vadd.f32 %v14141_v55, %v14077_v29  ;;  %v14105_v54 = vpop.f32.mrf.mxu0 }
 0x5b6   :  { %v14143_v34 = vpop.f32.mrf.mxu1 }
 0x5b7   :  { %v3387_v53 = vpack.c.bf16 %v3328_v48, %v3325_v56  ;;  %v14144_v58 = vadd.f32 %v14143_v34, %v14142_v61  ;;  %v14086_v34 = vadd.f32 %v19503_v24, %v19501_v30  ;;  %v14092_v24 = vadd.f32 %v19534_v19, %v19532_v1 }
 0x5b8   :  { %v14145_v27 = vpop.f32.mrf.mxu1  ;;  %v14098_v1 = vadd.f32 %v19565_v9, %v19563_v45  ;;  %v14101_v19 = vadd.f32 %v14100_v62, %v14099_v23  ;;  %v14104_v9 = vadd.f32 %v14103_v32, %v19575_v31 }
 0x5b9   :  { %16152 = vmatprep.mubr.bf16.mxu0 %v3387_v53  ;;  %v3333_v37 = vadd.f32 %v14144_v58, %v14080_v25 }
 0x5ba   :  { %v14146_v13 = vpop.f32.mrf.mxu1 }
 0x5bb   :  { %v14147_v12 = vadd.f32 %v14146_v13, %v14145_v27  ;;  %v14089_v13 = vadd.f32 %v19521_v42, %v19513_v59  ;;  %v14106_v27 = vpop.f32.mrf.mxu0  ;;  %v14095_v59 = vadd.f32 %v14094_v46, %v19544_v21 }
 0x5bc   :  { %v14148_v2 = vpop.f32.mrf.mxu1  ;;  %v14107_v23 = vadd.f32 %v14106_v27, %v14105_v54 }
 0x5bd   :  { %v3336_v57 = vadd.f32 %v14147_v12, %v14083_v44  ;;  %v14108_v12 = vpop.f32.mrf.mxu0 }
 0x5be   :  { %v14149_v55 = vpop.f32.mrf.mxu1 }
 0x5bf   :  { %v3388_v29 = vpack.c.bf16 %v3336_v57, %v3333_v37  ;;  %v14150_v52 = vadd.f32 %v14149_v55, %v14148_v2 }
 0x5c0   :  { %v14151_v48 = vpop.f32.mrf.mxu1 }
 0x5c1   :  { %16153 = vmatmul.mubr.bf16.vlgmr.msra.gmra.mxu0 %v3388_v29  ;;  %v3341_v3 = vadd.f32 %v14150_v52, %v14086_v34 }
 0x5c2   :  { %14265 = vmatpush3.bf16.msra.mxu0 %v18369_v18  ;;  %v14152_v53 = vpop.f32.mrf.mxu1 }
 0x5c3   :  { %v14153_v61 = vadd.f32 %v14152_v53, %v14151_v48  ;;  %14266 = vmatprep.subr.bf16.mxu0 %v18374_v22  ;;  %v14109_v48 = vpop.f32.mrf.mxu0 }
 0x5c4   :  { %v14154_v58 = vpop.f32.mrf.mxu1  ;;  %v14110_v31 = vadd.f32 %v14109_v48, %v14108_v12  ;;  %v17175_v12 = vld [vmem:[%s22907_s3 + $0x50c] ss:$16 sps:$4 sm:$0xff]  }
 0x5c5   :  { %v3344_v11 = vadd.f32 %v14153_v61, %v14089_v13  ;;  %v14111_v34 = vpop.f32.mrf.mxu0 }
 0x5c6   :  { %14267 = vmatpush3.bf16.msra.mxu0 %v18389_v14  ;;  %v14155_v7 = vpop.f32.mrf.mxu1 }
 0x5c7   :  { %14268 = vmatprep.subr.bf16.mxu0 %v18396_v35  ;;  %v3389_v39 = vpack.c.bf16 %v3344_v11, %v3341_v3  ;;  %v14156_v25 = vadd.f32 %v14155_v7, %v14154_v58  ;;  %v14112_v7 = vpop.f32.mrf.mxu0 }
 0x5c8   :  { %v14157_v56 = vpop.f32.mrf.mxu1  ;;  %v14113_v32 = vadd.f32 %v14112_v7, %v14111_v34  ;;  %v17173_v34 = vld [vmem:[%s22907_s3 + $0x508] ss:$16 sps:$4 sm:$0xff]   ;;  %v17181_v7 = vld [vmem:[%s22907_s3 + $0x52c] ss:$16 sps:$4 sm:$0xff]  }
 0x5c9   :  { %16156 = vmatprep.mubr.bf16.mxu0 %v3389_v39  ;;  %v3349_v2 = vadd.f32 %v14156_v25, %v14092_v24  ;;  %v14114_v25 = vpop.f32.mrf.mxu0 }
 0x5ca   :  { %14269 = vmatpush3.bf16.msra.mxu0 %v18407_v33  ;;  %v14158_v30 = vpop.f32.mrf.mxu1 }
 0x5cb   :  { %v14159_v42 = vadd.f32 %v14158_v30, %v14157_v56  ;;  %14270 = vmatprep.subr.bf16.mxu0 %v18411_v6 }
 0x5cc   :  { %v14160_v44 = vpop.f32.mrf.mxu1 }
 0x5cd   :  { %v3352_v37 = vadd.f32 %v14159_v42, %v14095_v59 }
 0x5ce   :  { %14271 = vmatpush3.bf16.msra.mxu0 %v18425_v0  ;;  %v14161_v57 = vpop.f32.mrf.mxu1 }
 0x5cf   :  { %v3390_v55 = vpack.c.bf16 %v3352_v37, %v3349_v2  ;;  %14272 = vmatprep.subr.bf16.mxu0 %v18432_v60  ;;  %v14162_v52 = vadd.f32 %v14161_v57, %v14160_v44  ;;  %v14115_v2 = vpop.f32.mrf.mxu0 }
 0x5d0   :  { %v14163_v29 = vpop.f32.mrf.mxu1 }
 0x5d1   :  { %16157 = vmatmul.mubr.bf16.gmra.mxu0 %v3390_v55  ;;  %v3357_v13 = vadd.f32 %v14162_v52, %v14098_v1  ;;  %v14117_v55 = vpop.f32.mrf.mxu0 }
 0x5d2   :  { %14273 = vmatpush3.bf16.msra.mxu0 %v18196_v40  ;;  %v14164_v46 = vpop.f32.mrf.mxu1 }
 0x5d3   :  { %v14165_v21 = vadd.f32 %v14164_v46, %v14163_v29  ;;  %14274 = vmatprep.subr.bf16.mxu0 %v18445_v36 }
 0x5d4   :  { %v14166_v53 = vpop.f32.mrf.mxu1 }
 0x5d5   :  { %v3360_v61 = vadd.f32 %v14165_v21, %v14101_v19  ;;  %v14118_v21 = vpop.f32.mrf.mxu0 }
 0x5d6   :  { %14275 = vmatpush3.bf16.msra.mxu0 %v18459_v5  ;;  %v14167_v58 = vpop.f32.mrf.mxu1 }
 0x5d7   :  { %14276 = vmatprep.subr.bf16.mxu0 %v18466_v10  ;;  %v3391_v3 = vpack.c.bf16 %v3360_v61, %v3357_v13  ;;  %v14168_v39 = vadd.f32 %v14167_v58, %v14166_v53  ;;  %v14116_v61 = vadd.f32 %v14115_v2, %v14114_v25  ;;  %v14119_v58 = vadd.f32 %v14118_v21, %v14117_v55  ;;  %v17199_v25 = vld [vmem:[%s22907_s3 + $0x58c] ss:$16 sps:$4 sm:$0xff]   ;;  %v17218_v55 = vld [vmem:[%s22907_s3 + $0x600] ss:$16 sps:$4 sm:$0xff]  }
 0x5d8   :  { %v14169_v11 = vpop.f32.mrf.mxu1  ;;  %v17205_v2 = vld [vmem:[%s22907_s3 + $0x5ac] ss:$16 sps:$4 sm:$0xff]  }
 0x5d9   :  { %16160 = vmatprep.mubr.bf16.mxu0 %v3391_v3  ;;  %v3365_v30 = vadd.f32 %v14168_v39, %v14104_v9  ;;  %v17187_v9 = vld [vmem:[%s22907_s3 + $0x54c] ss:$16 sps:$4 sm:$0xff]  }
 0x5da   :  { %14277 = vmatpush3.bf16.msra.mxu0 %v18162_v20  ;;  %v14170_v62 = vpop.f32.mrf.mxu1  ;;  %v17227_v21 = vld [vmem:[%s22908_s4 + $0x188] sm:$0xff]  }
 0x5db   :  { %v14171_v45 = vadd.f32 %v14170_v62, %v14169_v11  ;;  %14278 = vmatprep.subr.bf16.mxu0 %v18473_v51  ;;  %v17179_v62 = vld [vmem:[%s22907_s3 + $0x528] ss:$16 sps:$4 sm:$0xff]  }
 0x5dc   :  { %v14172_v56 = vpop.f32.mrf.mxu1 }
 0x5dd   :  { %v3368_v24 = vadd.f32 %v14171_v45, %v14107_v23  ;;  %v17185_v23 = vld [vmem:[%s22907_s3 + $0x548] ss:$16 sps:$4 sm:$0xff]   ;;  %v17193_v45 = vld [vmem:[%s22907_s3 + $0x56c] ss:$16 sps:$4 sm:$0xff]  }
 0x5de   :  { %14279 = vmatpush3.bf16.msra.mxu0 %v18480_v15  ;;  %v14173_v59 = vpop.f32.mrf.mxu1 }
 0x5df   :  { %v3392_v42 = vpack.c.bf16 %v3368_v24, %v3365_v30  ;;  %14344 = vmatprep.subr.bf16.mxu0 %v18125_v38  ;;  %v14174_v37 = vadd.f32 %v14173_v59, %v14172_v56  ;;  %v17191_v56 = vld [vmem:[%s22907_s3 + $0x568] ss:$16 sps:$4 sm:$0xff]   ;;  %v23057_v30 = vld [vmem:[#allocation3_spill] sm:$0xff] }
 0x5e0   :  { %v14175_v44 = vpop.f32.mrf.mxu1  ;;  %v23058_v24 = vld [vmem:[#allocation14_spill] sm:$0xff] }
 0x5e1   :  { %16161 = vmatmul.mubr.bf16.gmra.mxu0 %v3392_v42  ;;  %v3373_v29 = vadd.f32 %v14174_v37, %v14110_v31  ;;  %v17221_v59 = vld [vmem:[%s22908_s4 + $0x1b8] sm:$0xff]  }
 0x5e2   :  { %v14176_v57 = vpop.f32.mrf.mxu1  ;;  %v17197_v42 = vld [vmem:[%s22907_s3 + $0x588] ss:$16 sps:$4 sm:$0xff]  }
 0x5e3   :  { %v14177_v54 = vadd.f32 %v14176_v57, %v14175_v44  ;;  %v23059_v44 = vld [vmem:[#allocation15_spill] sm:$0xff]  ;;  %v17203_v37 = vld [vmem:[%s22907_s3 + $0x5a8] ss:$16 sps:$4 sm:$0xff]   ;;  %v17211_v57 = vld [vmem:[%s22907_s3 + $0x5cc] ss:$16 sps:$4 sm:$0xff]  }
 0x5e4   :  { %v14178_v27 = vpop.f32.mrf.mxu1  ;;  %v17209_v31 = vld [vmem:[%s22907_s3 + $0x5c8] ss:$16 sps:$4 sm:$0xff]  }
 0x5e5   :  { %v3376_v52 = vadd.f32 %v14177_v54, %v14113_v32  ;;  %v17217_v32 = vld [vmem:[%s22907_s3 + $0x5ec] ss:$16 sps:$4 sm:$0xff]   ;;  %v17215_v54 = vld [vmem:[%s22907_s3 + $0x5e8] ss:$16 sps:$4 sm:$0xff]  }
 0x5e6   :  { %v14179_v46 = vpop.f32.mrf.mxu1 }
 0x5e7   :  { %v3393_v1 = vpack.c.bf16 %v3376_v52, %v3373_v29  ;;  %v14180_v53 = vadd.f32 %v14179_v46, %v14178_v27  ;;  %v17220_v27 = vld [vmem:[%s22907_s3 + $0x604] ss:$16 sps:$4 sm:$0xff]   ;;  %v17223_v52 = vld [vmem:[%s22908_s4 + $0x1a8] sm:$0xff]  }
 0x5e8   :  { %v14181_v19 = vpop.f32.mrf.mxu1  ;;  %v17222_v29 = vld [vmem:[%s22908_s4 + $0x1b0] sm:$0xff]   ;;  %v17224_v46 = vld [vmem:[%s22908_s4 + $0x1a0] sm:$0xff]  }
 0x5e9   :  { %16164 = vmatprep.mubr.bf16.mxu0 %v3393_v1  ;;  %v3381_v11 = vadd.f32 %v14180_v53, %v14116_v61  ;;  %v17225_v1 = vld [vmem:[%s22908_s4 + $0x198] sm:$0xff]   ;;  %v17228_v53 = vld [vmem:[%s22908_s4 + $0x180] sm:$0xff]  }
 0x5ea   :  { %v14182_v13 = vpop.f32.mrf.mxu1 }
 0x5eb   :  { %v14183_v3 = vadd.f32 %v14182_v13, %v14181_v19  ;;  %v17226_v19 = vld [vmem:[%s22908_s4 + $0x190] sm:$0xff]   ;;  %v23060_v13 = vld [vmem:[#allocation16_spill] sm:$0xff] }
 0x5ec   :  { %v19697_v61 = vpop.f32.mrf.mxu1 }
 0x5ed   :  { %v3384_v39 = vadd.f32 %v14183_v3, %v14119_v58 }
 0x5ee   :  { %v19699_v58 = vpop.f32.mrf.mxu1 }
 0x5ef   :  { %v3394_v48 = vpack.c.bf16 %v3384_v39, %v3381_v11  ;;  %v23061_v39 = vld [vmem:[#allocation9_spill] sm:$0xff] }
 0x5f0   :  { %v19701_v11 = vpop.f32.mrf.mxu1 }
 0x5f1   :  { %16165 = vmatmul.mubr.bf16.gmra.mxu0 %v3394_v48 }
 0x5f2   :  { %3895 = vmatprep.mubr.bf16.mxu0 %v17175_v12 }
 0x5f9   :  { %3896 = vmatmul.mubr.bf16.vlgmr.msra.gmra.mxu0 %v17173_v34  ;;  %v23063_v34 = vld [vmem:[#allocation10_spill] sm:$0xff] }
 0x5fa   :  { %14345 = vmatpush3.bf16.msra.mxu0 %v18128_v41  ;;  %3903 = vmatprep.mubr.bf16.mxu0 %v17181_v7 }
 0x5fb   :  { %14346 = vmatprep.subr.bf16.mxu0 %v18133_v47 }
 0x5fe   :  { %14347 = vmatpush3.bf16.msra.mxu0 %v22960_v8 }
 0x5ff   :  { %14348 = vmatprep.subr.bf16.mxu0 %v22961_v63 }
 0x601   :  { %3904 = vmatmul.mubr.bf16.gmra.mxu0 %v17179_v62 }
 0x602   :  { %14349 = vmatpush3.bf16.msra.mxu0 %v22962_v49  ;;  %3911 = vmatprep.mubr.bf16.mxu0 %v17187_v9  ;;  %v19709_v9 = vpop.f32.mrf.mxu1 }
 0x603   :  { %14350 = vmatprep.subr.bf16.mxu0 %v22963_v28 }
 0x606   :  { %14351 = vmatpush3.bf16.msra.mxu0 %v22964_v26 }
 0x607   :  { %14352 = vmatprep.subr.bf16.mxu0 %v22965_v16 }
 0x609   :  { %3912 = vmatmul.mubr.bf16.gmra.mxu0 %v17185_v23  ;;  %v23065_v23 = vld [vmem:[#allocation4_spill] sm:$0xff] }
 0x60a   :  { %14353 = vmatpush3.bf16.msra.mxu0 %v22966_v17  ;;  %3919 = vmatprep.mubr.bf16.mxu0 %v17193_v45 }
 0x60b   :  { %14354 = vmatprep.subr.bf16.mxu0 %v22967_v4 }
 0x60e   :  { %14355 = vmatpush3.bf16.msra.mxu0 %v22968_v50 }
 0x60f   :  { %14356 = vmatprep.subr.bf16.mxu0 %v22969_v43 }
 0x611   :  { %3920 = vmatmul.mubr.bf16.gmra.mxu0 %v17191_v56  ;;  %v17234_v56 = vld [vmem:[%s22907_s3 + $0x624] ss:$16 sps:$4 sm:$0xff]  }
 0x612   :  { %14357 = vmatpush3.bf16.msra.mxu0 %v23057_v30  ;;  %3927 = vmatprep.mubr.bf16.mxu0 %v17199_v25  ;;  %v17232_v25 = vld [vmem:[%s22907_s3 + $0x620] ss:$16 sps:$4 sm:$0xff]  }
 0x613   :  { %14358 = vmatprep.subr.bf16.mxu0 %v23058_v24 }
 0x616   :  { %14359 = vmatpush3.bf16.msra.mxu0 %v23059_v44 }
 0x617   :  { %16200 = vmatprep.subr.bf16.mxu0 %v17221_v59 }
 0x619   :  { %3928 = vmatmul.mubr.bf16.gmra.mxu0 %v17197_v42 }
 0x61a   :  { %3935 = vmatprep.mubr.bf16.mxu0 %v17205_v2  ;;  %v17240_v2 = vld [vmem:[%s22907_s3 + $0x644] ss:$16 sps:$4 sm:$0xff]  }
 0x621   :  { %3936 = vmatmul.mubr.bf16.gmra.mxu0 %v17203_v37 }
 0x622   :  { %3943 = vmatprep.mubr.bf16.mxu0 %v17211_v57  ;;  %v17238_v57 = vld [vmem:[%s22907_s3 + $0x640] ss:$16 sps:$4 sm:$0xff]  }
 0x629   :  { %3944 = vmatmul.mubr.bf16.gmra.mxu0 %v17209_v31 }
 0x62a   :  { %3951 = vmatprep.mubr.bf16.mxu0 %v17217_v32 }
 0x631   :  { %3952 = vmatmul.mubr.bf16.gmra.mxu0 %v17215_v54  ;;  %v23068_v54 = vld [vmem:[#allocation12_spill] sm:$0xff] }
 0x632   :  { %4371 = vmatprep.mubr.bf16.mxu0 %v17220_v27 }
 0x639   :  { %4372 = vmatmul.mubr.bf16.vlgmr.msra.gmra.mxu0 %v17218_v55 }
 0x63a   :  { %16201 = vmatpush3.bf16.msra.mxu0 %v17221_v59  ;;  %4379 = vmatprep.mubr.bf16.mxu0 %v17234_v56  ;;  %v19720_v59 = vpop.f32.mrf.mxu1 }
 0x63b   :  { %16202 = vmatprep.subr.bf16.mxu0 %v17222_v29 }
 0x63c   :  { %v19722_v42 = vpop.f32.mrf.mxu1 }
 0x63e   :  { %16203 = vmatpush3.bf16.msra.mxu0 %v17222_v29  ;;  %v19732_v32 = vpop.f32.mrf.mxu1  ;;  %v23070_v29 = vld [vmem:[#allocation13_spill] sm:$0xff] }
 0x63f   :  { %16204 = vmatprep.subr.bf16.mxu0 %v17223_v52 }
 0x641   :  { %4380 = vmatmul.mubr.bf16.gmra.mxu0 %v17232_v25 }
 0x642   :  { %16205 = vmatpush3.bf16.msra.mxu0 %v17223_v52  ;;  %4387 = vmatprep.mubr.bf16.mxu0 %v17240_v2  ;;  %v23075_v2 = vld [vmem:[#allocation19_spill] sm:$0xff] }
 0x643   :  { %16206 = vmatprep.subr.bf16.mxu0 %v17224_v46 }
 0x646   :  { %16207 = vmatpush3.bf16.msra.mxu0 %v17224_v46 }
 0x647   :  { %16208 = vmatprep.subr.bf16.mxu0 %v17225_v1 }
 0x649   :  { %4388 = vmatmul.mubr.bf16.gmra.mxu0 %v17238_v57 }
 0x64a   :  { %16209 = vmatpush3.bf16.msra.mxu0 %v17225_v1  ;;  %v19740_v1 = vpop.f32.mrf.mxu1 }
 0x64b   :  { %16210 = vmatprep.subr.bf16.mxu0 %v17226_v19 }
 0x64e   :  { %16211 = vmatpush3.bf16.msra.mxu0 %v17226_v19  ;;  %v23072_v19 = vld [vmem:[#allocation17_spill] sm:$0xff] }
 0x64f   :  { %16212 = vmatprep.subr.bf16.mxu0 %v17227_v21 }
 0x652   :  { %16213 = vmatpush3.bf16.msra.mxu0 %v17227_v21 }
 0x653   :  { %16214 = vmatprep.subr.bf16.mxu0 %v17228_v53 }
 0x656   :  { %16215 = vmatpush3.bf16.msra.mxu0 %v17228_v53  ;;  %v17246_v53 = vld [vmem:[%s22907_s3 + $0x664] ss:$16 sps:$4 sm:$0xff]  }
 0x657   :  { %14552 = vmatprep.subr.bf16.mxu0 %v23060_v13  ;;  %4395 = vmatprep.mubr.bf16.mxu0 %v17246_v53 }
 0x681   :  { %v16154_v3 = vpop.f32.mrf.mxu0 }
 0x682   :  { %v19704_v12 = vadd.f32 %v16154_v3, %v23061_v39  ;;  %v17244_v3 = vld [vmem:[%s22907_s3 + $0x660] ss:$16 sps:$4 sm:$0xff]   ;;  %v19751_v39 = vpop.f32.mrf.mxu1 }
 0x683   :  { %v3494_v48 = vpop.f32.mrf.mxu0  ;;  %4396 = vmatmul.mubr.bf16.gmra.mxu0 %v17244_v3  ;;  %v17256_v3 = vld [vmem:[%s22907_s3 + $0x6a0] ss:$16 sps:$4 sm:$0xff]  }
 0x684   :  { %23062 = vst [vmem:[#allocation9_spill] sm:$0xff] %v19704_v12  ;;  %v19707_v7 = vadd.f32 %v3494_v48, %v23063_v34  ;;  %v19753_v48 = vpop.f32.mrf.mxu1  ;;  %v17252_v34 = vld [vmem:[%s22907_s3 + $0x684] ss:$16 sps:$4 sm:$0xff]  }
 0x685   :  { %v16155_v62 = vpop.f32.mrf.mxu0  ;;  %4403 = vmatprep.mubr.bf16.mxu0 %v17252_v34  ;;  %v17258_v34 = vld [vmem:[%s22907_s3 + $0x6a4] ss:$16 sps:$4 sm:$0xff]  }
 0x686   :  { %23064 = vst [vmem:[#allocation10_spill] sm:$0xff] %v19707_v7  ;;  %v19712_v45 = vadd.f32 %v16155_v62, %v23065_v23  ;;  %v17250_v23 = vld [vmem:[%s22907_s3 + $0x680] ss:$16 sps:$4 sm:$0xff]   ;;  %v19763_v25 = vpop.f32.mrf.mxu1 }
 0x687   :  { %v19727_v37 = vpop.f32.mrf.mxu0 }
 0x688   :  { %23066 = vst [vmem:[#allocation4_spill] sm:$0xff] %v19712_v45  ;;  %23067 = vst [vmem:[#allocation35_spill] sm:$0xff] %v19727_v37  ;;  %v23084_v37 = vld [vmem:[#allocation24_spill] sm:$0xff] }
 0x68b   :  { %4404 = vmatmul.mubr.bf16.gmra.mxu0 %v17250_v23 }
 0x68c   :  { %4411 = vmatprep.mubr.bf16.mxu0 %v17258_v34  ;;  %v23082_v34 = vld [vmem:[#allocation23_spill] sm:$0xff] }
 0x691   :  { %v16158_v31 = vpop.f32.mrf.mxu0 }
 0x692   :  { %v19735_v27 = vadd.f32 %v16158_v31, %v23068_v54  ;;  %v23077_v54 = vld [vmem:[#allocation20_spill] sm:$0xff] }
 0x693   :  { %v3510_v55 = vpop.f32.mrf.mxu0  ;;  %4412 = vmatmul.mubr.bf16.gmra.mxu0 %v17256_v3 }
 0x694   :  { %23069 = vst [vmem:[#allocation12_spill] sm:$0xff] %v19735_v27  ;;  %v19738_v52 = vadd.f32 %v3510_v55, %v23070_v29 }
 0x695   :  { %v16159_v46 = vpop.f32.mrf.mxu0 }
 0x696   :  { %23071 = vst [vmem:[#allocation13_spill] sm:$0xff] %v19738_v52  ;;  %v19743_v21 = vadd.f32 %v16159_v46, %v23072_v19  ;;  %v19771_v46 = vpop.f32.mrf.mxu1  ;;  %v23079_v19 = vld [vmem:[#allocation21_spill] sm:$0xff] }
 0x697   :  { %v19758_v62 = vpop.f32.mrf.mxu0 }
 0x698   :  { %23073 = vst [vmem:[#allocation17_spill] sm:$0xff] %v19743_v21  ;;  %23074 = vst [vmem:[#allocation36_spill] sm:$0xff] %v19758_v62  ;;  %v19782_v23 = vpop.f32.mrf.mxu1  ;;  %v23086_v21 = vld [vmem:[#allocation25_spill] sm:$0xff] }
 0x6a1   :  { %v16162_v56 = vpop.f32.mrf.mxu0 }
 0x6a2   :  { %v19766_v57 = vadd.f32 %v16162_v56, %v23075_v2  ;;  %v19784_v56 = vpop.f32.mrf.mxu1  ;;  %v17262_v2 = vld [vmem:[%s22907_s3 + $0x6c0] ss:$16 sps:$4 sm:$0xff]  }
 0x6a3   :  { %v3526_v31 = vpop.f32.mrf.mxu0 }
 0x6a4   :  { %23076 = vst [vmem:[#allocation19_spill] sm:$0xff] %v19766_v57  ;;  %v19769_v55 = vadd.f32 %v3526_v31, %v23077_v54  ;;  %v17264_v31 = vld [vmem:[%s22907_s3 + $0x6c4] ss:$16 sps:$4 sm:$0xff]  }
 0x6a5   :  { %v16163_v29 = vpop.f32.mrf.mxu0  ;;  %4419 = vmatprep.mubr.bf16.mxu0 %v17264_v31  ;;  %v17268_v31 = vld [vmem:[%s22907_s3 + $0x6e0] ss:$16 sps:$4 sm:$0xff]  }
 0x6a6   :  { %23078 = vst [vmem:[#allocation20_spill] sm:$0xff] %v19769_v55  ;;  %v19774_v53 = vadd.f32 %v16163_v29, %v23079_v19  ;;  %v19794_v19 = vpop.f32.mrf.mxu1  ;;  %4420 = vmatmul.mubr.bf16.gmra.mxu0 %v17262_v2  ;;  %v17270_v2 = vld [vmem:[%s22907_s3 + $0x6e4] ss:$16 sps:$4 sm:$0xff]  }
 0x6a7   :  { %v19792_v54 = vpop.f32.mrf.mxu0  ;;  %4427 = vmatprep.mubr.bf16.mxu0 %v17270_v2 }
 0x6a8   :  { %23080 = vst [vmem:[#allocation21_spill] sm:$0xff] %v19774_v53  ;;  %23081 = vst [vmem:[#allocation37_spill] sm:$0xff] %v19792_v54  ;;  %v14238_v57 = vpop.f32.mrf.mxu1 }
 0x6ae   :  { %4428 = vmatmul.mubr.bf16.gmra.mxu0 %v17268_v31 }
 0x6b1   :  { %v16166_v29 = vpop.f32.mrf.mxu0 }
 0x6b2   :  { %v19797_v62 = vadd.f32 %v16166_v29, %v23082_v34  ;;  %v19813_v34 = vpop.f32.mrf.mxu1 }
 0x6b3   :  { %v3542_v3 = vpop.f32.mrf.mxu0 }
 0x6b4   :  { %23083 = vst [vmem:[#allocation23_spill] sm:$0xff] %v19797_v62  ;;  %v19800_v53 = vadd.f32 %v3542_v3, %v23084_v37  ;;  %v14221_v62 = vadd.f32 %v19709_v9, %v19701_v11 }
 0x6b5   :  { %v16167_v55 = vpop.f32.mrf.mxu0 }
 0x6b6   :  { %23085 = vst [vmem:[#allocation24_spill] sm:$0xff] %v19800_v53  ;;  %v19803_v52 = vadd.f32 %v16167_v55, %v23086_v21  ;;  %v19815_v53 = vpop.f32.mrf.mxu1 }
 0x6b7   :  { %v19811_v54 = vpop.f32.mrf.mxu0 }
 0x6b8   :  { %23087 = vst [vmem:[#allocation25_spill] sm:$0xff] %v19803_v52  ;;  %23088 = vst [vmem:[#allocation38_spill] sm:$0xff] %v19811_v54  ;;  %v14218_v52 = vadd.f32 %v19699_v58, %v19697_v61  ;;  %v14243_v54 = vpop.f32.mrf.mxu1  ;;  %v14227_v61 = vadd.f32 %v19740_v1, %v19732_v32 }
 0x6b9   :  { %v14280_v29 = vpop.f32.mrf.mxu0 }
 0x6ba   :  { %v14244_v44 = vpop.f32.mrf.mxu1 }
 0x6bb   :  { %v14281_v37 = vpop.f32.mrf.mxu0 }
 0x6bc   :  { %v14282_v21 = vadd.f32 %v14281_v37, %v14280_v29  ;;  %v14224_v29 = vadd.f32 %v19722_v42, %v19720_v59  ;;  %v19825_v9 = vpop.f32.mrf.mxu1 }
 0x6bd   :  { %v14283_v3 = vpop.f32.mrf.mxu0 }
 0x6be   :  { %v3898_v2 = vadd.f32 %v14282_v21, %v14218_v52 }
 0x6bf   :  { %v14284_v55 = vpop.f32.mrf.mxu0 }
 0x6c0   :  { %v14285_v27 = vadd.f32 %v14284_v55, %v14283_v3  ;;  %v14247_v3 = vpop.f32.mrf.mxu1 }
 0x6c1   :  { %v14286_v45 = vpop.f32.mrf.mxu0 }
 0x6c2   :  { %v3901_v7 = vadd.f32 %v14285_v27, %v14221_v62  ;;  %v14249_v59 = vpop.f32.mrf.mxu1 }
 0x6c3   :  { %v14287_v12 = vpop.f32.mrf.mxu0 }
 0x6c4   :  { %v3960_v13 = vpack.c.bf16 %v3901_v7, %v3898_v2  ;;  %v14288_v24 = vadd.f32 %v14287_v12, %v14286_v45  ;;  %v14230_v12 = vadd.f32 %v19753_v48, %v19751_v39  ;;  %v14236_v48 = vadd.f32 %v19784_v56, %v19782_v23 }
 0x6c5   :  { %v14289_v31 = vpop.f32.mrf.mxu0  ;;  %v14242_v23 = vadd.f32 %v19815_v53, %v19813_v34  ;;  %v14245_v56 = vadd.f32 %v14244_v44, %v14243_v54  ;;  %v14248_v53 = vadd.f32 %v14247_v3, %v19825_v9 }
 0x6c6   :  { %16184 = vmatprep.mubr.bf16.mxu1 %v3960_v13  ;;  %v3906_v37 = vadd.f32 %v14288_v24, %v14224_v29 }
 0x6c7   :  { %v14290_v30 = vpop.f32.mrf.mxu0 }
 0x6c8   :  { %v14291_v58 = vadd.f32 %v14290_v30, %v14289_v31  ;;  %v14233_v30 = vadd.f32 %v19771_v46, %v19763_v25  ;;  %v14250_v31 = vpop.f32.mrf.mxu1  ;;  %v14239_v25 = vadd.f32 %v14238_v57, %v19794_v19 }
 0x6c9   :  { %v14292_v11 = vpop.f32.mrf.mxu0  ;;  %v14251_v54 = vadd.f32 %v14250_v31, %v14249_v59 }
 0x6ca   :  { %v3909_v52 = vadd.f32 %v14291_v58, %v14227_v61  ;;  %v14252_v58 = vpop.f32.mrf.mxu1 }
 0x6cb   :  { %v14293_v27 = vpop.f32.mrf.mxu0 }
 0x6cc   :  { %v3961_v62 = vpack.c.bf16 %v3909_v52, %v3906_v37  ;;  %v14294_v21 = vadd.f32 %v14293_v27, %v14292_v11 }
 0x6cd   :  { %v14295_v7 = vpop.f32.mrf.mxu0 }
 0x6ce   :  { %16185 = vmatmul.mubr.bf16.vlgmr.msra.gmra.mxu1 %v3961_v62  ;;  %v3914_v42 = vadd.f32 %v14294_v21, %v14230_v12 }
 0x6cf   :  { %14409 = vmatpush3.bf16.msra.mxu1 %v18369_v18  ;;  %v14296_v13 = vpop.f32.mrf.mxu0 }
 0x6d0   :  { %v14297_v45 = vadd.f32 %v14296_v13, %v14295_v7  ;;  %14410 = vmatprep.subr.bf16.mxu1 %v18374_v22  ;;  %v14253_v7 = vpop.f32.mrf.mxu1 }
 0x6d1   :  { %v14298_v24 = vpop.f32.mrf.mxu0  ;;  %v14254_v9 = vadd.f32 %v14253_v7, %v14252_v58  ;;  %v17231_v58 = vld [vmem:[%s22907_s3 + $0x60c] ss:$16 sps:$4 sm:$0xff]  }
 0x6d2   :  { %v3917_v32 = vadd.f32 %v14297_v45, %v14233_v30  ;;  %v14255_v12 = vpop.f32.mrf.mxu1 }
 0x6d3   :  { %14411 = vmatpush3.bf16.msra.mxu1 %v18389_v14  ;;  %v14299_v1 = vpop.f32.mrf.mxu0 }
 0x6d4   :  { %14412 = vmatprep.subr.bf16.mxu1 %v18396_v35  ;;  %v3962_v55 = vpack.c.bf16 %v3917_v32, %v3914_v42  ;;  %v14300_v29 = vadd.f32 %v14299_v1, %v14298_v24  ;;  %v14256_v1 = vpop.f32.mrf.mxu1 }
 0x6d5   :  { %v14301_v2 = vpop.f32.mrf.mxu0  ;;  %v14257_v3 = vadd.f32 %v14256_v1, %v14255_v12  ;;  %v17229_v12 = vld [vmem:[%s22907_s3 + $0x608] ss:$16 sps:$4 sm:$0xff]   ;;  %v17237_v1 = vld [vmem:[%s22907_s3 + $0x62c] ss:$16 sps:$4 sm:$0xff]  }
 0x6d6   :  { %16188 = vmatprep.mubr.bf16.mxu1 %v3962_v55  ;;  %v3922_v11 = vadd.f32 %v14300_v29, %v14236_v48  ;;  %v14258_v29 = vpop.f32.mrf.mxu1 }
 0x6d7   :  { %14413 = vmatpush3.bf16.msra.mxu1 %v18407_v33  ;;  %v14302_v39 = vpop.f32.mrf.mxu0 }
 0x6d8   :  { %v14303_v46 = vadd.f32 %v14302_v39, %v14301_v2  ;;  %14414 = vmatprep.subr.bf16.mxu1 %v18411_v6 }
 0x6d9   :  { %v14304_v61 = vpop.f32.mrf.mxu0 }
 0x6da   :  { %v3925_v37 = vadd.f32 %v14303_v46, %v14239_v25 }
 0x6db   :  { %14415 = vmatpush3.bf16.msra.mxu1 %v18425_v0  ;;  %v14305_v52 = vpop.f32.mrf.mxu0 }
 0x6dc   :  { %v3963_v27 = vpack.c.bf16 %v3925_v37, %v3922_v11  ;;  %14416 = vmatprep.subr.bf16.mxu1 %v18432_v60  ;;  %v14306_v21 = vadd.f32 %v14305_v52, %v14304_v61  ;;  %v14259_v11 = vpop.f32.mrf.mxu1 }
 0x6dd   :  { %v14307_v62 = vpop.f32.mrf.mxu0 }
 0x6de   :  { %16189 = vmatmul.mubr.bf16.gmra.mxu1 %v3963_v27  ;;  %v3930_v30 = vadd.f32 %v14306_v21, %v14242_v23  ;;  %v14261_v27 = vpop.f32.mrf.mxu1 }
 0x6df   :  { %14417 = vmatpush3.bf16.msra.mxu1 %v18196_v40  ;;  %v14308_v57 = vpop.f32.mrf.mxu0 }
 0x6e0   :  { %v14309_v19 = vadd.f32 %v14308_v57, %v14307_v62  ;;  %14418 = vmatprep.subr.bf16.mxu1 %v18445_v36 }
 0x6e1   :  { %v14310_v13 = vpop.f32.mrf.mxu0 }
 0x6e2   :  { %v3933_v45 = vadd.f32 %v14309_v19, %v14245_v56  ;;  %v14262_v19 = vpop.f32.mrf.mxu1 }
 0x6e3   :  { %14419 = vmatpush3.bf16.msra.mxu1 %v18459_v5  ;;  %v14311_v24 = vpop.f32.mrf.mxu0 }
 0x6e4   :  { %14420 = vmatprep.subr.bf16.mxu1 %v18466_v10  ;;  %v3964_v42 = vpack.c.bf16 %v3933_v45, %v3930_v30  ;;  %v14312_v55 = vadd.f32 %v14311_v24, %v14310_v13  ;;  %v14260_v45 = vadd.f32 %v14259_v11, %v14258_v29  ;;  %v14263_v24 = vadd.f32 %v14262_v19, %v14261_v27  ;;  %v17255_v29 = vld [vmem:[%s22907_s3 + $0x68c] ss:$16 sps:$4 sm:$0xff]   ;;  %v17274_v27 = vld [vmem:[%s22907_s3 + $0x700] ss:$16 sps:$4 sm:$0xff]  }
 0x6e5   :  { %v14313_v32 = vpop.f32.mrf.mxu0  ;;  %v17261_v11 = vld [vmem:[%s22907_s3 + $0x6ac] ss:$16 sps:$4 sm:$0xff]  }
 0x6e6   :  { %16192 = vmatprep.mubr.bf16.mxu1 %v3964_v42  ;;  %v3938_v39 = vadd.f32 %v14312_v55, %v14248_v53  ;;  %v17243_v53 = vld [vmem:[%s22907_s3 + $0x64c] ss:$16 sps:$4 sm:$0xff]  }
 0x6e7   :  { %14421 = vmatpush3.bf16.msra.mxu1 %v18162_v20  ;;  %v14314_v44 = vpop.f32.mrf.mxu0  ;;  %v17283_v19 = vld [vmem:[%s22908_s4 + $0x1c8] sm:$0xff]  }
 0x6e8   :  { %v14315_v34 = vadd.f32 %v14314_v44, %v14313_v32  ;;  %14422 = vmatprep.subr.bf16.mxu1 %v18473_v51  ;;  %v17235_v44 = vld [vmem:[%s22907_s3 + $0x628] ss:$16 sps:$4 sm:$0xff]  }
 0x6e9   :  { %v14316_v2 = vpop.f32.mrf.mxu0 }
 0x6ea   :  { %v3941_v48 = vadd.f32 %v14315_v34, %v14251_v54  ;;  %v17241_v54 = vld [vmem:[%s22907_s3 + $0x648] ss:$16 sps:$4 sm:$0xff]   ;;  %v17249_v34 = vld [vmem:[%s22907_s3 + $0x66c] ss:$16 sps:$4 sm:$0xff]  }
 0x6eb   :  { %14423 = vmatpush3.bf16.msra.mxu1 %v18480_v15  ;;  %v14317_v25 = vpop.f32.mrf.mxu0 }
 0x6ec   :  { %v3965_v46 = vpack.c.bf16 %v3941_v48, %v3938_v39  ;;  %14488 = vmatprep.subr.bf16.mxu1 %v18125_v38  ;;  %v14318_v37 = vadd.f32 %v14317_v25, %v14316_v2  ;;  %v17247_v2 = vld [vmem:[%s22907_s3 + $0x668] ss:$16 sps:$4 sm:$0xff]   ;;  %v23089_v39 = vld [vmem:[#allocation3_spill] sm:$0xff] }
 0x6ed   :  { %v14319_v61 = vpop.f32.mrf.mxu0  ;;  %v23090_v48 = vld [vmem:[#allocation14_spill] sm:$0xff] }
 0x6ee   :  { %16193 = vmatmul.mubr.bf16.gmra.mxu1 %v3965_v46  ;;  %v3946_v62 = vadd.f32 %v14318_v37, %v14254_v9  ;;  %v17277_v25 = vld [vmem:[%s22908_s4 + $0x1f8] sm:$0xff]  }
 0x6ef   :  { %v14320_v52 = vpop.f32.mrf.mxu0  ;;  %v17253_v46 = vld [vmem:[%s22907_s3 + $0x688] ss:$16 sps:$4 sm:$0xff]  }
 0x6f0   :  { %v14321_v59 = vadd.f32 %v14320_v52, %v14319_v61  ;;  %v23091_v61 = vld [vmem:[#allocation15_spill] sm:$0xff]  ;;  %v17259_v37 = vld [vmem:[%s22907_s3 + $0x6a8] ss:$16 sps:$4 sm:$0xff]   ;;  %v17267_v52 = vld [vmem:[%s22907_s3 + $0x6cc] ss:$16 sps:$4 sm:$0xff]  }
 0x6f1   :  { %v14322_v31 = vpop.f32.mrf.mxu0  ;;  %v17265_v9 = vld [vmem:[%s22907_s3 + $0x6c8] ss:$16 sps:$4 sm:$0xff]  }
 0x6f2   :  { %v3949_v21 = vadd.f32 %v14321_v59, %v14257_v3  ;;  %v17273_v3 = vld [vmem:[%s22907_s3 + $0x6ec] ss:$16 sps:$4 sm:$0xff]   ;;  %v17271_v59 = vld [vmem:[%s22907_s3 + $0x6e8] ss:$16 sps:$4 sm:$0xff]  }
 0x6f3   :  { %v14323_v57 = vpop.f32.mrf.mxu0 }
 0x6f4   :  { %v3966_v23 = vpack.c.bf16 %v3949_v21, %v3946_v62  ;;  %v14324_v13 = vadd.f32 %v14323_v57, %v14322_v31  ;;  %v17276_v31 = vld [vmem:[%s22907_s3 + $0x704] ss:$16 sps:$4 sm:$0xff]   ;;  %v17279_v21 = vld [vmem:[%s22908_s4 + $0x1e8] sm:$0xff]  }
 0x6f5   :  { %v14325_v56 = vpop.f32.mrf.mxu0  ;;  %v17278_v62 = vld [vmem:[%s22908_s4 + $0x1f0] sm:$0xff]   ;;  %v17280_v57 = vld [vmem:[%s22908_s4 + $0x1e0] sm:$0xff]  }
 0x6f6   :  { %16196 = vmatprep.mubr.bf16.mxu1 %v3966_v23  ;;  %v3954_v32 = vadd.f32 %v14324_v13, %v14260_v45  ;;  %v17281_v23 = vld [vmem:[%s22908_s4 + $0x1d8] sm:$0xff]   ;;  %v17284_v13 = vld [vmem:[%s22908_s4 + $0x1c0] sm:$0xff]  }
 0x6f7   :  { %v14326_v30 = vpop.f32.mrf.mxu0 }
 0x6f8   :  { %v14327_v42 = vadd.f32 %v14326_v30, %v14325_v56  ;;  %v17282_v56 = vld [vmem:[%s22908_s4 + $0x1d0] sm:$0xff]   ;;  %v23092_v30 = vld [vmem:[#allocation16_spill] sm:$0xff] }
 0x6f9   :  { %v19947_v45 = vpop.f32.mrf.mxu0 }
 0x6fa   :  { %v3957_v55 = vadd.f32 %v14327_v42, %v14263_v24 }
 0x6fb   :  { %v19949_v24 = vpop.f32.mrf.mxu0 }
 0x6fc   :  { %v3967_v7 = vpack.c.bf16 %v3957_v55, %v3954_v32  ;;  %v23093_v55 = vld [vmem:[#allocation9_spill] sm:$0xff] }
 0x6fd   :  { %v19951_v32 = vpop.f32.mrf.mxu0 }
 0x6fe   :  { %16197 = vmatmul.mubr.bf16.gmra.mxu1 %v3967_v7 }
 0x6ff   :  { %4468 = vmatprep.mubr.bf16.mxu1 %v17231_v58 }
 0x706   :  { %4469 = vmatmul.mubr.bf16.vlgmr.msra.gmra.mxu1 %v17229_v12  ;;  %v23095_v12 = vld [vmem:[#allocation10_spill] sm:$0xff] }
 0x707   :  { %14489 = vmatpush3.bf16.msra.mxu1 %v18128_v41  ;;  %4476 = vmatprep.mubr.bf16.mxu1 %v17237_v1 }
 0x708   :  { %14490 = vmatprep.subr.bf16.mxu1 %v18133_v47 }
 0x70b   :  { %14491 = vmatpush3.bf16.msra.mxu1 %v22960_v8 }
 0x70c   :  { %14492 = vmatprep.subr.bf16.mxu1 %v22961_v63 }
 0x70e   :  { %4477 = vmatmul.mubr.bf16.gmra.mxu1 %v17235_v44 }
 0x70f   :  { %14493 = vmatpush3.bf16.msra.mxu1 %v22962_v49  ;;  %4484 = vmatprep.mubr.bf16.mxu1 %v17243_v53  ;;  %v19959_v53 = vpop.f32.mrf.mxu0 }
 0x710   :  { %14494 = vmatprep.subr.bf16.mxu1 %v22963_v28 }
 0x713   :  { %14495 = vmatpush3.bf16.msra.mxu1 %v22964_v26 }
 0x714   :  { %14496 = vmatprep.subr.bf16.mxu1 %v22965_v16 }
 0x716   :  { %4485 = vmatmul.mubr.bf16.gmra.mxu1 %v17241_v54  ;;  %v23097_v54 = vld [vmem:[#allocation4_spill] sm:$0xff] }
 0x717   :  { %14497 = vmatpush3.bf16.msra.mxu1 %v22966_v17  ;;  %4492 = vmatprep.mubr.bf16.mxu1 %v17249_v34 }
 0x718   :  { %14498 = vmatprep.subr.bf16.mxu1 %v22967_v4 }
 0x71b   :  { %14499 = vmatpush3.bf16.msra.mxu1 %v22968_v50 }
 0x71c   :  { %14500 = vmatprep.subr.bf16.mxu1 %v22969_v43 }
 0x71e   :  { %4493 = vmatmul.mubr.bf16.gmra.mxu1 %v17247_v2  ;;  %v17290_v2 = vld [vmem:[%s22907_s3 + $0x724] ss:$16 sps:$4 sm:$0xff]  }
 0x71f   :  { %14501 = vmatpush3.bf16.msra.mxu1 %v23089_v39  ;;  %4500 = vmatprep.mubr.bf16.mxu1 %v17255_v29  ;;  %v17288_v29 = vld [vmem:[%s22907_s3 + $0x720] ss:$16 sps:$4 sm:$0xff]  }
 0x720   :  { %14502 = vmatprep.subr.bf16.mxu1 %v23090_v48 }
 0x723   :  { %14503 = vmatpush3.bf16.msra.mxu1 %v23091_v61 }
 0x724   :  { %16232 = vmatprep.subr.bf16.mxu1 %v17277_v25 }
 0x726   :  { %4501 = vmatmul.mubr.bf16.gmra.mxu1 %v17253_v46 }
 0x727   :  { %4508 = vmatprep.mubr.bf16.mxu1 %v17261_v11  ;;  %v17296_v11 = vld [vmem:[%s22907_s3 + $0x744] ss:$16 sps:$4 sm:$0xff]  }
 0x72e   :  { %4509 = vmatmul.mubr.bf16.gmra.mxu1 %v17259_v37 }
 0x72f   :  { %4516 = vmatprep.mubr.bf16.mxu1 %v17267_v52  ;;  %v17294_v52 = vld [vmem:[%s22907_s3 + $0x740] ss:$16 sps:$4 sm:$0xff]  }
 0x736   :  { %4517 = vmatmul.mubr.bf16.gmra.mxu1 %v17265_v9 }
 0x737   :  { %4524 = vmatprep.mubr.bf16.mxu1 %v17273_v3 }
 0x73e   :  { %4525 = vmatmul.mubr.bf16.gmra.mxu1 %v17271_v59  ;;  %v23100_v59 = vld [vmem:[#allocation12_spill] sm:$0xff] }
 0x73f   :  { %4944 = vmatprep.mubr.bf16.mxu1 %v17276_v31 }
 0x746   :  { %4945 = vmatmul.mubr.bf16.vlgmr.msra.gmra.mxu1 %v17274_v27 }
 0x747   :  { %16233 = vmatpush3.bf16.msra.mxu1 %v17277_v25  ;;  %4952 = vmatprep.mubr.bf16.mxu1 %v17290_v2  ;;  %v19970_v25 = vpop.f32.mrf.mxu0 }
 0x748   :  { %16234 = vmatprep.subr.bf16.mxu1 %v17278_v62 }
 0x749   :  { %v19972_v46 = vpop.f32.mrf.mxu0 }
 0x74b   :  { %16235 = vmatpush3.bf16.msra.mxu1 %v17278_v62  ;;  %v19982_v3 = vpop.f32.mrf.mxu0  ;;  %v23102_v62 = vld [vmem:[#allocation13_spill] sm:$0xff] }
 0x74c   :  { %16236 = vmatprep.subr.bf16.mxu1 %v17279_v21 }
 0x74e   :  { %4953 = vmatmul.mubr.bf16.gmra.mxu1 %v17288_v29 }
 0x74f   :  { %16237 = vmatpush3.bf16.msra.mxu1 %v17279_v21  ;;  %4960 = vmatprep.mubr.bf16.mxu1 %v17296_v11  ;;  %v23107_v11 = vld [vmem:[#allocation19_spill] sm:$0xff] }
 0x750   :  { %16238 = vmatprep.subr.bf16.mxu1 %v17280_v57 }
 0x753   :  { %16239 = vmatpush3.bf16.msra.mxu1 %v17280_v57 }
 0x754   :  { %16240 = vmatprep.subr.bf16.mxu1 %v17281_v23 }
 0x756   :  { %4961 = vmatmul.mubr.bf16.gmra.mxu1 %v17294_v52 }
 0x757   :  { %16241 = vmatpush3.bf16.msra.mxu1 %v17281_v23  ;;  %v19990_v23 = vpop.f32.mrf.mxu0 }
 0x758   :  { %16242 = vmatprep.subr.bf16.mxu1 %v17282_v56 }
 0x75b   :  { %16243 = vmatpush3.bf16.msra.mxu1 %v17282_v56  ;;  %v23104_v56 = vld [vmem:[#allocation17_spill] sm:$0xff] }
 0x75c   :  { %16244 = vmatprep.subr.bf16.mxu1 %v17283_v19 }
 0x75f   :  { %16245 = vmatpush3.bf16.msra.mxu1 %v17283_v19 }
 0x760   :  { %16246 = vmatprep.subr.bf16.mxu1 %v17284_v13 }
 0x763   :  { %16247 = vmatpush3.bf16.msra.mxu1 %v17284_v13  ;;  %v17302_v13 = vld [vmem:[%s22907_s3 + $0x764] ss:$16 sps:$4 sm:$0xff]  }
 0x764   :  { %14696 = vmatprep.subr.bf16.mxu1 %v23092_v30  ;;  %4968 = vmatprep.mubr.bf16.mxu1 %v17302_v13 }
 0x78e   :  { %v16186_v42 = vpop.f32.mrf.mxu1 }
 0x78f   :  { %v19954_v58 = vadd.f32 %v16186_v42, %v23093_v55  ;;  %v17300_v42 = vld [vmem:[%s22907_s3 + $0x760] ss:$16 sps:$4 sm:$0xff]   ;;  %v20001_v55 = vpop.f32.mrf.mxu0 }
 0x790   :  { %v4067_v7 = vpop.f32.mrf.mxu1  ;;  %4969 = vmatmul.mubr.bf16.gmra.mxu1 %v17300_v42  ;;  %v17312_v42 = vld [vmem:[%s22907_s3 + $0x7a0] ss:$16 sps:$4 sm:$0xff]  }
 0x791   :  { %23094 = vst [vmem:[#allocation9_spill] sm:$0xff] %v19954_v58  ;;  %v19957_v1 = vadd.f32 %v4067_v7, %v23095_v12  ;;  %v20003_v7 = vpop.f32.mrf.mxu0  ;;  %v17308_v12 = vld [vmem:[%s22907_s3 + $0x784] ss:$16 sps:$4 sm:$0xff]  }
 0x792   :  { %v16187_v44 = vpop.f32.mrf.mxu1  ;;  %4976 = vmatprep.mubr.bf16.mxu1 %v17308_v12  ;;  %v17314_v12 = vld [vmem:[%s22907_s3 + $0x7a4] ss:$16 sps:$4 sm:$0xff]  }
 0x793   :  { %23096 = vst [vmem:[#allocation10_spill] sm:$0xff] %v19957_v1  ;;  %v19962_v34 = vadd.f32 %v16187_v44, %v23097_v54  ;;  %v17306_v54 = vld [vmem:[%s22907_s3 + $0x780] ss:$16 sps:$4 sm:$0xff]   ;;  %v20013_v29 = vpop.f32.mrf.mxu0 }
 0x794   :  { %v19977_v37 = vpop.f32.mrf.mxu1 }
 0x795   :  { %23098 = vst [vmem:[#allocation4_spill] sm:$0xff] %v19962_v34  ;;  %23099 = vst [vmem:[#allocation39_spill] sm:$0xff] %v19977_v37  ;;  %v23116_v37 = vld [vmem:[#allocation24_spill] sm:$0xff] }
 0x798   :  { %4977 = vmatmul.mubr.bf16.gmra.mxu1 %v17306_v54 }
 0x799   :  { %4984 = vmatprep.mubr.bf16.mxu1 %v17314_v12  ;;  %v23114_v12 = vld [vmem:[#allocation23_spill] sm:$0xff] }
 0x79e   :  { %v16190_v9 = vpop.f32.mrf.mxu1 }
 0x79f   :  { %v19985_v31 = vadd.f32 %v16190_v9, %v23100_v59  ;;  %v23109_v59 = vld [vmem:[#allocation20_spill] sm:$0xff] }
 0x7a0   :  { %v4083_v27 = vpop.f32.mrf.mxu1  ;;  %4985 = vmatmul.mubr.bf16.gmra.mxu1 %v17312_v42 }
 0x7a1   :  { %23101 = vst [vmem:[#allocation12_spill] sm:$0xff] %v19985_v31  ;;  %v19988_v21 = vadd.f32 %v4083_v27, %v23102_v62 }
 0x7a2   :  { %v16191_v57 = vpop.f32.mrf.mxu1 }
 0x7a3   :  { %23103 = vst [vmem:[#allocation13_spill] sm:$0xff] %v19988_v21  ;;  %v19993_v19 = vadd.f32 %v16191_v57, %v23104_v56  ;;  %v20021_v57 = vpop.f32.mrf.mxu0  ;;  %v23111_v56 = vld [vmem:[#allocation21_spill] sm:$0xff] }
 0x7a4   :  { %v20008_v44 = vpop.f32.mrf.mxu1 }
 0x7a5   :  { %23105 = vst [vmem:[#allocation17_spill] sm:$0xff] %v19993_v19  ;;  %23106 = vst [vmem:[#allocation40_spill] sm:$0xff] %v20008_v44  ;;  %v20032_v54 = vpop.f32.mrf.mxu0  ;;  %v23118_v19 = vld [vmem:[#allocation25_spill] sm:$0xff] }
 0x7ae   :  { %v16194_v2 = vpop.f32.mrf.mxu1 }
 0x7af   :  { %v20016_v52 = vadd.f32 %v16194_v2, %v23107_v11  ;;  %v20034_v2 = vpop.f32.mrf.mxu0  ;;  %v17318_v11 = vld [vmem:[%s22907_s3 + $0x7c0] ss:$16 sps:$4 sm:$0xff]  }
 0x7b0   :  { %v4099_v9 = vpop.f32.mrf.mxu1 }
 0x7b1   :  { %23108 = vst [vmem:[#allocation19_spill] sm:$0xff] %v20016_v52  ;;  %v20019_v27 = vadd.f32 %v4099_v9, %v23109_v59  ;;  %v17320_v9 = vld [vmem:[%s22907_s3 + $0x7c4] ss:$16 sps:$4 sm:$0xff]  }
 0x7b2   :  { %v16195_v62 = vpop.f32.mrf.mxu1  ;;  %4992 = vmatprep.mubr.bf16.mxu1 %v17320_v9  ;;  %v17324_v9 = vld [vmem:[%s22907_s3 + $0x7e0] ss:$16 sps:$4 sm:$0xff]  }
 0x7b3   :  { %23110 = vst [vmem:[#allocation20_spill] sm:$0xff] %v20019_v27  ;;  %v20024_v13 = vadd.f32 %v16195_v62, %v23111_v56  ;;  %v20044_v56 = vpop.f32.mrf.mxu0  ;;  %4993 = vmatmul.mubr.bf16.gmra.mxu1 %v17318_v11  ;;  %v17326_v11 = vld [vmem:[%s22907_s3 + $0x7e4] ss:$16 sps:$4 sm:$0xff]  }
 0x7b4   :  { %v20042_v59 = vpop.f32.mrf.mxu1  ;;  %5000 = vmatprep.mubr.bf16.mxu1 %v17326_v11 }
 0x7b5   :  { %23112 = vst [vmem:[#allocation21_spill] sm:$0xff] %v20024_v13  ;;  %23113 = vst [vmem:[#allocation41_spill] sm:$0xff] %v20042_v59  ;;  %v14382_v52 = vpop.f32.mrf.mxu0 }
 0x7bb   :  { %5001 = vmatmul.mubr.bf16.gmra.mxu1 %v17324_v9 }
 0x7be   :  { %v16198_v62 = vpop.f32.mrf.mxu1 }
 0x7bf   :  { %v20047_v44 = vadd.f32 %v16198_v62, %v23114_v12  ;;  %v20063_v12 = vpop.f32.mrf.mxu0 }
 0x7c0   :  { %v4115_v42 = vpop.f32.mrf.mxu1 }
 0x7c1   :  { %23115 = vst [vmem:[#allocation23_spill] sm:$0xff] %v20047_v44  ;;  %v20050_v13 = vadd.f32 %v4115_v42, %v23116_v37  ;;  %v14365_v44 = vadd.f32 %v19959_v53, %v19951_v32 }
 0x7c2   :  { %v16199_v27 = vpop.f32.mrf.mxu1 }
 0x7c3   :  { %23117 = vst [vmem:[#allocation24_spill] sm:$0xff] %v20050_v13  ;;  %v20053_v21 = vadd.f32 %v16199_v27, %v23118_v19  ;;  %v20065_v13 = vpop.f32.mrf.mxu0 }
 0x7c4   :  { %v20061_v59 = vpop.f32.mrf.mxu1 }
 0x7c5   :  { %23119 = vst [vmem:[#allocation25_spill] sm:$0xff] %v20053_v21  ;;  %23120 = vst [vmem:[#allocation42_spill] sm:$0xff] %v20061_v59  ;;  %v14362_v21 = vadd.f32 %v19949_v24, %v19947_v45  ;;  %v14387_v59 = vpop.f32.mrf.mxu0  ;;  %v14371_v45 = vadd.f32 %v19990_v23, %v19982_v3 }
 0x7c6   :  { %v14424_v62 = vpop.f32.mrf.mxu1 }
 0x7c7   :  { %v14388_v61 = vpop.f32.mrf.mxu0 }
 0x7c8   :  { %v14425_v37 = vpop.f32.mrf.mxu1 }
 0x7c9   :  { %v14426_v19 = vadd.f32 %v14425_v37, %v14424_v62  ;;  %v14368_v62 = vadd.f32 %v19972_v46, %v19970_v25  ;;  %v20075_v53 = vpop.f32.mrf.mxu0 }
 0x7ca   :  { %v14427_v42 = vpop.f32.mrf.mxu1 }
 0x7cb   :  { %v4471_v11 = vadd.f32 %v14426_v19, %v14362_v21 }
 0x7cc   :  { %v14428_v27 = vpop.f32.mrf.mxu1 }
 0x7cd   :  { %v14429_v31 = vadd.f32 %v14428_v27, %v14427_v42  ;;  %v14391_v42 = vpop.f32.mrf.mxu0 }
 0x7ce   :  { %v14430_v34 = vpop.f32.mrf.mxu1 }
 0x7cf   :  { %v4474_v1 = vadd.f32 %v14429_v31, %v14365_v44  ;;  %v14393_v25 = vpop.f32.mrf.mxu0 }
 0x7d0   :  { %v14431_v58 = vpop.f32.mrf.mxu1 }
 0x7d1   :  { %v4533_v30 = vpack.c.bf16 %v4474_v1, %v4471_v11  ;;  %v14432_v48 = vadd.f32 %v14431_v58, %v14430_v34  ;;  %v14374_v58 = vadd.f32 %v20003_v7, %v20001_v55  ;;  %v14380_v7 = vadd.f32 %v20034_v2, %v20032_v54 }
 0x7d2   :  { %v14433_v9 = vpop.f32.mrf.mxu1  ;;  %v14386_v54 = vadd.f32 %v20065_v13, %v20063_v12  ;;  %v14389_v2 = vadd.f32 %v14388_v61, %v14387_v59  ;;  %v14392_v13 = vadd.f32 %v14391_v42, %v20075_v53 }
 0x7d3   :  { %16216 = vmatprep.mubr.bf16.mxu0 %v4533_v30  ;;  %v4479_v37 = vadd.f32 %v14432_v48, %v14368_v62 }
 0x7d4   :  { %v14434_v39 = vpop.f32.mrf.mxu1 }
 0x7d5   :  { %v14435_v24 = vadd.f32 %v14434_v39, %v14433_v9  ;;  %v14377_v39 = vadd.f32 %v20021_v57, %v20013_v29  ;;  %v14394_v9 = vpop.f32.mrf.mxu0  ;;  %v14383_v29 = vadd.f32 %v14382_v52, %v20044_v56 }
 0x7d6   :  { %v14436_v32 = vpop.f32.mrf.mxu1  ;;  %v14395_v59 = vadd.f32 %v14394_v9, %v14393_v25 }
 0x7d7   :  { %v4482_v21 = vadd.f32 %v14435_v24, %v14371_v45  ;;  %v14396_v24 = vpop.f32.mrf.mxu0 }
 0x7d8   :  { %v14437_v31 = vpop.f32.mrf.mxu1 }
 0x7d9   :  { %v4534_v44 = vpack.c.bf16 %v4482_v21, %v4479_v37  ;;  %v14438_v19 = vadd.f32 %v14437_v31, %v14436_v32 }
 0x7da   :  { %v14439_v1 = vpop.f32.mrf.mxu1 }
 0x7db   :  { %16217 = vmatmul.mubr.bf16.vlgmr.msra.gmra.mxu0 %v4534_v44  ;;  %v4487_v46 = vadd.f32 %v14438_v19, %v14374_v58 }
 0x7dc   :  { %14553 = vmatpush3.bf16.msra.mxu0 %v18369_v18  ;;  %v14440_v30 = vpop.f32.mrf.mxu1 }
 0x7dd   :  { %v14441_v34 = vadd.f32 %v14440_v30, %v14439_v1  ;;  %14554 = vmatprep.subr.bf16.mxu0 %v18374_v22  ;;  %v14397_v1 = vpop.f32.mrf.mxu0 }
 0x7de   :  { %v14442_v48 = vpop.f32.mrf.mxu1  ;;  %v14398_v53 = vadd.f32 %v14397_v1, %v14396_v24  ;;  %v17287_v24 = vld [vmem:[%s22907_s3 + $0x70c] ss:$16 sps:$4 sm:$0xff]  }
 0x7df   :  { %v4490_v3 = vadd.f32 %v14441_v34, %v14377_v39  ;;  %v14399_v58 = vpop.f32.mrf.mxu0 }
 0x7e0   :  { %14555 = vmatpush3.bf16.msra.mxu0 %v18389_v14  ;;  %v14443_v23 = vpop.f32.mrf.mxu1 }
 0x7e1   :  { %14556 = vmatprep.subr.bf16.mxu0 %v18396_v35  ;;  %v4535_v27 = vpack.c.bf16 %v4490_v3, %v4487_v46  ;;  %v14444_v62 = vadd.f32 %v14443_v23, %v14442_v48  ;;  %v14400_v23 = vpop.f32.mrf.mxu0 }
 0x7e2   :  { %v14445_v11 = vpop.f32.mrf.mxu1  ;;  %v14401_v42 = vadd.f32 %v14400_v23, %v14399_v58  ;;  %v17285_v58 = vld [vmem:[%s22907_s3 + $0x708] ss:$16 sps:$4 sm:$0xff]   ;;  %v17293_v23 = vld [vmem:[%s22907_s3 + $0x72c] ss:$16 sps:$4 sm:$0xff]  }
 0x7e3   :  { %16220 = vmatprep.mubr.bf16.mxu0 %v4535_v27  ;;  %v4495_v32 = vadd.f32 %v14444_v62, %v14380_v7  ;;  %v14402_v62 = vpop.f32.mrf.mxu0 }
 0x7e4   :  { %14557 = vmatpush3.bf16.msra.mxu0 %v18407_v33  ;;  %v14446_v55 = vpop.f32.mrf.mxu1 }
 0x7e5   :  { %v14447_v57 = vadd.f32 %v14446_v55, %v14445_v11  ;;  %14558 = vmatprep.subr.bf16.mxu0 %v18411_v6 }
 0x7e6   :  { %v14448_v45 = vpop.f32.mrf.mxu1 }
 0x7e7   :  { %v4498_v37 = vadd.f32 %v14447_v57, %v14383_v29 }
 0x7e8   :  { %14559 = vmatpush3.bf16.msra.mxu0 %v18425_v0  ;;  %v14449_v21 = vpop.f32.mrf.mxu1 }
 0x7e9   :  { %v4536_v31 = vpack.c.bf16 %v4498_v37, %v4495_v32  ;;  %14560 = vmatprep.subr.bf16.mxu0 %v18432_v60  ;;  %v14450_v19 = vadd.f32 %v14449_v21, %v14448_v45  ;;  %v14403_v32 = vpop.f32.mrf.mxu0 }
 0x7ea   :  { %v14451_v44 = vpop.f32.mrf.mxu1 }
 0x7eb   :  { %16221 = vmatmul.mubr.bf16.gmra.mxu0 %v4536_v31  ;;  %v4503_v39 = vadd.f32 %v14450_v19, %v14386_v54  ;;  %v14405_v31 = vpop.f32.mrf.mxu0 }
 0x7ec   :  { %14561 = vmatpush3.bf16.msra.mxu0 %v18196_v40  ;;  %v14452_v52 = vpop.f32.mrf.mxu1 }
 0x7ed   :  { %v14453_v56 = vadd.f32 %v14452_v52, %v14451_v44  ;;  %14562 = vmatprep.subr.bf16.mxu0 %v18445_v36 }
 0x7ee   :  { %v14454_v30 = vpop.f32.mrf.mxu1 }
 0x7ef   :  { %v4506_v34 = vadd.f32 %v14453_v56, %v14389_v2  ;;  %v14406_v56 = vpop.f32.mrf.mxu0 }
 0x7f0   :  { %14563 = vmatpush3.bf16.msra.mxu0 %v18459_v5  ;;  %v14455_v48 = vpop.f32.mrf.mxu1 }
 0x7f1   :  { %14564 = vmatprep.subr.bf16.mxu0 %v18466_v10  ;;  %v4537_v46 = vpack.c.bf16 %v4506_v34, %v4503_v39  ;;  %v14456_v27 = vadd.f32 %v14455_v48, %v14454_v30  ;;  %v14404_v34 = vadd.f32 %v14403_v32, %v14402_v62  ;;  %v14407_v48 = vadd.f32 %v14406_v56, %v14405_v31  ;;  %v17311_v62 = vld [vmem:[%s22907_s3 + $0x78c] ss:$16 sps:$4 sm:$0xff]   ;;  %v17330_v31 = vld [vmem:[%s22907_s3 + $0x800] ss:$16 sps:$4 sm:$0xff]  }
 0x7f2   :  { %v14457_v3 = vpop.f32.mrf.mxu1  ;;  %v17317_v32 = vld [vmem:[%s22907_s3 + $0x7ac] ss:$16 sps:$4 sm:$0xff]  }
 0x7f3   :  { %16224 = vmatprep.mubr.bf16.mxu0 %v4537_v46  ;;  %v4511_v55 = vadd.f32 %v14456_v27, %v14392_v13  ;;  %v17299_v13 = vld [vmem:[%s22907_s3 + $0x74c] ss:$16 sps:$4 sm:$0xff]  }
 0x7f4   :  { %14565 = vmatpush3.bf16.msra.mxu0 %v18162_v20  ;;  %v14458_v61 = vpop.f32.mrf.mxu1  ;;  %v17339_v56 = vld [vmem:[%s22908_s4 + $0x208] sm:$0xff]  }
 0x7f5   :  { %v14459_v12 = vadd.f32 %v14458_v61, %v14457_v3  ;;  %14566 = vmatprep.subr.bf16.mxu0 %v18473_v51  ;;  %v17291_v61 = vld [vmem:[%s22907_s3 + $0x728] ss:$16 sps:$4 sm:$0xff]  }
 0x7f6   :  { %v14460_v11 = vpop.f32.mrf.mxu1 }
 0x7f7   :  { %v4514_v7 = vadd.f32 %v14459_v12, %v14395_v59  ;;  %v17297_v59 = vld [vmem:[%s22907_s3 + $0x748] ss:$16 sps:$4 sm:$0xff]   ;;  %v17305_v12 = vld [vmem:[%s22907_s3 + $0x76c] ss:$16 sps:$4 sm:$0xff]  }
 0x7f8   :  { %14567 = vmatpush3.bf16.msra.mxu0 %v18480_v15  ;;  %v14461_v29 = vpop.f32.mrf.mxu1 }
 0x7f9   :  { %v4538_v57 = vpack.c.bf16 %v4514_v7, %v4511_v55  ;;  %14632 = vmatprep.subr.bf16.mxu0 %v18125_v38  ;;  %v14462_v37 = vadd.f32 %v14461_v29, %v14460_v11  ;;  %v17303_v11 = vld [vmem:[%s22907_s3 + $0x768] ss:$16 sps:$4 sm:$0xff]   ;;  %v23121_v55 = vld [vmem:[#allocation3_spill] sm:$0xff] }
 0x7fa   :  { %v14463_v45 = vpop.f32.mrf.mxu1  ;;  %v23122_v7 = vld [vmem:[#allocation14_spill] sm:$0xff] }
 0x7fb   :  { %16225 = vmatmul.mubr.bf16.gmra.mxu0 %v4538_v57  ;;  %v4519_v44 = vadd.f32 %v14462_v37, %v14398_v53  ;;  %v17333_v29 = vld [vmem:[%s22908_s4 + $0x238] sm:$0xff]  }
 0x7fc   :  { %v14464_v21 = vpop.f32.mrf.mxu1  ;;  %v17309_v57 = vld [vmem:[%s22907_s3 + $0x788] ss:$16 sps:$4 sm:$0xff]  }
 0x7fd   :  { %v14465_v25 = vadd.f32 %v14464_v21, %v14463_v45  ;;  %v23123_v45 = vld [vmem:[#allocation15_spill] sm:$0xff]  ;;  %v17315_v37 = vld [vmem:[%s22907_s3 + $0x7a8] ss:$16 sps:$4 sm:$0xff]   ;;  %v17323_v21 = vld [vmem:[%s22907_s3 + $0x7cc] ss:$16 sps:$4 sm:$0xff]  }
 0x7fe   :  { %v14466_v9 = vpop.f32.mrf.mxu1  ;;  %v17321_v53 = vld [vmem:[%s22907_s3 + $0x7c8] ss:$16 sps:$4 sm:$0xff]  }
 0x7ff   :  { %v4522_v19 = vadd.f32 %v14465_v25, %v14401_v42  ;;  %v17329_v42 = vld [vmem:[%s22907_s3 + $0x7ec] ss:$16 sps:$4 sm:$0xff]   ;;  %v17327_v25 = vld [vmem:[%s22907_s3 + $0x7e8] ss:$16 sps:$4 sm:$0xff]  }
 0x800   :  { %v14467_v52 = vpop.f32.mrf.mxu1 }
 0x801   :  { %v4539_v54 = vpack.c.bf16 %v4522_v19, %v4519_v44  ;;  %v14468_v30 = vadd.f32 %v14467_v52, %v14466_v9  ;;  %v17332_v9 = vld [vmem:[%s22907_s3 + $0x804] ss:$16 sps:$4 sm:$0xff]   ;;  %v17335_v19 = vld [vmem:[%s22908_s4 + $0x228] sm:$0xff]  }
 0x802   :  { %v14469_v2 = vpop.f32.mrf.mxu1  ;;  %v17334_v44 = vld [vmem:[%s22908_s4 + $0x230] sm:$0xff]   ;;  %v17336_v52 = vld [vmem:[%s22908_s4 + $0x220] sm:$0xff]  }
 0x803   :  { %16228 = vmatprep.mubr.bf16.mxu0 %v4539_v54  ;;  %v4527_v3 = vadd.f32 %v14468_v30, %v14404_v34  ;;  %v17337_v54 = vld [vmem:[%s22908_s4 + $0x218] sm:$0xff]   ;;  %v17340_v30 = vld [vmem:[%s22908_s4 + $0x200] sm:$0xff]  }
 0x804   :  { %v14470_v39 = vpop.f32.mrf.mxu1 }
 0x805   :  { %v14471_v46 = vadd.f32 %v14470_v39, %v14469_v2  ;;  %v17338_v2 = vld [vmem:[%s22908_s4 + $0x210] sm:$0xff]   ;;  %v23124_v39 = vld [vmem:[#allocation16_spill] sm:$0xff] }
 0x806   :  { %v20197_v34 = vpop.f32.mrf.mxu1 }
 0x807   :  { %v4530_v27 = vadd.f32 %v14471_v46, %v14407_v48 }
 0x808   :  { %v20199_v48 = vpop.f32.mrf.mxu1 }
 0x809   :  { %v4540_v1 = vpack.c.bf16 %v4530_v27, %v4527_v3  ;;  %v23125_v27 = vld [vmem:[#allocation9_spill] sm:$0xff] }
 0x80a   :  { %v20201_v3 = vpop.f32.mrf.mxu1 }
 0x80b   :  { %16229 = vmatmul.mubr.bf16.gmra.mxu0 %v4540_v1 }
 0x80c   :  { %5041 = vmatprep.mubr.bf16.mxu0 %v17287_v24 }
 0x813   :  { %5042 = vmatmul.mubr.bf16.vlgmr.msra.gmra.mxu0 %v17285_v58  ;;  %v23127_v58 = vld [vmem:[#allocation10_spill] sm:$0xff] }
 0x814   :  { %14633 = vmatpush3.bf16.msra.mxu0 %v18128_v41  ;;  %5049 = vmatprep.mubr.bf16.mxu0 %v17293_v23 }
 0x815   :  { %14634 = vmatprep.subr.bf16.mxu0 %v18133_v47 }
 0x818   :  { %14635 = vmatpush3.bf16.msra.mxu0 %v22960_v8 }
 0x819   :  { %14636 = vmatprep.subr.bf16.mxu0 %v22961_v63 }
 0x81b   :  { %5050 = vmatmul.mubr.bf16.gmra.mxu0 %v17291_v61 }
 0x81c   :  { %14637 = vmatpush3.bf16.msra.mxu0 %v22962_v49  ;;  %5057 = vmatprep.mubr.bf16.mxu0 %v17299_v13  ;;  %v20209_v13 = vpop.f32.mrf.mxu1 }
 0x81d   :  { %14638 = vmatprep.subr.bf16.mxu0 %v22963_v28 }
 0x820   :  { %14639 = vmatpush3.bf16.msra.mxu0 %v22964_v26 }
 0x821   :  { %14640 = vmatprep.subr.bf16.mxu0 %v22965_v16 }
 0x823   :  { %5058 = vmatmul.mubr.bf16.gmra.mxu0 %v17297_v59  ;;  %v23129_v59 = vld [vmem:[#allocation4_spill] sm:$0xff] }
 0x824   :  { %14641 = vmatpush3.bf16.msra.mxu0 %v22966_v17  ;;  %5065 = vmatprep.mubr.bf16.mxu0 %v17305_v12 }
 0x825   :  { %14642 = vmatprep.subr.bf16.mxu0 %v22967_v4 }
 0x828   :  { %14643 = vmatpush3.bf16.msra.mxu0 %v22968_v50 }
 0x829   :  { %14644 = vmatprep.subr.bf16.mxu0 %v22969_v43 }
 0x82b   :  { %5066 = vmatmul.mubr.bf16.gmra.mxu0 %v17303_v11  ;;  %v17346_v11 = vld [vmem:[%s22907_s3 + $0x824] ss:$16 sps:$4 sm:$0xff]  }
 0x82c   :  { %14645 = vmatpush3.bf16.msra.mxu0 %v23121_v55  ;;  %5073 = vmatprep.mubr.bf16.mxu0 %v17311_v62  ;;  %v17344_v62 = vld [vmem:[%s22907_s3 + $0x820] ss:$16 sps:$4 sm:$0xff]  }
 0x82d   :  { %14646 = vmatprep.subr.bf16.mxu0 %v23122_v7 }
 0x830   :  { %14647 = vmatpush3.bf16.msra.mxu0 %v23123_v45 }
 0x831   :  { %16264 = vmatprep.subr.bf16.mxu0 %v17333_v29 }
 0x833   :  { %5074 = vmatmul.mubr.bf16.gmra.mxu0 %v17309_v57 }
 0x834   :  { %5081 = vmatprep.mubr.bf16.mxu0 %v17317_v32  ;;  %v17352_v32 = vld [vmem:[%s22907_s3 + $0x844] ss:$16 sps:$4 sm:$0xff]  }
 0x83b   :  { %5082 = vmatmul.mubr.bf16.gmra.mxu0 %v17315_v37 }
 0x83c   :  { %5089 = vmatprep.mubr.bf16.mxu0 %v17323_v21  ;;  %v17350_v21 = vld [vmem:[%s22907_s3 + $0x840] ss:$16 sps:$4 sm:$0xff]  }
 0x843   :  { %5090 = vmatmul.mubr.bf16.gmra.mxu0 %v17321_v53 }
 0x844   :  { %5097 = vmatprep.mubr.bf16.mxu0 %v17329_v42 }
 0x84b   :  { %5098 = vmatmul.mubr.bf16.gmra.mxu0 %v17327_v25  ;;  %v23132_v25 = vld [vmem:[#allocation12_spill] sm:$0xff] }
 0x84c   :  { %5517 = vmatprep.mubr.bf16.mxu0 %v17332_v9 }
 0x853   :  { %5518 = vmatmul.mubr.bf16.vlgmr.msra.gmra.mxu0 %v17330_v31 }
 0x854   :  { %16265 = vmatpush3.bf16.msra.mxu0 %v17333_v29  ;;  %5525 = vmatprep.mubr.bf16.mxu0 %v17346_v11  ;;  %v20220_v29 = vpop.f32.mrf.mxu1 }
 0x855   :  { %16266 = vmatprep.subr.bf16.mxu0 %v17334_v44 }
 0x856   :  { %v20222_v57 = vpop.f32.mrf.mxu1 }
 0x858   :  { %16267 = vmatpush3.bf16.msra.mxu0 %v17334_v44  ;;  %v20232_v42 = vpop.f32.mrf.mxu1  ;;  %v23134_v44 = vld [vmem:[#allocation13_spill] sm:$0xff] }
 0x859   :  { %16268 = vmatprep.subr.bf16.mxu0 %v17335_v19 }
 0x85b   :  { %5526 = vmatmul.mubr.bf16.gmra.mxu0 %v17344_v62 }
 0x85c   :  { %16269 = vmatpush3.bf16.msra.mxu0 %v17335_v19  ;;  %5533 = vmatprep.mubr.bf16.mxu0 %v17352_v32  ;;  %v23139_v32 = vld [vmem:[#allocation19_spill] sm:$0xff] }
 0x85d   :  { %16270 = vmatprep.subr.bf16.mxu0 %v17336_v52 }
 0x860   :  { %16271 = vmatpush3.bf16.msra.mxu0 %v17336_v52 }
 0x861   :  { %16272 = vmatprep.subr.bf16.mxu0 %v17337_v54 }
 0x863   :  { %5534 = vmatmul.mubr.bf16.gmra.mxu0 %v17350_v21 }
 0x864   :  { %16273 = vmatpush3.bf16.msra.mxu0 %v17337_v54  ;;  %v20240_v54 = vpop.f32.mrf.mxu1 }
 0x865   :  { %16274 = vmatprep.subr.bf16.mxu0 %v17338_v2 }
 0x868   :  { %16275 = vmatpush3.bf16.msra.mxu0 %v17338_v2  ;;  %v23136_v2 = vld [vmem:[#allocation17_spill] sm:$0xff] }
 0x869   :  { %16276 = vmatprep.subr.bf16.mxu0 %v17339_v56 }
 0x86c   :  { %16277 = vmatpush3.bf16.msra.mxu0 %v17339_v56 }
 0x86d   :  { %16278 = vmatprep.subr.bf16.mxu0 %v17340_v30 }
 0x870   :  { %16279 = vmatpush3.bf16.msra.mxu0 %v17340_v30  ;;  %v17358_v30 = vld [vmem:[%s22907_s3 + $0x864] ss:$16 sps:$4 sm:$0xff]  }
 0x871   :  { %14840 = vmatprep.subr.bf16.mxu0 %v23124_v39  ;;  %5541 = vmatprep.mubr.bf16.mxu0 %v17358_v30 }
 0x89b   :  { %v16218_v46 = vpop.f32.mrf.mxu0 }
 0x89c   :  { %v20204_v24 = vadd.f32 %v16218_v46, %v23125_v27  ;;  %v17356_v46 = vld [vmem:[%s22907_s3 + $0x860] ss:$16 sps:$4 sm:$0xff]   ;;  %v20251_v27 = vpop.f32.mrf.mxu1 }
 0x89d   :  { %v4640_v1 = vpop.f32.mrf.mxu0  ;;  %5542 = vmatmul.mubr.bf16.gmra.mxu0 %v17356_v46  ;;  %v17368_v46 = vld [vmem:[%s22907_s3 + $0x8a0] ss:$16 sps:$4 sm:$0xff]  }
 0x89e   :  { %23126 = vst [vmem:[#allocation9_spill] sm:$0xff] %v20204_v24  ;;  %v20207_v23 = vadd.f32 %v4640_v1, %v23127_v58  ;;  %v20253_v1 = vpop.f32.mrf.mxu1  ;;  %v17364_v58 = vld [vmem:[%s22907_s3 + $0x884] ss:$16 sps:$4 sm:$0xff]  }
 0x89f   :  { %v16219_v61 = vpop.f32.mrf.mxu0  ;;  %5549 = vmatprep.mubr.bf16.mxu0 %v17364_v58  ;;  %v17370_v58 = vld [vmem:[%s22907_s3 + $0x8a4] ss:$16 sps:$4 sm:$0xff]  }
 0x8a0   :  { %23128 = vst [vmem:[#allocation10_spill] sm:$0xff] %v20207_v23  ;;  %v20212_v12 = vadd.f32 %v16219_v61, %v23129_v59  ;;  %v17362_v59 = vld [vmem:[%s22907_s3 + $0x880] ss:$16 sps:$4 sm:$0xff]   ;;  %v20263_v62 = vpop.f32.mrf.mxu1 }
 0x8a1   :  { %v20227_v37 = vpop.f32.mrf.mxu0 }
 0x8a2   :  { %23130 = vst [vmem:[#allocation4_spill] sm:$0xff] %v20212_v12  ;;  %23131 = vst [vmem:[#allocation43_spill] sm:$0xff] %v20227_v37  ;;  %v23148_v37 = vld [vmem:[#allocation24_spill] sm:$0xff] }
 0x8a5   :  { %5550 = vmatmul.mubr.bf16.gmra.mxu0 %v17362_v59 }
 0x8a6   :  { %5557 = vmatprep.mubr.bf16.mxu0 %v17370_v58  ;;  %v23146_v58 = vld [vmem:[#allocation23_spill] sm:$0xff] }
 0x8ab   :  { %v16222_v53 = vpop.f32.mrf.mxu0 }
 0x8ac   :  { %v20235_v9 = vadd.f32 %v16222_v53, %v23132_v25  ;;  %v23141_v25 = vld [vmem:[#allocation20_spill] sm:$0xff] }
 0x8ad   :  { %v4656_v31 = vpop.f32.mrf.mxu0  ;;  %5558 = vmatmul.mubr.bf16.gmra.mxu0 %v17368_v46 }
 0x8ae   :  { %23133 = vst [vmem:[#allocation12_spill] sm:$0xff] %v20235_v9  ;;  %v20238_v19 = vadd.f32 %v4656_v31, %v23134_v44 }
 0x8af   :  { %v16223_v52 = vpop.f32.mrf.mxu0 }
 0x8b0   :  { %23135 = vst [vmem:[#allocation13_spill] sm:$0xff] %v20238_v19  ;;  %v20243_v56 = vadd.f32 %v16223_v52, %v23136_v2  ;;  %v20271_v52 = vpop.f32.mrf.mxu1  ;;  %v23143_v2 = vld [vmem:[#allocation21_spill] sm:$0xff] }
 0x8b1   :  { %v20258_v61 = vpop.f32.mrf.mxu0 }
 0x8b2   :  { %23137 = vst [vmem:[#allocation17_spill] sm:$0xff] %v20243_v56  ;;  %23138 = vst [vmem:[#allocation44_spill] sm:$0xff] %v20258_v61  ;;  %v20282_v59 = vpop.f32.mrf.mxu1  ;;  %v23150_v56 = vld [vmem:[#allocation25_spill] sm:$0xff] }
 0x8bb   :  { %v16226_v11 = vpop.f32.mrf.mxu0 }
 0x8bc   :  { %v20266_v21 = vadd.f32 %v16226_v11, %v23139_v32  ;;  %v20284_v11 = vpop.f32.mrf.mxu1  ;;  %v17374_v32 = vld [vmem:[%s22907_s3 + $0x8c0] ss:$16 sps:$4 sm:$0xff]  }
 0x8bd   :  { %v4672_v53 = vpop.f32.mrf.mxu0 }
 0x8be   :  { %23140 = vst [vmem:[#allocation19_spill] sm:$0xff] %v20266_v21  ;;  %v20269_v31 = vadd.f32 %v4672_v53, %v23141_v25  ;;  %v17376_v53 = vld [vmem:[%s22907_s3 + $0x8c4] ss:$16 sps:$4 sm:$0xff]  }
 0x8bf   :  { %v16227_v44 = vpop.f32.mrf.mxu0  ;;  %5565 = vmatprep.mubr.bf16.mxu0 %v17376_v53  ;;  %v17380_v53 = vld [vmem:[%s22907_s3 + $0x8e0] ss:$16 sps:$4 sm:$0xff]  }
 0x8c0   :  { %23142 = vst [vmem:[#allocation20_spill] sm:$0xff] %v20269_v31  ;;  %v20274_v30 = vadd.f32 %v16227_v44, %v23143_v2  ;;  %v20294_v2 = vpop.f32.mrf.mxu1  ;;  %5566 = vmatmul.mubr.bf16.gmra.mxu0 %v17374_v32  ;;  %v17382_v32 = vld [vmem:[%s22907_s3 + $0x8e4] ss:$16 sps:$4 sm:$0xff]  }
 0x8c1   :  { %v20292_v25 = vpop.f32.mrf.mxu0  ;;  %5573 = vmatprep.mubr.bf16.mxu0 %v17382_v32 }
 0x8c2   :  { %23144 = vst [vmem:[#allocation21_spill] sm:$0xff] %v20274_v30  ;;  %23145 = vst [vmem:[#allocation45_spill] sm:$0xff] %v20292_v25  ;;  %v14526_v21 = vpop.f32.mrf.mxu1 }
 0x8c8   :  { %5574 = vmatmul.mubr.bf16.gmra.mxu0 %v17380_v53 }
 0x8cb   :  { %v16230_v44 = vpop.f32.mrf.mxu0 }
 0x8cc   :  { %v20297_v61 = vadd.f32 %v16230_v44, %v23146_v58  ;;  %v20313_v58 = vpop.f32.mrf.mxu1 }
 0x8cd   :  { %v4688_v46 = vpop.f32.mrf.mxu0 }
 0x8ce   :  { %23147 = vst [vmem:[#allocation23_spill] sm:$0xff] %v20297_v61  ;;  %v20300_v30 = vadd.f32 %v4688_v46, %v23148_v37  ;;  %v14509_v61 = vadd.f32 %v20209_v13, %v20201_v3 }
 0x8cf   :  { %v16231_v31 = vpop.f32.mrf.mxu0 }
 0x8d0   :  { %23149 = vst [vmem:[#allocation24_spill] sm:$0xff] %v20300_v30  ;;  %v20303_v19 = vadd.f32 %v16231_v31, %v23150_v56  ;;  %v20315_v30 = vpop.f32.mrf.mxu1 }
 0x8d1   :  { %v20311_v25 = vpop.f32.mrf.mxu0 }
 0x8d2   :  { %23151 = vst [vmem:[#allocation25_spill] sm:$0xff] %v20303_v19  ;;  %23152 = vst [vmem:[#allocation46_spill] sm:$0xff] %v20311_v25  ;;  %v14506_v19 = vadd.f32 %v20199_v48, %v20197_v34  ;;  %v14531_v25 = vpop.f32.mrf.mxu1  ;;  %v14515_v34 = vadd.f32 %v20240_v54, %v20232_v42 }
 0x8d3   :  { %v14568_v44 = vpop.f32.mrf.mxu0 }
 0x8d4   :  { %v14532_v45 = vpop.f32.mrf.mxu1 }
 0x8d5   :  { %v14569_v37 = vpop.f32.mrf.mxu0 }
 0x8d6   :  { %v14570_v56 = vadd.f32 %v14569_v37, %v14568_v44  ;;  %v14512_v44 = vadd.f32 %v20222_v57, %v20220_v29  ;;  %v20325_v13 = vpop.f32.mrf.mxu1 }
 0x8d7   :  { %v14571_v46 = vpop.f32.mrf.mxu0 }
 0x8d8   :  { %v5044_v32 = vadd.f32 %v14570_v56, %v14506_v19 }
 0x8d9   :  { %v14572_v31 = vpop.f32.mrf.mxu0 }
 0x8da   :  { %v14573_v9 = vadd.f32 %v14572_v31, %v14571_v46  ;;  %v14535_v46 = vpop.f32.mrf.mxu1 }
 0x8db   :  { %v14574_v12 = vpop.f32.mrf.mxu0 }
 0x8dc   :  { %v5047_v23 = vadd.f32 %v14573_v9, %v14509_v61  ;;  %v14537_v29 = vpop.f32.mrf.mxu1 }
 0x8dd   :  { %v14575_v24 = vpop.f32.mrf.mxu0 }
 0x8de   :  { %v5106_v39 = vpack.c.bf16 %v5047_v23, %v5044_v32  ;;  %v14576_v7 = vadd.f32 %v14575_v24, %v14574_v12  ;;  %v14518_v24 = vadd.f32 %v20253_v1, %v20251_v27  ;;  %v14524_v1 = vadd.f32 %v20284_v11, %v20282_v59 }
 0x8df   :  { %v14577_v53 = vpop.f32.mrf.mxu0  ;;  %v14530_v59 = vadd.f32 %v20315_v30, %v20313_v58  ;;  %v14533_v11 = vadd.f32 %v14532_v45, %v14531_v25  ;;  %v14536_v30 = vadd.f32 %v14535_v46, %v20325_v13 }
 0x8e0   :  { %16248 = vmatprep.mubr.bf16.mxu1 %v5106_v39  ;;  %v5052_v37 = vadd.f32 %v14576_v7, %v14512_v44 }
 0x8e1   :  { %v14578_v55 = vpop.f32.mrf.mxu0 }
 0x8e2   :  { %v14579_v48 = vadd.f32 %v14578_v55, %v14577_v53  ;;  %v14521_v55 = vadd.f32 %v20271_v52, %v20263_v62  ;;  %v14538_v53 = vpop.f32.mrf.mxu1  ;;  %v14527_v62 = vadd.f32 %v14526_v21, %v20294_v2 }
 0x8e3   :  { %v14580_v3 = vpop.f32.mrf.mxu0  ;;  %v14539_v25 = vadd.f32 %v14538_v53, %v14537_v29 }
 0x8e4   :  { %v5055_v19 = vadd.f32 %v14579_v48, %v14515_v34  ;;  %v14540_v48 = vpop.f32.mrf.mxu1 }
 0x8e5   :  { %v14581_v9 = vpop.f32.mrf.mxu0 }
 0x8e6   :  { %v5107_v61 = vpack.c.bf16 %v5055_v19, %v5052_v37  ;;  %v14582_v56 = vadd.f32 %v14581_v9, %v14580_v3 }
 0x8e7   :  { %v14583_v23 = vpop.f32.mrf.mxu0 }
 0x8e8   :  { %16249 = vmatmul.mubr.bf16.vlgmr.msra.gmra.mxu1 %v5107_v61  ;;  %v5060_v57 = vadd.f32 %v14582_v56, %v14518_v24 }
 0x8e9   :  { %14697 = vmatpush3.bf16.msra.mxu1 %v18369_v18  ;;  %v14584_v39 = vpop.f32.mrf.mxu0 }
 0x8ea   :  { %v14585_v12 = vadd.f32 %v14584_v39, %v14583_v23  ;;  %14698 = vmatprep.subr.bf16.mxu1 %v18374_v22  ;;  %v14541_v23 = vpop.f32.mrf.mxu1 }
 0x8eb   :  { %v14586_v7 = vpop.f32.mrf.mxu0  ;;  %v14542_v13 = vadd.f32 %v14541_v23, %v14540_v48  ;;  %v17343_v48 = vld [vmem:[%s22907_s3 + $0x80c] ss:$16 sps:$4 sm:$0xff]  }
 0x8ec   :  { %v5063_v42 = vadd.f32 %v14585_v12, %v14521_v55  ;;  %v14543_v24 = vpop.f32.mrf.mxu1 }
 0x8ed   :  { %14699 = vmatpush3.bf16.msra.mxu1 %v18389_v14  ;;  %v14587_v54 = vpop.f32.mrf.mxu0 }
 0x8ee   :  { %14700 = vmatprep.subr.bf16.mxu1 %v18396_v35  ;;  %v5108_v31 = vpack.c.bf16 %v5063_v42, %v5060_v57  ;;  %v14588_v44 = vadd.f32 %v14587_v54, %v14586_v7  ;;  %v14544_v54 = vpop.f32.mrf.mxu1 }
 0x8ef   :  { %v14589_v32 = vpop.f32.mrf.mxu0  ;;  %v14545_v46 = vadd.f32 %v14544_v54, %v14543_v24  ;;  %v17341_v24 = vld [vmem:[%s22907_s3 + $0x808] ss:$16 sps:$4 sm:$0xff]   ;;  %v17349_v54 = vld [vmem:[%s22907_s3 + $0x82c] ss:$16 sps:$4 sm:$0xff]  }
 0x8f0   :  { %16252 = vmatprep.mubr.bf16.mxu1 %v5108_v31  ;;  %v5068_v3 = vadd.f32 %v14588_v44, %v14524_v1  ;;  %v14546_v44 = vpop.f32.mrf.mxu1 }
 0x8f1   :  { %14701 = vmatpush3.bf16.msra.mxu1 %v18407_v33  ;;  %v14590_v27 = vpop.f32.mrf.mxu0 }
 0x8f2   :  { %v14591_v52 = vadd.f32 %v14590_v27, %v14589_v32  ;;  %14702 = vmatprep.subr.bf16.mxu1 %v18411_v6 }
 0x8f3   :  { %v14592_v34 = vpop.f32.mrf.mxu0 }
 0x8f4   :  { %v5071_v37 = vadd.f32 %v14591_v52, %v14527_v62 }
 0x8f5   :  { %14703 = vmatpush3.bf16.msra.mxu1 %v18425_v0  ;;  %v14593_v19 = vpop.f32.mrf.mxu0 }
 0x8f6   :  { %v5109_v9 = vpack.c.bf16 %v5071_v37, %v5068_v3  ;;  %14704 = vmatprep.subr.bf16.mxu1 %v18432_v60  ;;  %v14594_v56 = vadd.f32 %v14593_v19, %v14592_v34  ;;  %v14547_v3 = vpop.f32.mrf.mxu1 }
 0x8f7   :  { %v14595_v61 = vpop.f32.mrf.mxu0 }
 0x8f8   :  { %16253 = vmatmul.mubr.bf16.gmra.mxu1 %v5109_v9  ;;  %v5076_v55 = vadd.f32 %v14594_v56, %v14530_v59  ;;  %v14549_v9 = vpop.f32.mrf.mxu1 }
 0x8f9   :  { %14705 = vmatpush3.bf16.msra.mxu1 %v18196_v40  ;;  %v14596_v21 = vpop.f32.mrf.mxu0 }
 0x8fa   :  { %v14597_v2 = vadd.f32 %v14596_v21, %v14595_v61  ;;  %14706 = vmatprep.subr.bf16.mxu1 %v18445_v36 }
 0x8fb   :  { %v14598_v39 = vpop.f32.mrf.mxu0 }
 0x8fc   :  { %v5079_v12 = vadd.f32 %v14597_v2, %v14533_v11  ;;  %v14550_v2 = vpop.f32.mrf.mxu1 }
 0x8fd   :  { %14707 = vmatpush3.bf16.msra.mxu1 %v18459_v5  ;;  %v14599_v7 = vpop.f32.mrf.mxu0 }
 0x8fe   :  { %14708 = vmatprep.subr.bf16.mxu1 %v18466_v10  ;;  %v5110_v57 = vpack.c.bf16 %v5079_v12, %v5076_v55  ;;  %v14600_v31 = vadd.f32 %v14599_v7, %v14598_v39  ;;  %v14548_v12 = vadd.f32 %v14547_v3, %v14546_v44  ;;  %v14551_v7 = vadd.f32 %v14550_v2, %v14549_v9  ;;  %v17367_v44 = vld [vmem:[%s22907_s3 + $0x88c] ss:$16 sps:$4 sm:$0xff]   ;;  %v17386_v9 = vld [vmem:[%s22907_s3 + $0x900] ss:$16 sps:$4 sm:$0xff]  }
 0x8ff   :  { %v14601_v42 = vpop.f32.mrf.mxu0  ;;  %v17373_v3 = vld [vmem:[%s22907_s3 + $0x8ac] ss:$16 sps:$4 sm:$0xff]  }
 0x900   :  { %16256 = vmatprep.mubr.bf16.mxu1 %v5110_v57  ;;  %v5084_v27 = vadd.f32 %v14600_v31, %v14536_v30  ;;  %v17355_v30 = vld [vmem:[%s22907_s3 + $0x84c] ss:$16 sps:$4 sm:$0xff]  }
 0x901   :  { %14709 = vmatpush3.bf16.msra.mxu1 %v18162_v20  ;;  %v14602_v45 = vpop.f32.mrf.mxu0  ;;  %v17395_v2 = vld [vmem:[%s22908_s4 + $0x248] sm:$0xff]  }
 0x902   :  { %v14603_v58 = vadd.f32 %v14602_v45, %v14601_v42  ;;  %14710 = vmatprep.subr.bf16.mxu1 %v18473_v51  ;;  %v17347_v45 = vld [vmem:[%s22907_s3 + $0x828] ss:$16 sps:$4 sm:$0xff]  }
 0x903   :  { %v14604_v32 = vpop.f32.mrf.mxu0 }
 0x904   :  { %v5087_v1 = vadd.f32 %v14603_v58, %v14539_v25  ;;  %v17353_v25 = vld [vmem:[%s22907_s3 + $0x848] ss:$16 sps:$4 sm:$0xff]   ;;  %v17361_v58 = vld [vmem:[%s22907_s3 + $0x86c] ss:$16 sps:$4 sm:$0xff]  }
 0x905   :  { %14711 = vmatpush3.bf16.msra.mxu1 %v18480_v15  ;;  %v14605_v62 = vpop.f32.mrf.mxu0 }
 0x906   :  { %v5111_v52 = vpack.c.bf16 %v5087_v1, %v5084_v27  ;;  %14776 = vmatprep.subr.bf16.mxu1 %v18125_v38  ;;  %v14606_v37 = vadd.f32 %v14605_v62, %v14604_v32  ;;  %v17359_v32 = vld [vmem:[%s22907_s3 + $0x868] ss:$16 sps:$4 sm:$0xff]   ;;  %v23153_v27 = vld [vmem:[#allocation3_spill] sm:$0xff] }
 0x907   :  { %v14607_v34 = vpop.f32.mrf.mxu0  ;;  %v23154_v1 = vld [vmem:[#allocation14_spill] sm:$0xff] }
 0x908   :  { %16257 = vmatmul.mubr.bf16.gmra.mxu1 %v5111_v52  ;;  %v5092_v61 = vadd.f32 %v14606_v37, %v14542_v13  ;;  %v17389_v62 = vld [vmem:[%s22908_s4 + $0x278] sm:$0xff]  }
 0x909   :  { %v14608_v19 = vpop.f32.mrf.mxu0  ;;  %v17365_v52 = vld [vmem:[%s22907_s3 + $0x888] ss:$16 sps:$4 sm:$0xff]  }
 0x90a   :  { %v14609_v29 = vadd.f32 %v14608_v19, %v14607_v34  ;;  %v23155_v34 = vld [vmem:[#allocation15_spill] sm:$0xff]  ;;  %v17371_v37 = vld [vmem:[%s22907_s3 + $0x8a8] ss:$16 sps:$4 sm:$0xff]   ;;  %v17379_v19 = vld [vmem:[%s22907_s3 + $0x8cc] ss:$16 sps:$4 sm:$0xff]  }
 0x90b   :  { %v14610_v53 = vpop.f32.mrf.mxu0  ;;  %v17377_v13 = vld [vmem:[%s22907_s3 + $0x8c8] ss:$16 sps:$4 sm:$0xff]  }
 0x90c   :  { %v5095_v56 = vadd.f32 %v14609_v29, %v14545_v46  ;;  %v17385_v46 = vld [vmem:[%s22907_s3 + $0x8ec] ss:$16 sps:$4 sm:$0xff]   ;;  %v17383_v29 = vld [vmem:[%s22907_s3 + $0x8e8] ss:$16 sps:$4 sm:$0xff]  }
 0x90d   :  { %v14611_v21 = vpop.f32.mrf.mxu0 }
 0x90e   :  { %v5112_v59 = vpack.c.bf16 %v5095_v56, %v5092_v61  ;;  %v14612_v39 = vadd.f32 %v14611_v21, %v14610_v53  ;;  %v17388_v53 = vld [vmem:[%s22907_s3 + $0x904] ss:$16 sps:$4 sm:$0xff]   ;;  %v17391_v56 = vld [vmem:[%s22908_s4 + $0x268] sm:$0xff]  }
 0x90f   :  { %v14613_v11 = vpop.f32.mrf.mxu0  ;;  %v17390_v61 = vld [vmem:[%s22908_s4 + $0x270] sm:$0xff]   ;;  %v17392_v21 = vld [vmem:[%s22908_s4 + $0x260] sm:$0xff]  }
 0x910   :  { %16260 = vmatprep.mubr.bf16.mxu1 %v5112_v59  ;;  %v5100_v42 = vadd.f32 %v14612_v39, %v14548_v12  ;;  %v17393_v59 = vld [vmem:[%s22908_s4 + $0x258] sm:$0xff]   ;;  %v17396_v39 = vld [vmem:[%s22908_s4 + $0x240] sm:$0xff]  }
 0x911   :  { %v14614_v55 = vpop.f32.mrf.mxu0 }
 0x912   :  { %v14615_v57 = vadd.f32 %v14614_v55, %v14613_v11  ;;  %v17394_v11 = vld [vmem:[%s22908_s4 + $0x250] sm:$0xff]   ;;  %v23156_v55 = vld [vmem:[#allocation16_spill] sm:$0xff] }
 0x913   :  { %v20447_v12 = vpop.f32.mrf.mxu0 }
 0x914   :  { %v5103_v31 = vadd.f32 %v14615_v57, %v14551_v7 }
 0x915   :  { %v20449_v7 = vpop.f32.mrf.mxu0 }
 0x916   :  { %v5113_v23 = vpack.c.bf16 %v5103_v31, %v5100_v42  ;;  %v23157_v31 = vld [vmem:[#allocation9_spill] sm:$0xff] }
 0x917   :  { %v20451_v42 = vpop.f32.mrf.mxu0 }
 0x918   :  { %16261 = vmatmul.mubr.bf16.gmra.mxu1 %v5113_v23 }
 0x919   :  { %5614 = vmatprep.mubr.bf16.mxu1 %v17343_v48 }
 0x920   :  { %5615 = vmatmul.mubr.bf16.vlgmr.msra.gmra.mxu1 %v17341_v24  ;;  %v23159_v24 = vld [vmem:[#allocation10_spill] sm:$0xff] }
 0x921   :  { %14777 = vmatpush3.bf16.msra.mxu1 %v18128_v41  ;;  %5622 = vmatprep.mubr.bf16.mxu1 %v17349_v54 }
 0x922   :  { %14778 = vmatprep.subr.bf16.mxu1 %v18133_v47 }
 0x925   :  { %14779 = vmatpush3.bf16.msra.mxu1 %v22960_v8 }
 0x926   :  { %14780 = vmatprep.subr.bf16.mxu1 %v22961_v63 }
 0x928   :  { %5623 = vmatmul.mubr.bf16.gmra.mxu1 %v17347_v45 }
 0x929   :  { %14781 = vmatpush3.bf16.msra.mxu1 %v22962_v49  ;;  %5630 = vmatprep.mubr.bf16.mxu1 %v17355_v30  ;;  %v20459_v30 = vpop.f32.mrf.mxu0 }
 0x92a   :  { %14782 = vmatprep.subr.bf16.mxu1 %v22963_v28 }
 0x92d   :  { %14783 = vmatpush3.bf16.msra.mxu1 %v22964_v26 }
 0x92e   :  { %14784 = vmatprep.subr.bf16.mxu1 %v22965_v16 }
 0x930   :  { %5631 = vmatmul.mubr.bf16.gmra.mxu1 %v17353_v25  ;;  %v23161_v25 = vld [vmem:[#allocation4_spill] sm:$0xff] }
 0x931   :  { %14785 = vmatpush3.bf16.msra.mxu1 %v22966_v17  ;;  %5638 = vmatprep.mubr.bf16.mxu1 %v17361_v58 }
 0x932   :  { %14786 = vmatprep.subr.bf16.mxu1 %v22967_v4 }
 0x935   :  { %14787 = vmatpush3.bf16.msra.mxu1 %v22968_v50 }
 0x936   :  { %14788 = vmatprep.subr.bf16.mxu1 %v22969_v43 }
 0x938   :  { %5639 = vmatmul.mubr.bf16.gmra.mxu1 %v17359_v32  ;;  %v17402_v32 = vld [vmem:[%s22907_s3 + $0x924] ss:$16 sps:$4 sm:$0xff]  }
 0x939   :  { %14789 = vmatpush3.bf16.msra.mxu1 %v23153_v27  ;;  %5646 = vmatprep.mubr.bf16.mxu1 %v17367_v44  ;;  %v17400_v44 = vld [vmem:[%s22907_s3 + $0x920] ss:$16 sps:$4 sm:$0xff]  }
 0x93a   :  { %14790 = vmatprep.subr.bf16.mxu1 %v23154_v1 }
 0x93d   :  { %14791 = vmatpush3.bf16.msra.mxu1 %v23155_v34 }
 0x93e   :  { %16296 = vmatprep.subr.bf16.mxu1 %v17389_v62 }
 0x940   :  { %5647 = vmatmul.mubr.bf16.gmra.mxu1 %v17365_v52 }
 0x941   :  { %5654 = vmatprep.mubr.bf16.mxu1 %v17373_v3  ;;  %v17408_v3 = vld [vmem:[%s22907_s3 + $0x944] ss:$16 sps:$4 sm:$0xff]  }
 0x948   :  { %5655 = vmatmul.mubr.bf16.gmra.mxu1 %v17371_v37 }
 0x949   :  { %5662 = vmatprep.mubr.bf16.mxu1 %v17379_v19  ;;  %v17406_v19 = vld [vmem:[%s22907_s3 + $0x940] ss:$16 sps:$4 sm:$0xff]  }
 0x950   :  { %5663 = vmatmul.mubr.bf16.gmra.mxu1 %v17377_v13 }
 0x951   :  { %5670 = vmatprep.mubr.bf16.mxu1 %v17385_v46 }
 0x958   :  { %5671 = vmatmul.mubr.bf16.gmra.mxu1 %v17383_v29  ;;  %v23164_v29 = vld [vmem:[#allocation12_spill] sm:$0xff] }
 0x959   :  { %6090 = vmatprep.mubr.bf16.mxu1 %v17388_v53 }
 0x960   :  { %6091 = vmatmul.mubr.bf16.vlgmr.msra.gmra.mxu1 %v17386_v9 }
 0x961   :  { %16297 = vmatpush3.bf16.msra.mxu1 %v17389_v62  ;;  %6098 = vmatprep.mubr.bf16.mxu1 %v17402_v32  ;;  %v20470_v62 = vpop.f32.mrf.mxu0 }
 0x962   :  { %16298 = vmatprep.subr.bf16.mxu1 %v17390_v61 }
 0x963   :  { %v20472_v52 = vpop.f32.mrf.mxu0 }
 0x965   :  { %16299 = vmatpush3.bf16.msra.mxu1 %v17390_v61  ;;  %v20482_v46 = vpop.f32.mrf.mxu0  ;;  %v23166_v61 = vld [vmem:[#allocation13_spill] sm:$0xff] }
 0x966   :  { %16300 = vmatprep.subr.bf16.mxu1 %v17391_v56 }
 0x968   :  { %6099 = vmatmul.mubr.bf16.gmra.mxu1 %v17400_v44 }
 0x969   :  { %16301 = vmatpush3.bf16.msra.mxu1 %v17391_v56  ;;  %6106 = vmatprep.mubr.bf16.mxu1 %v17408_v3  ;;  %v23171_v3 = vld [vmem:[#allocation19_spill] sm:$0xff] }
 0x96a   :  { %16302 = vmatprep.subr.bf16.mxu1 %v17392_v21 }
 0x96d   :  { %16303 = vmatpush3.bf16.msra.mxu1 %v17392_v21 }
 0x96e   :  { %16304 = vmatprep.subr.bf16.mxu1 %v17393_v59 }
 0x970   :  { %6107 = vmatmul.mubr.bf16.gmra.mxu1 %v17406_v19 }
 0x971   :  { %16305 = vmatpush3.bf16.msra.mxu1 %v17393_v59  ;;  %v20490_v59 = vpop.f32.mrf.mxu0 }
 0x972   :  { %16306 = vmatprep.subr.bf16.mxu1 %v17394_v11 }
 0x975   :  { %16307 = vmatpush3.bf16.msra.mxu1 %v17394_v11  ;;  %v23168_v11 = vld [vmem:[#allocation17_spill] sm:$0xff] }
 0x976   :  { %16308 = vmatprep.subr.bf16.mxu1 %v17395_v2 }
 0x979   :  { %16309 = vmatpush3.bf16.msra.mxu1 %v17395_v2 }
 0x97a   :  { %16310 = vmatprep.subr.bf16.mxu1 %v17396_v39 }
 0x97d   :  { %16311 = vmatpush3.bf16.msra.mxu1 %v17396_v39  ;;  %v17414_v39 = vld [vmem:[%s22907_s3 + $0x964] ss:$16 sps:$4 sm:$0xff]  }
 0x97e   :  { %14984 = vmatprep.subr.bf16.mxu1 %v23156_v55  ;;  %6114 = vmatprep.mubr.bf16.mxu1 %v17414_v39 }
 0x9a8   :  { %v16250_v57 = vpop.f32.mrf.mxu1 }
 0x9a9   :  { %v20454_v48 = vadd.f32 %v16250_v57, %v23157_v31  ;;  %v17412_v57 = vld [vmem:[%s22907_s3 + $0x960] ss:$16 sps:$4 sm:$0xff]   ;;  %v20501_v31 = vpop.f32.mrf.mxu0 }
 0x9aa   :  { %v5213_v23 = vpop.f32.mrf.mxu1  ;;  %6115 = vmatmul.mubr.bf16.gmra.mxu1 %v17412_v57  ;;  %v17424_v57 = vld [vmem:[%s22907_s3 + $0x9a0] ss:$16 sps:$4 sm:$0xff]  }
 0x9ab   :  { %23158 = vst [vmem:[#allocation9_spill] sm:$0xff] %v20454_v48  ;;  %v20457_v54 = vadd.f32 %v5213_v23, %v23159_v24  ;;  %v20503_v23 = vpop.f32.mrf.mxu0  ;;  %v17420_v24 = vld [vmem:[%s22907_s3 + $0x984] ss:$16 sps:$4 sm:$0xff]  }
 0x9ac   :  { %v16251_v45 = vpop.f32.mrf.mxu1  ;;  %6122 = vmatprep.mubr.bf16.mxu1 %v17420_v24  ;;  %v17426_v24 = vld [vmem:[%s22907_s3 + $0x9a4] ss:$16 sps:$4 sm:$0xff]  }
 0x9ad   :  { %23160 = vst [vmem:[#allocation10_spill] sm:$0xff] %v20457_v54  ;;  %v20462_v58 = vadd.f32 %v16251_v45, %v23161_v25  ;;  %v17418_v25 = vld [vmem:[%s22907_s3 + $0x980] ss:$16 sps:$4 sm:$0xff]   ;;  %v20513_v44 = vpop.f32.mrf.mxu0 }
 0x9ae   :  { %v20477_v37 = vpop.f32.mrf.mxu1 }
 0x9af   :  { %23162 = vst [vmem:[#allocation4_spill] sm:$0xff] %v20462_v58  ;;  %23163 = vst [vmem:[#allocation47_spill] sm:$0xff] %v20477_v37  ;;  %v23180_v37 = vld [vmem:[#allocation24_spill] sm:$0xff] }
 0x9b2   :  { %6123 = vmatmul.mubr.bf16.gmra.mxu1 %v17418_v25 }
 0x9b3   :  { %6130 = vmatprep.mubr.bf16.mxu1 %v17426_v24  ;;  %v23178_v24 = vld [vmem:[#allocation23_spill] sm:$0xff] }
 0x9b8   :  { %v16254_v13 = vpop.f32.mrf.mxu1 }
 0x9b9   :  { %v20485_v53 = vadd.f32 %v16254_v13, %v23164_v29  ;;  %v23173_v29 = vld [vmem:[#allocation20_spill] sm:$0xff] }
 0x9ba   :  { %v5229_v9 = vpop.f32.mrf.mxu1  ;;  %6131 = vmatmul.mubr.bf16.gmra.mxu1 %v17424_v57 }
 0x9bb   :  { %23165 = vst [vmem:[#allocation12_spill] sm:$0xff] %v20485_v53  ;;  %v20488_v56 = vadd.f32 %v5229_v9, %v23166_v61 }
 0x9bc   :  { %v16255_v21 = vpop.f32.mrf.mxu1 }
 0x9bd   :  { %23167 = vst [vmem:[#allocation13_spill] sm:$0xff] %v20488_v56  ;;  %v20493_v2 = vadd.f32 %v16255_v21, %v23168_v11  ;;  %v20521_v21 = vpop.f32.mrf.mxu0  ;;  %v23175_v11 = vld [vmem:[#allocation21_spill] sm:$0xff] }
 0x9be   :  { %v20508_v45 = vpop.f32.mrf.mxu1 }
 0x9bf   :  { %23169 = vst [vmem:[#allocation17_spill] sm:$0xff] %v20493_v2  ;;  %23170 = vst [vmem:[#allocation48_spill] sm:$0xff] %v20508_v45  ;;  %v20532_v25 = vpop.f32.mrf.mxu0  ;;  %v23182_v2 = vld [vmem:[#allocation25_spill] sm:$0xff] }
 0x9c8   :  { %v16258_v32 = vpop.f32.mrf.mxu1 }
 0x9c9   :  { %v20516_v19 = vadd.f32 %v16258_v32, %v23171_v3  ;;  %v20534_v32 = vpop.f32.mrf.mxu0  ;;  %v17430_v3 = vld [vmem:[%s22907_s3 + $0x9c0] ss:$16 sps:$4 sm:$0xff]  }
 0x9ca   :  { %v5245_v13 = vpop.f32.mrf.mxu1 }
 0x9cb   :  { %23172 = vst [vmem:[#allocation19_spill] sm:$0xff] %v20516_v19  ;;  %v20519_v9 = vadd.f32 %v5245_v13, %v23173_v29  ;;  %v17432_v13 = vld [vmem:[%s22907_s3 + $0x9c4] ss:$16 sps:$4 sm:$0xff]  }
 0x9cc   :  { %v16259_v61 = vpop.f32.mrf.mxu1  ;;  %6138 = vmatprep.mubr.bf16.mxu1 %v17432_v13  ;;  %v17436_v13 = vld [vmem:[%s22907_s3 + $0x9e0] ss:$16 sps:$4 sm:$0xff]  }
 0x9cd   :  { %23174 = vst [vmem:[#allocation20_spill] sm:$0xff] %v20519_v9  ;;  %v20524_v39 = vadd.f32 %v16259_v61, %v23175_v11  ;;  %v20544_v11 = vpop.f32.mrf.mxu0  ;;  %6139 = vmatmul.mubr.bf16.gmra.mxu1 %v17430_v3  ;;  %v17438_v3 = vld [vmem:[%s22907_s3 + $0x9e4] ss:$16 sps:$4 sm:$0xff]  }
 0x9ce   :  { %v20542_v29 = vpop.f32.mrf.mxu1  ;;  %6146 = vmatprep.mubr.bf16.mxu1 %v17438_v3 }
 0x9cf   :  { %23176 = vst [vmem:[#allocation21_spill] sm:$0xff] %v20524_v39  ;;  %23177 = vst [vmem:[#allocation49_spill] sm:$0xff] %v20542_v29  ;;  %v14670_v19 = vpop.f32.mrf.mxu0 }
 0x9d5   :  { %6147 = vmatmul.mubr.bf16.gmra.mxu1 %v17436_v13 }
 0x9d8   :  { %v16262_v61 = vpop.f32.mrf.mxu1 }
 0x9d9   :  { %v20547_v45 = vadd.f32 %v16262_v61, %v23178_v24  ;;  %v20563_v24 = vpop.f32.mrf.mxu0 }
 0x9da   :  { %v5261_v57 = vpop.f32.mrf.mxu1 }
 0x9db   :  { %23179 = vst [vmem:[#allocation23_spill] sm:$0xff] %v20547_v45  ;;  %v20550_v39 = vadd.f32 %v5261_v57, %v23180_v37  ;;  %v14653_v45 = vadd.f32 %v20459_v30, %v20451_v42 }
 0x9dc   :  { %v16263_v9 = vpop.f32.mrf.mxu1 }
 0x9dd   :  { %23181 = vst [vmem:[#allocation24_spill] sm:$0xff] %v20550_v39  ;;  %v20553_v56 = vadd.f32 %v16263_v9, %v23182_v2  ;;  %v20565_v39 = vpop.f32.mrf.mxu0 }
 0x9de   :  { %v20561_v29 = vpop.f32.mrf.mxu1 }
 0x9df   :  { %23183 = vst [vmem:[#allocation25_spill] sm:$0xff] %v20553_v56  ;;  %23184 = vst [vmem:[#allocation50_spill] sm:$0xff] %v20561_v29  ;;  %v14650_v56 = vadd.f32 %v20449_v7, %v20447_v12  ;;  %v14675_v29 = vpop.f32.mrf.mxu0  ;;  %v14659_v12 = vadd.f32 %v20490_v59, %v20482_v46 }
 0x9e0   :  { %v14712_v61 = vpop.f32.mrf.mxu1 }
 0x9e1   :  { %v14676_v34 = vpop.f32.mrf.mxu0 }
 0x9e2   :  { %v14713_v37 = vpop.f32.mrf.mxu1 }
 0x9e3   :  { %v14714_v2 = vadd.f32 %v14713_v37, %v14712_v61  ;;  %v14656_v61 = vadd.f32 %v20472_v52, %v20470_v62  ;;  %v20575_v30 = vpop.f32.mrf.mxu0 }
 0x9e4   :  { %v14715_v57 = vpop.f32.mrf.mxu1 }
 0x9e5   :  { %v5617_v3 = vadd.f32 %v14714_v2, %v14650_v56 }
 0x9e6   :  { %v14716_v9 = vpop.f32.mrf.mxu1 }
 0x9e7   :  { %v14717_v53 = vadd.f32 %v14716_v9, %v14715_v57  ;;  %v14679_v57 = vpop.f32.mrf.mxu0 }
 0x9e8   :  { %v14718_v58 = vpop.f32.mrf.mxu1 }
 0x9e9   :  { %v5620_v54 = vadd.f32 %v14717_v53, %v14653_v45  ;;  %v14681_v62 = vpop.f32.mrf.mxu0 }
 0x9ea   :  { %v14719_v48 = vpop.f32.mrf.mxu1 }
 0x9eb   :  { %v5679_v55 = vpack.c.bf16 %v5620_v54, %v5617_v3  ;;  %v14720_v1 = vadd.f32 %v14719_v48, %v14718_v58  ;;  %v14662_v48 = vadd.f32 %v20503_v23, %v20501_v31  ;;  %v14668_v23 = vadd.f32 %v20534_v32, %v20532_v25 }
 0x9ec   :  { %v14721_v13 = vpop.f32.mrf.mxu1  ;;  %v14674_v25 = vadd.f32 %v20565_v39, %v20563_v24  ;;  %v14677_v32 = vadd.f32 %v14676_v34, %v14675_v29  ;;  %v14680_v39 = vadd.f32 %v14679_v57, %v20575_v30 }
 0x9ed   :  { %16280 = vmatprep.mubr.bf16.mxu0 %v5679_v55  ;;  %v5625_v37 = vadd.f32 %v14720_v1, %v14656_v61 }
 0x9ee   :  { %v14722_v27 = vpop.f32.mrf.mxu1 }
 0x9ef   :  { %v14723_v7 = vadd.f32 %v14722_v27, %v14721_v13  ;;  %v14665_v27 = vadd.f32 %v20521_v21, %v20513_v44  ;;  %v14682_v13 = vpop.f32.mrf.mxu0  ;;  %v14671_v44 = vadd.f32 %v14670_v19, %v20544_v11 }
 0x9f0   :  { %v14724_v42 = vpop.f32.mrf.mxu1  ;;  %v14683_v29 = vadd.f32 %v14682_v13, %v14681_v62 }
 0x9f1   :  { %v5628_v56 = vadd.f32 %v14723_v7, %v14659_v12  ;;  %v14684_v7 = vpop.f32.mrf.mxu0 }
 0x9f2   :  { %v14725_v53 = vpop.f32.mrf.mxu1 }
 0x9f3   :  { %v5680_v45 = vpack.c.bf16 %v5628_v56, %v5625_v37  ;;  %v14726_v2 = vadd.f32 %v14725_v53, %v14724_v42 }
 0x9f4   :  { %v14727_v54 = vpop.f32.mrf.mxu1 }
 0x9f5   :  { %16281 = vmatmul.mubr.bf16.vlgmr.msra.gmra.mxu0 %v5680_v45  ;;  %v5633_v52 = vadd.f32 %v14726_v2, %v14662_v48 }
 0x9f6   :  { %14841 = vmatpush3.bf16.msra.mxu0 %v18369_v18  ;;  %v14728_v55 = vpop.f32.mrf.mxu1 }
 0x9f7   :  { %v14729_v58 = vadd.f32 %v14728_v55, %v14727_v54  ;;  %14842 = vmatprep.subr.bf16.mxu0 %v18374_v22  ;;  %v14685_v54 = vpop.f32.mrf.mxu0 }
 0x9f8   :  { %v14730_v1 = vpop.f32.mrf.mxu1  ;;  %v14686_v30 = vadd.f32 %v14685_v54, %v14684_v7  ;;  %v17399_v7 = vld [vmem:[%s22907_s3 + $0x90c] ss:$16 sps:$4 sm:$0xff]  }
 0x9f9   :  { %v5636_v46 = vadd.f32 %v14729_v58, %v14665_v27  ;;  %v14687_v48 = vpop.f32.mrf.mxu0 }
 0x9fa   :  { %14843 = vmatpush3.bf16.msra.mxu0 %v18389_v14  ;;  %v14731_v59 = vpop.f32.mrf.mxu1 }
 0x9fb   :  { %14844 = vmatprep.subr.bf16.mxu0 %v18396_v35  ;;  %v5681_v9 = vpack.c.bf16 %v5636_v46, %v5633_v52  ;;  %v14732_v61 = vadd.f32 %v14731_v59, %v14730_v1  ;;  %v14688_v59 = vpop.f32.mrf.mxu0 }
 0x9fc   :  { %v14733_v3 = vpop.f32.mrf.mxu1  ;;  %v14689_v57 = vadd.f32 %v14688_v59, %v14687_v48  ;;  %v17397_v48 = vld [vmem:[%s22907_s3 + $0x908] ss:$16 sps:$4 sm:$0xff]   ;;  %v17405_v59 = vld [vmem:[%s22907_s3 + $0x92c] ss:$16 sps:$4 sm:$0xff]  }
 0x9fd   :  { %16284 = vmatprep.mubr.bf16.mxu0 %v5681_v9  ;;  %v5641_v42 = vadd.f32 %v14732_v61, %v14668_v23  ;;  %v14690_v61 = vpop.f32.mrf.mxu0 }
 0x9fe   :  { %14845 = vmatpush3.bf16.msra.mxu0 %v18407_v33  ;;  %v14734_v31 = vpop.f32.mrf.mxu1 }
 0x9ff   :  { %v14735_v21 = vadd.f32 %v14734_v31, %v14733_v3  ;;  %14846 = vmatprep.subr.bf16.mxu0 %v18411_v6 }
 0xa00   :  { %v14736_v12 = vpop.f32.mrf.mxu1 }
 0xa01   :  { %v5644_v37 = vadd.f32 %v14735_v21, %v14671_v44 }
 0xa02   :  { %14847 = vmatpush3.bf16.msra.mxu0 %v18425_v0  ;;  %v14737_v56 = vpop.f32.mrf.mxu1 }
 0xa03   :  { %v5682_v53 = vpack.c.bf16 %v5644_v37, %v5641_v42  ;;  %14848 = vmatprep.subr.bf16.mxu0 %v18432_v60  ;;  %v14738_v2 = vadd.f32 %v14737_v56, %v14736_v12  ;;  %v14691_v42 = vpop.f32.mrf.mxu0 }
 0xa04   :  { %v14739_v45 = vpop.f32.mrf.mxu1 }
 0xa05   :  { %16285 = vmatmul.mubr.bf16.gmra.mxu0 %v5682_v53  ;;  %v5649_v27 = vadd.f32 %v14738_v2, %v14674_v25  ;;  %v14693_v53 = vpop.f32.mrf.mxu0 }
 0xa06   :  { %14849 = vmatpush3.bf16.msra.mxu0 %v18196_v40  ;;  %v14740_v19 = vpop.f32.mrf.mxu1 }
 0xa07   :  { %v14741_v11 = vadd.f32 %v14740_v19, %v14739_v45  ;;  %14850 = vmatprep.subr.bf16.mxu0 %v18445_v36 }
 0xa08   :  { %v14742_v55 = vpop.f32.mrf.mxu1 }
 0xa09   :  { %v5652_v58 = vadd.f32 %v14741_v11, %v14677_v32  ;;  %v14694_v11 = vpop.f32.mrf.mxu0 }
 0xa0a   :  { %14851 = vmatpush3.bf16.msra.mxu0 %v18459_v5  ;;  %v14743_v1 = vpop.f32.mrf.mxu1 }
 0xa0b   :  { %14852 = vmatprep.subr.bf16.mxu0 %v18466_v10  ;;  %v5683_v52 = vpack.c.bf16 %v5652_v58, %v5649_v27  ;;  %v14744_v9 = vadd.f32 %v14743_v1, %v14742_v55  ;;  %v14692_v58 = vadd.f32 %v14691_v42, %v14690_v61  ;;  %v14695_v1 = vadd.f32 %v14694_v11, %v14693_v53  ;;  %v17423_v61 = vld [vmem:[%s22907_s3 + $0x98c] ss:$16 sps:$4 sm:$0xff]   ;;  %v17442_v53 = vld [vmem:[%s22907_s3 + $0xa00] ss:$16 sps:$4 sm:$0xff]  }
 0xa0c   :  { %v14745_v46 = vpop.f32.mrf.mxu1  ;;  %v17429_v42 = vld [vmem:[%s22907_s3 + $0x9ac] ss:$16 sps:$4 sm:$0xff]  }
 0xa0d   :  { %16288 = vmatprep.mubr.bf16.mxu0 %v5683_v52  ;;  %v5657_v31 = vadd.f32 %v14744_v9, %v14680_v39  ;;  %v17411_v39 = vld [vmem:[%s22907_s3 + $0x94c] ss:$16 sps:$4 sm:$0xff]  }
 0xa0e   :  { %14853 = vmatpush3.bf16.msra.mxu0 %v18162_v20  ;;  %v14746_v34 = vpop.f32.mrf.mxu1  ;;  %v17451_v11 = vld [vmem:[%s22908_s4 + $0x288] sm:$0xff]  }
 0xa0f   :  { %v14747_v24 = vadd.f32 %v14746_v34, %v14745_v46  ;;  %14854 = vmatprep.subr.bf16.mxu0 %v18473_v51  ;;  %v17403_v34 = vld [vmem:[%s22907_s3 + $0x928] ss:$16 sps:$4 sm:$0xff]  }
 0xa10   :  { %v14748_v3 = vpop.f32.mrf.mxu1 }
 0xa11   :  { %v5660_v23 = vadd.f32 %v14747_v24, %v14683_v29  ;;  %v17409_v29 = vld [vmem:[%s22907_s3 + $0x948] ss:$16 sps:$4 sm:$0xff]   ;;  %v17417_v24 = vld [vmem:[%s22907_s3 + $0x96c] ss:$16 sps:$4 sm:$0xff]  }
 0xa12   :  { %14855 = vmatpush3.bf16.msra.mxu0 %v18480_v15  ;;  %v14749_v44 = vpop.f32.mrf.mxu1 }
 0xa13   :  { %v5684_v21 = vpack.c.bf16 %v5660_v23, %v5657_v31  ;;  %14920 = vmatprep.subr.bf16.mxu0 %v18125_v38  ;;  %v14750_v37 = vadd.f32 %v14749_v44, %v14748_v3  ;;  %v17415_v3 = vld [vmem:[%s22907_s3 + $0x968] ss:$16 sps:$4 sm:$0xff]   ;;  %v23185_v31 = vld [vmem:[#allocation3_spill] sm:$0xff] }
 0xa14   :  { %v14751_v12 = vpop.f32.mrf.mxu1  ;;  %v23186_v23 = vld [vmem:[#allocation14_spill] sm:$0xff] }
 0xa15   :  { %16289 = vmatmul.mubr.bf16.gmra.mxu0 %v5684_v21  ;;  %v5665_v45 = vadd.f32 %v14750_v37, %v14686_v30  ;;  %v17445_v44 = vld [vmem:[%s22908_s4 + $0x2b8] sm:$0xff]  }
 0xa16   :  { %v14752_v56 = vpop.f32.mrf.mxu1  ;;  %v17421_v21 = vld [vmem:[%s22907_s3 + $0x988] ss:$16 sps:$4 sm:$0xff]  }
 0xa17   :  { %v14753_v62 = vadd.f32 %v14752_v56, %v14751_v12  ;;  %v23187_v12 = vld [vmem:[#allocation15_spill] sm:$0xff]  ;;  %v17427_v37 = vld [vmem:[%s22907_s3 + $0x9a8] ss:$16 sps:$4 sm:$0xff]   ;;  %v17435_v56 = vld [vmem:[%s22907_s3 + $0x9cc] ss:$16 sps:$4 sm:$0xff]  }
 0xa18   :  { %v14754_v13 = vpop.f32.mrf.mxu1  ;;  %v17433_v30 = vld [vmem:[%s22907_s3 + $0x9c8] ss:$16 sps:$4 sm:$0xff]  }
 0xa19   :  { %v5668_v2 = vadd.f32 %v14753_v62, %v14689_v57  ;;  %v17441_v57 = vld [vmem:[%s22907_s3 + $0x9ec] ss:$16 sps:$4 sm:$0xff]   ;;  %v17439_v62 = vld [vmem:[%s22907_s3 + $0x9e8] ss:$16 sps:$4 sm:$0xff]  }
 0xa1a   :  { %v14755_v19 = vpop.f32.mrf.mxu1 }
 0xa1b   :  { %v5685_v25 = vpack.c.bf16 %v5668_v2, %v5665_v45  ;;  %v14756_v55 = vadd.f32 %v14755_v19, %v14754_v13  ;;  %v17444_v13 = vld [vmem:[%s22907_s3 + $0xa04] ss:$16 sps:$4 sm:$0xff]   ;;  %v17447_v2 = vld [vmem:[%s22908_s4 + $0x2a8] sm:$0xff]  }
 0xa1c   :  { %v14757_v32 = vpop.f32.mrf.mxu1  ;;  %v17446_v45 = vld [vmem:[%s22908_s4 + $0x2b0] sm:$0xff]   ;;  %v17448_v19 = vld [vmem:[%s22908_s4 + $0x2a0] sm:$0xff]  }
 0xa1d   :  { %16292 = vmatprep.mubr.bf16.mxu0 %v5685_v25  ;;  %v5673_v46 = vadd.f32 %v14756_v55, %v14692_v58  ;;  %v17449_v25 = vld [vmem:[%s22908_s4 + $0x298] sm:$0xff]   ;;  %v17452_v55 = vld [vmem:[%s22908_s4 + $0x280] sm:$0xff]  }
 0xa1e   :  { %v14758_v27 = vpop.f32.mrf.mxu1 }
 0xa1f   :  { %v14759_v52 = vadd.f32 %v14758_v27, %v14757_v32  ;;  %v17450_v32 = vld [vmem:[%s22908_s4 + $0x290] sm:$0xff]   ;;  %v23188_v27 = vld [vmem:[#allocation16_spill] sm:$0xff] }
 0xa20   :  { %v20697_v58 = vpop.f32.mrf.mxu1 }
 0xa21   :  { %v5676_v9 = vadd.f32 %v14759_v52, %v14695_v1 }
 0xa22   :  { %v20699_v1 = vpop.f32.mrf.mxu1 }
 0xa23   :  { %v5686_v54 = vpack.c.bf16 %v5676_v9, %v5673_v46  ;;  %v23189_v9 = vld [vmem:[#allocation9_spill] sm:$0xff] }
 0xa24   :  { %v20701_v46 = vpop.f32.mrf.mxu1 }
 0xa25   :  { %16293 = vmatmul.mubr.bf16.gmra.mxu0 %v5686_v54 }
 0xa26   :  { %6187 = vmatprep.mubr.bf16.mxu0 %v17399_v7 }
 0xa2d   :  { %6188 = vmatmul.mubr.bf16.vlgmr.msra.gmra.mxu0 %v17397_v48  ;;  %v23191_v48 = vld [vmem:[#allocation10_spill] sm:$0xff] }
 0xa2e   :  { %14921 = vmatpush3.bf16.msra.mxu0 %v18128_v41  ;;  %6195 = vmatprep.mubr.bf16.mxu0 %v17405_v59 }
 0xa2f   :  { %14922 = vmatprep.subr.bf16.mxu0 %v18133_v47 }
 0xa32   :  { %14923 = vmatpush3.bf16.msra.mxu0 %v22960_v8 }
 0xa33   :  { %14924 = vmatprep.subr.bf16.mxu0 %v22961_v63 }
 0xa35   :  { %6196 = vmatmul.mubr.bf16.gmra.mxu0 %v17403_v34 }
 0xa36   :  { %14925 = vmatpush3.bf16.msra.mxu0 %v22962_v49  ;;  %6203 = vmatprep.mubr.bf16.mxu0 %v17411_v39  ;;  %v20709_v39 = vpop.f32.mrf.mxu1 }
 0xa37   :  { %14926 = vmatprep.subr.bf16.mxu0 %v22963_v28 }
 0xa3a   :  { %14927 = vmatpush3.bf16.msra.mxu0 %v22964_v26 }
 0xa3b   :  { %14928 = vmatprep.subr.bf16.mxu0 %v22965_v16 }
 0xa3d   :  { %6204 = vmatmul.mubr.bf16.gmra.mxu0 %v17409_v29  ;;  %v23193_v29 = vld [vmem:[#allocation4_spill] sm:$0xff] }
 0xa3e   :  { %14929 = vmatpush3.bf16.msra.mxu0 %v22966_v17  ;;  %6211 = vmatprep.mubr.bf16.mxu0 %v17417_v24 }
 0xa3f   :  { %14930 = vmatprep.subr.bf16.mxu0 %v22967_v4 }
 0xa42   :  { %14931 = vmatpush3.bf16.msra.mxu0 %v22968_v50 }
 0xa43   :  { %14932 = vmatprep.subr.bf16.mxu0 %v22969_v43 }
 0xa45   :  { %6212 = vmatmul.mubr.bf16.gmra.mxu0 %v17415_v3  ;;  %v17458_v3 = vld [vmem:[%s22907_s3 + $0xa24] ss:$16 sps:$4 sm:$0xff]  }
 0xa46   :  { %14933 = vmatpush3.bf16.msra.mxu0 %v23185_v31  ;;  %6219 = vmatprep.mubr.bf16.mxu0 %v17423_v61  ;;  %v17456_v61 = vld [vmem:[%s22907_s3 + $0xa20] ss:$16 sps:$4 sm:$0xff]  }
 0xa47   :  { %14934 = vmatprep.subr.bf16.mxu0 %v23186_v23 }
 0xa4a   :  { %14935 = vmatpush3.bf16.msra.mxu0 %v23187_v12 }
 0xa4b   :  { %16328 = vmatprep.subr.bf16.mxu0 %v17445_v44 }
 0xa4d   :  { %6220 = vmatmul.mubr.bf16.gmra.mxu0 %v17421_v21 }
 0xa4e   :  { %6227 = vmatprep.mubr.bf16.mxu0 %v17429_v42  ;;  %v17464_v42 = vld [vmem:[%s22907_s3 + $0xa44] ss:$16 sps:$4 sm:$0xff]  }
 0xa55   :  { %6228 = vmatmul.mubr.bf16.gmra.mxu0 %v17427_v37 }
 0xa56   :  { %6235 = vmatprep.mubr.bf16.mxu0 %v17435_v56  ;;  %v17462_v56 = vld [vmem:[%s22907_s3 + $0xa40] ss:$16 sps:$4 sm:$0xff]  }
 0xa5d   :  { %6236 = vmatmul.mubr.bf16.gmra.mxu0 %v17433_v30 }
 0xa5e   :  { %6243 = vmatprep.mubr.bf16.mxu0 %v17441_v57 }
 0xa65   :  { %6244 = vmatmul.mubr.bf16.gmra.mxu0 %v17439_v62  ;;  %v23196_v62 = vld [vmem:[#allocation12_spill] sm:$0xff] }
 0xa66   :  { %6663 = vmatprep.mubr.bf16.mxu0 %v17444_v13 }
 0xa6d   :  { %6664 = vmatmul.mubr.bf16.vlgmr.msra.gmra.mxu0 %v17442_v53 }
 0xa6e   :  { %16329 = vmatpush3.bf16.msra.mxu0 %v17445_v44  ;;  %6671 = vmatprep.mubr.bf16.mxu0 %v17458_v3  ;;  %v20720_v44 = vpop.f32.mrf.mxu1 }
 0xa6f   :  { %16330 = vmatprep.subr.bf16.mxu0 %v17446_v45 }
 0xa70   :  { %v20722_v21 = vpop.f32.mrf.mxu1 }
 0xa72   :  { %16331 = vmatpush3.bf16.msra.mxu0 %v17446_v45  ;;  %v20732_v57 = vpop.f32.mrf.mxu1  ;;  %v23198_v45 = vld [vmem:[#allocation13_spill] sm:$0xff] }
 0xa73   :  { %16332 = vmatprep.subr.bf16.mxu0 %v17447_v2 }
 0xa75   :  { %6672 = vmatmul.mubr.bf16.gmra.mxu0 %v17456_v61 }
 0xa76   :  { %16333 = vmatpush3.bf16.msra.mxu0 %v17447_v2  ;;  %6679 = vmatprep.mubr.bf16.mxu0 %v17464_v42  ;;  %v23203_v42 = vld [vmem:[#allocation19_spill] sm:$0xff] }
 0xa77   :  { %16334 = vmatprep.subr.bf16.mxu0 %v17448_v19 }
 0xa7a   :  { %16335 = vmatpush3.bf16.msra.mxu0 %v17448_v19 }
 0xa7b   :  { %16336 = vmatprep.subr.bf16.mxu0 %v17449_v25 }
 0xa7d   :  { %6680 = vmatmul.mubr.bf16.gmra.mxu0 %v17462_v56 }
 0xa7e   :  { %16337 = vmatpush3.bf16.msra.mxu0 %v17449_v25  ;;  %v20740_v25 = vpop.f32.mrf.mxu1 }
 0xa7f   :  { %16338 = vmatprep.subr.bf16.mxu0 %v17450_v32 }
 0xa82   :  { %16339 = vmatpush3.bf16.msra.mxu0 %v17450_v32  ;;  %v23200_v32 = vld [vmem:[#allocation17_spill] sm:$0xff] }
 0xa83   :  { %16340 = vmatprep.subr.bf16.mxu0 %v17451_v11 }
 0xa86   :  { %16341 = vmatpush3.bf16.msra.mxu0 %v17451_v11 }
 0xa87   :  { %16342 = vmatprep.subr.bf16.mxu0 %v17452_v55 }
 0xa8a   :  { %16343 = vmatpush3.bf16.msra.mxu0 %v17452_v55  ;;  %v17470_v55 = vld [vmem:[%s22907_s3 + $0xa64] ss:$16 sps:$4 sm:$0xff]  }
 0xa8b   :  { %15128 = vmatprep.subr.bf16.mxu0 %v23188_v27  ;;  %6687 = vmatprep.mubr.bf16.mxu0 %v17470_v55 }
 0xab5   :  { %v16282_v52 = vpop.f32.mrf.mxu0 }
 0xab6   :  { %v20704_v7 = vadd.f32 %v16282_v52, %v23189_v9  ;;  %v17468_v52 = vld [vmem:[%s22907_s3 + $0xa60] ss:$16 sps:$4 sm:$0xff]   ;;  %v20751_v9 = vpop.f32.mrf.mxu1 }
 0xab7   :  { %v5786_v54 = vpop.f32.mrf.mxu0  ;;  %6688 = vmatmul.mubr.bf16.gmra.mxu0 %v17468_v52  ;;  %v17480_v52 = vld [vmem:[%s22907_s3 + $0xaa0] ss:$16 sps:$4 sm:$0xff]  }
 0xab8   :  { %23190 = vst [vmem:[#allocation9_spill] sm:$0xff] %v20704_v7  ;;  %v20707_v59 = vadd.f32 %v5786_v54, %v23191_v48  ;;  %v20753_v54 = vpop.f32.mrf.mxu1  ;;  %v17476_v48 = vld [vmem:[%s22907_s3 + $0xa84] ss:$16 sps:$4 sm:$0xff]  }
 0xab9   :  { %v16283_v34 = vpop.f32.mrf.mxu0  ;;  %6695 = vmatprep.mubr.bf16.mxu0 %v17476_v48  ;;  %v17482_v48 = vld [vmem:[%s22907_s3 + $0xaa4] ss:$16 sps:$4 sm:$0xff]  }
 0xaba   :  { %23192 = vst [vmem:[#allocation10_spill] sm:$0xff] %v20707_v59  ;;  %v20712_v24 = vadd.f32 %v16283_v34, %v23193_v29  ;;  %v17474_v29 = vld [vmem:[%s22907_s3 + $0xa80] ss:$16 sps:$4 sm:$0xff]   ;;  %v20763_v61 = vpop.f32.mrf.mxu1 }
 0xabb   :  { %v20727_v37 = vpop.f32.mrf.mxu0 }
 0xabc   :  { %23194 = vst [vmem:[#allocation4_spill] sm:$0xff] %v20712_v24  ;;  %23195 = vst [vmem:[#allocation51_spill] sm:$0xff] %v20727_v37  ;;  %v23212_v37 = vld [vmem:[#allocation24_spill] sm:$0xff] }
 0xabf   :  { %6696 = vmatmul.mubr.bf16.gmra.mxu0 %v17474_v29 }
 0xac0   :  { %6703 = vmatprep.mubr.bf16.mxu0 %v17482_v48  ;;  %v23210_v48 = vld [vmem:[#allocation23_spill] sm:$0xff] }
 0xac5   :  { %v16286_v30 = vpop.f32.mrf.mxu0 }
 0xac6   :  { %v20735_v13 = vadd.f32 %v16286_v30, %v23196_v62  ;;  %v23205_v62 = vld [vmem:[#allocation20_spill] sm:$0xff] }
 0xac7   :  { %v5802_v53 = vpop.f32.mrf.mxu0  ;;  %6704 = vmatmul.mubr.bf16.gmra.mxu0 %v17480_v52 }
 0xac8   :  { %23197 = vst [vmem:[#allocation12_spill] sm:$0xff] %v20735_v13  ;;  %v20738_v2 = vadd.f32 %v5802_v53, %v23198_v45 }
 0xac9   :  { %v16287_v19 = vpop.f32.mrf.mxu0 }
 0xaca   :  { %23199 = vst [vmem:[#allocation13_spill] sm:$0xff] %v20738_v2  ;;  %v20743_v11 = vadd.f32 %v16287_v19, %v23200_v32  ;;  %v20771_v19 = vpop.f32.mrf.mxu1  ;;  %v23207_v32 = vld [vmem:[#allocation21_spill] sm:$0xff] }
 0xacb   :  { %v20758_v34 = vpop.f32.mrf.mxu0 }
 0xacc   :  { %23201 = vst [vmem:[#allocation17_spill] sm:$0xff] %v20743_v11  ;;  %23202 = vst [vmem:[#allocation52_spill] sm:$0xff] %v20758_v34  ;;  %v20782_v29 = vpop.f32.mrf.mxu1  ;;  %v23214_v11 = vld [vmem:[#allocation25_spill] sm:$0xff] }
 0xad5   :  { %v16290_v3 = vpop.f32.mrf.mxu0 }
 0xad6   :  { %v20766_v56 = vadd.f32 %v16290_v3, %v23203_v42  ;;  %v20784_v3 = vpop.f32.mrf.mxu1  ;;  %v17486_v42 = vld [vmem:[%s22907_s3 + $0xac0] ss:$16 sps:$4 sm:$0xff]  }
 0xad7   :  { %v5818_v30 = vpop.f32.mrf.mxu0 }
 0xad8   :  { %23204 = vst [vmem:[#allocation19_spill] sm:$0xff] %v20766_v56  ;;  %v20769_v53 = vadd.f32 %v5818_v30, %v23205_v62  ;;  %v17488_v30 = vld [vmem:[%s22907_s3 + $0xac4] ss:$16 sps:$4 sm:$0xff]  }
 0xad9   :  { %v16291_v45 = vpop.f32.mrf.mxu0  ;;  %6711 = vmatprep.mubr.bf16.mxu0 %v17488_v30  ;;  %v17492_v30 = vld [vmem:[%s22907_s3 + $0xae0] ss:$16 sps:$4 sm:$0xff]  }
 0xada   :  { %23206 = vst [vmem:[#allocation20_spill] sm:$0xff] %v20769_v53  ;;  %v20774_v55 = vadd.f32 %v16291_v45, %v23207_v32  ;;  %v20794_v32 = vpop.f32.mrf.mxu1  ;;  %6712 = vmatmul.mubr.bf16.gmra.mxu0 %v17486_v42  ;;  %v17494_v42 = vld [vmem:[%s22907_s3 + $0xae4] ss:$16 sps:$4 sm:$0xff]  }
 0xadb   :  { %v20792_v62 = vpop.f32.mrf.mxu0  ;;  %6719 = vmatprep.mubr.bf16.mxu0 %v17494_v42 }
 0xadc   :  { %23208 = vst [vmem:[#allocation21_spill] sm:$0xff] %v20774_v55  ;;  %23209 = vst [vmem:[#allocation53_spill] sm:$0xff] %v20792_v62  ;;  %v14814_v56 = vpop.f32.mrf.mxu1 }
 0xae2   :  { %6720 = vmatmul.mubr.bf16.gmra.mxu0 %v17492_v30 }
 0xae5   :  { %v16294_v45 = vpop.f32.mrf.mxu0 }
 0xae6   :  { %v20797_v34 = vadd.f32 %v16294_v45, %v23210_v48  ;;  %v20813_v48 = vpop.f32.mrf.mxu1 }
 0xae7   :  { %v5834_v52 = vpop.f32.mrf.mxu0 }
 0xae8   :  { %23211 = vst [vmem:[#allocation23_spill] sm:$0xff] %v20797_v34  ;;  %v20800_v55 = vadd.f32 %v5834_v52, %v23212_v37  ;;  %v14797_v34 = vadd.f32 %v20709_v39, %v20701_v46 }
 0xae9   :  { %v16295_v53 = vpop.f32.mrf.mxu0 }
 0xaea   :  { %23213 = vst [vmem:[#allocation24_spill] sm:$0xff] %v20800_v55  ;;  %v20803_v2 = vadd.f32 %v16295_v53, %v23214_v11  ;;  %v20815_v55 = vpop.f32.mrf.mxu1 }
 0xaeb   :  { %v20811_v62 = vpop.f32.mrf.mxu0 }
 0xaec   :  { %23215 = vst [vmem:[#allocation25_spill] sm:$0xff] %v20803_v2  ;;  %23216 = vst [vmem:[#allocation54_spill] sm:$0xff] %v20811_v62  ;;  %v14794_v2 = vadd.f32 %v20699_v1, %v20697_v58  ;;  %v14819_v62 = vpop.f32.mrf.mxu1  ;;  %v14803_v58 = vadd.f32 %v20740_v25, %v20732_v57 }
 0xaed   :  { %v14856_v45 = vpop.f32.mrf.mxu0 }
 0xaee   :  { %v14820_v12 = vpop.f32.mrf.mxu1 }
 0xaef   :  { %v14857_v37 = vpop.f32.mrf.mxu0 }
 0xaf0   :  { %v14858_v11 = vadd.f32 %v14857_v37, %v14856_v45  ;;  %v14800_v45 = vadd.f32 %v20722_v21, %v20720_v44  ;;  %v20825_v39 = vpop.f32.mrf.mxu1 }
 0xaf1   :  { %v14859_v52 = vpop.f32.mrf.mxu0 }
 0xaf2   :  { %v6190_v42 = vadd.f32 %v14858_v11, %v14794_v2 }
 0xaf3   :  { %v14860_v53 = vpop.f32.mrf.mxu0 }
 0xaf4   :  { %v14861_v13 = vadd.f32 %v14860_v53, %v14859_v52  ;;  %v14823_v52 = vpop.f32.mrf.mxu1 }
 0xaf5   :  { %v14862_v24 = vpop.f32.mrf.mxu0 }
 0xaf6   :  { %v6193_v59 = vadd.f32 %v14861_v13, %v14797_v34  ;;  %v14825_v44 = vpop.f32.mrf.mxu1 }
 0xaf7   :  { %v14863_v7 = vpop.f32.mrf.mxu0 }
 0xaf8   :  { %v6252_v27 = vpack.c.bf16 %v6193_v59, %v6190_v42  ;;  %v14864_v23 = vadd.f32 %v14863_v7, %v14862_v24  ;;  %v14806_v7 = vadd.f32 %v20753_v54, %v20751_v9  ;;  %v14812_v54 = vadd.f32 %v20784_v3, %v20782_v29 }
 0xaf9   :  { %v14865_v30 = vpop.f32.mrf.mxu0  ;;  %v14818_v29 = vadd.f32 %v20815_v55, %v20813_v48  ;;  %v14821_v3 = vadd.f32 %v14820_v12, %v14819_v62  ;;  %v14824_v55 = vadd.f32 %v14823_v52, %v20825_v39 }
 0xafa   :  { %16312 = vmatprep.mubr.bf16.mxu1 %v6252_v27  ;;  %v6198_v37 = vadd.f32 %v14864_v23, %v14800_v45 }
 0xafb   :  { %v14866_v31 = vpop.f32.mrf.mxu0 }
 0xafc   :  { %v14867_v1 = vadd.f32 %v14866_v31, %v14865_v30  ;;  %v14809_v31 = vadd.f32 %v20771_v19, %v20763_v61  ;;  %v14826_v30 = vpop.f32.mrf.mxu1  ;;  %v14815_v61 = vadd.f32 %v14814_v56, %v20794_v32 }
 0xafd   :  { %v14868_v46 = vpop.f32.mrf.mxu0  ;;  %v14827_v62 = vadd.f32 %v14826_v30, %v14825_v44 }
 0xafe   :  { %v6201_v2 = vadd.f32 %v14867_v1, %v14803_v58  ;;  %v14828_v1 = vpop.f32.mrf.mxu1 }
 0xaff   :  { %v14869_v13 = vpop.f32.mrf.mxu0 }
 0xb00   :  { %v6253_v34 = vpack.c.bf16 %v6201_v2, %v6198_v37  ;;  %v14870_v11 = vadd.f32 %v14869_v13, %v14868_v46 }
 0xb01   :  { %v14871_v59 = vpop.f32.mrf.mxu0 }
 0xb02   :  { %16313 = vmatmul.mubr.bf16.vlgmr.msra.gmra.mxu1 %v6253_v34  ;;  %v6206_v21 = vadd.f32 %v14870_v11, %v14806_v7 }
 0xb03   :  { %14985 = vmatpush3.bf16.msra.mxu1 %v18369_v18  ;;  %v14872_v27 = vpop.f32.mrf.mxu0 }
 0xb04   :  { %v14873_v24 = vadd.f32 %v14872_v27, %v14871_v59  ;;  %14986 = vmatprep.subr.bf16.mxu1 %v18374_v22  ;;  %v14829_v59 = vpop.f32.mrf.mxu1 }
 0xb05   :  { %v14874_v23 = vpop.f32.mrf.mxu0  ;;  %v14830_v39 = vadd.f32 %v14829_v59, %v14828_v1  ;;  %v17455_v1 = vld [vmem:[%s22907_s3 + $0xa0c] ss:$16 sps:$4 sm:$0xff]  }
 0xb06   :  { %v6209_v57 = vadd.f32 %v14873_v24, %v14809_v31  ;;  %v14831_v7 = vpop.f32.mrf.mxu1 }
 0xb07   :  { %14987 = vmatpush3.bf16.msra.mxu1 %v18389_v14  ;;  %v14875_v25 = vpop.f32.mrf.mxu0 }
 0xb08   :  { %14988 = vmatprep.subr.bf16.mxu1 %v18396_v35  ;;  %v6254_v53 = vpack.c.bf16 %v6209_v57, %v6206_v21  ;;  %v14876_v45 = vadd.f32 %v14875_v25, %v14874_v23  ;;  %v14832_v25 = vpop.f32.mrf.mxu1 }
 0xb09   :  { %v14877_v42 = vpop.f32.mrf.mxu0  ;;  %v14833_v52 = vadd.f32 %v14832_v25, %v14831_v7  ;;  %v17453_v7 = vld [vmem:[%s22907_s3 + $0xa08] ss:$16 sps:$4 sm:$0xff]   ;;  %v17461_v25 = vld [vmem:[%s22907_s3 + $0xa2c] ss:$16 sps:$4 sm:$0xff]  }
 0xb0a   :  { %16316 = vmatprep.mubr.bf16.mxu1 %v6254_v53  ;;  %v6214_v46 = vadd.f32 %v14876_v45, %v14812_v54  ;;  %v14834_v45 = vpop.f32.mrf.mxu1 }
 0xb0b   :  { %14989 = vmatpush3.bf16.msra.mxu1 %v18407_v33  ;;  %v14878_v9 = vpop.f32.mrf.mxu0 }
 0xb0c   :  { %v14879_v19 = vadd.f32 %v14878_v9, %v14877_v42  ;;  %14990 = vmatprep.subr.bf16.mxu1 %v18411_v6 }
 0xb0d   :  { %v14880_v58 = vpop.f32.mrf.mxu0 }
 0xb0e   :  { %v6217_v37 = vadd.f32 %v14879_v19, %v14815_v61 }
 0xb0f   :  { %14991 = vmatpush3.bf16.msra.mxu1 %v18425_v0  ;;  %v14881_v2 = vpop.f32.mrf.mxu0 }
 0xb10   :  { %v6255_v13 = vpack.c.bf16 %v6217_v37, %v6214_v46  ;;  %14992 = vmatprep.subr.bf16.mxu1 %v18432_v60  ;;  %v14882_v11 = vadd.f32 %v14881_v2, %v14880_v58  ;;  %v14835_v46 = vpop.f32.mrf.mxu1 }
 0xb11   :  { %v14883_v34 = vpop.f32.mrf.mxu0 }
 0xb12   :  { %16317 = vmatmul.mubr.bf16.gmra.mxu1 %v6255_v13  ;;  %v6222_v31 = vadd.f32 %v14882_v11, %v14818_v29  ;;  %v14837_v13 = vpop.f32.mrf.mxu1 }
 0xb13   :  { %14993 = vmatpush3.bf16.msra.mxu1 %v18196_v40  ;;  %v14884_v56 = vpop.f32.mrf.mxu0 }
 0xb14   :  { %v14885_v32 = vadd.f32 %v14884_v56, %v14883_v34  ;;  %14994 = vmatprep.subr.bf16.mxu1 %v18445_v36 }
 0xb15   :  { %v14886_v27 = vpop.f32.mrf.mxu0 }
 0xb16   :  { %v6225_v24 = vadd.f32 %v14885_v32, %v14821_v3  ;;  %v14838_v32 = vpop.f32.mrf.mxu1 }
 0xb17   :  { %14995 = vmatpush3.bf16.msra.mxu1 %v18459_v5  ;;  %v14887_v23 = vpop.f32.mrf.mxu0 }
 0xb18   :  { %14996 = vmatprep.subr.bf16.mxu1 %v18466_v10  ;;  %v6256_v21 = vpack.c.bf16 %v6225_v24, %v6222_v31  ;;  %v14888_v53 = vadd.f32 %v14887_v23, %v14886_v27  ;;  %v14836_v24 = vadd.f32 %v14835_v46, %v14834_v45  ;;  %v14839_v23 = vadd.f32 %v14838_v32, %v14837_v13  ;;  %v17479_v45 = vld [vmem:[%s22907_s3 + $0xa8c] ss:$16 sps:$4 sm:$0xff]   ;;  %v17498_v13 = vld [vmem:[%s22907_s3 + $0xb00] ss:$16 sps:$4 sm:$0xff]  }
 0xb19   :  { %v14889_v57 = vpop.f32.mrf.mxu0  ;;  %v17485_v46 = vld [vmem:[%s22907_s3 + $0xaac] ss:$16 sps:$4 sm:$0xff]  }
 0xb1a   :  { %16320 = vmatprep.mubr.bf16.mxu1 %v6256_v21  ;;  %v6230_v9 = vadd.f32 %v14888_v53, %v14824_v55  ;;  %v17467_v55 = vld [vmem:[%s22907_s3 + $0xa4c] ss:$16 sps:$4 sm:$0xff]  }
 0xb1b   :  { %14997 = vmatpush3.bf16.msra.mxu1 %v18162_v20  ;;  %v14890_v12 = vpop.f32.mrf.mxu0  ;;  %v17507_v32 = vld [vmem:[%s22908_s4 + $0x2c8] sm:$0xff]  }
 0xb1c   :  { %v14891_v48 = vadd.f32 %v14890_v12, %v14889_v57  ;;  %14998 = vmatprep.subr.bf16.mxu1 %v18473_v51  ;;  %v17459_v12 = vld [vmem:[%s22907_s3 + $0xa28] ss:$16 sps:$4 sm:$0xff]  }
 0xb1d   :  { %v14892_v42 = vpop.f32.mrf.mxu0 }
 0xb1e   :  { %v6233_v54 = vadd.f32 %v14891_v48, %v14827_v62  ;;  %v17465_v62 = vld [vmem:[%s22907_s3 + $0xa48] ss:$16 sps:$4 sm:$0xff]   ;;  %v17473_v48 = vld [vmem:[%s22907_s3 + $0xa6c] ss:$16 sps:$4 sm:$0xff]  }
 0xb1f   :  { %14999 = vmatpush3.bf16.msra.mxu1 %v18480_v15  ;;  %v14893_v61 = vpop.f32.mrf.mxu0 }
 0xb20   :  { %v6257_v19 = vpack.c.bf16 %v6233_v54, %v6230_v9  ;;  %15064 = vmatprep.subr.bf16.mxu1 %v18125_v38  ;;  %v14894_v37 = vadd.f32 %v14893_v61, %v14892_v42  ;;  %v17471_v42 = vld [vmem:[%s22907_s3 + $0xa68] ss:$16 sps:$4 sm:$0xff]   ;;  %v23217_v9 = vld [vmem:[#allocation3_spill] sm:$0xff] }
 0xb21   :  { %v14895_v58 = vpop.f32.mrf.mxu0  ;;  %v23218_v54 = vld [vmem:[#allocation14_spill] sm:$0xff] }
 0xb22   :  { %16321 = vmatmul.mubr.bf16.gmra.mxu1 %v6257_v19  ;;  %v6238_v34 = vadd.f32 %v14894_v37, %v14830_v39  ;;  %v17501_v61 = vld [vmem:[%s22908_s4 + $0x2f8] sm:$0xff]  }
 0xb23   :  { %v14896_v2 = vpop.f32.mrf.mxu0  ;;  %v17477_v19 = vld [vmem:[%s22907_s3 + $0xa88] ss:$16 sps:$4 sm:$0xff]  }
 0xb24   :  { %v14897_v44 = vadd.f32 %v14896_v2, %v14895_v58  ;;  %v23219_v58 = vld [vmem:[#allocation15_spill] sm:$0xff]  ;;  %v17483_v37 = vld [vmem:[%s22907_s3 + $0xaa8] ss:$16 sps:$4 sm:$0xff]   ;;  %v17491_v2 = vld [vmem:[%s22907_s3 + $0xacc] ss:$16 sps:$4 sm:$0xff]  }
 0xb25   :  { %v14898_v30 = vpop.f32.mrf.mxu0  ;;  %v17489_v39 = vld [vmem:[%s22907_s3 + $0xac8] ss:$16 sps:$4 sm:$0xff]  }
 0xb26   :  { %v6241_v11 = vadd.f32 %v14897_v44, %v14833_v52  ;;  %v17497_v52 = vld [vmem:[%s22907_s3 + $0xaec] ss:$16 sps:$4 sm:$0xff]   ;;  %v17495_v44 = vld [vmem:[%s22907_s3 + $0xae8] ss:$16 sps:$4 sm:$0xff]  }
 0xb27   :  { %v14899_v56 = vpop.f32.mrf.mxu0 }
 0xb28   :  { %v6258_v29 = vpack.c.bf16 %v6241_v11, %v6238_v34  ;;  %v14900_v27 = vadd.f32 %v14899_v56, %v14898_v30  ;;  %v17500_v30 = vld [vmem:[%s22907_s3 + $0xb04] ss:$16 sps:$4 sm:$0xff]   ;;  %v17503_v11 = vld [vmem:[%s22908_s4 + $0x2e8] sm:$0xff]  }
 0xb29   :  { %v14901_v3 = vpop.f32.mrf.mxu0  ;;  %v17502_v34 = vld [vmem:[%s22908_s4 + $0x2f0] sm:$0xff]   ;;  %v17504_v56 = vld [vmem:[%s22908_s4 + $0x2e0] sm:$0xff]  }
 0xb2a   :  { %16324 = vmatprep.mubr.bf16.mxu1 %v6258_v29  ;;  %v6246_v57 = vadd.f32 %v14900_v27, %v14836_v24  ;;  %v17505_v29 = vld [vmem:[%s22908_s4 + $0x2d8] sm:$0xff]   ;;  %v17508_v27 = vld [vmem:[%s22908_s4 + $0x2c0] sm:$0xff]  }
 0xb2b   :  { %v14902_v31 = vpop.f32.mrf.mxu0 }
 0xb2c   :  { %v14903_v21 = vadd.f32 %v14902_v31, %v14901_v3  ;;  %v17506_v3 = vld [vmem:[%s22908_s4 + $0x2d0] sm:$0xff]   ;;  %v23220_v31 = vld [vmem:[#allocation16_spill] sm:$0xff] }
 0xb2d   :  { %v20947_v24 = vpop.f32.mrf.mxu0 }
 0xb2e   :  { %v6249_v53 = vadd.f32 %v14903_v21, %v14839_v23 }
 0xb2f   :  { %v20949_v23 = vpop.f32.mrf.mxu0 }
 0xb30   :  { %v6259_v59 = vpack.c.bf16 %v6249_v53, %v6246_v57  ;;  %v23221_v53 = vld [vmem:[#allocation9_spill] sm:$0xff] }
 0xb31   :  { %v20951_v57 = vpop.f32.mrf.mxu0 }
 0xb32   :  { %16325 = vmatmul.mubr.bf16.gmra.mxu1 %v6259_v59 }
 0xb33   :  { %6760 = vmatprep.mubr.bf16.mxu1 %v17455_v1 }
 0xb3a   :  { %6761 = vmatmul.mubr.bf16.vlgmr.msra.gmra.mxu1 %v17453_v7  ;;  %v23223_v7 = vld [vmem:[#allocation10_spill] sm:$0xff] }
 0xb3b   :  { %15065 = vmatpush3.bf16.msra.mxu1 %v18128_v41  ;;  %6768 = vmatprep.mubr.bf16.mxu1 %v17461_v25 }
 0xb3c   :  { %15066 = vmatprep.subr.bf16.mxu1 %v18133_v47 }
 0xb3f   :  { %15067 = vmatpush3.bf16.msra.mxu1 %v22960_v8 }
 0xb40   :  { %15068 = vmatprep.subr.bf16.mxu1 %v22961_v63 }
 0xb42   :  { %6769 = vmatmul.mubr.bf16.gmra.mxu1 %v17459_v12 }
 0xb43   :  { %15069 = vmatpush3.bf16.msra.mxu1 %v22962_v49  ;;  %6776 = vmatprep.mubr.bf16.mxu1 %v17467_v55  ;;  %v20959_v55 = vpop.f32.mrf.mxu0 }
 0xb44   :  { %15070 = vmatprep.subr.bf16.mxu1 %v22963_v28 }
 0xb47   :  { %15071 = vmatpush3.bf16.msra.mxu1 %v22964_v26 }
 0xb48   :  { %15072 = vmatprep.subr.bf16.mxu1 %v22965_v16 }
 0xb4a   :  { %6777 = vmatmul.mubr.bf16.gmra.mxu1 %v17465_v62  ;;  %v23225_v62 = vld [vmem:[#allocation4_spill] sm:$0xff] }
 0xb4b   :  { %15073 = vmatpush3.bf16.msra.mxu1 %v22966_v17  ;;  %6784 = vmatprep.mubr.bf16.mxu1 %v17473_v48 }
 0xb4c   :  { %15074 = vmatprep.subr.bf16.mxu1 %v22967_v4 }
 0xb4f   :  { %15075 = vmatpush3.bf16.msra.mxu1 %v22968_v50 }
 0xb50   :  { %15076 = vmatprep.subr.bf16.mxu1 %v22969_v43 }
 0xb52   :  { %6785 = vmatmul.mubr.bf16.gmra.mxu1 %v17471_v42  ;;  %v17514_v42 = vld [vmem:[%s22907_s3 + $0xb24] ss:$16 sps:$4 sm:$0xff]  }
 0xb53   :  { %15077 = vmatpush3.bf16.msra.mxu1 %v23217_v9  ;;  %6792 = vmatprep.mubr.bf16.mxu1 %v17479_v45  ;;  %v17512_v45 = vld [vmem:[%s22907_s3 + $0xb20] ss:$16 sps:$4 sm:$0xff]  }
 0xb54   :  { %15078 = vmatprep.subr.bf16.mxu1 %v23218_v54 }
 0xb57   :  { %15079 = vmatpush3.bf16.msra.mxu1 %v23219_v58 }
 0xb58   :  { %16360 = vmatprep.subr.bf16.mxu1 %v17501_v61 }
 0xb5a   :  { %6793 = vmatmul.mubr.bf16.gmra.mxu1 %v17477_v19 }
 0xb5b   :  { %6800 = vmatprep.mubr.bf16.mxu1 %v17485_v46  ;;  %v17520_v46 = vld [vmem:[%s22907_s3 + $0xb44] ss:$16 sps:$4 sm:$0xff]  }
 0xb62   :  { %6801 = vmatmul.mubr.bf16.gmra.mxu1 %v17483_v37 }
 0xb63   :  { %6808 = vmatprep.mubr.bf16.mxu1 %v17491_v2  ;;  %v17518_v2 = vld [vmem:[%s22907_s3 + $0xb40] ss:$16 sps:$4 sm:$0xff]  }
 0xb6a   :  { %6809 = vmatmul.mubr.bf16.gmra.mxu1 %v17489_v39 }
 0xb6b   :  { %6816 = vmatprep.mubr.bf16.mxu1 %v17497_v52 }
 0xb72   :  { %6817 = vmatmul.mubr.bf16.gmra.mxu1 %v17495_v44  ;;  %v23228_v44 = vld [vmem:[#allocation12_spill] sm:$0xff] }
 0xb73   :  { %7236 = vmatprep.mubr.bf16.mxu1 %v17500_v30 }
 0xb7a   :  { %7237 = vmatmul.mubr.bf16.vlgmr.msra.gmra.mxu1 %v17498_v13 }
 0xb7b   :  { %16361 = vmatpush3.bf16.msra.mxu1 %v17501_v61  ;;  %7244 = vmatprep.mubr.bf16.mxu1 %v17514_v42  ;;  %v20970_v61 = vpop.f32.mrf.mxu0 }
 0xb7c   :  { %16362 = vmatprep.subr.bf16.mxu1 %v17502_v34 }
 0xb7d   :  { %v20972_v19 = vpop.f32.mrf.mxu0 }
 0xb7f   :  { %16363 = vmatpush3.bf16.msra.mxu1 %v17502_v34  ;;  %v20982_v52 = vpop.f32.mrf.mxu0  ;;  %v23230_v34 = vld [vmem:[#allocation13_spill] sm:$0xff] }
 0xb80   :  { %16364 = vmatprep.subr.bf16.mxu1 %v17503_v11 }
 0xb82   :  { %7245 = vmatmul.mubr.bf16.gmra.mxu1 %v17512_v45 }
 0xb83   :  { %16365 = vmatpush3.bf16.msra.mxu1 %v17503_v11  ;;  %7252 = vmatprep.mubr.bf16.mxu1 %v17520_v46  ;;  %v23235_v46 = vld [vmem:[#allocation19_spill] sm:$0xff] }
 0xb84   :  { %16366 = vmatprep.subr.bf16.mxu1 %v17504_v56 }
 0xb87   :  { %16367 = vmatpush3.bf16.msra.mxu1 %v17504_v56 }
 0xb88   :  { %16368 = vmatprep.subr.bf16.mxu1 %v17505_v29 }
 0xb8a   :  { %7253 = vmatmul.mubr.bf16.gmra.mxu1 %v17518_v2 }
 0xb8b   :  { %16369 = vmatpush3.bf16.msra.mxu1 %v17505_v29  ;;  %v20990_v29 = vpop.f32.mrf.mxu0 }
 0xb8c   :  { %16370 = vmatprep.subr.bf16.mxu1 %v17506_v3 }
 0xb8f   :  { %16371 = vmatpush3.bf16.msra.mxu1 %v17506_v3  ;;  %v23232_v3 = vld [vmem:[#allocation17_spill] sm:$0xff] }
 0xb90   :  { %16372 = vmatprep.subr.bf16.mxu1 %v17507_v32 }
 0xb93   :  { %16373 = vmatpush3.bf16.msra.mxu1 %v17507_v32 }
 0xb94   :  { %16374 = vmatprep.subr.bf16.mxu1 %v17508_v27 }
 0xb97   :  { %16375 = vmatpush3.bf16.msra.mxu1 %v17508_v27  ;;  %v17526_v27 = vld [vmem:[%s22907_s3 + $0xb64] ss:$16 sps:$4 sm:$0xff]  }
 0xb98   :  { %15272 = vmatprep.subr.bf16.mxu1 %v23220_v31  ;;  %7260 = vmatprep.mubr.bf16.mxu1 %v17526_v27 }
 0xbc2   :  { %v16314_v21 = vpop.f32.mrf.mxu1 }
 0xbc3   :  { %v20954_v1 = vadd.f32 %v16314_v21, %v23221_v53  ;;  %v17524_v21 = vld [vmem:[%s22907_s3 + $0xb60] ss:$16 sps:$4 sm:$0xff]   ;;  %v21001_v53 = vpop.f32.mrf.mxu0 }
 0xbc4   :  { %v6359_v59 = vpop.f32.mrf.mxu1  ;;  %7261 = vmatmul.mubr.bf16.gmra.mxu1 %v17524_v21  ;;  %v17536_v21 = vld [vmem:[%s22907_s3 + $0xba0] ss:$16 sps:$4 sm:$0xff]  }
 0xbc5   :  { %23222 = vst [vmem:[#allocation9_spill] sm:$0xff] %v20954_v1  ;;  %v20957_v25 = vadd.f32 %v6359_v59, %v23223_v7  ;;  %v21003_v59 = vpop.f32.mrf.mxu0  ;;  %v17532_v7 = vld [vmem:[%s22907_s3 + $0xb84] ss:$16 sps:$4 sm:$0xff]  }
 0xbc6   :  { %v16315_v12 = vpop.f32.mrf.mxu1  ;;  %7268 = vmatprep.mubr.bf16.mxu1 %v17532_v7  ;;  %v17538_v7 = vld [vmem:[%s22907_s3 + $0xba4] ss:$16 sps:$4 sm:$0xff]  }
 0xbc7   :  { %23224 = vst [vmem:[#allocation10_spill] sm:$0xff] %v20957_v25  ;;  %v20962_v48 = vadd.f32 %v16315_v12, %v23225_v62  ;;  %v17530_v62 = vld [vmem:[%s22907_s3 + $0xb80] ss:$16 sps:$4 sm:$0xff]   ;;  %v21013_v45 = vpop.f32.mrf.mxu0 }
 0xbc8   :  { %v20977_v37 = vpop.f32.mrf.mxu1 }
 0xbc9   :  { %23226 = vst [vmem:[#allocation4_spill] sm:$0xff] %v20962_v48  ;;  %23227 = vst [vmem:[#allocation55_spill] sm:$0xff] %v20977_v37  ;;  %v23244_v37 = vld [vmem:[#allocation24_spill] sm:$0xff] }
 0xbcc   :  { %7269 = vmatmul.mubr.bf16.gmra.mxu1 %v17530_v62 }
 0xbcd   :  { %7276 = vmatprep.mubr.bf16.mxu1 %v17538_v7  ;;  %v23242_v7 = vld [vmem:[#allocation23_spill] sm:$0xff] }
 0xbd2   :  { %v16318_v39 = vpop.f32.mrf.mxu1 }
 0xbd3   :  { %v20985_v30 = vadd.f32 %v16318_v39, %v23228_v44  ;;  %v23237_v44 = vld [vmem:[#allocation20_spill] sm:$0xff] }
 0xbd4   :  { %v6375_v13 = vpop.f32.mrf.mxu1  ;;  %7277 = vmatmul.mubr.bf16.gmra.mxu1 %v17536_v21 }
 0xbd5   :  { %23229 = vst [vmem:[#allocation12_spill] sm:$0xff] %v20985_v30  ;;  %v20988_v11 = vadd.f32 %v6375_v13, %v23230_v34 }
 0xbd6   :  { %v16319_v56 = vpop.f32.mrf.mxu1 }
 0xbd7   :  { %23231 = vst [vmem:[#allocation13_spill] sm:$0xff] %v20988_v11  ;;  %v20993_v32 = vadd.f32 %v16319_v56, %v23232_v3  ;;  %v21021_v56 = vpop.f32.mrf.mxu0  ;;  %v23239_v3 = vld [vmem:[#allocation21_spill] sm:$0xff] }
 0xbd8   :  { %v21008_v12 = vpop.f32.mrf.mxu1 }
 0xbd9   :  { %23233 = vst [vmem:[#allocation17_spill] sm:$0xff] %v20993_v32  ;;  %23234 = vst [vmem:[#allocation56_spill] sm:$0xff] %v21008_v12  ;;  %v21032_v62 = vpop.f32.mrf.mxu0  ;;  %v23246_v32 = vld [vmem:[#allocation25_spill] sm:$0xff] }
 0xbe2   :  { %v16322_v42 = vpop.f32.mrf.mxu1 }
 0xbe3   :  { %v21016_v2 = vadd.f32 %v16322_v42, %v23235_v46  ;;  %v21034_v42 = vpop.f32.mrf.mxu0  ;;  %v17542_v46 = vld [vmem:[%s22907_s3 + $0xbc0] ss:$16 sps:$4 sm:$0xff]  }
 0xbe4   :  { %v6391_v39 = vpop.f32.mrf.mxu1 }
 0xbe5   :  { %23236 = vst [vmem:[#allocation19_spill] sm:$0xff] %v21016_v2  ;;  %v21019_v13 = vadd.f32 %v6391_v39, %v23237_v44  ;;  %v17544_v39 = vld [vmem:[%s22907_s3 + $0xbc4] ss:$16 sps:$4 sm:$0xff]  }
 0xbe6   :  { %v16323_v34 = vpop.f32.mrf.mxu1  ;;  %7284 = vmatprep.mubr.bf16.mxu1 %v17544_v39  ;;  %v17548_v39 = vld [vmem:[%s22907_s3 + $0xbe0] ss:$16 sps:$4 sm:$0xff]  }
 0xbe7   :  { %23238 = vst [vmem:[#allocation20_spill] sm:$0xff] %v21019_v13  ;;  %v21024_v27 = vadd.f32 %v16323_v34, %v23239_v3  ;;  %v21044_v3 = vpop.f32.mrf.mxu0  ;;  %7285 = vmatmul.mubr.bf16.gmra.mxu1 %v17542_v46  ;;  %v17550_v46 = vld [vmem:[%s22907_s3 + $0xbe4] ss:$16 sps:$4 sm:$0xff]  }
 0xbe8   :  { %v21042_v44 = vpop.f32.mrf.mxu1  ;;  %7292 = vmatprep.mubr.bf16.mxu1 %v17550_v46 }
 0xbe9   :  { %23240 = vst [vmem:[#allocation21_spill] sm:$0xff] %v21024_v27  ;;  %23241 = vst [vmem:[#allocation57_spill] sm:$0xff] %v21042_v44  ;;  %v14958_v2 = vpop.f32.mrf.mxu0 }
 0xbef   :  { %7293 = vmatmul.mubr.bf16.gmra.mxu1 %v17548_v39 }
 0xbf2   :  { %v16326_v34 = vpop.f32.mrf.mxu1 }
 0xbf3   :  { %v21047_v12 = vadd.f32 %v16326_v34, %v23242_v7  ;;  %v21063_v7 = vpop.f32.mrf.mxu0 }
 0xbf4   :  { %v6407_v21 = vpop.f32.mrf.mxu1 }
 0xbf5   :  { %23243 = vst [vmem:[#allocation23_spill] sm:$0xff] %v21047_v12  ;;  %v21050_v27 = vadd.f32 %v6407_v21, %v23244_v37  ;;  %v14941_v12 = vadd.f32 %v20959_v55, %v20951_v57 }
 0xbf6   :  { %v16327_v13 = vpop.f32.mrf.mxu1 }
 0xbf7   :  { %23245 = vst [vmem:[#allocation24_spill] sm:$0xff] %v21050_v27  ;;  %v21053_v11 = vadd.f32 %v16327_v13, %v23246_v32  ;;  %v21065_v27 = vpop.f32.mrf.mxu0 }
 0xbf8   :  { %v21061_v44 = vpop.f32.mrf.mxu1 }
 0xbf9   :  { %23247 = vst [vmem:[#allocation25_spill] sm:$0xff] %v21053_v11  ;;  %23248 = vst [vmem:[#allocation58_spill] sm:$0xff] %v21061_v44  ;;  %v14938_v11 = vadd.f32 %v20949_v23, %v20947_v24  ;;  %v14963_v44 = vpop.f32.mrf.mxu0  ;;  %v14947_v24 = vadd.f32 %v20990_v29, %v20982_v52 }
 0xbfa   :  { %v15000_v34 = vpop.f32.mrf.mxu1 }
 0xbfb   :  { %v14964_v58 = vpop.f32.mrf.mxu0 }
 0xbfc   :  { %v15001_v37 = vpop.f32.mrf.mxu1 }
 0xbfd   :  { %v15002_v32 = vadd.f32 %v15001_v37, %v15000_v34  ;;  %v14944_v34 = vadd.f32 %v20972_v19, %v20970_v61  ;;  %v21075_v55 = vpop.f32.mrf.mxu0 }
 0xbfe   :  { %v15003_v21 = vpop.f32.mrf.mxu1 }
 0xbff   :  { %v6763_v46 = vadd.f32 %v15002_v32, %v14938_v11 }
 0xc00   :  { %v15004_v13 = vpop.f32.mrf.mxu1 }
 0xc01   :  { %v15005_v30 = vadd.f32 %v15004_v13, %v15003_v21  ;;  %v14967_v21 = vpop.f32.mrf.mxu0 }
 0xc02   :  { %v15006_v48 = vpop.f32.mrf.mxu1 }
 0xc03   :  { %v6766_v25 = vadd.f32 %v15005_v30, %v14941_v12  ;;  %v14969_v61 = vpop.f32.mrf.mxu0 }
 0xc04   :  { %v15007_v1 = vpop.f32.mrf.mxu1 }
 0xc05   :  { %v6825_v31 = vpack.c.bf16 %v6766_v25, %v6763_v46  ;;  %v15008_v54 = vadd.f32 %v15007_v1, %v15006_v48  ;;  %v14950_v1 = vadd.f32 %v21003_v59, %v21001_v53  ;;  %v14956_v59 = vadd.f32 %v21034_v42, %v21032_v62 }
 0xc06   :  { %v15009_v39 = vpop.f32.mrf.mxu1  ;;  %v14962_v62 = vadd.f32 %v21065_v27, %v21063_v7  ;;  %v14965_v42 = vadd.f32 %v14964_v58, %v14963_v44  ;;  %v14968_v27 = vadd.f32 %v14967_v21, %v21075_v55 }
 0xc07   :  { %16344 = vmatprep.mubr.bf16.mxu0 %v6825_v31  ;;  %v6771_v37 = vadd.f32 %v15008_v54, %v14944_v34 }
 0xc08   :  { %v15010_v9 = vpop.f32.mrf.mxu1 }
 0xc09   :  { %v15011_v23 = vadd.f32 %v15010_v9, %v15009_v39  ;;  %v14953_v9 = vadd.f32 %v21021_v56, %v21013_v45  ;;  %v14970_v39 = vpop.f32.mrf.mxu0  ;;  %v14959_v45 = vadd.f32 %v14958_v2, %v21044_v3 }
 0xc0a   :  { %v15012_v57 = vpop.f32.mrf.mxu1  ;;  %v14971_v44 = vadd.f32 %v14970_v39, %v14969_v61 }
 0xc0b   :  { %v6774_v11 = vadd.f32 %v15011_v23, %v14947_v24  ;;  %v14972_v23 = vpop.f32.mrf.mxu0 }
 0xc0c   :  { %v15013_v30 = vpop.f32.mrf.mxu1 }
 0xc0d   :  { %v6826_v12 = vpack.c.bf16 %v6774_v11, %v6771_v37  ;;  %v15014_v32 = vadd.f32 %v15013_v30, %v15012_v57 }
 0xc0e   :  { %v15015_v25 = vpop.f32.mrf.mxu1 }
 0xc0f   :  { %16345 = vmatmul.mubr.bf16.vlgmr.msra.gmra.mxu0 %v6826_v12  ;;  %v6779_v19 = vadd.f32 %v15014_v32, %v14950_v1 }
 0xc10   :  { %15129 = vmatpush3.bf16.msra.mxu0 %v18369_v18  ;;  %v15016_v31 = vpop.f32.mrf.mxu1 }
 0xc11   :  { %v15017_v48 = vadd.f32 %v15016_v31, %v15015_v25  ;;  %15130 = vmatprep.subr.bf16.mxu0 %v18374_v22  ;;  %v14973_v25 = vpop.f32.mrf.mxu0 }
 0xc12   :  { %v15018_v54 = vpop.f32.mrf.mxu1  ;;  %v14974_v55 = vadd.f32 %v14973_v25, %v14972_v23  ;;  %v17511_v23 = vld [vmem:[%s22907_s3 + $0xb0c] ss:$16 sps:$4 sm:$0xff]  }
 0xc13   :  { %v6782_v52 = vadd.f32 %v15017_v48, %v14953_v9  ;;  %v14975_v1 = vpop.f32.mrf.mxu0 }
 0xc14   :  { %15131 = vmatpush3.bf16.msra.mxu0 %v18389_v14  ;;  %v15019_v29 = vpop.f32.mrf.mxu1 }
 0xc15   :  { %15132 = vmatprep.subr.bf16.mxu0 %v18396_v35  ;;  %v6827_v13 = vpack.c.bf16 %v6782_v52, %v6779_v19  ;;  %v15020_v34 = vadd.f32 %v15019_v29, %v15018_v54  ;;  %v14976_v29 = vpop.f32.mrf.mxu0 }
 0xc16   :  { %v15021_v46 = vpop.f32.mrf.mxu1  ;;  %v14977_v21 = vadd.f32 %v14976_v29, %v14975_v1  ;;  %v17509_v1 = vld [vmem:[%s22907_s3 + $0xb08] ss:$16 sps:$4 sm:$0xff]   ;;  %v17517_v29 = vld [vmem:[%s22907_s3 + $0xb2c] ss:$16 sps:$4 sm:$0xff]  }
 0xc17   :  { %16348 = vmatprep.mubr.bf16.mxu0 %v6827_v13  ;;  %v6787_v57 = vadd.f32 %v15020_v34, %v14956_v59  ;;  %v14978_v34 = vpop.f32.mrf.mxu0 }
 0xc18   :  { %15133 = vmatpush3.bf16.msra.mxu0 %v18407_v33  ;;  %v15022_v53 = vpop.f32.mrf.mxu1 }
 0xc19   :  { %v15023_v56 = vadd.f32 %v15022_v53, %v15021_v46  ;;  %15134 = vmatprep.subr.bf16.mxu0 %v18411_v6 }
 0xc1a   :  { %v15024_v24 = vpop.f32.mrf.mxu1 }
 0xc1b   :  { %v6790_v37 = vadd.f32 %v15023_v56, %v14959_v45 }
 0xc1c   :  { %15135 = vmatpush3.bf16.msra.mxu0 %v18425_v0  ;;  %v15025_v11 = vpop.f32.mrf.mxu1 }
 0xc1d   :  { %v6828_v30 = vpack.c.bf16 %v6790_v37, %v6787_v57  ;;  %15136 = vmatprep.subr.bf16.mxu0 %v18432_v60  ;;  %v15026_v32 = vadd.f32 %v15025_v11, %v15024_v24  ;;  %v14979_v57 = vpop.f32.mrf.mxu0 }
 0xc1e   :  { %v15027_v12 = vpop.f32.mrf.mxu1 }
 0xc1f   :  { %16349 = vmatmul.mubr.bf16.gmra.mxu0 %v6828_v30  ;;  %v6795_v9 = vadd.f32 %v15026_v32, %v14962_v62  ;;  %v14981_v30 = vpop.f32.mrf.mxu0 }
 0xc20   :  { %15137 = vmatpush3.bf16.msra.mxu0 %v18196_v40  ;;  %v15028_v2 = vpop.f32.mrf.mxu1 }
 0xc21   :  { %v15029_v3 = vadd.f32 %v15028_v2, %v15027_v12  ;;  %15138 = vmatprep.subr.bf16.mxu0 %v18445_v36 }
 0xc22   :  { %v15030_v31 = vpop.f32.mrf.mxu1 }
 0xc23   :  { %v6798_v48 = vadd.f32 %v15029_v3, %v14965_v42  ;;  %v14982_v3 = vpop.f32.mrf.mxu0 }
 0xc24   :  { %15139 = vmatpush3.bf16.msra.mxu0 %v18459_v5  ;;  %v15031_v54 = vpop.f32.mrf.mxu1 }
 0xc25   :  { %15140 = vmatprep.subr.bf16.mxu0 %v18466_v10  ;;  %v6829_v19 = vpack.c.bf16 %v6798_v48, %v6795_v9  ;;  %v15032_v13 = vadd.f32 %v15031_v54, %v15030_v31  ;;  %v14980_v48 = vadd.f32 %v14979_v57, %v14978_v34  ;;  %v14983_v54 = vadd.f32 %v14982_v3, %v14981_v30  ;;  %v17535_v34 = vld [vmem:[%s22907_s3 + $0xb8c] ss:$16 sps:$4 sm:$0xff]   ;;  %v17554_v30 = vld [vmem:[%s22907_s3 + $0xc00] ss:$16 sps:$4 sm:$0xff]  }
 0xc26   :  { %v15033_v52 = vpop.f32.mrf.mxu1  ;;  %v17541_v57 = vld [vmem:[%s22907_s3 + $0xbac] ss:$16 sps:$4 sm:$0xff]  }
 0xc27   :  { %16352 = vmatprep.mubr.bf16.mxu0 %v6829_v19  ;;  %v6803_v53 = vadd.f32 %v15032_v13, %v14968_v27  ;;  %v17523_v27 = vld [vmem:[%s22907_s3 + $0xb4c] ss:$16 sps:$4 sm:$0xff]  }
 0xc28   :  { %15141 = vmatpush3.bf16.msra.mxu0 %v18162_v20  ;;  %v15034_v58 = vpop.f32.mrf.mxu1  ;;  %v17563_v3 = vld [vmem:[%s22908_s4 + $0x308] sm:$0xff]  }
 0xc29   :  { %v15035_v7 = vadd.f32 %v15034_v58, %v15033_v52  ;;  %15142 = vmatprep.subr.bf16.mxu0 %v18473_v51  ;;  %v17515_v58 = vld [vmem:[%s22907_s3 + $0xb28] ss:$16 sps:$4 sm:$0xff]  }
 0xc2a   :  { %v15036_v46 = vpop.f32.mrf.mxu1 }
 0xc2b   :  { %v6806_v59 = vadd.f32 %v15035_v7, %v14971_v44  ;;  %v17521_v44 = vld [vmem:[%s22907_s3 + $0xb48] ss:$16 sps:$4 sm:$0xff]   ;;  %v17529_v7 = vld [vmem:[%s22907_s3 + $0xb6c] ss:$16 sps:$4 sm:$0xff]  }
 0xc2c   :  { %15143 = vmatpush3.bf16.msra.mxu0 %v18480_v15  ;;  %v15037_v45 = vpop.f32.mrf.mxu1 }
 0xc2d   :  { %v6830_v56 = vpack.c.bf16 %v6806_v59, %v6803_v53  ;;  %15208 = vmatprep.subr.bf16.mxu0 %v18125_v38  ;;  %v15038_v37 = vadd.f32 %v15037_v45, %v15036_v46  ;;  %v17527_v46 = vld [vmem:[%s22907_s3 + $0xb68] ss:$16 sps:$4 sm:$0xff]   ;;  %v23249_v53 = vld [vmem:[#allocation3_spill] sm:$0xff] }
 0xc2e   :  { %v15039_v24 = vpop.f32.mrf.mxu1  ;;  %v23250_v59 = vld [vmem:[#allocation14_spill] sm:$0xff] }
 0xc2f   :  { %16353 = vmatmul.mubr.bf16.gmra.mxu0 %v6830_v56  ;;  %v6811_v12 = vadd.f32 %v15038_v37, %v14974_v55  ;;  %v17557_v45 = vld [vmem:[%s22908_s4 + $0x338] sm:$0xff]  }
 0xc30   :  { %v15040_v11 = vpop.f32.mrf.mxu1  ;;  %v17533_v56 = vld [vmem:[%s22907_s3 + $0xb88] ss:$16 sps:$4 sm:$0xff]  }
 0xc31   :  { %v15041_v61 = vadd.f32 %v15040_v11, %v15039_v24  ;;  %v23251_v24 = vld [vmem:[#allocation15_spill] sm:$0xff]  ;;  %v17539_v37 = vld [vmem:[%s22907_s3 + $0xba8] ss:$16 sps:$4 sm:$0xff]   ;;  %v17547_v11 = vld [vmem:[%s22907_s3 + $0xbcc] ss:$16 sps:$4 sm:$0xff]  }
 0xc32   :  { %v15042_v39 = vpop.f32.mrf.mxu1  ;;  %v17545_v55 = vld [vmem:[%s22907_s3 + $0xbc8] ss:$16 sps:$4 sm:$0xff]  }
 0xc33   :  { %v6814_v32 = vadd.f32 %v15041_v61, %v14977_v21  ;;  %v17553_v21 = vld [vmem:[%s22907_s3 + $0xbec] ss:$16 sps:$4 sm:$0xff]   ;;  %v17551_v61 = vld [vmem:[%s22907_s3 + $0xbe8] ss:$16 sps:$4 sm:$0xff]  }
 0xc34   :  { %v15043_v2 = vpop.f32.mrf.mxu1 }
 0xc35   :  { %v6831_v62 = vpack.c.bf16 %v6814_v32, %v6811_v12  ;;  %v15044_v31 = vadd.f32 %v15043_v2, %v15042_v39  ;;  %v17556_v39 = vld [vmem:[%s22907_s3 + $0xc04] ss:$16 sps:$4 sm:$0xff]   ;;  %v17559_v32 = vld [vmem:[%s22908_s4 + $0x328] sm:$0xff]  }
 0xc36   :  { %v15045_v42 = vpop.f32.mrf.mxu1  ;;  %v17558_v12 = vld [vmem:[%s22908_s4 + $0x330] sm:$0xff]   ;;  %v17560_v2 = vld [vmem:[%s22908_s4 + $0x320] sm:$0xff]  }
 0xc37   :  { %16356 = vmatprep.mubr.bf16.mxu0 %v6831_v62  ;;  %v6819_v52 = vadd.f32 %v15044_v31, %v14980_v48  ;;  %v17561_v62 = vld [vmem:[%s22908_s4 + $0x318] sm:$0xff]   ;;  %v17564_v31 = vld [vmem:[%s22908_s4 + $0x300] sm:$0xff]  }
 0xc38   :  { %v15046_v9 = vpop.f32.mrf.mxu1 }
 0xc39   :  { %v15047_v19 = vadd.f32 %v15046_v9, %v15045_v42  ;;  %v17562_v42 = vld [vmem:[%s22908_s4 + $0x310] sm:$0xff]   ;;  %v23252_v9 = vld [vmem:[#allocation16_spill] sm:$0xff] }
 0xc3a   :  { %v21197_v48 = vpop.f32.mrf.mxu1 }
 0xc3b   :  { %v6822_v13 = vadd.f32 %v15047_v19, %v14983_v54 }
 0xc3c   :  { %v21199_v54 = vpop.f32.mrf.mxu1 }
 0xc3d   :  { %v6832_v25 = vpack.c.bf16 %v6822_v13, %v6819_v52  ;;  %v23253_v13 = vld [vmem:[#allocation9_spill] sm:$0xff] }
 0xc3e   :  { %v21201_v52 = vpop.f32.mrf.mxu1 }
 0xc3f   :  { %16357 = vmatmul.mubr.bf16.gmra.mxu0 %v6832_v25 }
 0xc40   :  { %7333 = vmatprep.mubr.bf16.mxu0 %v17511_v23 }
 0xc47   :  { %7334 = vmatmul.mubr.bf16.vlgmr.msra.gmra.mxu0 %v17509_v1  ;;  %v23255_v1 = vld [vmem:[#allocation10_spill] sm:$0xff] }
 0xc48   :  { %15209 = vmatpush3.bf16.msra.mxu0 %v18128_v41  ;;  %7341 = vmatprep.mubr.bf16.mxu0 %v17517_v29 }
 0xc49   :  { %15210 = vmatprep.subr.bf16.mxu0 %v18133_v47 }
 0xc4c   :  { %15211 = vmatpush3.bf16.msra.mxu0 %v22960_v8 }
 0xc4d   :  { %15212 = vmatprep.subr.bf16.mxu0 %v22961_v63 }
 0xc4f   :  { %7342 = vmatmul.mubr.bf16.gmra.mxu0 %v17515_v58 }
 0xc50   :  { %15213 = vmatpush3.bf16.msra.mxu0 %v22962_v49  ;;  %7349 = vmatprep.mubr.bf16.mxu0 %v17523_v27  ;;  %v21209_v27 = vpop.f32.mrf.mxu1 }
 0xc51   :  { %15214 = vmatprep.subr.bf16.mxu0 %v22963_v28 }
 0xc54   :  { %15215 = vmatpush3.bf16.msra.mxu0 %v22964_v26 }
 0xc55   :  { %15216 = vmatprep.subr.bf16.mxu0 %v22965_v16 }
 0xc57   :  { %7350 = vmatmul.mubr.bf16.gmra.mxu0 %v17521_v44  ;;  %v23257_v44 = vld [vmem:[#allocation4_spill] sm:$0xff] }
 0xc58   :  { %15217 = vmatpush3.bf16.msra.mxu0 %v22966_v17  ;;  %7357 = vmatprep.mubr.bf16.mxu0 %v17529_v7 }
 0xc59   :  { %15218 = vmatprep.subr.bf16.mxu0 %v22967_v4 }
 0xc5c   :  { %15219 = vmatpush3.bf16.msra.mxu0 %v22968_v50 }
 0xc5d   :  { %15220 = vmatprep.subr.bf16.mxu0 %v22969_v43 }
 0xc5f   :  { %7358 = vmatmul.mubr.bf16.gmra.mxu0 %v17527_v46  ;;  %v17570_v46 = vld [vmem:[%s22907_s3 + $0xc24] ss:$16 sps:$4 sm:$0xff]  }
 0xc60   :  { %15221 = vmatpush3.bf16.msra.mxu0 %v23249_v53  ;;  %7365 = vmatprep.mubr.bf16.mxu0 %v17535_v34  ;;  %v17568_v34 = vld [vmem:[%s22907_s3 + $0xc20] ss:$16 sps:$4 sm:$0xff]  }
 0xc61   :  { %15222 = vmatprep.subr.bf16.mxu0 %v23250_v59 }
 0xc64   :  { %15223 = vmatpush3.bf16.msra.mxu0 %v23251_v24 }
 0xc65   :  { %16392 = vmatprep.subr.bf16.mxu0 %v17557_v45 }
 0xc67   :  { %7366 = vmatmul.mubr.bf16.gmra.mxu0 %v17533_v56 }
 0xc68   :  { %7373 = vmatprep.mubr.bf16.mxu0 %v17541_v57  ;;  %v17576_v57 = vld [vmem:[%s22907_s3 + $0xc44] ss:$16 sps:$4 sm:$0xff]  }
 0xc6f   :  { %7374 = vmatmul.mubr.bf16.gmra.mxu0 %v17539_v37 }
 0xc70   :  { %7381 = vmatprep.mubr.bf16.mxu0 %v17547_v11  ;;  %v17574_v11 = vld [vmem:[%s22907_s3 + $0xc40] ss:$16 sps:$4 sm:$0xff]  }
 0xc77   :  { %7382 = vmatmul.mubr.bf16.gmra.mxu0 %v17545_v55 }
 0xc78   :  { %7389 = vmatprep.mubr.bf16.mxu0 %v17553_v21 }
 0xc7f   :  { %7390 = vmatmul.mubr.bf16.gmra.mxu0 %v17551_v61  ;;  %v23260_v61 = vld [vmem:[#allocation12_spill] sm:$0xff] }
 0xc80   :  { %7809 = vmatprep.mubr.bf16.mxu0 %v17556_v39 }
 0xc87   :  { %7810 = vmatmul.mubr.bf16.vlgmr.msra.gmra.mxu0 %v17554_v30 }
 0xc88   :  { %16393 = vmatpush3.bf16.msra.mxu0 %v17557_v45  ;;  %7817 = vmatprep.mubr.bf16.mxu0 %v17570_v46  ;;  %v21220_v45 = vpop.f32.mrf.mxu1 }
 0xc89   :  { %16394 = vmatprep.subr.bf16.mxu0 %v17558_v12 }
 0xc8a   :  { %v21222_v56 = vpop.f32.mrf.mxu1 }
 0xc8c   :  { %16395 = vmatpush3.bf16.msra.mxu0 %v17558_v12  ;;  %v21232_v21 = vpop.f32.mrf.mxu1  ;;  %v23262_v12 = vld [vmem:[#allocation13_spill] sm:$0xff] }
 0xc8d   :  { %16396 = vmatprep.subr.bf16.mxu0 %v17559_v32 }
 0xc8f   :  { %7818 = vmatmul.mubr.bf16.gmra.mxu0 %v17568_v34 }
 0xc90   :  { %16397 = vmatpush3.bf16.msra.mxu0 %v17559_v32  ;;  %7825 = vmatprep.mubr.bf16.mxu0 %v17576_v57  ;;  %v23267_v57 = vld [vmem:[#allocation19_spill] sm:$0xff] }
 0xc91   :  { %16398 = vmatprep.subr.bf16.mxu0 %v17560_v2 }
 0xc94   :  { %16399 = vmatpush3.bf16.msra.mxu0 %v17560_v2 }
 0xc95   :  { %16400 = vmatprep.subr.bf16.mxu0 %v17561_v62 }
 0xc97   :  { %7826 = vmatmul.mubr.bf16.gmra.mxu0 %v17574_v11 }
 0xc98   :  { %16401 = vmatpush3.bf16.msra.mxu0 %v17561_v62  ;;  %v21240_v62 = vpop.f32.mrf.mxu1 }
 0xc99   :  { %16402 = vmatprep.subr.bf16.mxu0 %v17562_v42 }
 0xc9c   :  { %16403 = vmatpush3.bf16.msra.mxu0 %v17562_v42  ;;  %v23264_v42 = vld [vmem:[#allocation17_spill] sm:$0xff] }
 0xc9d   :  { %16404 = vmatprep.subr.bf16.mxu0 %v17563_v3 }
 0xca0   :  { %16405 = vmatpush3.bf16.msra.mxu0 %v17563_v3 }
 0xca1   :  { %16406 = vmatprep.subr.bf16.mxu0 %v17564_v31 }
 0xca4   :  { %16407 = vmatpush3.bf16.msra.mxu0 %v17564_v31  ;;  %v17582_v31 = vld [vmem:[%s22907_s3 + $0xc64] ss:$16 sps:$4 sm:$0xff]  }
 0xca5   :  { %15416 = vmatprep.subr.bf16.mxu0 %v23252_v9  ;;  %7833 = vmatprep.mubr.bf16.mxu0 %v17582_v31 }
 0xccf   :  { %v16346_v19 = vpop.f32.mrf.mxu0 }
 0xcd0   :  { %v21204_v23 = vadd.f32 %v16346_v19, %v23253_v13  ;;  %v17580_v19 = vld [vmem:[%s22907_s3 + $0xc60] ss:$16 sps:$4 sm:$0xff]   ;;  %v21251_v13 = vpop.f32.mrf.mxu1 }
 0xcd1   :  { %v6932_v25 = vpop.f32.mrf.mxu0  ;;  %7834 = vmatmul.mubr.bf16.gmra.mxu0 %v17580_v19  ;;  %v17592_v19 = vld [vmem:[%s22907_s3 + $0xca0] ss:$16 sps:$4 sm:$0xff]  }
 0xcd2   :  { %23254 = vst [vmem:[#allocation9_spill] sm:$0xff] %v21204_v23  ;;  %v21207_v29 = vadd.f32 %v6932_v25, %v23255_v1  ;;  %v21253_v25 = vpop.f32.mrf.mxu1  ;;  %v17588_v1 = vld [vmem:[%s22907_s3 + $0xc84] ss:$16 sps:$4 sm:$0xff]  }
 0xcd3   :  { %v16347_v58 = vpop.f32.mrf.mxu0  ;;  %7841 = vmatprep.mubr.bf16.mxu0 %v17588_v1  ;;  %v17594_v1 = vld [vmem:[%s22907_s3 + $0xca4] ss:$16 sps:$4 sm:$0xff]  }
 0xcd4   :  { %23256 = vst [vmem:[#allocation10_spill] sm:$0xff] %v21207_v29  ;;  %v21212_v7 = vadd.f32 %v16347_v58, %v23257_v44  ;;  %v17586_v44 = vld [vmem:[%s22907_s3 + $0xc80] ss:$16 sps:$4 sm:$0xff]   ;;  %v21263_v34 = vpop.f32.mrf.mxu1 }
 0xcd5   :  { %v21227_v37 = vpop.f32.mrf.mxu0 }
 0xcd6   :  { %23258 = vst [vmem:[#allocation4_spill] sm:$0xff] %v21212_v7  ;;  %23259 = vst [vmem:[#allocation59_spill] sm:$0xff] %v21227_v37  ;;  %v23276_v37 = vld [vmem:[#allocation24_spill] sm:$0xff] }
 0xcd9   :  { %7842 = vmatmul.mubr.bf16.gmra.mxu0 %v17586_v44 }
 0xcda   :  { %7849 = vmatprep.mubr.bf16.mxu0 %v17594_v1  ;;  %v23274_v1 = vld [vmem:[#allocation23_spill] sm:$0xff] }
 0xcdf   :  { %v16350_v55 = vpop.f32.mrf.mxu0 }
 0xce0   :  { %v21235_v39 = vadd.f32 %v16350_v55, %v23260_v61  ;;  %v23269_v61 = vld [vmem:[#allocation20_spill] sm:$0xff] }
 0xce1   :  { %v6948_v30 = vpop.f32.mrf.mxu0  ;;  %7850 = vmatmul.mubr.bf16.gmra.mxu0 %v17592_v19 }
 0xce2   :  { %23261 = vst [vmem:[#allocation12_spill] sm:$0xff] %v21235_v39  ;;  %v21238_v32 = vadd.f32 %v6948_v30, %v23262_v12 }
 0xce3   :  { %v16351_v2 = vpop.f32.mrf.mxu0 }
 0xce4   :  { %23263 = vst [vmem:[#allocation13_spill] sm:$0xff] %v21238_v32  ;;  %v21243_v3 = vadd.f32 %v16351_v2, %v23264_v42  ;;  %v21271_v2 = vpop.f32.mrf.mxu1  ;;  %v23271_v42 = vld [vmem:[#allocation21_spill] sm:$0xff] }
 0xce5   :  { %v21258_v58 = vpop.f32.mrf.mxu0 }
 0xce6   :  { %23265 = vst [vmem:[#allocation17_spill] sm:$0xff] %v21243_v3  ;;  %23266 = vst [vmem:[#allocation60_spill] sm:$0xff] %v21258_v58  ;;  %v21282_v44 = vpop.f32.mrf.mxu1  ;;  %v23278_v3 = vld [vmem:[#allocation25_spill] sm:$0xff] }
 0xcef   :  { %v16354_v46 = vpop.f32.mrf.mxu0 }
 0xcf0   :  { %v21266_v11 = vadd.f32 %v16354_v46, %v23267_v57  ;;  %v21284_v46 = vpop.f32.mrf.mxu1  ;;  %v17598_v57 = vld [vmem:[%s22907_s3 + $0xcc0] ss:$16 sps:$4 sm:$0xff]  }
 0xcf1   :  { %v6964_v55 = vpop.f32.mrf.mxu0 }
 0xcf2   :  { %23268 = vst [vmem:[#allocation19_spill] sm:$0xff] %v21266_v11  ;;  %v21269_v30 = vadd.f32 %v6964_v55, %v23269_v61  ;;  %v17600_v55 = vld [vmem:[%s22907_s3 + $0xcc4] ss:$16 sps:$4 sm:$0xff]  }
 0xcf3   :  { %v16355_v12 = vpop.f32.mrf.mxu0  ;;  %7857 = vmatprep.mubr.bf16.mxu0 %v17600_v55  ;;  %v17604_v55 = vld [vmem:[%s22907_s3 + $0xce0] ss:$16 sps:$4 sm:$0xff]  }
 0xcf4   :  { %23270 = vst [vmem:[#allocation20_spill] sm:$0xff] %v21269_v30  ;;  %v21274_v31 = vadd.f32 %v16355_v12, %v23271_v42  ;;  %v21294_v42 = vpop.f32.mrf.mxu1  ;;  %7858 = vmatmul.mubr.bf16.gmra.mxu0 %v17598_v57  ;;  %v17606_v57 = vld [vmem:[%s22907_s3 + $0xce4] ss:$16 sps:$4 sm:$0xff]  }
 0xcf5   :  { %v21292_v61 = vpop.f32.mrf.mxu0  ;;  %7865 = vmatprep.mubr.bf16.mxu0 %v17606_v57 }
 0xcf6   :  { %23272 = vst [vmem:[#allocation21_spill] sm:$0xff] %v21274_v31  ;;  %23273 = vst [vmem:[#allocation61_spill] sm:$0xff] %v21292_v61  ;;  %v15102_v11 = vpop.f32.mrf.mxu1 }
 0xcfc   :  { %7866 = vmatmul.mubr.bf16.gmra.mxu0 %v17604_v55 }
 0xcff   :  { %v16358_v12 = vpop.f32.mrf.mxu0 }
 0xd00   :  { %v21297_v58 = vadd.f32 %v16358_v12, %v23274_v1  ;;  %v21313_v1 = vpop.f32.mrf.mxu1 }
 0xd01   :  { %v6980_v19 = vpop.f32.mrf.mxu0 }
 0xd02   :  { %23275 = vst [vmem:[#allocation23_spill] sm:$0xff] %v21297_v58  ;;  %v21300_v31 = vadd.f32 %v6980_v19, %v23276_v37  ;;  %v15085_v58 = vadd.f32 %v21209_v27, %v21201_v52 }
 0xd03   :  { %v16359_v30 = vpop.f32.mrf.mxu0 }
 0xd04   :  { %23277 = vst [vmem:[#allocation24_spill] sm:$0xff] %v21300_v31  ;;  %v21303_v32 = vadd.f32 %v16359_v30, %v23278_v3  ;;  %v21315_v31 = vpop.f32.mrf.mxu1 }
 0xd05   :  { %v21311_v61 = vpop.f32.mrf.mxu0 }
 0xd06   :  { %23279 = vst [vmem:[#allocation25_spill] sm:$0xff] %v21303_v32  ;;  %23280 = vst [vmem:[#allocation62_spill] sm:$0xff] %v21311_v61  ;;  %v15082_v32 = vadd.f32 %v21199_v54, %v21197_v48  ;;  %v15107_v61 = vpop.f32.mrf.mxu1  ;;  %v15091_v48 = vadd.f32 %v21240_v62, %v21232_v21 }
 0xd07   :  { %v15144_v12 = vpop.f32.mrf.mxu0 }
 0xd08   :  { %v15108_v24 = vpop.f32.mrf.mxu1 }
 0xd09   :  { %v15145_v37 = vpop.f32.mrf.mxu0 }
 0xd0a   :  { %v15146_v3 = vadd.f32 %v15145_v37, %v15144_v12  ;;  %v15088_v12 = vadd.f32 %v21222_v56, %v21220_v45  ;;  %v21325_v27 = vpop.f32.mrf.mxu1 }
 0xd0b   :  { %v15147_v19 = vpop.f32.mrf.mxu0 }
 0xd0c   :  { %v7336_v57 = vadd.f32 %v15146_v3, %v15082_v32 }
 0xd0d   :  { %v15148_v30 = vpop.f32.mrf.mxu0 }
 0xd0e   :  { %v15149_v39 = vadd.f32 %v15148_v30, %v15147_v19  ;;  %v15111_v19 = vpop.f32.mrf.mxu1 }
 0xd0f   :  { %v15150_v7 = vpop.f32.mrf.mxu0 }
 0xd10   :  { %v7339_v29 = vadd.f32 %v15149_v39, %v15085_v58  ;;  %v15113_v45 = vpop.f32.mrf.mxu1 }
 0xd11   :  { %v15151_v23 = vpop.f32.mrf.mxu0 }
 0xd12   :  { %v7398_v9 = vpack.c.bf16 %v7339_v29, %v7336_v57  ;;  %v15152_v59 = vadd.f32 %v15151_v23, %v15150_v7  ;;  %v15094_v23 = vadd.f32 %v21253_v25, %v21251_v13  ;;  %v15100_v25 = vadd.f32 %v21284_v46, %v21282_v44 }
 0xd13   :  { %v15153_v55 = vpop.f32.mrf.mxu0  ;;  %v15106_v44 = vadd.f32 %v21315_v31, %v21313_v1  ;;  %v15109_v46 = vadd.f32 %v15108_v24, %v15107_v61  ;;  %v15112_v31 = vadd.f32 %v15111_v19, %v21325_v27 }
 0xd14   :  { %16376 = vmatprep.mubr.bf16.mxu1 %v7398_v9  ;;  %v7344_v37 = vadd.f32 %v15152_v59, %v15088_v12 }
 0xd15   :  { %v15154_v53 = vpop.f32.mrf.mxu0 }
 0xd16   :  { %v15155_v54 = vadd.f32 %v15154_v53, %v15153_v55  ;;  %v15097_v53 = vadd.f32 %v21271_v2, %v21263_v34  ;;  %v15114_v55 = vpop.f32.mrf.mxu1  ;;  %v15103_v34 = vadd.f32 %v15102_v11, %v21294_v42 }
 0xd17   :  { %v15156_v52 = vpop.f32.mrf.mxu0  ;;  %v15115_v61 = vadd.f32 %v15114_v55, %v15113_v45 }
 0xd18   :  { %v7347_v32 = vadd.f32 %v15155_v54, %v15091_v48  ;;  %v15116_v54 = vpop.f32.mrf.mxu1 }
 0xd19   :  { %v15157_v39 = vpop.f32.mrf.mxu0 }
 0xd1a   :  { %v7399_v58 = vpack.c.bf16 %v7347_v32, %v7344_v37  ;;  %v15158_v3 = vadd.f32 %v15157_v39, %v15156_v52 }
 0xd1b   :  { %v15159_v29 = vpop.f32.mrf.mxu0 }
 0xd1c   :  { %16377 = vmatmul.mubr.bf16.vlgmr.msra.gmra.mxu1 %v7399_v58  ;;  %v7352_v56 = vadd.f32 %v15158_v3, %v15094_v23 }
 0xd1d   :  { %15273 = vmatpush3.bf16.msra.mxu1 %v18369_v18  ;;  %v15160_v9 = vpop.f32.mrf.mxu0 }
 0xd1e   :  { %v15161_v7 = vadd.f32 %v15160_v9, %v15159_v29  ;;  %15274 = vmatprep.subr.bf16.mxu1 %v18374_v22  ;;  %v15117_v29 = vpop.f32.mrf.mxu1 }
 0xd1f   :  { %v15162_v59 = vpop.f32.mrf.mxu0  ;;  %v15118_v27 = vadd.f32 %v15117_v29, %v15116_v54  ;;  %v17567_v54 = vld [vmem:[%s22907_s3 + $0xc0c] ss:$16 sps:$4 sm:$0xff]  }
 0xd20   :  { %v7355_v21 = vadd.f32 %v15161_v7, %v15097_v53  ;;  %v15119_v23 = vpop.f32.mrf.mxu1 }
 0xd21   :  { %15275 = vmatpush3.bf16.msra.mxu1 %v18389_v14  ;;  %v15163_v62 = vpop.f32.mrf.mxu0 }
 0xd22   :  { %15276 = vmatprep.subr.bf16.mxu1 %v18396_v35  ;;  %v7400_v30 = vpack.c.bf16 %v7355_v21, %v7352_v56  ;;  %v15164_v12 = vadd.f32 %v15163_v62, %v15162_v59  ;;  %v15120_v62 = vpop.f32.mrf.mxu1 }
 0xd23   :  { %v15165_v57 = vpop.f32.mrf.mxu0  ;;  %v15121_v19 = vadd.f32 %v15120_v62, %v15119_v23  ;;  %v17565_v23 = vld [vmem:[%s22907_s3 + $0xc08] ss:$16 sps:$4 sm:$0xff]   ;;  %v17573_v62 = vld [vmem:[%s22907_s3 + $0xc2c] ss:$16 sps:$4 sm:$0xff]  }
 0xd24   :  { %16380 = vmatprep.mubr.bf16.mxu1 %v7400_v30  ;;  %v7360_v52 = vadd.f32 %v15164_v12, %v15100_v25  ;;  %v15122_v12 = vpop.f32.mrf.mxu1 }
 0xd25   :  { %15277 = vmatpush3.bf16.msra.mxu1 %v18407_v33  ;;  %v15166_v13 = vpop.f32.mrf.mxu0 }
 0xd26   :  { %v15167_v2 = vadd.f32 %v15166_v13, %v15165_v57  ;;  %15278 = vmatprep.subr.bf16.mxu1 %v18411_v6 }
 0xd27   :  { %v15168_v48 = vpop.f32.mrf.mxu0 }
 0xd28   :  { %v7363_v37 = vadd.f32 %v15167_v2, %v15103_v34 }
 0xd29   :  { %15279 = vmatpush3.bf16.msra.mxu1 %v18425_v0  ;;  %v15169_v32 = vpop.f32.mrf.mxu0 }
 0xd2a   :  { %v7401_v39 = vpack.c.bf16 %v7363_v37, %v7360_v52  ;;  %15280 = vmatprep.subr.bf16.mxu1 %v18432_v60  ;;  %v15170_v3 = vadd.f32 %v15169_v32, %v15168_v48  ;;  %v15123_v52 = vpop.f32.mrf.mxu1 }
 0xd2b   :  { %v15171_v58 = vpop.f32.mrf.mxu0 }
 0xd2c   :  { %16381 = vmatmul.mubr.bf16.gmra.mxu1 %v7401_v39  ;;  %v7368_v53 = vadd.f32 %v15170_v3, %v15106_v44  ;;  %v15125_v39 = vpop.f32.mrf.mxu1 }
 0xd2d   :  { %15281 = vmatpush3.bf16.msra.mxu1 %v18196_v40  ;;  %v15172_v11 = vpop.f32.mrf.mxu0 }
 0xd2e   :  { %v15173_v42 = vadd.f32 %v15172_v11, %v15171_v58  ;;  %15282 = vmatprep.subr.bf16.mxu1 %v18445_v36 }
 0xd2f   :  { %v15174_v9 = vpop.f32.mrf.mxu0 }
 0xd30   :  { %v7371_v7 = vadd.f32 %v15173_v42, %v15109_v46  ;;  %v15126_v42 = vpop.f32.mrf.mxu1 }
 0xd31   :  { %15283 = vmatpush3.bf16.msra.mxu1 %v18459_v5  ;;  %v15175_v59 = vpop.f32.mrf.mxu0 }
 0xd32   :  { %15284 = vmatprep.subr.bf16.mxu1 %v18466_v10  ;;  %v7402_v56 = vpack.c.bf16 %v7371_v7, %v7368_v53  ;;  %v15176_v30 = vadd.f32 %v15175_v59, %v15174_v9  ;;  %v15124_v7 = vadd.f32 %v15123_v52, %v15122_v12  ;;  %v15127_v59 = vadd.f32 %v15126_v42, %v15125_v39  ;;  %v17591_v12 = vld [vmem:[%s22907_s3 + $0xc8c] ss:$16 sps:$4 sm:$0xff]   ;;  %v17610_v39 = vld [vmem:[%s22907_s3 + $0xd00] ss:$16 sps:$4 sm:$0xff]  }
 0xd33   :  { %v15177_v21 = vpop.f32.mrf.mxu0  ;;  %v17597_v52 = vld [vmem:[%s22907_s3 + $0xcac] ss:$16 sps:$4 sm:$0xff]  }
 0xd34   :  { %16384 = vmatprep.mubr.bf16.mxu1 %v7402_v56  ;;  %v7376_v13 = vadd.f32 %v15176_v30, %v15112_v31  ;;  %v17579_v31 = vld [vmem:[%s22907_s3 + $0xc4c] ss:$16 sps:$4 sm:$0xff]  }
 0xd35   :  { %15285 = vmatpush3.bf16.msra.mxu1 %v18162_v20  ;;  %v15178_v24 = vpop.f32.mrf.mxu0  ;;  %v17619_v42 = vld [vmem:[%s22908_s4 + $0x348] sm:$0xff]  }
 0xd36   :  { %v15179_v1 = vadd.f32 %v15178_v24, %v15177_v21  ;;  %15286 = vmatprep.subr.bf16.mxu1 %v18473_v51  ;;  %v17571_v24 = vld [vmem:[%s22907_s3 + $0xc28] ss:$16 sps:$4 sm:$0xff]  }
 0xd37   :  { %v15180_v57 = vpop.f32.mrf.mxu0 }
 0xd38   :  { %v7379_v25 = vadd.f32 %v15179_v1, %v15115_v61  ;;  %v17577_v61 = vld [vmem:[%s22907_s3 + $0xc48] ss:$16 sps:$4 sm:$0xff]   ;;  %v17585_v1 = vld [vmem:[%s22907_s3 + $0xc6c] ss:$16 sps:$4 sm:$0xff]  }
 0xd39   :  { %15287 = vmatpush3.bf16.msra.mxu1 %v18480_v15  ;;  %v15181_v34 = vpop.f32.mrf.mxu0 }
 0xd3a   :  { %v7403_v2 = vpack.c.bf16 %v7379_v25, %v7376_v13  ;;  %15352 = vmatprep.subr.bf16.mxu1 %v18125_v38  ;;  %v15182_v37 = vadd.f32 %v15181_v34, %v15180_v57  ;;  %v17583_v57 = vld [vmem:[%s22907_s3 + $0xc68] ss:$16 sps:$4 sm:$0xff]   ;;  %v23281_v13 = vld [vmem:[#allocation3_spill] sm:$0xff] }
 0xd3b   :  { %v15183_v48 = vpop.f32.mrf.mxu0  ;;  %v23282_v25 = vld [vmem:[#allocation14_spill] sm:$0xff] }
 0xd3c   :  { %16385 = vmatmul.mubr.bf16.gmra.mxu1 %v7403_v2  ;;  %v7384_v58 = vadd.f32 %v15182_v37, %v15118_v27  ;;  %v17613_v34 = vld [vmem:[%s22908_s4 + $0x378] sm:$0xff]  }
 0xd3d   :  { %v15184_v32 = vpop.f32.mrf.mxu0  ;;  %v17589_v2 = vld [vmem:[%s22907_s3 + $0xc88] ss:$16 sps:$4 sm:$0xff]  }
 0xd3e   :  { %v15185_v45 = vadd.f32 %v15184_v32, %v15183_v48  ;;  %v23283_v48 = vld [vmem:[#allocation15_spill] sm:$0xff]  ;;  %v17595_v37 = vld [vmem:[%s22907_s3 + $0xca8] ss:$16 sps:$4 sm:$0xff]   ;;  %v17603_v32 = vld [vmem:[%s22907_s3 + $0xccc] ss:$16 sps:$4 sm:$0xff]  }
 0xd3f   :  { %v15186_v55 = vpop.f32.mrf.mxu0  ;;  %v17601_v27 = vld [vmem:[%s22907_s3 + $0xcc8] ss:$16 sps:$4 sm:$0xff]  }
 0xd40   :  { %v7387_v3 = vadd.f32 %v15185_v45, %v15121_v19  ;;  %v17609_v19 = vld [vmem:[%s22907_s3 + $0xcec] ss:$16 sps:$4 sm:$0xff]   ;;  %v17607_v45 = vld [vmem:[%s22907_s3 + $0xce8] ss:$16 sps:$4 sm:$0xff]  }
 0xd41   :  { %v15187_v11 = vpop.f32.mrf.mxu0 }
 0xd42   :  { %v7404_v44 = vpack.c.bf16 %v7387_v3, %v7384_v58  ;;  %v15188_v9 = vadd.f32 %v15187_v11, %v15186_v55  ;;  %v17612_v55 = vld [vmem:[%s22907_s3 + $0xd04] ss:$16 sps:$4 sm:$0xff]   ;;  %v17615_v3 = vld [vmem:[%s22908_s4 + $0x368] sm:$0xff]  }
 0xd43   :  { %v15189_v46 = vpop.f32.mrf.mxu0  ;;  %v17614_v58 = vld [vmem:[%s22908_s4 + $0x370] sm:$0xff]   ;;  %v17616_v11 = vld [vmem:[%s22908_s4 + $0x360] sm:$0xff]  }
 0xd44   :  { %16388 = vmatprep.mubr.bf16.mxu1 %v7404_v44  ;;  %v7392_v21 = vadd.f32 %v15188_v9, %v15124_v7  ;;  %v17617_v44 = vld [vmem:[%s22908_s4 + $0x358] sm:$0xff]   ;;  %v17620_v9 = vld [vmem:[%s22908_s4 + $0x340] sm:$0xff]  }
 0xd45   :  { %v15190_v53 = vpop.f32.mrf.mxu0 }
 0xd46   :  { %v15191_v56 = vadd.f32 %v15190_v53, %v15189_v46  ;;  %v17618_v46 = vld [vmem:[%s22908_s4 + $0x350] sm:$0xff]   ;;  %v23284_v53 = vld [vmem:[#allocation16_spill] sm:$0xff] }
 0xd47   :  { %v21447_v7 = vpop.f32.mrf.mxu0 }
 0xd48   :  { %v7395_v30 = vadd.f32 %v15191_v56, %v15127_v59 }
 0xd49   :  { %v21449_v59 = vpop.f32.mrf.mxu0 }
 0xd4a   :  { %v7405_v29 = vpack.c.bf16 %v7395_v30, %v7392_v21  ;;  %v23285_v30 = vld [vmem:[#allocation9_spill] sm:$0xff] }
 0xd4b   :  { %v21451_v21 = vpop.f32.mrf.mxu0 }
 0xd4c   :  { %16389 = vmatmul.mubr.bf16.gmra.mxu1 %v7405_v29 }
 0xd4d   :  { %7906 = vmatprep.mubr.bf16.mxu1 %v17567_v54 }
 0xd54   :  { %7907 = vmatmul.mubr.bf16.vlgmr.msra.gmra.mxu1 %v17565_v23  ;;  %v23287_v23 = vld [vmem:[#allocation10_spill] sm:$0xff] }
 0xd55   :  { %15353 = vmatpush3.bf16.msra.mxu1 %v18128_v41  ;;  %7914 = vmatprep.mubr.bf16.mxu1 %v17573_v62 }
 0xd56   :  { %15354 = vmatprep.subr.bf16.mxu1 %v18133_v47 }
 0xd59   :  { %15355 = vmatpush3.bf16.msra.mxu1 %v22960_v8 }
 0xd5a   :  { %15356 = vmatprep.subr.bf16.mxu1 %v22961_v63 }
 0xd5c   :  { %7915 = vmatmul.mubr.bf16.gmra.mxu1 %v17571_v24 }
 0xd5d   :  { %15357 = vmatpush3.bf16.msra.mxu1 %v22962_v49  ;;  %7922 = vmatprep.mubr.bf16.mxu1 %v17579_v31  ;;  %v21459_v31 = vpop.f32.mrf.mxu0 }
 0xd5e   :  { %15358 = vmatprep.subr.bf16.mxu1 %v22963_v28 }
 0xd61   :  { %15359 = vmatpush3.bf16.msra.mxu1 %v22964_v26 }
 0xd62   :  { %15360 = vmatprep.subr.bf16.mxu1 %v22965_v16 }
 0xd64   :  { %7923 = vmatmul.mubr.bf16.gmra.mxu1 %v17577_v61  ;;  %v23289_v61 = vld [vmem:[#allocation4_spill] sm:$0xff] }
 0xd65   :  { %15361 = vmatpush3.bf16.msra.mxu1 %v22966_v17  ;;  %7930 = vmatprep.mubr.bf16.mxu1 %v17585_v1 }
 0xd66   :  { %15362 = vmatprep.subr.bf16.mxu1 %v22967_v4 }
 0xd69   :  { %15363 = vmatpush3.bf16.msra.mxu1 %v22968_v50 }
 0xd6a   :  { %15364 = vmatprep.subr.bf16.mxu1 %v22969_v43 }
 0xd6c   :  { %7931 = vmatmul.mubr.bf16.gmra.mxu1 %v17583_v57  ;;  %v17626_v57 = vld [vmem:[%s22907_s3 + $0xd24] ss:$16 sps:$4 sm:$0xff]  }
 0xd6d   :  { %15365 = vmatpush3.bf16.msra.mxu1 %v23281_v13  ;;  %7938 = vmatprep.mubr.bf16.mxu1 %v17591_v12  ;;  %v17624_v12 = vld [vmem:[%s22907_s3 + $0xd20] ss:$16 sps:$4 sm:$0xff]  }
 0xd6e   :  { %15366 = vmatprep.subr.bf16.mxu1 %v23282_v25 }
 0xd71   :  { %15367 = vmatpush3.bf16.msra.mxu1 %v23283_v48 }
 0xd72   :  { %16424 = vmatprep.subr.bf16.mxu1 %v17613_v34 }
 0xd74   :  { %7939 = vmatmul.mubr.bf16.gmra.mxu1 %v17589_v2 }
 0xd75   :  { %7946 = vmatprep.mubr.bf16.mxu1 %v17597_v52  ;;  %v17632_v52 = vld [vmem:[%s22907_s3 + $0xd44] ss:$16 sps:$4 sm:$0xff]  }
 0xd7c   :  { %7947 = vmatmul.mubr.bf16.gmra.mxu1 %v17595_v37 }
 0xd7d   :  { %7954 = vmatprep.mubr.bf16.mxu1 %v17603_v32  ;;  %v17630_v32 = vld [vmem:[%s22907_s3 + $0xd40] ss:$16 sps:$4 sm:$0xff]  }
 0xd84   :  { %7955 = vmatmul.mubr.bf16.gmra.mxu1 %v17601_v27 }
 0xd85   :  { %7962 = vmatprep.mubr.bf16.mxu1 %v17609_v19 }
 0xd8c   :  { %7963 = vmatmul.mubr.bf16.gmra.mxu1 %v17607_v45  ;;  %v23292_v45 = vld [vmem:[#allocation12_spill] sm:$0xff] }
 0xd8d   :  { %8382 = vmatprep.mubr.bf16.mxu1 %v17612_v55 }
 0xd94   :  { %8383 = vmatmul.mubr.bf16.vlgmr.msra.gmra.mxu1 %v17610_v39 }
 0xd95   :  { %16425 = vmatpush3.bf16.msra.mxu1 %v17613_v34  ;;  %8390 = vmatprep.mubr.bf16.mxu1 %v17626_v57  ;;  %v21470_v34 = vpop.f32.mrf.mxu0 }
 0xd96   :  { %16426 = vmatprep.subr.bf16.mxu1 %v17614_v58 }
 0xd97   :  { %v21472_v2 = vpop.f32.mrf.mxu0 }
 0xd99   :  { %16427 = vmatpush3.bf16.msra.mxu1 %v17614_v58  ;;  %v21482_v19 = vpop.f32.mrf.mxu0  ;;  %v23294_v58 = vld [vmem:[#allocation13_spill] sm:$0xff] }
 0xd9a   :  { %16428 = vmatprep.subr.bf16.mxu1 %v17615_v3 }
 0xd9c   :  { %8391 = vmatmul.mubr.bf16.gmra.mxu1 %v17624_v12 }
 0xd9d   :  { %16429 = vmatpush3.bf16.msra.mxu1 %v17615_v3  ;;  %8398 = vmatprep.mubr.bf16.mxu1 %v17632_v52  ;;  %v23299_v52 = vld [vmem:[#allocation19_spill] sm:$0xff] }
 0xd9e   :  { %16430 = vmatprep.subr.bf16.mxu1 %v17616_v11 }
 0xda1   :  { %16431 = vmatpush3.bf16.msra.mxu1 %v17616_v11 }
 0xda2   :  { %16432 = vmatprep.subr.bf16.mxu1 %v17617_v44 }
 0xda4   :  { %8399 = vmatmul.mubr.bf16.gmra.mxu1 %v17630_v32 }
 0xda5   :  { %16433 = vmatpush3.bf16.msra.mxu1 %v17617_v44  ;;  %v21490_v44 = vpop.f32.mrf.mxu0 }
 0xda6   :  { %16434 = vmatprep.subr.bf16.mxu1 %v17618_v46 }
 0xda9   :  { %16435 = vmatpush3.bf16.msra.mxu1 %v17618_v46  ;;  %v23296_v46 = vld [vmem:[#allocation17_spill] sm:$0xff] }
 0xdaa   :  { %16436 = vmatprep.subr.bf16.mxu1 %v17619_v42 }
 0xdad   :  { %16437 = vmatpush3.bf16.msra.mxu1 %v17619_v42 }
 0xdae   :  { %16438 = vmatprep.subr.bf16.mxu1 %v17620_v9 }
 0xdb1   :  { %16439 = vmatpush3.bf16.msra.mxu1 %v17620_v9  ;;  %v17638_v9 = vld [vmem:[%s22907_s3 + $0xd64] ss:$16 sps:$4 sm:$0xff]  }
 0xdb2   :  { %15560 = vmatprep.subr.bf16.mxu1 %v23284_v53  ;;  %8406 = vmatprep.mubr.bf16.mxu1 %v17638_v9 }
 0xddc   :  { %v16378_v56 = vpop.f32.mrf.mxu1 }
 0xddd   :  { %v21454_v54 = vadd.f32 %v16378_v56, %v23285_v30  ;;  %v17636_v56 = vld [vmem:[%s22907_s3 + $0xd60] ss:$16 sps:$4 sm:$0xff]   ;;  %v21501_v30 = vpop.f32.mrf.mxu0 }
 0xdde   :  { %v7505_v29 = vpop.f32.mrf.mxu1  ;;  %8407 = vmatmul.mubr.bf16.gmra.mxu1 %v17636_v56  ;;  %v17648_v56 = vld [vmem:[%s22907_s3 + $0xda0] ss:$16 sps:$4 sm:$0xff]  }
 0xddf   :  { %23286 = vst [vmem:[#allocation9_spill] sm:$0xff] %v21454_v54  ;;  %v21457_v62 = vadd.f32 %v7505_v29, %v23287_v23  ;;  %v21503_v29 = vpop.f32.mrf.mxu0  ;;  %v17644_v23 = vld [vmem:[%s22907_s3 + $0xd84] ss:$16 sps:$4 sm:$0xff]  }
 0xde0   :  { %v16379_v24 = vpop.f32.mrf.mxu1  ;;  %8414 = vmatprep.mubr.bf16.mxu1 %v17644_v23  ;;  %v17650_v23 = vld [vmem:[%s22907_s3 + $0xda4] ss:$16 sps:$4 sm:$0xff]  }
 0xde1   :  { %23288 = vst [vmem:[#allocation10_spill] sm:$0xff] %v21457_v62  ;;  %v21462_v1 = vadd.f32 %v16379_v24, %v23289_v61  ;;  %v17642_v61 = vld [vmem:[%s22907_s3 + $0xd80] ss:$16 sps:$4 sm:$0xff]   ;;  %v21513_v12 = vpop.f32.mrf.mxu0 }
 0xde2   :  { %v21477_v37 = vpop.f32.mrf.mxu1 }
 0xde3   :  { %23290 = vst [vmem:[#allocation4_spill] sm:$0xff] %v21462_v1  ;;  %23291 = vst [vmem:[#allocation63_spill] sm:$0xff] %v21477_v37  ;;  %v23308_v37 = vld [vmem:[#allocation24_spill] sm:$0xff] }
 0xde6   :  { %8415 = vmatmul.mubr.bf16.gmra.mxu1 %v17642_v61 }
 0xde7   :  { %8422 = vmatprep.mubr.bf16.mxu1 %v17650_v23  ;;  %v23306_v23 = vld [vmem:[#allocation23_spill] sm:$0xff] }
 0xdec   :  { %v16382_v27 = vpop.f32.mrf.mxu1 }
 0xded   :  { %v21485_v55 = vadd.f32 %v16382_v27, %v23292_v45  ;;  %v23301_v45 = vld [vmem:[#allocation20_spill] sm:$0xff] }
 0xdee   :  { %v7521_v39 = vpop.f32.mrf.mxu1  ;;  %8423 = vmatmul.mubr.bf16.gmra.mxu1 %v17648_v56 }
 0xdef   :  { %23293 = vst [vmem:[#allocation12_spill] sm:$0xff] %v21485_v55  ;;  %v21488_v3 = vadd.f32 %v7521_v39, %v23294_v58 }
 0xdf0   :  { %v16383_v11 = vpop.f32.mrf.mxu1 }
 0xdf1   :  { %23295 = vst [vmem:[#allocation13_spill] sm:$0xff] %v21488_v3  ;;  %v21493_v42 = vadd.f32 %v16383_v11, %v23296_v46  ;;  %v21521_v11 = vpop.f32.mrf.mxu0  ;;  %v23303_v46 = vld [vmem:[#allocation21_spill] sm:$0xff] }
 0xdf2   :  { %v21508_v24 = vpop.f32.mrf.mxu1 }
 0xdf3   :  { %23297 = vst [vmem:[#allocation17_spill] sm:$0xff] %v21493_v42  ;;  %23298 = vst [vmem:[#allocation64_spill] sm:$0xff] %v21508_v24  ;;  %v21532_v61 = vpop.f32.mrf.mxu0  ;;  %v23310_v42 = vld [vmem:[#allocation25_spill] sm:$0xff] }
 0xdfc   :  { %v16386_v57 = vpop.f32.mrf.mxu1 }
 0xdfd   :  { %v21516_v32 = vadd.f32 %v16386_v57, %v23299_v52  ;;  %v21534_v57 = vpop.f32.mrf.mxu0  ;;  %v17654_v52 = vld [vmem:[%s22907_s3 + $0xdc0] ss:$16 sps:$4 sm:$0xff]  }
 0xdfe   :  { %v7537_v27 = vpop.f32.mrf.mxu1 }
 0xdff   :  { %23300 = vst [vmem:[#allocation19_spill] sm:$0xff] %v21516_v32  ;;  %v21519_v39 = vadd.f32 %v7537_v27, %v23301_v45  ;;  %v17656_v27 = vld [vmem:[%s22907_s3 + $0xdc4] ss:$16 sps:$4 sm:$0xff]  }
 0xe00   :  { %v16387_v58 = vpop.f32.mrf.mxu1  ;;  %8430 = vmatprep.mubr.bf16.mxu1 %v17656_v27  ;;  %v17660_v27 = vld [vmem:[%s22907_s3 + $0xde0] ss:$16 sps:$4 sm:$0xff]  }
 0xe01   :  { %23302 = vst [vmem:[#allocation20_spill] sm:$0xff] %v21519_v39  ;;  %v21524_v9 = vadd.f32 %v16387_v58, %v23303_v46  ;;  %v21544_v46 = vpop.f32.mrf.mxu0  ;;  %8431 = vmatmul.mubr.bf16.gmra.mxu1 %v17654_v52  ;;  %v17662_v52 = vld [vmem:[%s22907_s3 + $0xde4] ss:$16 sps:$4 sm:$0xff]  }
 0xe02   :  { %v21542_v45 = vpop.f32.mrf.mxu1  ;;  %8438 = vmatprep.mubr.bf16.mxu1 %v17662_v52 }
 0xe03   :  { %23304 = vst [vmem:[#allocation21_spill] sm:$0xff] %v21524_v9  ;;  %23305 = vst [vmem:[#allocation65_spill] sm:$0xff] %v21542_v45  ;;  %v15246_v32 = vpop.f32.mrf.mxu0 }
 0xe09   :  { %8439 = vmatmul.mubr.bf16.gmra.mxu1 %v17660_v27 }
 0xe0c   :  { %v16390_v58 = vpop.f32.mrf.mxu1 }
 0xe0d   :  { %v21547_v24 = vadd.f32 %v16390_v58, %v23306_v23  ;;  %v21563_v23 = vpop.f32.mrf.mxu0 }
 0xe0e   :  { %v7553_v56 = vpop.f32.mrf.mxu1 }
 0xe0f   :  { %23307 = vst [vmem:[#allocation23_spill] sm:$0xff] %v21547_v24  ;;  %v21550_v9 = vadd.f32 %v7553_v56, %v23308_v37  ;;  %v15229_v24 = vadd.f32 %v21459_v31, %v21451_v21 }
 0xe10   :  { %v16391_v39 = vpop.f32.mrf.mxu1 }
 0xe11   :  { %23309 = vst [vmem:[#allocation24_spill] sm:$0xff] %v21550_v9  ;;  %v21553_v3 = vadd.f32 %v16391_v39, %v23310_v42  ;;  %v21565_v9 = vpop.f32.mrf.mxu0 }
 0xe12   :  { %v21561_v45 = vpop.f32.mrf.mxu1 }
 0xe13   :  { %23311 = vst [vmem:[#allocation25_spill] sm:$0xff] %v21553_v3  ;;  %23312 = vst [vmem:[#allocation66_spill] sm:$0xff] %v21561_v45  ;;  %v15226_v3 = vadd.f32 %v21449_v59, %v21447_v7  ;;  %v15251_v45 = vpop.f32.mrf.mxu0  ;;  %v15235_v7 = vadd.f32 %v21490_v44, %v21482_v19 }
 0xe14   :  { %v15288_v58 = vpop.f32.mrf.mxu1 }
 0xe15   :  { %v15252_v48 = vpop.f32.mrf.mxu0 }
 0xe16   :  { %v15289_v37 = vpop.f32.mrf.mxu1 }
 0xe17   :  { %v15290_v42 = vadd.f32 %v15289_v37, %v15288_v58  ;;  %v15232_v58 = vadd.f32 %v21472_v2, %v21470_v34  ;;  %v21575_v31 = vpop.f32.mrf.mxu0 }
 0xe18   :  { %v15291_v56 = vpop.f32.mrf.mxu1 }
 0xe19   :  { %v7909_v52 = vadd.f32 %v15290_v42, %v15226_v3 }
 0xe1a   :  { %v15292_v39 = vpop.f32.mrf.mxu1 }
 0xe1b   :  { %v15293_v55 = vadd.f32 %v15292_v39, %v15291_v56  ;;  %v15255_v56 = vpop.f32.mrf.mxu0 }
 0xe1c   :  { %v15294_v1 = vpop.f32.mrf.mxu1 }
 0xe1d   :  { %v7912_v62 = vadd.f32 %v15293_v55, %v15229_v24  ;;  %v15257_v34 = vpop.f32.mrf.mxu0 }
 0xe1e   :  { %v15295_v54 = vpop.f32.mrf.mxu1 }
 0xe1f   :  { %v7971_v53 = vpack.c.bf16 %v7912_v62, %v7909_v52  ;;  %v15296_v25 = vadd.f32 %v15295_v54, %v15294_v1  ;;  %v15238_v54 = vadd.f32 %v21503_v29, %v21501_v30  ;;  %v15244_v29 = vadd.f32 %v21534_v57, %v21532_v61 }
 0xe20   :  { %v15297_v27 = vpop.f32.mrf.mxu1  ;;  %v15250_v61 = vadd.f32 %v21565_v9, %v21563_v23  ;;  %v15253_v57 = vadd.f32 %v15252_v48, %v15251_v45  ;;  %v15256_v9 = vadd.f32 %v15255_v56, %v21575_v31 }
 0xe21   :  { %16408 = vmatprep.mubr.bf16.mxu0 %v7971_v53  ;;  %v7917_v37 = vadd.f32 %v15296_v25, %v15232_v58 }
 0xe22   :  { %v15298_v13 = vpop.f32.mrf.mxu1 }
 0xe23   :  { %v15299_v59 = vadd.f32 %v15298_v13, %v15297_v27  ;;  %v15241_v13 = vadd.f32 %v21521_v11, %v21513_v12  ;;  %v15258_v27 = vpop.f32.mrf.mxu0  ;;  %v15247_v12 = vadd.f32 %v15246_v32, %v21544_v46 }
 0xe24   :  { %v15300_v21 = vpop.f32.mrf.mxu1  ;;  %v15259_v45 = vadd.f32 %v15258_v27, %v15257_v34 }
 0xe25   :  { %v7920_v3 = vadd.f32 %v15299_v59, %v15235_v7  ;;  %v15260_v59 = vpop.f32.mrf.mxu0 }
 0xe26   :  { %v15301_v55 = vpop.f32.mrf.mxu1 }
 0xe27   :  { %v7972_v24 = vpack.c.bf16 %v7920_v3, %v7917_v37  ;;  %v15302_v42 = vadd.f32 %v15301_v55, %v15300_v21 }
 0xe28   :  { %v15303_v62 = vpop.f32.mrf.mxu1 }
 0xe29   :  { %16409 = vmatmul.mubr.bf16.vlgmr.msra.gmra.mxu0 %v7972_v24  ;;  %v7925_v2 = vadd.f32 %v15302_v42, %v15238_v54 }
 0xe2a   :  { %15417 = vmatpush3.bf16.msra.mxu0 %v18369_v18  ;;  %v15304_v53 = vpop.f32.mrf.mxu1 }
 0xe2b   :  { %v15305_v1 = vadd.f32 %v15304_v53, %v15303_v62  ;;  %15418 = vmatprep.subr.bf16.mxu0 %v18374_v22  ;;  %v15261_v62 = vpop.f32.mrf.mxu0 }
 0xe2c   :  { %v15306_v25 = vpop.f32.mrf.mxu1  ;;  %v15262_v31 = vadd.f32 %v15261_v62, %v15260_v59  ;;  %v17623_v59 = vld [vmem:[%s22907_s3 + $0xd0c] ss:$16 sps:$4 sm:$0xff]  }
 0xe2d   :  { %v7928_v19 = vadd.f32 %v15305_v1, %v15241_v13  ;;  %v15263_v54 = vpop.f32.mrf.mxu0 }
 0xe2e   :  { %15419 = vmatpush3.bf16.msra.mxu0 %v18389_v14  ;;  %v15307_v44 = vpop.f32.mrf.mxu1 }
 0xe2f   :  { %15420 = vmatprep.subr.bf16.mxu0 %v18396_v35  ;;  %v7973_v39 = vpack.c.bf16 %v7928_v19, %v7925_v2  ;;  %v15308_v58 = vadd.f32 %v15307_v44, %v15306_v25  ;;  %v15264_v44 = vpop.f32.mrf.mxu0 }
 0xe30   :  { %v15309_v52 = vpop.f32.mrf.mxu1  ;;  %v15265_v56 = vadd.f32 %v15264_v44, %v15263_v54  ;;  %v17621_v54 = vld [vmem:[%s22907_s3 + $0xd08] ss:$16 sps:$4 sm:$0xff]   ;;  %v17629_v44 = vld [vmem:[%s22907_s3 + $0xd2c] ss:$16 sps:$4 sm:$0xff]  }
 0xe31   :  { %16412 = vmatprep.mubr.bf16.mxu0 %v7973_v39  ;;  %v7933_v21 = vadd.f32 %v15308_v58, %v15244_v29  ;;  %v15266_v58 = vpop.f32.mrf.mxu0 }
 0xe32   :  { %15421 = vmatpush3.bf16.msra.mxu0 %v18407_v33  ;;  %v15310_v30 = vpop.f32.mrf.mxu1 }
 0xe33   :  { %v15311_v11 = vadd.f32 %v15310_v30, %v15309_v52  ;;  %15422 = vmatprep.subr.bf16.mxu0 %v18411_v6 }
 0xe34   :  { %v15312_v7 = vpop.f32.mrf.mxu1 }
 0xe35   :  { %v7936_v37 = vadd.f32 %v15311_v11, %v15247_v12 }
 0xe36   :  { %15423 = vmatpush3.bf16.msra.mxu0 %v18425_v0  ;;  %v15313_v3 = vpop.f32.mrf.mxu1 }
 0xe37   :  { %v7974_v55 = vpack.c.bf16 %v7936_v37, %v7933_v21  ;;  %15424 = vmatprep.subr.bf16.mxu0 %v18432_v60  ;;  %v15314_v42 = vadd.f32 %v15313_v3, %v15312_v7  ;;  %v15267_v21 = vpop.f32.mrf.mxu0 }
 0xe38   :  { %v15315_v24 = vpop.f32.mrf.mxu1 }
 0xe39   :  { %16413 = vmatmul.mubr.bf16.gmra.mxu0 %v7974_v55  ;;  %v7941_v13 = vadd.f32 %v15314_v42, %v15250_v61  ;;  %v15269_v55 = vpop.f32.mrf.mxu0 }
 0xe3a   :  { %15425 = vmatpush3.bf16.msra.mxu0 %v18196_v40  ;;  %v15316_v32 = vpop.f32.mrf.mxu1 }
 0xe3b   :  { %v15317_v46 = vadd.f32 %v15316_v32, %v15315_v24  ;;  %15426 = vmatprep.subr.bf16.mxu0 %v18445_v36 }
 0xe3c   :  { %v15318_v53 = vpop.f32.mrf.mxu1 }
 0xe3d   :  { %v7944_v1 = vadd.f32 %v15317_v46, %v15253_v57  ;;  %v15270_v46 = vpop.f32.mrf.mxu0 }
 0xe3e   :  { %15427 = vmatpush3.bf16.msra.mxu0 %v18459_v5  ;;  %v15319_v25 = vpop.f32.mrf.mxu1 }
 0xe3f   :  { %15428 = vmatprep.subr.bf16.mxu0 %v18466_v10  ;;  %v7975_v2 = vpack.c.bf16 %v7944_v1, %v7941_v13  ;;  %v15320_v39 = vadd.f32 %v15319_v25, %v15318_v53  ;;  %v15268_v1 = vadd.f32 %v15267_v21, %v15266_v58  ;;  %v15271_v25 = vadd.f32 %v15270_v46, %v15269_v55  ;;  %v17647_v58 = vld [vmem:[%s22907_s3 + $0xd8c] ss:$16 sps:$4 sm:$0xff]   ;;  %v17666_v55 = vld [vmem:[%s22907_s3 + $0xe00] ss:$16 sps:$4 sm:$0xff]  }
 0xe40   :  { %v15321_v19 = vpop.f32.mrf.mxu1  ;;  %v17653_v21 = vld [vmem:[%s22907_s3 + $0xdac] ss:$16 sps:$4 sm:$0xff]  }
 0xe41   :  { %16416 = vmatprep.mubr.bf16.mxu0 %v7975_v2  ;;  %v7949_v30 = vadd.f32 %v15320_v39, %v15256_v9  ;;  %v17635_v9 = vld [vmem:[%s22907_s3 + $0xd4c] ss:$16 sps:$4 sm:$0xff]  }
 0xe42   :  { %15429 = vmatpush3.bf16.msra.mxu0 %v18162_v20  ;;  %v15322_v48 = vpop.f32.mrf.mxu1  ;;  %v17675_v46 = vld [vmem:[%s22908_s4 + $0x388] sm:$0xff]  }
 0xe43   :  { %v15323_v23 = vadd.f32 %v15322_v48, %v15321_v19  ;;  %15430 = vmatprep.subr.bf16.mxu0 %v18473_v51  ;;  %v17627_v48 = vld [vmem:[%s22907_s3 + $0xd28] ss:$16 sps:$4 sm:$0xff]  }
 0xe44   :  { %v15324_v52 = vpop.f32.mrf.mxu1 }
 0xe45   :  { %v7952_v29 = vadd.f32 %v15323_v23, %v15259_v45  ;;  %v17633_v45 = vld [vmem:[%s22907_s3 + $0xd48] ss:$16 sps:$4 sm:$0xff]   ;;  %v17641_v23 = vld [vmem:[%s22907_s3 + $0xd6c] ss:$16 sps:$4 sm:$0xff]  }
 0xe46   :  { %15431 = vmatpush3.bf16.msra.mxu0 %v18480_v15  ;;  %v15325_v12 = vpop.f32.mrf.mxu1 }
 0xe47   :  { %v7976_v11 = vpack.c.bf16 %v7952_v29, %v7949_v30  ;;  %15496 = vmatprep.subr.bf16.mxu0 %v18125_v38  ;;  %v15326_v37 = vadd.f32 %v15325_v12, %v15324_v52  ;;  %v17639_v52 = vld [vmem:[%s22907_s3 + $0xd68] ss:$16 sps:$4 sm:$0xff]   ;;  %v23313_v30 = vld [vmem:[#allocation3_spill] sm:$0xff] }
 0xe48   :  { %v15327_v7 = vpop.f32.mrf.mxu1  ;;  %v23314_v29 = vld [vmem:[#allocation14_spill] sm:$0xff] }
 0xe49   :  { %16417 = vmatmul.mubr.bf16.gmra.mxu0 %v7976_v11  ;;  %v7957_v24 = vadd.f32 %v15326_v37, %v15262_v31  ;;  %v17669_v12 = vld [vmem:[%s22908_s4 + $0x3b8] sm:$0xff]  }
 0xe4a   :  { %v15328_v3 = vpop.f32.mrf.mxu1  ;;  %v17645_v11 = vld [vmem:[%s22907_s3 + $0xd88] ss:$16 sps:$4 sm:$0xff]  }
 0xe4b   :  { %v15329_v34 = vadd.f32 %v15328_v3, %v15327_v7  ;;  %v23315_v7 = vld [vmem:[#allocation15_spill] sm:$0xff]  ;;  %v17651_v37 = vld [vmem:[%s22907_s3 + $0xda8] ss:$16 sps:$4 sm:$0xff]   ;;  %v17659_v3 = vld [vmem:[%s22907_s3 + $0xdcc] ss:$16 sps:$4 sm:$0xff]  }
 0xe4c   :  { %v15330_v27 = vpop.f32.mrf.mxu1  ;;  %v17657_v31 = vld [vmem:[%s22907_s3 + $0xdc8] ss:$16 sps:$4 sm:$0xff]  }
 0xe4d   :  { %v7960_v42 = vadd.f32 %v15329_v34, %v15265_v56  ;;  %v17665_v56 = vld [vmem:[%s22907_s3 + $0xdec] ss:$16 sps:$4 sm:$0xff]   ;;  %v17663_v34 = vld [vmem:[%s22907_s3 + $0xde8] ss:$16 sps:$4 sm:$0xff]  }
 0xe4e   :  { %v15331_v32 = vpop.f32.mrf.mxu1 }
 0xe4f   :  { %v7977_v61 = vpack.c.bf16 %v7960_v42, %v7957_v24  ;;  %v15332_v53 = vadd.f32 %v15331_v32, %v15330_v27  ;;  %v17668_v27 = vld [vmem:[%s22907_s3 + $0xe04] ss:$16 sps:$4 sm:$0xff]   ;;  %v17671_v42 = vld [vmem:[%s22908_s4 + $0x3a8] sm:$0xff]  }
 0xe50   :  { %v15333_v57 = vpop.f32.mrf.mxu1  ;;  %v17670_v24 = vld [vmem:[%s22908_s4 + $0x3b0] sm:$0xff]   ;;  %v17672_v32 = vld [vmem:[%s22908_s4 + $0x3a0] sm:$0xff]  }
 0xe51   :  { %16420 = vmatprep.mubr.bf16.mxu0 %v7977_v61  ;;  %v7965_v19 = vadd.f32 %v15332_v53, %v15268_v1  ;;  %v17673_v61 = vld [vmem:[%s22908_s4 + $0x398] sm:$0xff]   ;;  %v17676_v53 = vld [vmem:[%s22908_s4 + $0x380] sm:$0xff]  }
 0xe52   :  { %v15334_v13 = vpop.f32.mrf.mxu1 }
 0xe53   :  { %v15335_v2 = vadd.f32 %v15334_v13, %v15333_v57  ;;  %v17674_v57 = vld [vmem:[%s22908_s4 + $0x390] sm:$0xff]   ;;  %v23316_v13 = vld [vmem:[#allocation16_spill] sm:$0xff] }
 0xe54   :  { %v21697_v1 = vpop.f32.mrf.mxu1 }
 0xe55   :  { %v7968_v39 = vadd.f32 %v15335_v2, %v15271_v25 }
 0xe56   :  { %v21699_v25 = vpop.f32.mrf.mxu1 }
 0xe57   :  { %v7978_v62 = vpack.c.bf16 %v7968_v39, %v7965_v19  ;;  %v23317_v39 = vld [vmem:[#allocation9_spill] sm:$0xff] }
 0xe58   :  { %v21701_v19 = vpop.f32.mrf.mxu1 }
 0xe59   :  { %16421 = vmatmul.mubr.bf16.gmra.mxu0 %v7978_v62 }
 0xe5a   :  { %8479 = vmatprep.mubr.bf16.mxu0 %v17623_v59 }
 0xe61   :  { %8480 = vmatmul.mubr.bf16.vlgmr.msra.gmra.mxu0 %v17621_v54  ;;  %v23319_v54 = vld [vmem:[#allocation10_spill] sm:$0xff] }
 0xe62   :  { %15497 = vmatpush3.bf16.msra.mxu0 %v18128_v41  ;;  %8487 = vmatprep.mubr.bf16.mxu0 %v17629_v44 }
 0xe63   :  { %15498 = vmatprep.subr.bf16.mxu0 %v18133_v47 }
 0xe66   :  { %15499 = vmatpush3.bf16.msra.mxu0 %v22960_v8 }
 0xe67   :  { %15500 = vmatprep.subr.bf16.mxu0 %v22961_v63 }
 0xe69   :  { %8488 = vmatmul.mubr.bf16.gmra.mxu0 %v17627_v48 }
 0xe6a   :  { %15501 = vmatpush3.bf16.msra.mxu0 %v22962_v49  ;;  %8495 = vmatprep.mubr.bf16.mxu0 %v17635_v9  ;;  %v21709_v9 = vpop.f32.mrf.mxu1 }
 0xe6b   :  { %15502 = vmatprep.subr.bf16.mxu0 %v22963_v28 }
 0xe6e   :  { %15503 = vmatpush3.bf16.msra.mxu0 %v22964_v26 }
 0xe6f   :  { %15504 = vmatprep.subr.bf16.mxu0 %v22965_v16 }
 0xe71   :  { %8496 = vmatmul.mubr.bf16.gmra.mxu0 %v17633_v45  ;;  %v23321_v45 = vld [vmem:[#allocation4_spill] sm:$0xff] }
 0xe72   :  { %15505 = vmatpush3.bf16.msra.mxu0 %v22966_v17  ;;  %8503 = vmatprep.mubr.bf16.mxu0 %v17641_v23 }
 0xe73   :  { %15506 = vmatprep.subr.bf16.mxu0 %v22967_v4 }
 0xe76   :  { %15507 = vmatpush3.bf16.msra.mxu0 %v22968_v50 }
 0xe77   :  { %15508 = vmatprep.subr.bf16.mxu0 %v22969_v43 }
 0xe79   :  { %8504 = vmatmul.mubr.bf16.gmra.mxu0 %v17639_v52  ;;  %v17682_v52 = vld [vmem:[%s22907_s3 + $0xe24] ss:$16 sps:$4 sm:$0xff]  }
 0xe7a   :  { %15509 = vmatpush3.bf16.msra.mxu0 %v23313_v30  ;;  %8511 = vmatprep.mubr.bf16.mxu0 %v17647_v58  ;;  %v17680_v58 = vld [vmem:[%s22907_s3 + $0xe20] ss:$16 sps:$4 sm:$0xff]  }
 0xe7b   :  { %15510 = vmatprep.subr.bf16.mxu0 %v23314_v29 }
 0xe7e   :  { %15511 = vmatpush3.bf16.msra.mxu0 %v23315_v7 }
 0xe7f   :  { %16456 = vmatprep.subr.bf16.mxu0 %v17669_v12 }
 0xe81   :  { %8512 = vmatmul.mubr.bf16.gmra.mxu0 %v17645_v11 }
 0xe82   :  { %8519 = vmatprep.mubr.bf16.mxu0 %v17653_v21  ;;  %v17688_v21 = vld [vmem:[%s22907_s3 + $0xe44] ss:$16 sps:$4 sm:$0xff]  }
 0xe89   :  { %8520 = vmatmul.mubr.bf16.gmra.mxu0 %v17651_v37 }
 0xe8a   :  { %8527 = vmatprep.mubr.bf16.mxu0 %v17659_v3  ;;  %v17686_v3 = vld [vmem:[%s22907_s3 + $0xe40] ss:$16 sps:$4 sm:$0xff]  }
 0xe91   :  { %8528 = vmatmul.mubr.bf16.gmra.mxu0 %v17657_v31 }
 0xe92   :  { %8535 = vmatprep.mubr.bf16.mxu0 %v17665_v56 }
 0xe99   :  { %8536 = vmatmul.mubr.bf16.gmra.mxu0 %v17663_v34  ;;  %v23324_v34 = vld [vmem:[#allocation12_spill] sm:$0xff] }
 0xe9a   :  { %8955 = vmatprep.mubr.bf16.mxu0 %v17668_v27 }
 0xea1   :  { %8956 = vmatmul.mubr.bf16.vlgmr.msra.gmra.mxu0 %v17666_v55 }
 0xea2   :  { %16457 = vmatpush3.bf16.msra.mxu0 %v17669_v12  ;;  %8963 = vmatprep.mubr.bf16.mxu0 %v17682_v52  ;;  %v21720_v12 = vpop.f32.mrf.mxu1 }
 0xea3   :  { %16458 = vmatprep.subr.bf16.mxu0 %v17670_v24 }
 0xea4   :  { %v21722_v11 = vpop.f32.mrf.mxu1 }
 0xea6   :  { %16459 = vmatpush3.bf16.msra.mxu0 %v17670_v24  ;;  %v21732_v56 = vpop.f32.mrf.mxu1  ;;  %v23326_v24 = vld [vmem:[#allocation13_spill] sm:$0xff] }
 0xea7   :  { %16460 = vmatprep.subr.bf16.mxu0 %v17671_v42 }
 0xea9   :  { %8964 = vmatmul.mubr.bf16.gmra.mxu0 %v17680_v58  ;;  %v23331_v58 = vld [vmem:[#allocation19_spill] sm:$0xff] }
 0xeaa   :  { %16461 = vmatpush3.bf16.msra.mxu0 %v17671_v42  ;;  %8971 = vmatprep.mubr.bf16.mxu0 %v17688_v21 }
 0xeab   :  { %16462 = vmatprep.subr.bf16.mxu0 %v17672_v32 }
 0xeae   :  { %16463 = vmatpush3.bf16.msra.mxu0 %v17672_v32 }
 0xeaf   :  { %16464 = vmatprep.subr.bf16.mxu0 %v17673_v61 }
 0xeb1   :  { %8972 = vmatmul.mubr.bf16.gmra.mxu0 %v17686_v3 }
 0xeb2   :  { %16465 = vmatpush3.bf16.msra.mxu0 %v17673_v61  ;;  %v21740_v61 = vpop.f32.mrf.mxu1 }
 0xeb3   :  { %16466 = vmatprep.subr.bf16.mxu0 %v17674_v57 }
 0xeb6   :  { %16467 = vmatpush3.bf16.msra.mxu0 %v17674_v57  ;;  %v23328_v57 = vld [vmem:[#allocation17_spill] sm:$0xff] }
 0xeb7   :  { %16468 = vmatprep.subr.bf16.mxu0 %v17675_v46 }
 0xeba   :  { %16469 = vmatpush3.bf16.msra.mxu0 %v17675_v46 }
 0xebb   :  { %16470 = vmatprep.subr.bf16.mxu0 %v17676_v53 }
 0xebe   :  { %16471 = vmatpush3.bf16.msra.mxu0 %v17676_v53  ;;  %v17694_v53 = vld [vmem:[%s22907_s3 + $0xe64] ss:$16 sps:$4 sm:$0xff]  }
 0xebf   :  { %15704 = vmatprep.subr.bf16.mxu0 %v23316_v13  ;;  %v17692_v13 = vld [vmem:[%s22907_s3 + $0xe60] ss:$16 sps:$4 sm:$0xff]   ;;  %8979 = vmatprep.mubr.bf16.mxu0 %v17694_v53 }
 0xec0   :  { %8980 = vmatmul.mubr.bf16.gmra.mxu0 %v17692_v13  ;;  %v17704_v53 = vld [vmem:[%s22907_s3 + $0xea0] ss:$16 sps:$4 sm:$0xff]   ;;  %v17706_v13 = vld [vmem:[%s22907_s3 + $0xea4] ss:$16 sps:$4 sm:$0xff]  }
 0xee9   :  { %v16410_v2 = vpop.f32.mrf.mxu0 }
 0xeea   :  { %v21704_v59 = vadd.f32 %v16410_v2, %v23317_v39  ;;  %v21751_v2 = vpop.f32.mrf.mxu1 }
 0xeeb   :  { %v8078_v62 = vpop.f32.mrf.mxu0 }
 0xeec   :  { %23318 = vst [vmem:[#allocation16_spill] sm:$0xff] %v21704_v59  ;;  %v21707_v44 = vadd.f32 %v8078_v62, %v23319_v54  ;;  %v21753_v39 = vpop.f32.mrf.mxu1  ;;  %v17700_v62 = vld [vmem:[%s22907_s3 + $0xe84] ss:$16 sps:$4 sm:$0xff]  }
 0xeed   :  { %v16411_v48 = vpop.f32.mrf.mxu0  ;;  %8987 = vmatprep.mubr.bf16.mxu0 %v17700_v62 }
 0xeee   :  { %23320 = vst [vmem:[#allocation9_spill] sm:$0xff] %v21707_v44  ;;  %v21712_v23 = vadd.f32 %v16411_v48, %v23321_v45  ;;  %v17698_v48 = vld [vmem:[%s22907_s3 + $0xe80] ss:$16 sps:$4 sm:$0xff]   ;;  %v21763_v52 = vpop.f32.mrf.mxu1 }
 0xeef   :  { %v21727_v37 = vpop.f32.mrf.mxu0  ;;  %8988 = vmatmul.mubr.bf16.gmra.mxu0 %v17698_v48 }
 0xef0   :  { %23322 = vst [vmem:[#allocation10_spill] sm:$0xff] %v21712_v23  ;;  %23323 = vst [vmem:[#allocation4_spill] sm:$0xff] %v21727_v37  ;;  %8995 = vmatprep.mubr.bf16.mxu0 %v17706_v13 }
 0xef7   :  { %8996 = vmatmul.mubr.bf16.gmra.mxu0 %v17704_v53 }
 0xef9   :  { %v16414_v31 = vpop.f32.mrf.mxu0 }
 0xefa   :  { %v21735_v27 = vadd.f32 %v16414_v31, %v23324_v34  ;;  %v23333_v31 = vld [vmem:[#allocation20_spill] sm:$0xff] }
 0xefb   :  { %v8094_v55 = vpop.f32.mrf.mxu0 }
 0xefc   :  { %23325 = vst [vmem:[#allocation12_spill] sm:$0xff] %v21735_v27  ;;  %v21738_v42 = vadd.f32 %v8094_v55, %v23326_v24  ;;  %v21771_v24 = vpop.f32.mrf.mxu1 }
 0xefd   :  { %v16415_v32 = vpop.f32.mrf.mxu0 }
 0xefe   :  { %23327 = vst [vmem:[#allocation13_spill] sm:$0xff] %v21738_v42  ;;  %v21743_v46 = vadd.f32 %v16415_v32, %v23328_v57  ;;  %v23335_v32 = vld [vmem:[#allocation21_spill] sm:$0xff]  ;;  %v21782_v62 = vpop.f32.mrf.mxu1 }
 0xeff   :  { %v21758_v54 = vpop.f32.mrf.mxu0 }
 0xf00   :  { %23329 = vst [vmem:[#allocation17_spill] sm:$0xff] %v21743_v46  ;;  %23330 = vst [vmem:[#allocation67_spill] sm:$0xff] %v21758_v54  ;;  %v21784_v48 = vpop.f32.mrf.mxu1  ;;  %v23340_v54 = vld [vmem:[#allocation24_spill] sm:$0xff] }
 0xf09   :  { %v16418_v45 = vpop.f32.mrf.mxu0 }
 0xf0a   :  { %v21766_v21 = vadd.f32 %v16418_v45, %v23331_v58  ;;  %v17710_v45 = vld [vmem:[%s22907_s3 + $0xec0] ss:$16 sps:$4 sm:$0xff]   ;;  %v17712_v58 = vld [vmem:[%s22907_s3 + $0xec4] ss:$16 sps:$4 sm:$0xff]  }
 0xf0b   :  { %v8110_v3 = vpop.f32.mrf.mxu0  ;;  %9003 = vmatprep.mubr.bf16.mxu0 %v17712_v58  ;;  %v17716_v58 = vld [vmem:[%s22907_s3 + $0xee0] ss:$16 sps:$4 sm:$0xff]  }
 0xf0c   :  { %23332 = vst [vmem:[#allocation19_spill] sm:$0xff] %v21766_v21  ;;  %v21769_v34 = vadd.f32 %v8110_v3, %v23333_v31  ;;  %9004 = vmatmul.mubr.bf16.gmra.mxu0 %v17710_v45  ;;  %v23342_v21 = vld [vmem:[#allocation25_spill] sm:$0xff] }
 0xf0d   :  { %v16419_v55 = vpop.f32.mrf.mxu0  ;;  %v17718_v45 = vld [vmem:[%s22907_s3 + $0xee4] ss:$16 sps:$4 sm:$0xff]  }
 0xf0e   :  { %23334 = vst [vmem:[#allocation20_spill] sm:$0xff] %v21769_v34  ;;  %v21774_v57 = vadd.f32 %v16419_v55, %v23335_v32  ;;  %v21794_v55 = vpop.f32.mrf.mxu1  ;;  %v23338_v32 = vld [vmem:[#allocation23_spill] sm:$0xff]  ;;  %9011 = vmatprep.mubr.bf16.mxu0 %v17718_v45 }
 0xf0f   :  { %v21792_v3 = vpop.f32.mrf.mxu0 }
 0xf10   :  { %23336 = vst [vmem:[#allocation21_spill] sm:$0xff] %v21774_v57  ;;  %23337 = vst [vmem:[#allocation68_spill] sm:$0xff] %v21792_v3  ;;  %v15390_v34 = vpop.f32.mrf.mxu1 }
 0xf14   :  { %9012 = vmatmul.mubr.bf16.gmra.mxu0 %v17716_v58 }
 0xf19   :  { %v16422_v31 = vpop.f32.mrf.mxu0 }
 0xf1a   :  { %v21797_v13 = vadd.f32 %v16422_v31, %v23338_v32  ;;  %v21813_v32 = vpop.f32.mrf.mxu1 }
 0xf1b   :  { %v8126_v53 = vpop.f32.mrf.mxu0 }
 0xf1c   :  { %23339 = vst [vmem:[#allocation23_spill] sm:$0xff] %v21797_v13  ;;  %v21800_v37 = vadd.f32 %v8126_v53, %v23340_v54  ;;  %v15373_v13 = vadd.f32 %v21709_v9, %v21701_v19 }
 0xf1d   :  { %v16423_v57 = vpop.f32.mrf.mxu0 }
 0xf1e   :  { %23341 = vst [vmem:[#allocation24_spill] sm:$0xff] %v21800_v37  ;;  %v21803_v46 = vadd.f32 %v16423_v57, %v23342_v21  ;;  %v21815_v37 = vpop.f32.mrf.mxu1 }
 0xf1f   :  { %v21811_v3 = vpop.f32.mrf.mxu0 }
 0xf20   :  { %23343 = vst [vmem:[#allocation25_spill] sm:$0xff] %v21803_v46  ;;  %23344 = vst [vmem:[#allocation69_spill] sm:$0xff] %v21811_v3  ;;  %v15370_v46 = vadd.f32 %v21699_v25, %v21697_v1  ;;  %v15395_v3 = vpop.f32.mrf.mxu1  ;;  %v15379_v1 = vadd.f32 %v21740_v61, %v21732_v56 }
 0xf21   :  { %v15432_v31 = vpop.f32.mrf.mxu0 }
 0xf22   :  { %v15396_v7 = vpop.f32.mrf.mxu1 }
 0xf23   :  { %v15433_v54 = vpop.f32.mrf.mxu0 }
 0xf24   :  { %v15434_v21 = vadd.f32 %v15433_v54, %v15432_v31  ;;  %v15376_v31 = vadd.f32 %v21722_v11, %v21720_v12  ;;  %v21825_v9 = vpop.f32.mrf.mxu1 }
 0xf25   :  { %v15435_v53 = vpop.f32.mrf.mxu0 }
 0xf26   :  { %v8482_v45 = vadd.f32 %v15434_v21, %v15370_v46 }
 0xf27   :  { %v15436_v57 = vpop.f32.mrf.mxu0 }
 0xf28   :  { %v15437_v42 = vadd.f32 %v15436_v57, %v15435_v53  ;;  %v15399_v53 = vpop.f32.mrf.mxu1 }
 0xf29   :  { %v15438_v27 = vpop.f32.mrf.mxu0 }
 0xf2a   :  { %v8485_v23 = vadd.f32 %v15437_v42, %v15373_v13  ;;  %v15401_v11 = vpop.f32.mrf.mxu1 }
 0xf2b   :  { %v15439_v44 = vpop.f32.mrf.mxu0 }
 0xf2c   :  { %v8544_v59 = vpack.c.bf16 %v8485_v23, %v8482_v45  ;;  %v15440_v29 = vadd.f32 %v15439_v44, %v15438_v27  ;;  %v15382_v44 = vadd.f32 %v21753_v39, %v21751_v2  ;;  %v15388_v39 = vadd.f32 %v21784_v48, %v21782_v62 }
 0xf2d   :  { %v15441_v58 = vpop.f32.mrf.mxu0  ;;  %v15394_v62 = vadd.f32 %v21815_v37, %v21813_v32  ;;  %v15397_v48 = vadd.f32 %v15396_v7, %v15395_v3  ;;  %v15400_v37 = vadd.f32 %v15399_v53, %v21825_v9 }
 0xf2e   :  { %16440 = vmatprep.mubr.bf16.mxu1 %v8544_v59  ;;  %v8490_v54 = vadd.f32 %v15440_v29, %v15376_v31 }
 0xf2f   :  { %v15442_v30 = vpop.f32.mrf.mxu0 }
 0xf30   :  { %v15443_v25 = vadd.f32 %v15442_v30, %v15441_v58  ;;  %v15385_v30 = vadd.f32 %v21771_v24, %v21763_v52  ;;  %v15402_v58 = vpop.f32.mrf.mxu1  ;;  %v15391_v52 = vadd.f32 %v15390_v34, %v21794_v55 }
 0xf31   :  { %v15444_v19 = vpop.f32.mrf.mxu0  ;;  %v15403_v3 = vadd.f32 %v15402_v58, %v15401_v11 }
 0xf32   :  { %v8493_v46 = vadd.f32 %v15443_v25, %v15379_v1  ;;  %v15404_v25 = vpop.f32.mrf.mxu1 }
 0xf33   :  { %v15445_v42 = vpop.f32.mrf.mxu0 }
 0xf34   :  { %v8545_v13 = vpack.c.bf16 %v8493_v46, %v8490_v54  ;;  %v15446_v21 = vadd.f32 %v15445_v42, %v15444_v19 }
 0xf35   :  { %v15447_v23 = vpop.f32.mrf.mxu0 }
 0xf36   :  { %16441 = vmatmul.mubr.bf16.vlgmr.msra.gmra.mxu1 %v8545_v13  ;;  %v8498_v56 = vadd.f32 %v15446_v21, %v15382_v44 }
 0xf37   :  { %15561 = vmatpush3.bf16.msra.mxu1 %v18369_v18  ;;  %v15448_v59 = vpop.f32.mrf.mxu0 }
 0xf38   :  { %v15449_v12 = vadd.f32 %v15448_v59, %v15447_v23  ;;  %15562 = vmatprep.subr.bf16.mxu1 %v18374_v22  ;;  %v15405_v23 = vpop.f32.mrf.mxu1 }
 0xf39   :  { %v15450_v29 = vpop.f32.mrf.mxu0  ;;  %v15406_v9 = vadd.f32 %v15405_v23, %v15404_v25  ;;  %v17679_v25 = vld [vmem:[%s22907_s3 + $0xe0c] ss:$16 sps:$4 sm:$0xff]  }
 0xf3a   :  { %v8501_v27 = vadd.f32 %v15449_v12, %v15385_v30  ;;  %v15407_v44 = vpop.f32.mrf.mxu1 }
 0xf3b   :  { %15563 = vmatpush3.bf16.msra.mxu1 %v18389_v14  ;;  %v15451_v61 = vpop.f32.mrf.mxu0 }
 0xf3c   :  { %15564 = vmatprep.subr.bf16.mxu1 %v18396_v35  ;;  %v8546_v57 = vpack.c.bf16 %v8501_v27, %v8498_v56  ;;  %v15452_v31 = vadd.f32 %v15451_v61, %v15450_v29  ;;  %v15408_v61 = vpop.f32.mrf.mxu1 }
 0xf3d   :  { %v15453_v45 = vpop.f32.mrf.mxu0  ;;  %v15409_v53 = vadd.f32 %v15408_v61, %v15407_v44  ;;  %v17677_v44 = vld [vmem:[%s22907_s3 + $0xe08] ss:$16 sps:$4 sm:$0xff]   ;;  %v17685_v61 = vld [vmem:[%s22907_s3 + $0xe2c] ss:$16 sps:$4 sm:$0xff]  }
 0xf3e   :  { %16444 = vmatprep.mubr.bf16.mxu1 %v8546_v57  ;;  %v8506_v19 = vadd.f32 %v15452_v31, %v15388_v39  ;;  %v15410_v31 = vpop.f32.mrf.mxu1 }
 0xf3f   :  { %15565 = vmatpush3.bf16.msra.mxu1 %v18407_v33  ;;  %v15454_v2 = vpop.f32.mrf.mxu0 }
 0xf40   :  { %v15455_v24 = vadd.f32 %v15454_v2, %v15453_v45  ;;  %15566 = vmatprep.subr.bf16.mxu1 %v18411_v6 }
 0xf41   :  { %v15456_v1 = vpop.f32.mrf.mxu0 }
 0xf42   :  { %v8509_v54 = vadd.f32 %v15455_v24, %v15391_v52 }
 0xf43   :  { %15567 = vmatpush3.bf16.msra.mxu1 %v18425_v0  ;;  %v15457_v46 = vpop.f32.mrf.mxu0 }
 0xf44   :  { %v8547_v42 = vpack.c.bf16 %v8509_v54, %v8506_v19  ;;  %15568 = vmatprep.subr.bf16.mxu1 %v18432_v60  ;;  %v15458_v21 = vadd.f32 %v15457_v46, %v15456_v1  ;;  %v15411_v19 = vpop.f32.mrf.mxu1 }
 0xf45   :  { %v15459_v13 = vpop.f32.mrf.mxu0 }
 0xf46   :  { %16445 = vmatmul.mubr.bf16.gmra.mxu1 %v8547_v42  ;;  %v8514_v30 = vadd.f32 %v15458_v21, %v15394_v62  ;;  %v15413_v42 = vpop.f32.mrf.mxu1 }
 0xf47   :  { %15569 = vmatpush3.bf16.msra.mxu1 %v18196_v40  ;;  %v15460_v34 = vpop.f32.mrf.mxu0 }
 0xf48   :  { %v15461_v55 = vadd.f32 %v15460_v34, %v15459_v13  ;;  %15570 = vmatprep.subr.bf16.mxu1 %v18445_v36 }
 0xf49   :  { %v15462_v59 = vpop.f32.mrf.mxu0 }
 0xf4a   :  { %v8517_v12 = vadd.f32 %v15461_v55, %v15397_v48  ;;  %v15414_v55 = vpop.f32.mrf.mxu1 }
 0xf4b   :  { %15571 = vmatpush3.bf16.msra.mxu1 %v18459_v5  ;;  %v15463_v29 = vpop.f32.mrf.mxu0 }
 0xf4c   :  { %15572 = vmatprep.subr.bf16.mxu1 %v18466_v10  ;;  %v8548_v56 = vpack.c.bf16 %v8517_v12, %v8514_v30  ;;  %v15464_v57 = vadd.f32 %v15463_v29, %v15462_v59  ;;  %v15415_v12 = vadd.f32 %v15414_v55, %v15413_v42  ;;  %v17728_v42 = vld [vmem:[%s22907_s3 + $0xf20] ss:$16 sps:$4 sm:$0xff]  }
 0xf4d   :  { %v15465_v27 = vpop.f32.mrf.mxu0 }
 0xf4e   :  { %16448 = vmatprep.mubr.bf16.mxu1 %v8548_v56  ;;  %v8522_v2 = vadd.f32 %v15464_v57, %v15400_v37  ;;  %v17683_v57 = vld [vmem:[%s22907_s3 + $0xe28] ss:$16 sps:$4 sm:$0xff]   ;;  %v17721_v37 = vld [vmem:[%s22907_s3 + $0xeec] ss:$16 sps:$4 sm:$0xff]  }
 0xf4f   :  { %15573 = vmatpush3.bf16.msra.mxu1 %v18162_v20  ;;  %v15466_v7 = vpop.f32.mrf.mxu0 }
 0xf50   :  { %v15467_v32 = vadd.f32 %v15466_v7, %v15465_v27  ;;  %15574 = vmatprep.subr.bf16.mxu1 %v18473_v51  ;;  %v17691_v7 = vld [vmem:[%s22907_s3 + $0xe4c] ss:$16 sps:$4 sm:$0xff]  }
 0xf51   :  { %v15468_v45 = vpop.f32.mrf.mxu0 }
 0xf52   :  { %v8525_v39 = vadd.f32 %v15467_v32, %v15403_v3  ;;  %v17719_v3 = vld [vmem:[%s22907_s3 + $0xee8] ss:$16 sps:$4 sm:$0xff]  }
 0xf53   :  { %15575 = vmatpush3.bf16.msra.mxu1 %v18480_v15  ;;  %v15469_v52 = vpop.f32.mrf.mxu0 }
 0xf54   :  { %v8549_v24 = vpack.c.bf16 %v8525_v39, %v8522_v2  ;;  %15640 = vmatprep.subr.bf16.mxu1 %v18125_v38  ;;  %v15470_v54 = vadd.f32 %v15469_v52, %v15468_v45  ;;  %v15412_v38 = vadd.f32 %v15411_v19, %v15410_v31  ;;  %v17722_v31 = vld [vmem:[%s22907_s3 + $0xf00] ss:$16 sps:$4 sm:$0xff]   ;;  %v17724_v2 = vld [vmem:[%s22907_s3 + $0xf04] ss:$16 sps:$4 sm:$0xff]  }
 0xf55   :  { %v15471_v1 = vpop.f32.mrf.mxu0 }
 0xf56   :  { %16449 = vmatmul.mubr.bf16.gmra.mxu1 %v8549_v24  ;;  %v8530_v13 = vadd.f32 %v15470_v54, %v15406_v9  ;;  %v23348_v24 = vld [vmem:[#allocation16_spill] sm:$0xff]  ;;  %v23349_v54 = vld [vmem:[#allocation9_spill] sm:$0xff] }
 0xf57   :  { %v15472_v46 = vpop.f32.mrf.mxu0 }
 0xf58   :  { %v15473_v11 = vadd.f32 %v15472_v46, %v15471_v1 }
 0xf59   :  { %v15474_v58 = vpop.f32.mrf.mxu0 }
 0xf5a   :  { %v8533_v21 = vadd.f32 %v15473_v11, %v15409_v53  ;;  %v23350_v11 = vld [vmem:[#allocation10_spill] sm:$0xff] }
 0xf5b   :  { %v15475_v34 = vpop.f32.mrf.mxu0 }
 0xf5c   :  { %v8550_v62 = vpack.c.bf16 %v8533_v21, %v8530_v13  ;;  %v15476_v59 = vadd.f32 %v15475_v34, %v15474_v58  ;;  %v17730_v13 = vld [vmem:[%s22907_s3 + $0xf24] ss:$16 sps:$4 sm:$0xff]  }
 0xf5d   :  { %v15477_v48 = vpop.f32.mrf.mxu0 }
 0xf5e   :  { %16452 = vmatprep.mubr.bf16.mxu1 %v8550_v62  ;;  %v8538_v56 = vadd.f32 %v15476_v59, %v15412_v38  ;;  %v17734_v62 = vld [vmem:[%s22907_s3 + $0xf40] ss:$16 sps:$4 sm:$0xff]   ;;  %v23351_v38 = vld [vmem:[#allocation12_spill] sm:$0xff] }
 0xf5f   :  { %v15478_v30 = vpop.f32.mrf.mxu0 }
 0xf60   :  { %v15479_v29 = vadd.f32 %v15478_v30, %v15477_v48  ;;  %v17736_v48 = vld [vmem:[%s22907_s3 + $0xf44] ss:$16 sps:$4 sm:$0xff]  }
 0xf61   :  { %v21916_v32 = vpop.f32.mrf.mxu0 }
 0xf62   :  { %v8541_v27 = vadd.f32 %v15479_v29, %v15415_v12 }
 0xf63   :  { %v21918_v45 = vpop.f32.mrf.mxu0 }
 0xf64   :  { %v8551_v23 = vpack.c.bf16 %v8541_v27, %v8538_v56  ;;  %v23352_v56 = vld [vmem:[#allocation13_spill] sm:$0xff] }
 0xf65   :  { %v21926_v52 = vpop.f32.mrf.mxu0 }
 0xf66   :  { %16453 = vmatmul.mubr.bf16.gmra.mxu1 %v8551_v23 }
 0xf67   :  { %9052 = vmatprep.mubr.bf16.mxu1 %v17679_v25  ;;  %v21934_v53 = vpop.f32.mrf.mxu0 }
 0xf69   :  { %v21945_v21 = vpop.f32.mrf.mxu0 }
 0xf6b   :  { %v21947_v34 = vpop.f32.mrf.mxu0 }
 0xf6d   :  { %v21957_v30 = vpop.f32.mrf.mxu0 }
 0xf6e   :  { %9053 = vmatmul.mubr.bf16.vlgmr.msra.gmra.mxu1 %v17677_v44  ;;  %v23353_v44 = vld [vmem:[#allocation17_spill] sm:$0xff] }
 0xf6f   :  { %15641 = vmatpush3.bf16.msra.mxu1 %v18128_v41  ;;  %9060 = vmatprep.mubr.bf16.mxu1 %v17685_v61  ;;  %v17689_v41 = vld [vmem:[%s22907_s3 + $0xe48] ss:$16 sps:$4 sm:$0xff]   ;;  %v21965_v23 = vpop.f32.mrf.mxu0 }
 0xf70   :  { %15642 = vmatprep.subr.bf16.mxu1 %v18133_v47  ;;  %v17697_v47 = vld [vmem:[%s22907_s3 + $0xe6c] ss:$16 sps:$4 sm:$0xff]  }
 0xf73   :  { %15643 = vmatpush3.bf16.msra.mxu1 %v22960_v8  ;;  %v17695_v8 = vld [vmem:[%s22907_s3 + $0xe68] ss:$16 sps:$4 sm:$0xff]  }
 0xf74   :  { %15644 = vmatprep.subr.bf16.mxu1 %v22961_v63  ;;  %v17703_v63 = vld [vmem:[%s22907_s3 + $0xe8c] ss:$16 sps:$4 sm:$0xff]  }
 0xf76   :  { %9061 = vmatmul.mubr.bf16.gmra.mxu1 %v17683_v57  ;;  %v17740_v57 = vld [vmem:[%s22907_s3 + $0xf60] ss:$16 sps:$4 sm:$0xff]  }
 0xf77   :  { %15645 = vmatpush3.bf16.msra.mxu1 %v22962_v49  ;;  %9068 = vmatprep.mubr.bf16.mxu1 %v17691_v7  ;;  %v23345_v49 = vld [vmem:[#allocation3_spill] sm:$0xff] }
 0xf78   :  { %15646 = vmatprep.subr.bf16.mxu1 %v22963_v28  ;;  %v23346_v28 = vld [vmem:[#allocation14_spill] sm:$0xff]  ;;  %v17742_v7 = vld [vmem:[%s22907_s3 + $0xf64] ss:$16 sps:$4 sm:$0xff]  }
 0xf7b   :  { %15647 = vmatpush3.bf16.msra.mxu1 %v22964_v26  ;;  %v17701_v26 = vld [vmem:[%s22907_s3 + $0xe88] ss:$16 sps:$4 sm:$0xff]  }
 0xf7c   :  { %15648 = vmatprep.subr.bf16.mxu1 %v22965_v16  ;;  %v23347_v16 = vld [vmem:[#allocation15_spill] sm:$0xff] }
 0xf7e   :  { %9069 = vmatmul.mubr.bf16.gmra.mxu1 %v17689_v41  ;;  %v21976_v41 = vpop.f32.mrf.mxu0 }
 0xf7f   :  { %15649 = vmatpush3.bf16.msra.mxu1 %v22966_v17  ;;  %9076 = vmatprep.mubr.bf16.mxu1 %v17697_v47  ;;  %v17709_v17 = vld [vmem:[%s22907_s3 + $0xeac] ss:$16 sps:$4 sm:$0xff]  }
 0xf80   :  { %15650 = vmatprep.subr.bf16.mxu1 %v22967_v4  ;;  %v17707_v4 = vld [vmem:[%s22907_s3 + $0xea8] ss:$16 sps:$4 sm:$0xff]   ;;  %v21978_v47 = vpop.f32.mrf.mxu0 }
 0xf83   :  { %15651 = vmatpush3.bf16.msra.mxu1 %v22968_v50  ;;  %v17715_v50 = vld [vmem:[%s22907_s3 + $0xecc] ss:$16 sps:$4 sm:$0xff]  }
 0xf84   :  { %15652 = vmatprep.subr.bf16.mxu1 %v22969_v43  ;;  %v17713_v43 = vld [vmem:[%s22907_s3 + $0xec8] ss:$16 sps:$4 sm:$0xff]  }
 0xf86   :  { %9077 = vmatmul.mubr.bf16.gmra.mxu1 %v17695_v8  ;;  %v17746_v8 = vld [vmem:[%s22907_s3 + $0xf80] ss:$16 sps:$4 sm:$0xff]  }
 0xf87   :  { %15653 = vmatpush3.bf16.msra.mxu1 %v23345_v49  ;;  %9084 = vmatprep.mubr.bf16.mxu1 %v17703_v63  ;;  %v17748_v63 = vld [vmem:[%s22907_s3 + $0xf84] ss:$16 sps:$4 sm:$0xff]  }
 0xf88   :  { %15654 = vmatprep.subr.bf16.mxu1 %v23346_v28 }
 0xf8b   :  { %15655 = vmatpush3.bf16.msra.mxu1 %v23347_v16  ;;  %v23355_v16 = vld [vmem:[#allocation19_spill] sm:$0xff] }
 0xf8e   :  { %9085 = vmatmul.mubr.bf16.gmra.mxu1 %v17701_v26  ;;  %v21988_v26 = vpop.f32.mrf.mxu0 }
 0xf8f   :  { %9092 = vmatprep.mubr.bf16.mxu1 %v17709_v17 }
 0xf96   :  { %9093 = vmatmul.mubr.bf16.gmra.mxu1 %v17707_v4 }
 0xf97   :  { %9100 = vmatprep.mubr.bf16.mxu1 %v17715_v50  ;;  %v23356_v50 = vld [vmem:[#allocation20_spill] sm:$0xff] }
 0xf9e   :  { %9101 = vmatmul.mubr.bf16.gmra.mxu1 %v17713_v43 }
 0xf9f   :  { %9108 = vmatprep.mubr.bf16.mxu1 %v17721_v37 }
 0xfa6   :  { %9109 = vmatmul.mubr.bf16.gmra.mxu1 %v17719_v3  ;;  %v21996_v3 = vpop.f32.mrf.mxu0 }
 0xfa7   :  { %9528 = vmatprep.mubr.bf16.mxu1 %v17724_v2 }
 0xfae   :  { %9529 = vmatmul.mubr.bf16.vlgmr.msra.gmra.mxu1 %v17722_v31  ;;  %v23357_v31 = vld [vmem:[#allocation21_spill] sm:$0xff] }
 0xfaf   :  { %9536 = vmatprep.mubr.bf16.mxu1 %v17730_v13 }
 0xfb6   :  { %9537 = vmatmul.mubr.bf16.gmra.mxu1 %v17728_v42 }
 0xfb7   :  { %9544 = vmatprep.mubr.bf16.mxu1 %v17736_v48  ;;  %v23359_v48 = vld [vmem:[#allocation23_spill] sm:$0xff] }
 0xfbe   :  { %9545 = vmatmul.mubr.bf16.gmra.mxu1 %v17734_v62 }
 0xfbf   :  { %9552 = vmatprep.mubr.bf16.mxu1 %v17742_v7 }
 0xfc6   :  { %9553 = vmatmul.mubr.bf16.gmra.mxu1 %v17740_v57  ;;  %v23361_v57 = vld [vmem:[#allocation25_spill] sm:$0xff] }
 0xfc7   :  { %9560 = vmatprep.mubr.bf16.mxu1 %v17748_v63  ;;  %v17766_v63 = vld [vmem:[%s22907_s3 + $0xfe4] ss:$16 sps:$4 sm:$0xff]  }
 0xfce   :  { %9561 = vmatmul.mubr.bf16.gmra.mxu1 %v17746_v8  ;;  %v17764_v8 = vld [vmem:[%s22907_s3 + $0xfe0] ss:$16 sps:$4 sm:$0xff]  }
 0xff6   :  { %v16442_v39 = vpop.f32.mrf.mxu1 }
 0xff7   :  { %v21929_v1 = vadd.f32 %v16442_v39, %v23348_v24  ;;  %v17752_v39 = vld [vmem:[%s22907_s3 + $0xfa0] ss:$16 sps:$4 sm:$0xff]   ;;  %v17754_v24 = vld [vmem:[%s22907_s3 + $0xfa4] ss:$16 sps:$4 sm:$0xff]  }
 0xff8   :  { %v8651_v19 = vpop.f32.mrf.mxu1  ;;  %9568 = vmatprep.mubr.bf16.mxu1 %v17754_v24 }
 0xff9   :  { %v21932_v46 = vadd.f32 %v8651_v19, %v23349_v54  ;;  %v22007_v19 = vpop.f32.mrf.mxu0  ;;  %9569 = vmatmul.mubr.bf16.gmra.mxu1 %v17752_v39 }
 0xffa   :  { %v16443_v9 = vpop.f32.mrf.mxu1 }
 0xffb   :  { %v21937_v58 = vadd.f32 %v16443_v9, %v23350_v11  ;;  %v22009_v54 = vpop.f32.mrf.mxu0  ;;  %v17758_v9 = vld [vmem:[%s22907_s3 + $0xfc0] ss:$16 sps:$4 sm:$0xff]   ;;  %v17760_v11 = vld [vmem:[%s22907_s3 + $0xfc4] ss:$16 sps:$4 sm:$0xff]  }
 0xffc   :  { %v21955_v55 = vpop.f32.mrf.mxu1  ;;  %9576 = vmatprep.mubr.bf16.mxu1 %v17760_v11  ;;  %v15517_v11 = vadd.f32 %v21934_v53, %v21926_v52 }
 0xffd   :  { %v22019_v62 = vpop.f32.mrf.mxu0 }
0x1001   :  { %9577 = vmatmul.mubr.bf16.gmra.mxu1 %v17758_v9  ;;  %v15514_v9 = vadd.f32 %v21918_v45, %v21916_v32  ;;  %v15523_v32 = vadd.f32 %v21965_v23, %v21957_v30 }
0x1002   :  { %9584 = vmatprep.mubr.bf16.mxu1 %v17766_v63 }
0x1006   :  { %v16446_v59 = vpop.f32.mrf.mxu1 }
0x1007   :  { %v21960_v12 = vadd.f32 %v16446_v59, %v23351_v38 }
0x1008   :  { %v8667_v29 = vpop.f32.mrf.mxu1 }
0x1009   :  { %v21963_v27 = vadd.f32 %v8667_v29, %v23352_v56  ;;  %v23360_v29 = vld [vmem:[#allocation24_spill] sm:$0xff]  ;;  %9585 = vmatmul.mubr.bf16.gmra.mxu1 %v17764_v8 }
0x100a   :  { %v16447_v25 = vpop.f32.mrf.mxu1 }
0x100b   :  { %v21968_v61 = vadd.f32 %v16447_v25, %v23353_v44  ;;  %v15534_v44 = vpop.f32.mrf.mxu0 }
0x100c   :  { %v21986_v49 = vpop.f32.mrf.mxu1 }
0x100d   :  { %23354 = vst [vmem:[#allocation3_spill] sm:$0xff] %v21986_v49 }
0x1016   :  { %v16450_v28 = vpop.f32.mrf.mxu1 }
0x1017   :  { %v21991_v17 = vadd.f32 %v16450_v28, %v23355_v16 }
0x1018   :  { %v8683_v4 = vpop.f32.mrf.mxu1 }
0x1019   :  { %v21994_v43 = vadd.f32 %v8683_v4, %v23356_v50  ;;  %v22038_v4 = vpop.f32.mrf.mxu0 }
0x101a   :  { %v16451_v37 = vpop.f32.mrf.mxu1 }
0x101b   :  { %v21999_v2 = vadd.f32 %v16451_v37, %v23357_v31  ;;  %v22040_v31 = vpop.f32.mrf.mxu0 }
0x101c   :  { %v22017_v42 = vpop.f32.mrf.mxu1 }
0x101d   :  { %23358 = vst [vmem:[#allocation14_spill] sm:$0xff] %v22017_v42 }
0x1026   :  { %v16454_v13 = vpop.f32.mrf.mxu1 }
0x1027   :  { %v22022_v59 = vadd.f32 %v16454_v13, %v23359_v48 }
0x1028   :  { %v8699_v38 = vpop.f32.mrf.mxu1 }
0x1029   :  { %v22025_v56 = vadd.f32 %v8699_v38, %v23360_v29  ;;  %v15539_v38 = vpop.f32.mrf.mxu0 }
0x102a   :  { %v16455_v25 = vpop.f32.mrf.mxu1 }
0x102b   :  { %v22028_v7 = vadd.f32 %v16455_v25, %v23361_v57 }
0x102c   :  { %v22036_v28 = vpop.f32.mrf.mxu1 }
0x102d   :  { %23362 = vst [vmem:[#allocation15_spill] sm:$0xff] %v22036_v28  ;;  %v15540_v28 = vpop.f32.mrf.mxu0 }
0x102e   :  { %v15576_v16 = vpop.f32.mrf.mxu1 }
0x102f   :  { %v22050_v53 = vpop.f32.mrf.mxu0 }
0x1030   :  { %v15577_v50 = vpop.f32.mrf.mxu1 }
0x1031   :  { %v15578_v39 = vadd.f32 %v15577_v50, %v15576_v16  ;;  %v15520_v16 = vadd.f32 %v21947_v34, %v21945_v21  ;;  %v15526_v21 = vadd.f32 %v21978_v47, %v21976_v41  ;;  %v15529_v34 = vadd.f32 %v21996_v3, %v21988_v26 }
0x1032   :  { %v15579_v37 = vpop.f32.mrf.mxu1  ;;  %v15535_v47 = vadd.f32 %v15534_v44, %v22019_v62 }
0x1033   :  { %v9055_v29 = vadd.f32 %v15578_v39, %v15514_v9 }
0x1034   :  { %v15580_v24 = vpop.f32.mrf.mxu1 }
0x1035   :  { %v15581_v13 = vadd.f32 %v15580_v24, %v15579_v37 }
0x1036   :  { %v15582_v48 = vpop.f32.mrf.mxu1 }
0x1037   :  { %v9058_v25 = vadd.f32 %v15581_v13, %v15517_v11  ;;  %v15543_v11 = vpop.f32.mrf.mxu0 }
0x1038   :  { %v15583_v57 = vpop.f32.mrf.mxu1 }
0x1039   :  { %v9117_v63 = vpack.c.bf16 %v9058_v25, %v9055_v29  ;;  %v15584_v42 = vadd.f32 %v15583_v57, %v15582_v48 }
0x103a   :  { %v15585_v8 = vpop.f32.mrf.mxu1 }
0x103b   :  { %16472 = vmatprep.mubr.bf16.mxu0 %v9117_v63  ;;  %v9063_v50 = vadd.f32 %v15584_v42, %v15520_v16 }
0x103c   :  { %v15586_v49 = vpop.f32.mrf.mxu1 }
0x103d   :  { %v15587_v45 = vadd.f32 %v15586_v49, %v15585_v8  ;;  %v15545_v49 = vpop.f32.mrf.mxu0 }
0x103e   :  { %v15588_v52 = vpop.f32.mrf.mxu1 }
0x103f   :  { %v9066_v37 = vadd.f32 %v15587_v45, %v15523_v32  ;;  %v15546_v63 = vpop.f32.mrf.mxu0 }
0x1040   :  { %v15589_v39 = vpop.f32.mrf.mxu1 }
0x1041   :  { %v9118_v24 = vpack.c.bf16 %v9066_v37, %v9063_v50  ;;  %v15590_v13 = vadd.f32 %v15589_v39, %v15588_v52  ;;  %v15548_v3 = vpop.f32.mrf.mxu0 }
0x1042   :  { %v15591_v9 = vpop.f32.mrf.mxu1 }
0x1043   :  { %16473 = vmatmul.mubr.bf16.vlgmr.msra.gmra.mxu0 %v9118_v24  ;;  %v9071_v42 = vadd.f32 %v15590_v13, %v15526_v21  ;;  %v15549_v52 = vpop.f32.mrf.mxu0 }
0x1044   :  { %15705 = vmatpush3.bf16.msra.mxu0 %v18369_v18  ;;  %v15592_v48 = vpop.f32.mrf.mxu1 }
0x1045   :  { %v15593_v30 = vadd.f32 %v15592_v48, %v15591_v9  ;;  %15706 = vmatprep.subr.bf16.mxu0 %v18374_v22  ;;  %v15532_v22 = vadd.f32 %v22009_v54, %v22007_v19  ;;  %v15541_v54 = vadd.f32 %v15540_v28, %v15539_v38 }
0x1046   :  { %v15594_v23 = vpop.f32.mrf.mxu1 }
0x1047   :  { %v9074_v29 = vadd.f32 %v15593_v30, %v15529_v34 }
0x1048   :  { %15707 = vmatpush3.bf16.msra.mxu0 %v18389_v14  ;;  %v15595_v25 = vpop.f32.mrf.mxu1 }
0x1049   :  { %15708 = vmatprep.subr.bf16.mxu0 %v18396_v35  ;;  %v9119_v18 = vpack.c.bf16 %v9074_v29, %v9071_v42  ;;  %v15596_v8 = vadd.f32 %v15595_v25, %v15594_v23  ;;  %v15550_v29 = vadd.f32 %v15549_v52, %v15548_v3  ;;  %v17727_v3 = vld [vmem:[%s22907_s3 + $0xf0c] ss:$16 sps:$4 sm:$0xff]   ;;  %v17731_v52 = vld [vmem:[%s22907_s3 + $0xf28] ss:$16 sps:$4 sm:$0xff]  }
0x104a   :  { %v15597_v57 = vpop.f32.mrf.mxu1 }
0x104b   :  { %16476 = vmatprep.mubr.bf16.mxu0 %v9119_v18  ;;  %v9079_v16 = vadd.f32 %v15596_v8, %v15532_v22 }
0x104c   :  { %15709 = vmatpush3.bf16.msra.mxu0 %v18407_v33  ;;  %v15598_v41 = vpop.f32.mrf.mxu1 }
0x104d   :  { %v15599_v26 = vadd.f32 %v15598_v41, %v15597_v57  ;;  %15710 = vmatprep.subr.bf16.mxu0 %v18411_v6  ;;  %v15538_v6 = vadd.f32 %v22040_v31, %v22038_v4  ;;  %v15544_v4 = vadd.f32 %v15543_v11, %v22050_v53 }
0x104e   :  { %v15600_v14 = vpop.f32.mrf.mxu1 }
0x104f   :  { %v9082_v35 = vadd.f32 %v15599_v26, %v15535_v47 }
0x1050   :  { %15711 = vmatpush3.bf16.msra.mxu0 %v18425_v0  ;;  %v15601_v32 = vpop.f32.mrf.mxu1  ;;  %v15551_v0 = vpop.f32.mrf.mxu0 }
0x1051   :  { %v9120_v45 = vpack.c.bf16 %v9082_v35, %v9079_v16  ;;  %15712 = vmatprep.subr.bf16.mxu0 %v18432_v60  ;;  %v15602_v50 = vadd.f32 %v15601_v32, %v15600_v14 }
0x1052   :  { %v15603_v33 = vpop.f32.mrf.mxu1 }
0x1053   :  { %16477 = vmatmul.mubr.bf16.gmra.mxu0 %v9120_v45  ;;  %v9087_v37 = vadd.f32 %v15602_v50, %v15538_v6  ;;  %v17725_v45 = vld [vmem:[%s22907_s3 + $0xf08] ss:$16 sps:$4 sm:$0xff]   ;;  %v17739_v50 = vld [vmem:[%s22907_s3 + $0xf4c] ss:$16 sps:$4 sm:$0xff]  }
0x1054   :  { %15713 = vmatpush3.bf16.msra.mxu0 %v18196_v40  ;;  %v15604_v19 = vpop.f32.mrf.mxu1  ;;  %v15552_v40 = vpop.f32.mrf.mxu0  ;;  %v17745_v6 = vld [vmem:[%s22907_s3 + $0xf6c] ss:$16 sps:$4 sm:$0xff]  }
0x1055   :  { %v15605_v62 = vadd.f32 %v15604_v19, %v15603_v33  ;;  %15714 = vmatprep.subr.bf16.mxu0 %v18445_v36  ;;  %v15547_v36 = vadd.f32 %v15546_v63, %v15545_v49  ;;  %v15553_v25 = vadd.f32 %v15552_v40, %v15551_v0  ;;  %v17733_v33 = vld [vmem:[%s22907_s3 + $0xf2c] ss:$16 sps:$4 sm:$0xff]   ;;  %v17737_v19 = vld [vmem:[%s22907_s3 + $0xf48] ss:$16 sps:$4 sm:$0xff]  }
0x1056   :  { %v15606_v44 = vpop.f32.mrf.mxu1  ;;  %v15554_v48 = vpop.f32.mrf.mxu0  ;;  %v17757_v0 = vld [vmem:[%s22907_s3 + $0xfac] ss:$16 sps:$4 sm:$0xff]   ;;  %v17767_v40 = vld [vmem:[%s22907_s3 + $0xfe8] ss:$16 sps:$4 sm:$0xff]  }
0x1057   :  { %v9090_v39 = vadd.f32 %v15605_v62, %v15541_v54  ;;  %v17743_v54 = vld [vmem:[%s22907_s3 + $0xf68] ss:$16 sps:$4 sm:$0xff]   ;;  %v17751_v62 = vld [vmem:[%s22907_s3 + $0xf8c] ss:$16 sps:$4 sm:$0xff]  }
0x1058   :  { %15715 = vmatpush3.bf16.msra.mxu0 %v18459_v5  ;;  %v15607_v60 = vpop.f32.mrf.mxu1  ;;  %v15555_v23 = vpop.f32.mrf.mxu0 }
0x1059   :  { %15716 = vmatprep.subr.bf16.mxu0 %v18466_v10  ;;  %v9121_v24 = vpack.c.bf16 %v9090_v39, %v9087_v37  ;;  %v15608_v13 = vadd.f32 %v15607_v60, %v15606_v44  ;;  %v15556_v47 = vadd.f32 %v15555_v23, %v15554_v48  ;;  %v17749_v44 = vld [vmem:[%s22907_s3 + $0xf88] ss:$16 sps:$4 sm:$0xff]   ;;  %v17763_v39 = vld [vmem:[%s22907_s3 + $0xfcc] ss:$16 sps:$4 sm:$0xff]   ;;  %v17777_v48 = vld [vmem:[%s22908_s4 + $0x3c0] sm:$0xff]  }
0x105a   :  { %v15609_v9 = vpop.f32.mrf.mxu1  ;;  %v15557_v49 = vpop.f32.mrf.mxu0  ;;  %v17755_v37 = vld [vmem:[%s22907_s3 + $0xfa8] ss:$16 sps:$4 sm:$0xff]  }
0x105b   :  { %16480 = vmatprep.mubr.bf16.mxu0 %v9121_v24  ;;  %v9095_v5 = vadd.f32 %v15608_v13, %v15544_v4  ;;  %v17761_v60 = vld [vmem:[%s22907_s3 + $0xfc8] ss:$16 sps:$4 sm:$0xff]   ;;  %v17769_v24 = vld [vmem:[%s22907_s3 + $0xfec] ss:$16 sps:$4 sm:$0xff]   ;;  %v17771_v13 = vld [vmem:[%s22908_s4 + $0x3f0] sm:$0xff]  }
0x105c   :  { %15717 = vmatpush3.bf16.msra.mxu0 %v18162_v20  ;;  %v15610_v28 = vpop.f32.mrf.mxu1  ;;  %v15558_v41 = vpop.f32.mrf.mxu0  ;;  %v17773_v4 = vld [vmem:[%s22908_s4 + $0x3e0] sm:$0xff]  }
0x105d   :  { %v15611_v31 = vadd.f32 %v15610_v28, %v15609_v9  ;;  %15718 = vmatprep.subr.bf16.mxu0 %v18473_v51  ;;  %v15559_v26 = vadd.f32 %v15558_v41, %v15557_v49  ;;  %v17770_v9 = vld [vmem:[%s22908_s4 + $0x3f8] sm:$0xff]   ;;  %v17772_v28 = vld [vmem:[%s22908_s4 + $0x3e8] sm:$0xff]  }
0x105e   :  { %v15612_v38 = vpop.f32.mrf.mxu1  ;;  %16488 = vmatprep.subr.bf16.mxu1 %v17770_v9 }
0x105f   :  { %v9098_v21 = vadd.f32 %v15611_v31, %v15547_v36  ;;  %16489 = vmatpush3.bf16.msra.mxu1 %v17770_v9  ;;  %v17774_v36 = vld [vmem:[%s22908_s4 + $0x3d8] sm:$0xff]   ;;  %v17775_v31 = vld [vmem:[%s22908_s4 + $0x3d0] sm:$0xff]  }
0x1060   :  { %15719 = vmatpush3.bf16.msra.mxu0 %v18480_v15  ;;  %v15613_v10 = vpop.f32.mrf.mxu1  ;;  %16490 = vmatprep.subr.bf16.mxu1 %v17771_v13 }
0x1061   :  { %v9122_v34 = vpack.c.bf16 %v9098_v21, %v9095_v5  ;;  %v15614_v42 = vadd.f32 %v15613_v10, %v15612_v38  ;;  %v17776_v38 = vld [vmem:[%s22908_s4 + $0x3c8] sm:$0xff]   ;;  %v17907_v10 = vmov 0.0  }
0x1062   :  { %v15615_v30 = vpop.f32.mrf.mxu1  ;;  %16520 = vmatprep.subr.bf16.mxu0 %v17907_v10 }
0x1063   :  { %16481 = vmatmul.mubr.bf16.gmra.mxu0 %v9122_v34  ;;  %v9103_v18 = vadd.f32 %v15614_v42, %v15550_v29  ;;  %16491 = vmatpush3.bf16.msra.mxu1 %v17771_v13  ;;  %v17779_v34 = vld [vmem:[%s22910_s6 + $0x78] sm:$0xff]  }
0x1064   :  { %v15616_v20 = vpop.f32.mrf.mxu1  ;;  %16492 = vmatprep.subr.bf16.mxu1 %v17772_v28 }
0x1065   :  { %v15617_v53 = vadd.f32 %v15616_v20, %v15615_v30  ;;  %v17781_v20 = vld [vmem:[%s22910_s6 + $0x70] sm:$0xff]  }
0x1066   :  { %v15618_v11 = vpop.f32.mrf.mxu1 }
0x1067   :  { %v9106_v51 = vadd.f32 %v15617_v53, %v15553_v25  ;;  %16493 = vmatpush3.bf16.msra.mxu1 %v17772_v28 }
0x1068   :  { %v15619_v57 = vpop.f32.mrf.mxu1  ;;  %16494 = vmatprep.subr.bf16.mxu1 %v17773_v4 }
0x1069   :  { %v9123_v63 = vpack.c.bf16 %v9106_v51, %v9103_v18  ;;  %v15620_v22 = vadd.f32 %v15619_v57, %v15618_v11  ;;  %v17785_v51 = vld [vmem:[%s22910_s6 + $0x60] sm:$0xff]  }
0x106a   :  { %v15621_v8 = vpop.f32.mrf.mxu1 }
0x106b   :  { %16484 = vmatprep.mubr.bf16.mxu0 %v9123_v63  ;;  %v9111_v16 = vadd.f32 %v15620_v22, %v15556_v47  ;;  %16495 = vmatpush3.bf16.msra.mxu1 %v17773_v4 }
0x106c   :  { %v15622_v15 = vpop.f32.mrf.mxu1  ;;  %16496 = vmatprep.subr.bf16.mxu1 %v17774_v36 }
0x106d   :  { %v15623_v14 = vadd.f32 %v15622_v15, %v15621_v8 }
0x106e   :  { %v22149_v5 = vpop.f32.mrf.mxu1 }
0x106f   :  { %v9114_v35 = vadd.f32 %v15623_v14, %v15559_v26  ;;  %16497 = vmatpush3.bf16.msra.mxu1 %v17774_v36 }
0x1070   :  { %16498 = vmatprep.subr.bf16.mxu1 %v17775_v31  ;;  %v22151_v21 = vpop.f32.mrf.mxu1 }
0x1071   :  { %v9124_v32 = vpack.c.bf16 %v9114_v35, %v9111_v16 }
0x1072   :  { %v22158_v23 = vpop.f32.mrf.mxu1 }
0x1073   :  { %16485 = vmatmul.mubr.bf16.gmra.mxu0 %v9124_v32  ;;  %16499 = vmatpush3.bf16.msra.mxu1 %v17775_v31 }
0x1074   :  { %9625 = vmatprep.mubr.bf16.mxu0 %v17727_v3  ;;  %16500 = vmatprep.subr.bf16.mxu1 %v17776_v38  ;;  %v15660_v11 = vpop.f32.mrf.mxu1 }
0x1075   :  { %v15661_v31 = vadd.f32 %v15660_v11, %v22158_v23 }
0x1076   :  { %v22177_v18 = vpop.f32.mrf.mxu1 }
0x1077   :  { %16501 = vmatpush3.bf16.msra.mxu1 %v17776_v38 }
0x1078   :  { %16502 = vmatprep.subr.bf16.mxu1 %v17777_v48 }
0x107b   :  { %9626 = vmatmul.mubr.bf16.vlgmr.msra.gmra.mxu0 %v17725_v45  ;;  %16503 = vmatpush3.bf16.msra.mxu1 %v17777_v48 }
0x107c   :  { %9633 = vmatprep.mubr.bf16.mxu0 %v17733_v33  ;;  %16540 = vmatprep.subr.bf16.mxu1 %v17907_v10 }
0x107d   :  { %16521 = vmatpush3.bf16.msra.mxu0 %v17779_v34 }
0x107e   :  { %16522 = vmatprep.subr.bf16.mxu0 %v17907_v10 }
0x1081   :  { %16523 = vmatpush3.bf16.msra.mxu0 %v17781_v20 }
0x1082   :  { %16524 = vmatprep.subr.bf16.mxu0 %v17907_v10 }
0x1083   :  { %9634 = vmatmul.mubr.bf16.gmra.mxu0 %v17731_v52 }
0x1084   :  { %9641 = vmatprep.mubr.bf16.mxu0 %v17739_v50 }
0x108b   :  { %9642 = vmatmul.mubr.bf16.gmra.mxu0 %v17737_v19 }
0x108c   :  { %9649 = vmatprep.mubr.bf16.mxu0 %v17745_v6 }
0x1093   :  { %9650 = vmatmul.mubr.bf16.gmra.mxu0 %v17743_v54 }
0x1094   :  { %9657 = vmatprep.mubr.bf16.mxu0 %v17751_v62 }
0x109b   :  { %9658 = vmatmul.mubr.bf16.gmra.mxu0 %v17749_v44 }
0x109c   :  { %9665 = vmatprep.mubr.bf16.mxu0 %v17757_v0 }
0x10a3   :  { %9666 = vmatmul.mubr.bf16.gmra.mxu0 %v17755_v37 }
0x10a4   :  { %9673 = vmatprep.mubr.bf16.mxu0 %v17763_v39 }
0x10ab   :  { %9674 = vmatmul.mubr.bf16.gmra.mxu0 %v17761_v60 }
0x10ac   :  { %9681 = vmatprep.mubr.bf16.mxu0 %v17769_v24 }
0x10b3   :  { %9682 = vmatmul.mubr.bf16.gmra.mxu0 %v17767_v40 }
0x10b4   :  { %16536 = vmatprep.mubr.msk.bf16.mxu0 %vm17908_vm0, %v17907_v10 }
0x1103   :  { %v16474_v30 = vpop.f32.mrf.mxu0 }
0x1104   :  { %v22161_v42 = vadd.f32 %v16474_v30, %v21929_v1  ;;  %v17783_v1 = vld [vmem:[%s22910_s6 + $0x68] sm:$0xff]  }
0x1105   :  { %v9224_v29 = vpop.f32.mrf.mxu0  ;;  %16525 = vmatpush3.bf16.msra.mxu0 %v17783_v1 }
0x1106   :  { %v22168_v25 = vadd.f32 %v9224_v29, %v21932_v46  ;;  %16526 = vmatprep.subr.bf16.mxu0 %v17907_v10  ;;  %v17787_v46 = vld [vmem:[%s22910_s6 + $0x58] sm:$0xff]  }
0x1107   :  { %v16475_v53 = vpop.f32.mrf.mxu0 }
0x1108   :  { %v22171_v49 = vadd.f32 %v16475_v53, %v21937_v58  ;;  %v15663_v58 = vpop.f32.mrf.mxu1 }
0x1109   :  { %16527 = vmatpush3.bf16.msra.mxu0 %v17785_v51  ;;  %v22186_v57 = vpop.f32.mrf.mxu0 }
0x110a   :  { %16528 = vmatprep.subr.bf16.mxu0 %v17907_v10  ;;  %v15665_v8 = vpop.f32.mrf.mxu1 }
0x110c   :  { %v15666_v26 = vpop.f32.mrf.mxu1 }
0x110d   :  { %16529 = vmatpush3.bf16.msra.mxu0 %v17787_v46 }
0x110e   :  { %16530 = vmatprep.subr.bf16.mxu0 %v17907_v10  ;;  %v15668_v16 = vpop.f32.mrf.mxu1 }
0x1110   :  { %v15669_v35 = vpop.f32.mrf.mxu1 }
0x1112   :  { %v15671_v32 = vpop.f32.mrf.mxu1 }
0x1113   :  { %v16478_v63 = vpop.f32.mrf.mxu0 }
0x1114   :  { %v22190_v41 = vadd.f32 %v16478_v63, %v21960_v12  ;;  %v15672_v52 = vpop.f32.mrf.mxu1  ;;  %v15664_v63 = vadd.f32 %v15663_v58, %v22177_v18 }
0x1115   :  { %v9240_v22 = vpop.f32.mrf.mxu0  ;;  %v15673_v18 = vadd.f32 %v15672_v52, %v15671_v32  ;;  %v17784_v52 = vld [vmem:[%s22910_s6 + $0x20] sm:$0xff]  }
0x1116   :  { %v22194_v15 = vadd.f32 %v9240_v22, %v21963_v27  ;;  %v15667_v22 = vadd.f32 %v15666_v26, %v15665_v8 }
0x1117   :  { %v16479_v47 = vpop.f32.mrf.mxu0 }
0x1118   :  { %v22197_v14 = vadd.f32 %v16479_v47, %v21968_v61  ;;  %v15674_v61 = vpop.f32.mrf.mxu1 }
0x1119   :  { %v22199_v3 = vpop.f32.mrf.mxu0 }
0x111a   :  { %v15675_v6 = vpop.f32.mrf.mxu1 }
0x111c   :  { %v22212_v62 = vpop.f32.mrf.mxu1 }
0x111e   :  { %v15678_v37 = vpop.f32.mrf.mxu1 }
0x1120   :  { %v22225_v24 = vpop.f32.mrf.mxu1 }
0x1122   :  { %v22227_v13 = vpop.f32.mrf.mxu1 }
0x1123   :  { %v16482_v45 = vpop.f32.mrf.mxu0 }
0x1124   :  { %v22202_v12 = vadd.f32 %v16482_v45, %v21991_v17  ;;  %v22229_v36 = vpop.f32.mrf.mxu1 }
0x1125   :  { %v9256_v33 = vpop.f32.mrf.mxu0 }
0x1126   :  { %v22205_v50 = vadd.f32 %v9256_v33, %v21994_v43  ;;  %v15684_v20 = vpop.f32.mrf.mxu1 }
0x1127   :  { %v16483_v27 = vpop.f32.mrf.mxu0 }
0x1128   :  { %v22208_v19 = vadd.f32 %v16483_v27, %v21999_v2  ;;  %v22234_v46 = vpop.f32.mrf.mxu1 }
0x1129   :  { %v22210_v54 = vpop.f32.mrf.mxu0 }
0x112a   :  { %v15687_v33 = vpop.f32.mrf.mxu1 }
0x112c   :  { %v15689_v8 = vpop.f32.mrf.mxu1 }
0x1133   :  { %v16486_v44 = vpop.f32.mrf.mxu0 }
0x1134   :  { %v22215_v0 = vadd.f32 %v16486_v44, %v22022_v59  ;;  %v15670_v44 = vadd.f32 %v15669_v35, %v15668_v16  ;;  %v17782_v16 = vld [vmem:[%s22910_s6 + $0x28] sm:$0xff]  }
0x1135   :  { %v9272_v17 = vpop.f32.mrf.mxu0 }
0x1136   :  { %v22218_v39 = vadd.f32 %v9272_v17, %v22025_v56  ;;  %v15658_v56 = vadd.f32 %v22151_v21, %v22149_v5  ;;  %v17778_v21 = vld [vmem:[%s22910_s6 + $0x38] sm:$0xff]  }
0x1137   :  { %v16487_v43 = vpop.f32.mrf.mxu0 }
0x1138   :  { %v22221_v60 = vadd.f32 %v16487_v43, %v22028_v7 }
0x1139   :  { %v22223_v2 = vpop.f32.mrf.mxu0 }
0x113b   :  { %v15720_v9 = vpop.f32.mrf.mxu0 }
0x113d   :  { %v15721_v40 = vpop.f32.mrf.mxu0 }
0x113e   :  { %v15722_v59 = vadd.f32 %v15721_v40, %v15720_v9  ;;  %v17780_v9 = vld [vmem:[%s22910_s6 + $0x30] sm:$0xff]  }
0x113f   :  { %v15723_v28 = vpop.f32.mrf.mxu0 }
0x1140   :  { %v9628_v48 = vadd.f32 %v15722_v59, %v15658_v56  ;;  %v15676_v56 = vadd.f32 %v15675_v6, %v15674_v61 }
0x1141   :  { %v15724_v4 = vpop.f32.mrf.mxu0 }
0x1142   :  { %v15725_v7 = vadd.f32 %v15724_v4, %v15723_v28  ;;  %v15690_v4 = vpop.f32.mrf.mxu1 }
0x1143   :  { %v15726_v38 = vpop.f32.mrf.mxu0 }
0x1144   :  { %v9631_v34 = vadd.f32 %v15725_v7, %v15661_v31 }
0x1145   :  { %v15727_v30 = vpop.f32.mrf.mxu0 }
0x1146   :  { %v9690_v29 = vpack.c.bf16 %v9631_v34, %v9628_v48  ;;  %v15728_v1 = vadd.f32 %v15727_v30, %v15726_v38  ;;  %v15679_v38 = vadd.f32 %v15678_v37, %v22212_v62  ;;  %v15692_v34 = vpop.f32.mrf.mxu1  ;;  %v15682_v62 = vadd.f32 %v22227_v13, %v22225_v24 }
0x1147   :  { %v15729_v53 = vpop.f32.mrf.mxu0 }
0x1148   :  { %16504 = vmatprep.mubr.bf16.mxu1 %v9690_v29  ;;  %v9636_v23 = vadd.f32 %v15728_v1, %v15664_v63  ;;  %v15693_v1 = vpop.f32.mrf.mxu1 }
0x1149   :  { %v15730_v51 = vpop.f32.mrf.mxu0 }
0x114a   :  { %v15731_v47 = vadd.f32 %v15730_v51, %v15729_v53  ;;  %v17786_v51 = vld [vmem:[%s22910_s6 + $0x18] sm:$0xff]  }
0x114b   :  { %v15732_v5 = vpop.f32.mrf.mxu0 }
0x114c   :  { %v9639_v11 = vadd.f32 %v15731_v47, %v15667_v22  ;;  %v15685_v47 = vadd.f32 %v15684_v20, %v22229_v36 }
0x114d   :  { %v15733_v45 = vpop.f32.mrf.mxu0 }
0x114e   :  { %v9691_v27 = vpack.c.bf16 %v9639_v11, %v9636_v23  ;;  %v15734_v17 = vadd.f32 %v15733_v45, %v15732_v5  ;;  %v17788_v23 = vld [vmem:[%s22910_s6 + $0x10] sm:$0xff]  }
0x114f   :  { %v15735_v43 = vpop.f32.mrf.mxu0 }
0x1150   :  { %16505 = vmatmul.mubr.bf16.vlgmr.msra.gmra.mxu1 %v9691_v27  ;;  %v9644_v26 = vadd.f32 %v15734_v17, %v15670_v44  ;;  %v15688_v17 = vadd.f32 %v15687_v33, %v22234_v46 }
0x1151   :  { %v15736_v58 = vpop.f32.mrf.mxu0  ;;  %16541 = vmatpush3.bf16.msra.mxu1 %v17778_v21  ;;  %v15695_v21 = vpop.f32.mrf.mxu1 }
0x1152   :  { %v15737_v40 = vadd.f32 %v15736_v58, %v15735_v43  ;;  %16542 = vmatprep.subr.bf16.mxu1 %v17907_v10 }
0x1153   :  { %v15738_v28 = vpop.f32.mrf.mxu0  ;;  %v15696_v44 = vpop.f32.mrf.mxu1 }
0x1154   :  { %v9647_v35 = vadd.f32 %v15737_v40, %v15673_v18  ;;  %v15697_v46 = vadd.f32 %v15696_v44, %v15695_v21  ;;  %v17791_v21 = vld [vmem:[%s22910_s6 + $0x48] sm:$0xff]  }
0x1155   :  { %v15739_v59 = vpop.f32.mrf.mxu0  ;;  %16543 = vmatpush3.bf16.msra.mxu1 %v17780_v9  ;;  %v15691_v9 = vadd.f32 %v15690_v4, %v15689_v8  ;;  %v15698_v58 = vpop.f32.mrf.mxu1 }
0x1156   :  { %v15740_v31 = vadd.f32 %v15739_v59, %v15738_v28  ;;  %v9692_v7 = vpack.c.bf16 %v9647_v35, %v9644_v26  ;;  %16544 = vmatprep.subr.bf16.mxu1 %v17907_v10 }
0x1157   :  { %v15741_v32 = vpop.f32.mrf.mxu0  ;;  %v15699_v59 = vpop.f32.mrf.mxu1 }
0x1158   :  { %16508 = vmatprep.mubr.bf16.mxu1 %v9692_v7  ;;  %v9652_v30 = vadd.f32 %v15740_v31, %v15676_v56  ;;  %v15694_v31 = vadd.f32 %v15693_v1, %v15692_v34 }
0x1159   :  { %v15742_v48 = vpop.f32.mrf.mxu0  ;;  %16545 = vmatpush3.bf16.msra.mxu1 %v17782_v16 }
0x115a   :  { %v15743_v29 = vadd.f32 %v15742_v48, %v15741_v32  ;;  %16546 = vmatprep.subr.bf16.mxu1 %v17907_v10 }
0x115b   :  { %v15744_v61 = vpop.f32.mrf.mxu0 }
0x115c   :  { %v9655_v6 = vadd.f32 %v15743_v29, %v15679_v38 }
0x115d   :  { %v15745_v53 = vpop.f32.mrf.mxu0  ;;  %16547 = vmatpush3.bf16.msra.mxu1 %v17784_v52  ;;  %v15701_v52 = vpop.f32.mrf.mxu1 }
0x115e   :  { %v9693_v63 = vpack.c.bf16 %v9655_v6, %v9652_v30  ;;  %v15746_v37 = vadd.f32 %v15745_v53, %v15744_v61  ;;  %16548 = vmatprep.subr.bf16.mxu1 %v17907_v10  ;;  %v15700_v61 = vadd.f32 %v15699_v59, %v15698_v58  ;;  %v23369_v58 = vld [vmem:[#allocation43_spill] sm:$0xff]  ;;  %v23372_v59 = vld [vmem:[#allocation18_spill] sm:$0xff] }
0x115f   :  { %v15747_v22 = vpop.f32.mrf.mxu0  ;;  %v15702_v29 = vpop.f32.mrf.mxu1 }
0x1160   :  { %16509 = vmatmul.mubr.bf16.gmra.mxu1 %v9693_v63  ;;  %v9660_v11 = vadd.f32 %v15746_v37, %v15682_v62  ;;  %v15703_v63 = vadd.f32 %v15702_v29, %v15701_v52  ;;  %v23376_v52 = vld [vmem:[#allocation59_spill] sm:$0xff] }
0x1161   :  { %v15748_v5 = vpop.f32.mrf.mxu0  ;;  %16549 = vmatpush3.bf16.msra.mxu1 %v17786_v51 }
0x1162   :  { %v15749_v45 = vadd.f32 %v15748_v5, %v15747_v22  ;;  %16550 = vmatprep.subr.bf16.mxu1 %v17907_v10  ;;  %v17790_v5 = vld [vmem:[%s22910_s6 + $0x8] sm:$0xff]  }
0x1163   :  { %v15750_v27 = vpop.f32.mrf.mxu0 }
0x1164   :  { %v9663_v24 = vadd.f32 %v15749_v45, %v15685_v47  ;;  %v17789_v47 = vld [vmem:[%s22910_s6 + $0x50] sm:$0xff]   ;;  %v23363_v45 = vld [vmem:[#allocation11_spill] sm:$0xff] }
0x1165   :  { %v15751_v13 = vpop.f32.mrf.mxu0  ;;  %16551 = vmatpush3.bf16.msra.mxu1 %v17788_v23  ;;  %16531 = vmatpush3.bf16.msra.mxu0 %v17789_v47  ;;  %v17792_v23 = vld [vmem:[%s22910_s6] sm:$0xff]  }
0x1166   :  { %v15752_v43 = vadd.f32 %v15751_v13, %v15750_v27  ;;  %v9694_v36 = vpack.c.bf16 %v9663_v24, %v9660_v11  ;;  %16552 = vmatprep.subr.bf16.mxu1 %v17907_v10  ;;  %16532 = vmatprep.subr.bf16.mxu0 %v17907_v10  ;;  %v17793_v11 = vld [vmem:[%s22910_s6 + $0x40] sm:$0xff]   ;;  %v23364_v27 = vld [vmem:[#allocation5_spill] sm:$0xff] }
0x1167   :  { %v15753_v20 = vpop.f32.mrf.mxu0  ;;  %v1795_v24 = vadd.f32 %v23364_v27, %v23363_v45  ;;  %v23365_v13 = vld [vmem:[#allocation27_spill] sm:$0xff]  ;;  %v23383_v27 = vld [vmem:[#allocation48_spill] sm:$0xff] }
0x1168   :  { %16512 = vmatprep.mubr.bf16.mxu1 %v9694_v36  ;;  %v9668_v26 = vadd.f32 %v15752_v43, %v15688_v17  ;;  %v23366_v17 = vld [vmem:[#allocation31_spill] sm:$0xff] }
0x1169   :  { %v15754_v18 = vpop.f32.mrf.mxu0  ;;  %16553 = vmatpush3.bf16.msra.mxu1 %v17790_v5  ;;  %16533 = vmatpush3.bf16.msra.mxu0 %v17791_v21  ;;  %v2412_v44 = vadd.f32 %v23365_v13, %v1795_v24  ;;  %v23367_v36 = vld [vmem:[#allocation35_spill] sm:$0xff]  ;;  %v23382_v5 = vld [vmem:[#allocation44_spill] sm:$0xff] }
0x116a   :  { %v15755_v40 = vadd.f32 %v15754_v18, %v15753_v20  ;;  %16554 = vmatprep.subr.bf16.mxu1 %v17907_v10  ;;  %16534 = vmatprep.subr.bf16.mxu0 %v17907_v10 }
0x116b   :  { %v15756_v28 = vpop.f32.mrf.mxu0  ;;  %v2985_v43 = vadd.f32 %v23366_v17, %v2412_v44  ;;  %v23384_v44 = vld [vmem:[#allocation52_spill] sm:$0xff] }
0x116c   :  { %v9671_v16 = vadd.f32 %v15755_v40, %v15691_v9  ;;  %v23368_v9 = vld [vmem:[#allocation39_spill] sm:$0xff] }
0x116d   :  { %v15757_v35 = vpop.f32.mrf.mxu0  ;;  %16555 = vmatpush3.bf16.msra.mxu1 %v17792_v23  ;;  %16535 = vmatpush3.bf16.msra.mxu0 %v17793_v11  ;;  %v3558_v20 = vadd.f32 %v23367_v36, %v2985_v43  ;;  %v23370_v40 = vld [vmem:[#allocation47_spill] sm:$0xff] }
0x116e   :  { %v9695_v56 = vpack.c.bf16 %v9671_v16, %v9668_v26  ;;  %v15758_v7 = vadd.f32 %v15757_v35, %v15756_v28  ;;  %16580 = vmatprep.subr.bf16.mxu1 %v17907_v10  ;;  %16560 = vmatprep.subr.bf16.mxu0 %v17907_v10  ;;  %v23371_v16 = vld [vmem:[#allocation51_spill] sm:$0xff] }
0x116f   :  { %v15759_v32 = vpop.f32.mrf.mxu0  ;;  %v4131_v18 = vadd.f32 %v23368_v9, %v3558_v20  ;;  %v23385_v20 = vld [vmem:[#allocation22_spill] sm:$0xff]  ;;  %v23386_v9 = vld [vmem:[#allocation7_spill] sm:$0xff] }
0x1170   :  { %16513 = vmatmul.mubr.bf16.gmra.mxu1 %v9695_v56  ;;  %v9676_v38 = vadd.f32 %v15758_v7, %v15694_v31  ;;  %v23373_v56 = vld [vmem:[#allocation6_spill] sm:$0xff]  ;;  %v23374_v7 = vld [vmem:[#allocation55_spill] sm:$0xff] }
0x1171   :  { %v15760_v33 = vpop.f32.mrf.mxu0  ;;  %v4704_v26 = vadd.f32 %v23369_v58, %v4131_v18  ;;  %v1811_v31 = vadd.f32 %v23373_v56, %v23372_v59  ;;  %v1827_v18 = vadd.f32 %v23386_v9, %v23385_v20  ;;  %v23389_v59 = vld [vmem:[#allocation60_spill] sm:$0xff]  ;;  %v23399_v20 = vld [vmem:[#allocation26_spill] sm:$0xff] }
0x1172   :  { %v15761_v48 = vadd.f32 %v15760_v33, %v15759_v32  ;;  %v23400_v9 = vld [vmem:[#allocation8_spill] sm:$0xff] }
0x1173   :  { %v15762_v8 = vpop.f32.mrf.mxu0  ;;  %v5277_v28 = vadd.f32 %v23370_v40, %v4704_v26  ;;  %v23388_v40 = vld [vmem:[#allocation29_spill] sm:$0xff] }
0x1174   :  { %v9679_v4 = vadd.f32 %v15761_v48, %v15697_v46  ;;  %v23375_v46 = vld [vmem:[#allocation28_spill] sm:$0xff] }
0x1175   :  { %v15763_v30 = vpop.f32.mrf.mxu0  ;;  %v5850_v35 = vadd.f32 %v23371_v16, %v5277_v28  ;;  %v2416_v33 = vadd.f32 %v23375_v46, %v1811_v31  ;;  %v23377_v48 = vld [vmem:[#allocation32_spill] sm:$0xff]  ;;  %v2420_v28 = vadd.f32 %v23388_v40, %v1827_v18  ;;  %v17795_v16 = vld [vmem:[%s22910_s6 + $0xb8] sm:$0xff]   ;;  %v1843_v18 = vadd.f32 %v23400_v9, %v23399_v20 }
0x1176   :  { %v15764_v6 = vadd.f32 %v15763_v30, %v15762_v8  ;;  %v9696_v53 = vpack.c.bf16 %v9679_v4, %v9676_v38  ;;  %v23378_v4 = vld [vmem:[#allocation63_spill] sm:$0xff]  ;;  %v23391_v46 = vld [vmem:[#allocation64_spill] sm:$0xff]  ;;  %v23413_v9 = vld [vmem:[#allocation58_spill] sm:$0xff] }
0x1177   :  { %v15765_v51 = vpop.f32.mrf.mxu0  ;;  %v6423_v32 = vadd.f32 %v23374_v7, %v5850_v35  ;;  %v2989_v8 = vadd.f32 %v23377_v48, %v2416_v33  ;;  %v17796_v35 = vld [vmem:[%s22910_s6 + $0xf0] sm:$0xff]  }
0x1178   :  { %16516 = vmatprep.mubr.bf16.mxu1 %v9696_v53  ;;  %v9684_v34 = vadd.f32 %v15764_v6, %v15700_v61  ;;  %v23379_v61 = vld [vmem:[#allocation36_spill] sm:$0xff]  ;;  %v23390_v7 = vld [vmem:[#allocation33_spill] sm:$0xff] }
0x1179   :  { %v15766_v62 = vpop.f32.mrf.mxu0  ;;  %v6996_v38 = vadd.f32 %v23376_v52, %v6423_v32  ;;  %v3562_v6 = vadd.f32 %v23379_v61, %v2989_v8  ;;  %v23380_v53 = vld [vmem:[#allocation4_spill] sm:$0xff]  ;;  %v2993_v32 = vadd.f32 %v23390_v7, %v2420_v28  ;;  %v23392_v52 = vld [vmem:[#allocation37_spill] sm:$0xff] }
0x117a   :  { %v15767_v1 = vadd.f32 %v15766_v62, %v15765_v51  ;;  %v23381_v62 = vld [vmem:[#allocation40_spill] sm:$0xff]  ;;  %v17797_v8 = vld [vmem:[%s22910_s6 + $0xb0] sm:$0xff]  }
0x117b   :  { %v7569_v30 = vadd.f32 %v23378_v4, %v6996_v38  ;;  %v3566_v38 = vadd.f32 %v23392_v52, %v2993_v32  ;;  %v17798_v4 = vld [vmem:[%s22910_s6 + $0xe8] sm:$0xff]   ;;  %v23403_v28 = vld [vmem:[#allocation61_spill] sm:$0xff] }
0x117c   :  { %v9687_v37 = vadd.f32 %v15767_v1, %v15703_v63  ;;  %v23405_v32 = vld [vmem:[#allocation65_spill] sm:$0xff] }
0x117d   :  { %v8142_v51 = vadd.f32 %v23380_v53, %v7569_v30  ;;  %v23393_v30 = vld [vmem:[#allocation67_spill] sm:$0xff]  ;;  %v23394_v53 = vld [vmem:[#allocation41_spill] sm:$0xff] }
0x117e   :  { %v9697_v22 = vpack.c.bf16 %v9687_v37, %v9684_v34  ;;  %v4135_v34 = vadd.f32 %v23381_v62, %v3562_v6  ;;  %v23395_v62 = vld [vmem:[#allocation3_spill] sm:$0xff] }
0x117f   :  { %v8715_v1 = vadd.f32 %v21955_v55, %v8142_v51  ;;  %v4139_v51 = vadd.f32 %v23394_v53, %v3566_v38  ;;  %v23407_v38 = vld [vmem:[#allocation68_spill] sm:$0xff] }
0x1180   :  { %16517 = vmatmul.mubr.bf16.gmra.mxu1 %v9697_v22  ;;  %v22316_v22 = vld [vmem:[%s22911_s5] ss:$0 sm:$0xff]  ;;  %v4708_v21 = vadd.f32 %v23382_v5, %v4135_v34  ;;  %v23396_v5 = vld [vmem:[#allocation45_spill] sm:$0xff] }
0x1181   :  { %16556 = vmatprep.mubr.msk.bf16.mxu1 %vm17908_vm0, %v17907_v10  ;;  %v9288_v23 = vadd.f32 %v22186_v57, %v8715_v1  ;;  %v23387_v57 = vld [vmem:[#allocation56_spill] sm:$0xff] }
0x1182   :  { %v5281_v24 = vadd.f32 %v23383_v27, %v4708_v21  ;;  %v4712_v21 = vadd.f32 %v23396_v5, %v4139_v51  ;;  %v23409_v51 = vld [vmem:[#allocation14_spill] sm:$0xff] }
0x1183   :  { %v23410_v5 = vld [vmem:[#allocation46_spill] sm:$0xff] }
0x1184   :  { %v5854_v17 = vadd.f32 %v23384_v44, %v5281_v24  ;;  %v23397_v24 = vld [vmem:[#allocation49_spill] sm:$0xff] }
0x1186   :  { %v6427_v58 = vadd.f32 %v23387_v57, %v5854_v17  ;;  %v23398_v17 = vld [vmem:[#allocation53_spill] sm:$0xff] }
0x1187   :  { %v23401_v57 = vld [vmem:[#allocation57_spill] sm:$0xff] }
0x1188   :  { %v7000_v56 = vadd.f32 %v23389_v59, %v6427_v58  ;;  %v17804_v59 = vld [vmem:[%s22910_s6 + $0xd0] sm:$0xff]  }
0x118a   :  { %v7573_v33 = vadd.f32 %v23391_v46, %v7000_v56 }
0x118c   :  { %v8146_v61 = vadd.f32 %v23393_v30, %v7573_v33  ;;  %v23406_v33 = vld [vmem:[#allocation38_spill] sm:$0xff] }
0x118e   :  { %v8719_v34 = vadd.f32 %v23395_v62, %v8146_v61 }
0x1210   :  { %v22306_v29 = vpop.f32.mrf.mxu1 }
0x1212   :  { %v9797_v63 = vpop.f32.mrf.mxu1 }
0x1213   :  { %v9860_v37 = vadd.f32 %v9797_v63, %v22168_v25  ;;  %v17794_v25 = vld [vmem:[%s22910_s6 + $0xf8] sm:$0xff]  }
0x1214   :  { %v22318_v47 = vpop.f32.mrf.mxu1 }
0x1215   :  { %v9883_v11 = vadd.f32 %v22316_v22, %v9860_v37  ;;  %v9863_v56 = vadd.f32 %v22318_v47, %v22171_v49  ;;  %v17806_v49 = vld [vmem:[%s22910_s6 + $0xc8] sm:$0xff]   ;;  %v9862_v47 = vadd.f32 %v22306_v29, %v22161_v42 }
0x1216   :  { %v9800_v45 = vpop.f32.mrf.mxu1 }
0x1217   :  { %v9899_v13 = vmax.f32 %v9883_v11, 0.0  ;;  %v9861_v55 = vadd.f32 %v9800_v45, %v9288_v23  ;;  %v17799_v23 = vld [vmem:[%s22910_s6 + $0xa8] sm:$0xff]   ;;  %v17800_v11 = vld [vmem:[%s22910_s6 + $0xe0] sm:$0xff]   ;;  %v9292_v45 = vadd.f32 %v22199_v3, %v8719_v34  ;;  %v9886_v30 = vadd.f32 %v22316_v22, %v9863_v56  ;;  %v17813_v56 = vld [vmem:[%s22910_s6 + $0x130] sm:$0xff]  }
0x1218   :  { %v17801_v3 = vld [vmem:[%s22910_s6 + $0xa0] sm:$0xff]  }
0x1219   :  { %v9932_v43 = vpack.c.bf16 %v9899_v13, %v9899_v13  ;;  %v9884_v36 = vadd.f32 %v22316_v22, %v9861_v55  ;;  %v5285_v13 = vadd.f32 %v23397_v24, %v4712_v21  ;;  %v17807_v21 = vld [vmem:[%s22910_s6 + $0x88] sm:$0xff]  }
0x121b   :  { %v9900_v26 = vmax.f32 %v9884_v36, 0.0  ;;  %16557 = vmatmul.mubr.bf16.vlgmr.msra.gmra.mxu1 %v9932_v43  ;;  %v5858_v43 = vadd.f32 %v23398_v17, %v5285_v13  ;;  %v23412_v17 = vld [vmem:[#allocation54_spill] sm:$0xff] }
0x121c   :  { %16581 = vmatpush3.bf16.msra.mxu1 %v17794_v25  ;;  %16596 = vmatprep.mubr.msk.bf16.mxu1 %vm17908_vm0, %v17907_v10 }
0x121d   :  { %v9950_v31 = vpack.c.bf16 %v9900_v26, %v9900_v26  ;;  %16582 = vmatprep.subr.bf16.mxu1 %v17907_v10  ;;  %v6431_v58 = vadd.f32 %v23401_v57, %v5858_v43  ;;  %v23402_v26 = vld [vmem:[#allocation30_spill] sm:$0xff] }
0x121e   :  { %v2424_v40 = vadd.f32 %v23402_v26, %v1843_v18  ;;  %v17811_v57 = vld [vmem:[%s22910_s6 + $0x138] sm:$0xff]  }
0x121f   :  { %16537 = vmatmul.mubr.bf16.vlgmr.msra.gmra.mxu0 %v9950_v31  ;;  %v23404_v31 = vld [vmem:[#allocation34_spill] sm:$0xff] }
0x1220   :  { %16561 = vmatpush3.bf16.msra.mxu0 %v17795_v16  ;;  %16583 = vmatpush3.bf16.msra.mxu1 %v17796_v35  ;;  %v16510_v48 = vpop.f32.mrf.mxu1  ;;  %v7004_v16 = vadd.f32 %v23403_v28, %v6431_v58  ;;  %v17803_v35 = vld [vmem:[%s22910_s6 + $0x98] sm:$0xff]   ;;  %v2997_v7 = vadd.f32 %v23404_v31, %v2424_v40  ;;  %v17812_v58 = vld [vmem:[%s22910_s6 + $0x170] sm:$0xff]   ;;  %v17814_v31 = vld [vmem:[%s22910_s6 + $0x168] sm:$0xff]  }
0x1221   :  { %v9866_v6 = vadd.f32 %v16510_v48, %v22190_v41  ;;  %16562 = vmatprep.subr.bf16.mxu0 %v17907_v10  ;;  %16584 = vmatprep.subr.bf16.mxu1 %v17907_v10  ;;  %v23414_v26 = vld [vmem:[#allocation62_spill] sm:$0xff] }
0x1222   :  { %v9813_v63 = vpop.f32.mrf.mxu1  ;;  %16576 = vmatprep.mubr.msk.bf16.mxu0 %vm17908_vm0, %v17907_v10  ;;  %v7577_v46 = vadd.f32 %v23405_v32, %v7004_v16  ;;  %v3570_v52 = vadd.f32 %v23406_v33, %v2997_v7  ;;  %v23415_v16 = vld [vmem:[#allocation66_spill] sm:$0xff]  ;;  %v23416_v7 = vld [vmem:[#allocation69_spill] sm:$0xff] }
0x1223   :  { %v22361_v1 = vadd.f32 %v22316_v22, %v9866_v6  ;;  %v9864_v37 = vadd.f32 %v9813_v63, %v22194_v15  ;;  %v23408_v6 = vld [vmem:[#allocation42_spill] sm:$0xff] }
0x1224   :  { %16563 = vmatpush3.bf16.msra.mxu0 %v17797_v8  ;;  %16585 = vmatpush3.bf16.msra.mxu1 %v17798_v4  ;;  %v16511_v41 = vpop.f32.mrf.mxu1  ;;  %v8150_v48 = vadd.f32 %v23407_v38, %v7577_v46  ;;  %v17805_v4 = vld [vmem:[%s22910_s6 + $0x90] sm:$0xff]   ;;  %v4143_v53 = vadd.f32 %v23408_v6, %v3570_v52  ;;  %v23417_v52 = vld [vmem:[#allocation15_spill] sm:$0xff] }
0x1225   :  { %v22373_v27 = vadd.f32 %v22316_v22, %v9864_v37  ;;  %v9867_v15 = vadd.f32 %v16511_v41, %v22197_v14  ;;  %16564 = vmatprep.subr.bf16.mxu0 %v17907_v10  ;;  %16586 = vmatprep.subr.bf16.mxu1 %v17907_v10  ;;  %v17802_v14 = vld [vmem:[%s22910_s6 + $0xd8] sm:$0xff]   ;;  %v17808_v41 = vld [vmem:[%s22910_s6 + $0xc0] sm:$0xff]  }
0x1226   :  { %v9816_v55 = vpop.f32.mrf.mxu1  ;;  %v8723_v63 = vadd.f32 %v23409_v51, %v8150_v48  ;;  %v4716_v42 = vadd.f32 %v23410_v5, %v4143_v53  ;;  %v17818_v51 = vld [vmem:[%s22910_s6 + $0x158] sm:$0xff]   ;;  %v17823_v5 = vld [vmem:[%s22910_s6 + $0x108] sm:$0xff]  }
0x1227   :  { %v22380_v25 = vadd.f32 %v22316_v22, %v9867_v15  ;;  %v9865_v44 = vadd.f32 %v9816_v55, %v9292_v45  ;;  %v23411_v15 = vld [vmem:[#allocation50_spill] sm:$0xff] }
0x1228   :  { %16565 = vmatpush3.bf16.msra.mxu0 %v17799_v23  ;;  %16587 = vmatpush3.bf16.msra.mxu1 %v17800_v11  ;;  %v9296_v29 = vadd.f32 %v22210_v54, %v8723_v63  ;;  %v9885_v23 = vadd.f32 %v22316_v22, %v9862_v47  ;;  %v9902_v11 = vmax.f32 %v9886_v30, 0.0  ;;  %v5289_v24 = vadd.f32 %v23411_v15, %v4716_v42  ;;  %v17819_v63 = vld [vmem:[%s22910_s6 + $0x118] sm:$0xff]   ;;  %v17824_v42 = vld [vmem:[%s22910_s6 + $0x140] sm:$0xff]   ;;  %v17831_v15 = vld [vmem:[%s22910_s6 + $0x1a8] sm:$0xff]  }
0x1229   :  { %v22390_v36 = vadd.f32 %v22316_v22, %v9865_v44  ;;  %16566 = vmatprep.subr.bf16.mxu0 %v17907_v10  ;;  %16588 = vmatprep.subr.bf16.mxu1 %v17907_v10  ;;  %v17809_v44 = vld [vmem:[%s22910_s6 + $0x80] sm:$0xff]  }
0x122a   :  { %v5862_v43 = vadd.f32 %v23412_v17, %v5289_v24  ;;  %v17832_v24 = vld [vmem:[%s22910_s6 + $0x1e0] sm:$0xff]   ;;  %v17836_v17 = vld [vmem:[%s22910_s6 + $0x1d0] sm:$0xff]  }
0x122c   :  { %16567 = vmatpush3.bf16.msra.mxu0 %v17801_v3  ;;  %16589 = vmatpush3.bf16.msra.mxu1 %v17802_v14  ;;  %v9901_v3 = vmax.f32 %v9885_v23, 0.0  ;;  %v10253_v14 = vpack.c.bf16 %v9902_v11, %v9902_v11  ;;  %v6435_v18 = vadd.f32 %v23413_v9, %v5862_v43  ;;  %v17828_v11 = vld [vmem:[%s22910_s6 + $0x1f0] sm:$0xff]   ;;  %v17840_v9 = vld [vmem:[%s22910_s6 + $0x1c0] sm:$0xff]  }
0x122d   :  { %16568 = vmatprep.subr.bf16.mxu0 %v17907_v10  ;;  %16590 = vmatprep.subr.bf16.mxu1 %v17907_v10  ;;  %v17837_v43 = vld [vmem:[%s22910_s6 + $0x190] sm:$0xff]  }
0x122e   :  { %v7008_v40 = vadd.f32 %v23414_v26, %v6435_v18  ;;  %v10145_v28 = vpack.c.bf16 %v9901_v3, %v9901_v3  ;;  %v17838_v3 = vld [vmem:[%s22910_s6 + $0x1c8] sm:$0xff]   ;;  %v9906_v18 = vmax.f32 %v22380_v25, 0.0  ;;  %v9905_v26 = vmax.f32 %v22361_v1, 0.0  ;;  %v17843_v25 = vld [vmem:[%s22910_s6 + $0x238] sm:$0xff]   ;;  %v17845_v1 = vld [vmem:[%s22910_s6 + $0x230] sm:$0xff]  }
0x1230   :  { %16569 = vmatpush3.bf16.msra.mxu0 %v17803_v35  ;;  %16591 = vmatpush3.bf16.msra.mxu1 %v17804_v59  ;;  %v16514_v8 = vpop.f32.mrf.mxu1  ;;  %v7581_v35 = vadd.f32 %v23415_v16, %v7008_v40  ;;  %v10685_v40 = vpack.c.bf16 %v9906_v18, %v9906_v18  ;;  %v10577_v16 = vpack.c.bf16 %v9905_v26, %v9905_v26  ;;  %v17888_v18 = vld [vmem:[%s22910_s6 + $0x340] sm:$0xff]   ;;  %v17890_v26 = vld [vmem:[%s22910_s6 + $0x3f8] sm:$0xff]  }
0x1231   :  { %v9870_v61 = vadd.f32 %v16514_v8, %v22202_v12  ;;  %16570 = vmatprep.subr.bf16.mxu0 %v17907_v10  ;;  %16592 = vmatprep.subr.bf16.mxu1 %v17907_v10 }
0x1232   :  { %v9829_v62 = vpop.f32.mrf.mxu1  ;;  %v8154_v32 = vadd.f32 %v23416_v7, %v7581_v35  ;;  %v17846_v35 = vld [vmem:[%s22910_s6 + $0x268] sm:$0xff]   ;;  %v17850_v7 = vld [vmem:[%s22910_s6 + $0x258] sm:$0xff]  }
0x1233   :  { %v22428_v34 = vadd.f32 %v22316_v22, %v9870_v61  ;;  %v9868_v37 = vadd.f32 %v9829_v62, %v22205_v50  ;;  %v17820_v62 = vld [vmem:[%s22910_s6 + $0x150] sm:$0xff]  }
0x1234   :  { %16571 = vmatpush3.bf16.msra.mxu0 %v17805_v4  ;;  %16593 = vmatpush3.bf16.msra.mxu1 %v17806_v49  ;;  %v16515_v12 = vpop.f32.mrf.mxu1  ;;  %v8727_v38 = vadd.f32 %v23417_v52, %v8154_v32  ;;  %v17816_v49 = vld [vmem:[%s22910_s6 + $0x160] sm:$0xff]   ;;  %v17851_v32 = vld [vmem:[%s22910_s6 + $0x218] sm:$0xff]   ;;  %v17854_v52 = vld [vmem:[%s22910_s6 + $0x248] sm:$0xff]  }
0x1235   :  { %v22441_v50 = vadd.f32 %v22316_v22, %v9868_v37  ;;  %v9871_v45 = vadd.f32 %v16515_v12, %v22208_v19  ;;  %16572 = vmatprep.subr.bf16.mxu0 %v17907_v10  ;;  %16594 = vmatprep.subr.bf16.mxu1 %v17907_v10  ;;  %v17810_v19 = vld [vmem:[%s22910_s6 + $0x178] sm:$0xff]   ;;  %v17822_v37 = vld [vmem:[%s22910_s6 + $0x148] sm:$0xff]   ;;  %v17825_v12 = vld [vmem:[%s22910_s6 + $0x100] sm:$0xff]  }
0x1236   :  { %v9832_v54 = vpop.f32.mrf.mxu1  ;;  %v9300_v47 = vadd.f32 %v22223_v2, %v8727_v38  ;;  %v17817_v2 = vld [vmem:[%s22910_s6 + $0x120] sm:$0xff]   ;;  %v17855_v38 = vld [vmem:[%s22910_s6 + $0x208] sm:$0xff]  }
0x1237   :  { %v22448_v13 = vadd.f32 %v22316_v22, %v9871_v45  ;;  %v9869_v55 = vadd.f32 %v9832_v54, %v9296_v29  ;;  %v9904_v29 = vmax.f32 %v22390_v36, 0.0  ;;  %v17827_v36 = vld [vmem:[%s22910_s6 + $0x1b8] sm:$0xff]   ;;  %v17830_v54 = vld [vmem:[%s22910_s6 + $0x1e8] sm:$0xff]  }
0x1238   :  { %16573 = vmatpush3.bf16.msra.mxu0 %v17807_v21  ;;  %16595 = vmatpush3.bf16.msra.mxu1 %v17808_v41  ;;  %v17826_v21 = vld [vmem:[%s22910_s6 + $0x1f8] sm:$0xff]   ;;  %v9903_v41 = vmax.f32 %v22373_v27, 0.0  ;;  %v17829_v27 = vld [vmem:[%s22910_s6 + $0x1b0] sm:$0xff]  }
0x1239   :  { %v22458_v20 = vadd.f32 %v22316_v22, %v9869_v55  ;;  %16574 = vmatprep.subr.bf16.mxu0 %v17907_v10  ;;  %16620 = vmatprep.subr.bf16.mxu1 %v17907_v10  ;;  %v10469_v23 = vpack.c.bf16 %v9904_v29, %v9904_v29  ;;  %v17833_v55 = vld [vmem:[%s22910_s6 + $0x1a0] sm:$0xff]   ;;  %v17870_v29 = vld [vmem:[%s22910_s6 + $0x2c8] sm:$0xff]  }
0x123a   :  { %v10361_v45 = vpack.c.bf16 %v9903_v41, %v9903_v41  ;;  %v9910_v41 = vmax.f32 %v22448_v13, 0.0  ;;  %v17875_v13 = vld [vmem:[%s22910_s6 + $0x338] sm:$0xff]  }
0x123b   :  { %16597 = vmatmul.mubr.bf16.vlgmr.msra.gmra.mxu1 %v10253_v14  ;;  %v17839_v14 = vld [vmem:[%s22910_s6 + $0x188] sm:$0xff]  }
0x123c   :  { %16575 = vmatpush3.bf16.msra.mxu0 %v17809_v44  ;;  %16621 = vmatpush3.bf16.msra.mxu1 %v17810_v19  ;;  %v17834_v44 = vld [vmem:[%s22910_s6 + $0x1d8] sm:$0xff]  }
0x123d   :  { %16600 = vmatprep.subr.bf16.mxu0 %v17907_v10  ;;  %16622 = vmatprep.subr.bf16.mxu1 %v17907_v10  ;;  %v17835_v19 = vld [vmem:[%s22910_s6 + $0x198] sm:$0xff]  }
0x123e   :  { %16636 = vmatprep.mubr.msk.bf16.mxu1 %vm17908_vm0, %v17907_v10 }
0x123f   :  { %16577 = vmatmul.mubr.bf16.vlgmr.msra.gmra.mxu0 %v10145_v28  ;;  %v17844_v28 = vld [vmem:[%s22910_s6 + $0x270] sm:$0xff]  }
0x1240   :  { %16601 = vmatpush3.bf16.msra.mxu0 %v17811_v57  ;;  %16623 = vmatpush3.bf16.msra.mxu1 %v17812_v58  ;;  %v16518_v59 = vpop.f32.mrf.mxu1  ;;  %v17841_v57 = vld [vmem:[%s22910_s6 + $0x180] sm:$0xff]   ;;  %v17842_v58 = vld [vmem:[%s22910_s6 + $0x278] sm:$0xff]  }
0x1241   :  { %v9874_v46 = vadd.f32 %v16518_v59, %v22215_v0  ;;  %16602 = vmatprep.subr.bf16.mxu0 %v17907_v10  ;;  %16624 = vmatprep.subr.bf16.mxu1 %v17907_v10  ;;  %v17815_v0 = vld [vmem:[%s22910_s6 + $0x128] sm:$0xff]  }
0x1242   :  { %v9845_v33 = vpop.f32.mrf.mxu1  ;;  %16616 = vmatprep.mubr.msk.bf16.mxu0 %vm17908_vm0, %v17907_v10  ;;  %v17847_v59 = vld [vmem:[%s22910_s6 + $0x228] sm:$0xff]  }
0x1243   :  { %v22489_v48 = vadd.f32 %v22316_v22, %v9874_v46  ;;  %v9872_v8 = vadd.f32 %v9845_v33, %v22218_v39  ;;  %v17852_v46 = vld [vmem:[%s22910_s6 + $0x250] sm:$0xff]  }
0x1244   :  { %16603 = vmatpush3.bf16.msra.mxu0 %v17813_v56  ;;  %16625 = vmatpush3.bf16.msra.mxu1 %v17814_v31  ;;  %v16519_v4 = vpop.f32.mrf.mxu1  ;;  %v17848_v56 = vld [vmem:[%s22910_s6 + $0x260] sm:$0xff]   ;;  %v17853_v33 = vld [vmem:[%s22910_s6 + $0x210] sm:$0xff]  }
0x1245   :  { %v22500_v30 = vadd.f32 %v22316_v22, %v9872_v8  ;;  %v9875_v61 = vadd.f32 %v16519_v4, %v22221_v60  ;;  %16604 = vmatprep.subr.bf16.mxu0 %v17907_v10  ;;  %16626 = vmatprep.subr.bf16.mxu1 %v17907_v10  ;;  %v17849_v31 = vld [vmem:[%s22910_s6 + $0x220] sm:$0xff]   ;;  %v9908_v4 = vmax.f32 %v22458_v20, 0.0  ;;  %v17859_v20 = vld [vmem:[%s22910_s6 + $0x2b8] sm:$0xff]  }
0x1246   :  { %v9848_v39 = vpop.f32.mrf.mxu1  ;;  %v17856_v8 = vld [vmem:[%s22910_s6 + $0x240] sm:$0xff]  }
0x1247   :  { %v22506_v6 = vadd.f32 %v22316_v22, %v9875_v61  ;;  %v9873_v53 = vadd.f32 %v9848_v39, %v9300_v47  ;;  %v9907_v47 = vmax.f32 %v22441_v50, 0.0  ;;  %v10901_v61 = vpack.c.bf16 %v9908_v4, %v9908_v4  ;;  %v17860_v39 = vld [vmem:[%s22910_s6 + $0x2f0] sm:$0xff]   ;;  %v17897_v4 = vld [vmem:[%s22910_s6 + $0x3a0] sm:$0xff]  }
0x1248   :  { %16605 = vmatpush3.bf16.msra.mxu0 %v17815_v0  ;;  %16627 = vmatpush3.bf16.msra.mxu1 %v17816_v49  ;;  %v17857_v0 = vld [vmem:[%s22910_s6 + $0x200] sm:$0xff]   ;;  %v17858_v49 = vld [vmem:[%s22910_s6 + $0x2f8] sm:$0xff]   ;;  %v17861_v50 = vld [vmem:[%s22910_s6 + $0x2b0] sm:$0xff]  }
0x1249   :  { %v22515_v60 = vadd.f32 %v22316_v22, %v9873_v53  ;;  %16606 = vmatprep.subr.bf16.mxu0 %v17907_v10  ;;  %16628 = vmatprep.subr.bf16.mxu1 %v17907_v10  ;;  %v17821_v22 = vld [vmem:[%s22910_s6 + $0x110] sm:$0xff]   ;;  %v10793_v53 = vpack.c.bf16 %v9907_v47, %v9907_v47 }
0x124a   :  { %v17900_v47 = vld [vmem:[%s22910_s6 + $0x3d0] sm:$0xff]  }
0x124c   :  { %16607 = vmatpush3.bf16.msra.mxu0 %v17817_v2  ;;  %16629 = vmatpush3.bf16.msra.mxu1 %v17818_v51  ;;  %v17862_v2 = vld [vmem:[%s22910_s6 + $0x2e8] sm:$0xff]  }
0x124d   :  { %16608 = vmatprep.subr.bf16.mxu0 %v17907_v10  ;;  %16630 = vmatprep.subr.bf16.mxu1 %v17907_v10  ;;  %v17863_v51 = vld [vmem:[%s22910_s6 + $0x2a8] sm:$0xff]  }
0x1250   :  { %16609 = vmatpush3.bf16.msra.mxu0 %v17819_v63  ;;  %16631 = vmatpush3.bf16.msra.mxu1 %v17820_v62  ;;  %v17864_v63 = vld [vmem:[%s22910_s6 + $0x2e0] sm:$0xff]  }
0x1251   :  { %16610 = vmatprep.subr.bf16.mxu0 %v17907_v10  ;;  %16632 = vmatprep.subr.bf16.mxu1 %v17907_v10  ;;  %v17865_v62 = vld [vmem:[%s22910_s6 + $0x2a0] sm:$0xff]  }
0x1254   :  { %16611 = vmatpush3.bf16.msra.mxu0 %v17821_v22  ;;  %16633 = vmatpush3.bf16.msra.mxu1 %v17822_v37  ;;  %v17866_v22 = vld [vmem:[%s22910_s6 + $0x2d8] sm:$0xff]  }
0x1255   :  { %16612 = vmatprep.subr.bf16.mxu0 %v17907_v10  ;;  %16634 = vmatprep.subr.bf16.mxu1 %v17907_v10  ;;  %v17867_v37 = vld [vmem:[%s22910_s6 + $0x298] sm:$0xff]  }
0x1258   :  { %16613 = vmatpush3.bf16.msra.mxu0 %v17823_v5  ;;  %16635 = vmatpush3.bf16.msra.mxu1 %v17824_v42  ;;  %v17868_v5 = vld [vmem:[%s22910_s6 + $0x2d0] sm:$0xff]  }
0x1259   :  { %16614 = vmatprep.subr.bf16.mxu0 %v17907_v10  ;;  %16660 = vmatprep.subr.bf16.mxu1 %v17907_v10  ;;  %v17869_v42 = vld [vmem:[%s22910_s6 + $0x290] sm:$0xff]  }
0x125b   :  { %16637 = vmatmul.mubr.bf16.vlgmr.msra.gmra.mxu1 %v10469_v23  ;;  %v17873_v23 = vld [vmem:[%s22910_s6 + $0x280] sm:$0xff]  }
0x125c   :  { %16615 = vmatpush3.bf16.msra.mxu0 %v17825_v12  ;;  %16661 = vmatpush3.bf16.msra.mxu1 %v17826_v21  ;;  %v17871_v12 = vld [vmem:[%s22910_s6 + $0x288] sm:$0xff]   ;;  %v17872_v21 = vld [vmem:[%s22910_s6 + $0x2c0] sm:$0xff]  }
0x125d   :  { %16640 = vmatprep.subr.bf16.mxu0 %v17907_v10  ;;  %16662 = vmatprep.subr.bf16.mxu1 %v17907_v10 }
0x125e   :  { %16676 = vmatprep.mubr.msk.bf16.mxu1 %vm17908_vm0, %v17907_v10 }
0x125f   :  { %16617 = vmatmul.mubr.bf16.vlgmr.msra.gmra.mxu0 %v10361_v45  ;;  %v11117_v45 = vpack.c.bf16 %v9910_v41, %v9910_v41 }
0x1260   :  { %16641 = vmatpush3.bf16.msra.mxu0 %v17827_v36  ;;  %16663 = vmatpush3.bf16.msra.mxu1 %v17828_v11  ;;  %v17874_v36 = vld [vmem:[%s22910_s6 + $0x378] sm:$0xff]   ;;  %v9909_v11 = vmax.f32 %v22428_v34, 0.0  ;;  %v17877_v34 = vld [vmem:[%s22910_s6 + $0x330] sm:$0xff]  }
0x1261   :  { %16642 = vmatprep.subr.bf16.mxu0 %v17907_v10  ;;  %16664 = vmatprep.subr.bf16.mxu1 %v17907_v10 }
0x1262   :  { %16656 = vmatprep.mubr.msk.bf16.mxu0 %vm17908_vm0, %v17907_v10 }
0x1264   :  { %16643 = vmatpush3.bf16.msra.mxu0 %v17829_v27  ;;  %16665 = vmatpush3.bf16.msra.mxu1 %v17830_v54  ;;  %v17876_v27 = vld [vmem:[%s22910_s6 + $0x370] sm:$0xff]   ;;  %v11009_v54 = vpack.c.bf16 %v9909_v11, %v9909_v11 }
0x1265   :  { %16644 = vmatprep.subr.bf16.mxu0 %v17907_v10  ;;  %16666 = vmatprep.subr.bf16.mxu1 %v17907_v10 }
0x1268   :  { %16645 = vmatpush3.bf16.msra.mxu0 %v17831_v15  ;;  %16667 = vmatpush3.bf16.msra.mxu1 %v17832_v24  ;;  %v17878_v15 = vld [vmem:[%s22910_s6 + $0x368] sm:$0xff]  }
0x1269   :  { %16646 = vmatprep.subr.bf16.mxu0 %v17907_v10  ;;  %16668 = vmatprep.subr.bf16.mxu1 %v17907_v10  ;;  %v17879_v24 = vld [vmem:[%s22910_s6 + $0x328] sm:$0xff]  }
0x126c   :  { %16647 = vmatpush3.bf16.msra.mxu0 %v17833_v55  ;;  %16669 = vmatpush3.bf16.msra.mxu1 %v17834_v44  ;;  %v17880_v55 = vld [vmem:[%s22910_s6 + $0x360] sm:$0xff]  }
0x126d   :  { %16648 = vmatprep.subr.bf16.mxu0 %v17907_v10  ;;  %16670 = vmatprep.subr.bf16.mxu1 %v17907_v10  ;;  %v17881_v44 = vld [vmem:[%s22910_s6 + $0x320] sm:$0xff]  }
0x1270   :  { %16649 = vmatpush3.bf16.msra.mxu0 %v17835_v19  ;;  %16671 = vmatpush3.bf16.msra.mxu1 %v17836_v17  ;;  %v17882_v19 = vld [vmem:[%s22910_s6 + $0x358] sm:$0xff]  }
0x1271   :  { %16650 = vmatprep.subr.bf16.mxu0 %v17907_v10  ;;  %16672 = vmatprep.subr.bf16.mxu1 %v17907_v10  ;;  %v17883_v17 = vld [vmem:[%s22910_s6 + $0x318] sm:$0xff]  }
0x1274   :  { %16651 = vmatpush3.bf16.msra.mxu0 %v17837_v43  ;;  %16673 = vmatpush3.bf16.msra.mxu1 %v17838_v3  ;;  %v17884_v43 = vld [vmem:[%s22910_s6 + $0x350] sm:$0xff]  }
0x1275   :  { %16652 = vmatprep.subr.bf16.mxu0 %v17907_v10  ;;  %16674 = vmatprep.subr.bf16.mxu1 %v17907_v10  ;;  %v17885_v3 = vld [vmem:[%s22910_s6 + $0x310] sm:$0xff]  }
0x1278   :  { %16653 = vmatpush3.bf16.msra.mxu0 %v17839_v14  ;;  %16675 = vmatpush3.bf16.msra.mxu1 %v17840_v9  ;;  %v17886_v14 = vld [vmem:[%s22910_s6 + $0x348] sm:$0xff]  }
0x1279   :  { %16654 = vmatprep.subr.bf16.mxu0 %v17907_v10  ;;  %16700 = vmatprep.subr.bf16.mxu1 %v17907_v10  ;;  %v17887_v9 = vld [vmem:[%s22910_s6 + $0x308] sm:$0xff]  }
0x127b   :  { %16677 = vmatmul.mubr.bf16.vlgmr.msra.gmra.mxu1 %v10685_v40  ;;  %v9911_v40 = vmax.f32 %v22500_v30, 0.0 }
0x127c   :  { %16655 = vmatpush3.bf16.msra.mxu0 %v17841_v57  ;;  %16701 = vmatpush3.bf16.msra.mxu1 %v17842_v58  ;;  %v9912_v57 = vmax.f32 %v22515_v60, 0.0  ;;  %v17889_v58 = vld [vmem:[%s22910_s6 + $0x300] sm:$0xff]  }
0x127d   :  { %16680 = vmatprep.subr.bf16.mxu0 %v17907_v10  ;;  %16702 = vmatprep.subr.bf16.mxu1 %v17907_v10 }
0x127e   :  { %16716 = vmatprep.mubr.msk.bf16.mxu1 %vm17908_vm0, %v17907_v10 }
0x127f   :  { %16657 = vmatmul.mubr.bf16.vlgmr.msra.gmra.mxu0 %v10577_v16  ;;  %v17892_v16 = vld [vmem:[%s22910_s6 + $0x3f0] sm:$0xff]  }
0x1280   :  { %16681 = vmatpush3.bf16.msra.mxu0 %v17843_v25  ;;  %16703 = vmatpush3.bf16.msra.mxu1 %v17844_v28  ;;  %v11333_v25 = vpack.c.bf16 %v9912_v57, %v9912_v57  ;;  %v17891_v28 = vld [vmem:[%s22910_s6 + $0x3b8] sm:$0xff]  }
0x1281   :  { %16682 = vmatprep.subr.bf16.mxu0 %v17907_v10  ;;  %16704 = vmatprep.subr.bf16.mxu1 %v17907_v10 }
0x1282   :  { %16696 = vmatprep.mubr.msk.bf16.mxu0 %vm17908_vm0, %v17907_v10 }
0x1284   :  { %16683 = vmatpush3.bf16.msra.mxu0 %v17845_v1  ;;  %16705 = vmatpush3.bf16.msra.mxu1 %v17846_v35  ;;  %v11225_v1 = vpack.c.bf16 %v9911_v40, %v9911_v40 }
0x1285   :  { %16684 = vmatprep.subr.bf16.mxu0 %v17907_v10  ;;  %16706 = vmatprep.subr.bf16.mxu1 %v17907_v10 }
0x1288   :  { %16685 = vmatpush3.bf16.msra.mxu0 %v17847_v59  ;;  %16707 = vmatpush3.bf16.msra.mxu1 %v17848_v56 }
0x1289   :  { %16686 = vmatprep.subr.bf16.mxu0 %v17907_v10  ;;  %16708 = vmatprep.subr.bf16.mxu1 %v17907_v10 }
0x128c   :  { %16687 = vmatpush3.bf16.msra.mxu0 %v17849_v31  ;;  %16709 = vmatpush3.bf16.msra.mxu1 %v17850_v7  ;;  %v17893_v31 = vld [vmem:[%s22910_s6 + $0x3b0] sm:$0xff]   ;;  %v17894_v7 = vld [vmem:[%s22910_s6 + $0x3e8] sm:$0xff]  }
0x128d   :  { %16688 = vmatprep.subr.bf16.mxu0 %v17907_v10  ;;  %16710 = vmatprep.subr.bf16.mxu1 %v17907_v10 }
0x1290   :  { %16689 = vmatpush3.bf16.msra.mxu0 %v17851_v32  ;;  %16711 = vmatpush3.bf16.msra.mxu1 %v17852_v46 }
0x1291   :  { %16690 = vmatprep.subr.bf16.mxu0 %v17907_v10  ;;  %16712 = vmatprep.subr.bf16.mxu1 %v17907_v10 }
0x1294   :  { %16691 = vmatpush3.bf16.msra.mxu0 %v17853_v33  ;;  %16713 = vmatpush3.bf16.msra.mxu1 %v17854_v52  ;;  %v17895_v52 = vld [vmem:[%s22910_s6 + $0x3a8] sm:$0xff]  }
0x1295   :  { %16692 = vmatprep.subr.bf16.mxu0 %v17907_v10  ;;  %16714 = vmatprep.subr.bf16.mxu1 %v17907_v10 }
0x1298   :  { %16693 = vmatpush3.bf16.msra.mxu0 %v17855_v38  ;;  %16715 = vmatpush3.bf16.msra.mxu1 %v17856_v8  ;;  %v17896_v38 = vld [vmem:[%s22910_s6 + $0x3e0] sm:$0xff]  }
0x1299   :  { %16694 = vmatprep.subr.bf16.mxu0 %v17907_v10  ;;  %16740 = vmatprep.subr.bf16.mxu1 %v17907_v10 }
0x129b   :  { %16717 = vmatmul.mubr.bf16.vlgmr.msra.gmra.mxu1 %v10901_v61  ;;  %v17901_v61 = vld [vmem:[%s22910_s6 + $0x390] sm:$0xff]  }
0x129c   :  { %16695 = vmatpush3.bf16.msra.mxu0 %v17857_v0  ;;  %16741 = vmatpush3.bf16.msra.mxu1 %v17858_v49  ;;  %v17898_v0 = vld [vmem:[%s22910_s6 + $0x3d8] sm:$0xff]  }
0x129d   :  { %16720 = vmatprep.subr.bf16.mxu0 %v17907_v10  ;;  %16742 = vmatprep.subr.bf16.mxu1 %v17907_v10  ;;  %v17899_v49 = vld [vmem:[%s22910_s6 + $0x398] sm:$0xff]  }
0x129e   :  { %16756 = vmatprep.mubr.msk.bf16.mxu1 %vm17908_vm0, %v17907_v10 }
0x129f   :  { %16697 = vmatmul.mubr.bf16.vlgmr.msra.gmra.mxu0 %v10793_v53  ;;  %v17904_v53 = vld [vmem:[%s22910_s6 + $0x3c0] sm:$0xff]  }
0x12a0   :  { %16721 = vmatpush3.bf16.msra.mxu0 %v17859_v20  ;;  %16743 = vmatpush3.bf16.msra.mxu1 %v17860_v39  ;;  %v17902_v20 = vld [vmem:[%s22910_s6 + $0x3c8] sm:$0xff]  }
0x12a1   :  { %16722 = vmatprep.subr.bf16.mxu0 %v17907_v10  ;;  %16744 = vmatprep.subr.bf16.mxu1 %v17907_v10  ;;  %v17903_v39 = vld [vmem:[%s22910_s6 + $0x388] sm:$0xff]  }
0x12a2   :  { %16736 = vmatprep.mubr.msk.bf16.mxu0 %vm17908_vm0, %v17907_v10 }
0x12a4   :  { %16723 = vmatpush3.bf16.msra.mxu0 %v17861_v50  ;;  %16745 = vmatpush3.bf16.msra.mxu1 %v17862_v2  ;;  %v9914_v50 = vmax.f32 %v22506_v6, 0.0  ;;  %v17905_v2 = vld [vmem:[%s22910_s6 + $0x380] sm:$0xff]  }
0x12a5   :  { %16724 = vmatprep.subr.bf16.mxu0 %v17907_v10  ;;  %16746 = vmatprep.subr.bf16.mxu1 %v17907_v10 }
0x12a8   :  { %16725 = vmatpush3.bf16.msra.mxu0 %v17863_v51  ;;  %16747 = vmatpush3.bf16.msra.mxu1 %v17864_v63  ;;  %v9913_v51 = vmax.f32 %v22489_v48, 0.0  ;;  %v11549_v63 = vpack.c.bf16 %v9914_v50, %v9914_v50 }
0x12a9   :  { %16726 = vmatprep.subr.bf16.mxu0 %v17907_v10  ;;  %16748 = vmatprep.subr.bf16.mxu1 %v17907_v10 }
0x12ac   :  { %16727 = vmatpush3.bf16.msra.mxu0 %v17865_v62  ;;  %16749 = vmatpush3.bf16.msra.mxu1 %v17866_v22  ;;  %v11441_v22 = vpack.c.bf16 %v9913_v51, %v9913_v51 }
0x12ad   :  { %16728 = vmatprep.subr.bf16.mxu0 %v17907_v10  ;;  %16750 = vmatprep.subr.bf16.mxu1 %v17907_v10 }
0x12b0   :  { %16729 = vmatpush3.bf16.msra.mxu0 %v17867_v37  ;;  %16751 = vmatpush3.bf16.msra.mxu1 %v17868_v5 }
0x12b1   :  { %16730 = vmatprep.subr.bf16.mxu0 %v17907_v10  ;;  %16752 = vmatprep.subr.bf16.mxu1 %v17907_v10 }
0x12b4   :  { %16731 = vmatpush3.bf16.msra.mxu0 %v17869_v42  ;;  %16753 = vmatpush3.bf16.msra.mxu1 %v17870_v29 }
0x12b5   :  { %16732 = vmatprep.subr.bf16.mxu0 %v17907_v10  ;;  %16754 = vmatprep.subr.bf16.mxu1 %v17907_v10 }
0x12b8   :  { %16733 = vmatpush3.bf16.msra.mxu0 %v17871_v12  ;;  %16755 = vmatpush3.bf16.msra.mxu1 %v17872_v21 }
0x12b9   :  { %16734 = vmatprep.subr.bf16.mxu0 %v17907_v10  ;;  %16780 = vmatprep.subr.bf16.mxu1 %v17907_v10 }
0x12bb   :  { %16757 = vmatmul.mubr.bf16.vlgmr.msra.gmra.mxu1 %v11117_v45 }
0x12bc   :  { %16735 = vmatpush3.bf16.msra.mxu0 %v17873_v23  ;;  %16781 = vmatpush3.bf16.msra.mxu1 %v17874_v36 }
0x12bd   :  { %16760 = vmatprep.subr.bf16.mxu0 %v17907_v10  ;;  %16782 = vmatprep.subr.bf16.mxu1 %v17907_v10 }
0x12be   :  { %16796 = vmatprep.mubr.msk.bf16.mxu1 %vm17908_vm0, %v17907_v10 }
0x12bf   :  { %16737 = vmatmul.mubr.bf16.vlgmr.msra.gmra.mxu0 %v11009_v54 }
0x12c0   :  { %16761 = vmatpush3.bf16.msra.mxu0 %v17875_v13  ;;  %16783 = vmatpush3.bf16.msra.mxu1 %v17876_v27 }
0x12c1   :  { %16762 = vmatprep.subr.bf16.mxu0 %v17907_v10  ;;  %16784 = vmatprep.subr.bf16.mxu1 %v17907_v10 }
0x12c2   :  { %16776 = vmatprep.mubr.msk.bf16.mxu0 %vm17908_vm0, %v17907_v10 }
0x12c4   :  { %16763 = vmatpush3.bf16.msra.mxu0 %v17877_v34  ;;  %16785 = vmatpush3.bf16.msra.mxu1 %v17878_v15 }
0x12c5   :  { %16764 = vmatprep.subr.bf16.mxu0 %v17907_v10  ;;  %16786 = vmatprep.subr.bf16.mxu1 %v17907_v10 }
0x12c8   :  { %16765 = vmatpush3.bf16.msra.mxu0 %v17879_v24  ;;  %16787 = vmatpush3.bf16.msra.mxu1 %v17880_v55 }
0x12c9   :  { %16766 = vmatprep.subr.bf16.mxu0 %v17907_v10  ;;  %16788 = vmatprep.subr.bf16.mxu1 %v17907_v10 }
0x12cc   :  { %16767 = vmatpush3.bf16.msra.mxu0 %v17881_v44  ;;  %16789 = vmatpush3.bf16.msra.mxu1 %v17882_v19 }
0x12cd   :  { %16768 = vmatprep.subr.bf16.mxu0 %v17907_v10  ;;  %16790 = vmatprep.subr.bf16.mxu1 %v17907_v10 }
0x12d0   :  { %16769 = vmatpush3.bf16.msra.mxu0 %v17883_v17  ;;  %16791 = vmatpush3.bf16.msra.mxu1 %v17884_v43 }
0x12d1   :  { %16770 = vmatprep.subr.bf16.mxu0 %v17907_v10  ;;  %16792 = vmatprep.subr.bf16.mxu1 %v17907_v10 }
0x12d4   :  { %16771 = vmatpush3.bf16.msra.mxu0 %v17885_v3  ;;  %16793 = vmatpush3.bf16.msra.mxu1 %v17886_v14 }
0x12d5   :  { %16772 = vmatprep.subr.bf16.mxu0 %v17907_v10  ;;  %16794 = vmatprep.subr.bf16.mxu1 %v17907_v10 }
0x12d8   :  { %16773 = vmatpush3.bf16.msra.mxu0 %v17887_v9  ;;  %16795 = vmatpush3.bf16.msra.mxu1 %v17888_v18 }
0x12d9   :  { %16774 = vmatprep.subr.bf16.mxu0 %v17907_v10  ;;  %16820 = vmatprep.subr.bf16.mxu1 %v17907_v10 }
0x12db   :  { %16797 = vmatmul.mubr.bf16.vlgmr.msra.gmra.mxu1 %v11333_v25  ;;  %v10138_v60 = vpop.f32.mrf.mxu1 }
0x12dc   :  { %16775 = vmatpush3.bf16.msra.mxu0 %v17889_v58  ;;  %16821 = vmatpush3.bf16.msra.mxu1 %v17890_v26 }
0x12dd   :  { %v16558_v35 = vpop.f32.mrf.mxu1  ;;  %16800 = vmatprep.subr.bf16.mxu0 %v17907_v10  ;;  %16822 = vmatprep.subr.bf16.mxu1 %v17907_v10 }
0x12de   :  { %16836 = vmatprep.mubr.msk.bf16.mxu1 %vm17908_vm0, %v17907_v10 }
0x12df   :  { %16777 = vmatmul.mubr.bf16.vlgmr.msra.gmra.mxu0 %v11225_v1  ;;  %v10050_v30 = vpop.f32.mrf.mxu0  ;;  %v10141_v59 = vpop.f32.mrf.mxu1 }
0x12e0   :  { %v10139_v56 = vadd.f32 %v10138_v60, %v10050_v30  ;;  %16801 = vmatpush3.bf16.msra.mxu0 %v17891_v28  ;;  %16823 = vmatpush3.bf16.msra.mxu1 %v17892_v16 }
0x12e1   :  { %v16538_v32 = vpop.f32.mrf.mxu0  ;;  %v16559_v46 = vpop.f32.mrf.mxu1  ;;  %16802 = vmatprep.subr.bf16.mxu0 %v17907_v10  ;;  %16824 = vmatprep.subr.bf16.mxu1 %v17907_v10 }
0x12e2   :  { %16816 = vmatprep.mubr.msk.bf16.mxu0 %vm17908_vm0, %v17907_v10 }
0x12e3   :  { %v10053_v33 = vpop.f32.mrf.mxu0 }
0x12e4   :  { %16803 = vmatpush3.bf16.msra.mxu0 %v17893_v31  ;;  %16825 = vmatpush3.bf16.msra.mxu1 %v17894_v7 }
0x12e5   :  { %v16539_v8 = vpop.f32.mrf.mxu0  ;;  %16804 = vmatprep.subr.bf16.mxu0 %v17907_v10  ;;  %16826 = vmatprep.subr.bf16.mxu1 %v17907_v10 }
0x12e8   :  { %16805 = vmatpush3.bf16.msra.mxu0 %v17895_v52  ;;  %16827 = vmatpush3.bf16.msra.mxu1 %v17896_v38 }
0x12e9   :  { %16806 = vmatprep.subr.bf16.mxu0 %v17907_v10  ;;  %16828 = vmatprep.subr.bf16.mxu1 %v17907_v10 }
0x12ec   :  { %16807 = vmatpush3.bf16.msra.mxu0 %v17897_v4  ;;  %16829 = vmatpush3.bf16.msra.mxu1 %v17898_v0 }
0x12ed   :  { %16808 = vmatprep.subr.bf16.mxu0 %v17907_v10  ;;  %16830 = vmatprep.subr.bf16.mxu1 %v17907_v10 }
0x12f0   :  { %16809 = vmatpush3.bf16.msra.mxu0 %v17899_v49  ;;  %16831 = vmatpush3.bf16.msra.mxu1 %v17900_v47 }
0x12f1   :  { %16810 = vmatprep.subr.bf16.mxu0 %v17907_v10  ;;  %16832 = vmatprep.subr.bf16.mxu1 %v17907_v10 }
0x12f4   :  { %16811 = vmatpush3.bf16.msra.mxu0 %v17901_v61  ;;  %16833 = vmatpush3.bf16.msra.mxu1 %v17902_v20 }
0x12f5   :  { %16812 = vmatprep.subr.bf16.mxu0 %v17907_v10  ;;  %16834 = vmatprep.subr.bf16.mxu1 %v17907_v10 }
0x12f8   :  { %16813 = vmatpush3.bf16.msra.mxu0 %v17903_v39  ;;  %16835 = vmatpush3.bf16.msra.mxu1 %v17904_v53 }
0x12f9   :  { %16814 = vmatprep.subr.bf16.mxu0 %v17907_v10 }
0x12fb   :  { %v10353_v62 = vpop.f32.mrf.mxu1  ;;  %16837 = vmatmul.mubr.bf16.vlgmr.msra.gmra.mxu1 %v11549_v63 }
0x12fc   :  { %16815 = vmatpush3.bf16.msra.mxu0 %v17905_v2 }
0x12fd   :  { %v16598_v6 = vpop.f32.mrf.mxu1 }
0x12fe   :  { %v13439_v6 = vld [vmem:[%s22912_s7] ss:$0 sm:$0xff] }
0x12ff   :  { %v10245_v37 = vpop.f32.mrf.mxu0  ;;  %v10356_v5 = vpop.f32.mrf.mxu1  ;;  %16817 = vmatmul.mubr.bf16.vlgmr.msra.gmra.mxu0 %v11441_v22 }
0x1300   :  { %v10251_v42 = vadd.f32 %v10245_v37, %v10139_v56 }
0x1301   :  { %v16578_v29 = vpop.f32.mrf.mxu0  ;;  %v16599_v12 = vpop.f32.mrf.mxu1 }
0x1302   :  { %v10359_v21 = vadd.f32 %v10353_v62, %v10251_v42 }
0x1303   :  { %v10248_v41 = vpop.f32.mrf.mxu0 }
0x1305   :  { %v16579_v23 = vpop.f32.mrf.mxu0 }
0x131b   :  { %v10569_v36 = vpop.f32.mrf.mxu1 }
0x131d   :  { %v16638_v11 = vpop.f32.mrf.mxu1 }
0x131f   :  { %v10461_v48 = vpop.f32.mrf.mxu0  ;;  %v10572_v45 = vpop.f32.mrf.mxu1 }
0x1320   :  { %v10467_v13 = vadd.f32 %v10461_v48, %v10359_v21 }
0x1321   :  { %v16618_v10 = vpop.f32.mrf.mxu0  ;;  %v16639_v27 = vpop.f32.mrf.mxu1 }
0x1322   :  { %v10575_v54 = vadd.f32 %v10569_v36, %v10467_v13 }
0x1323   :  { %v10464_v34 = vpop.f32.mrf.mxu0 }
0x1325   :  { %v16619_v15 = vpop.f32.mrf.mxu0 }
0x133b   :  { %v10785_v24 = vpop.f32.mrf.mxu1 }
0x133d   :  { %v16678_v55 = vpop.f32.mrf.mxu1 }
0x133f   :  { %v10677_v44 = vpop.f32.mrf.mxu0  ;;  %v10788_v19 = vpop.f32.mrf.mxu1 }
0x1340   :  { %v10683_v17 = vadd.f32 %v10677_v44, %v10575_v54 }
0x1341   :  { %v16658_v43 = vpop.f32.mrf.mxu0  ;;  %v16679_v3 = vpop.f32.mrf.mxu1 }
0x1342   :  { %v10791_v14 = vadd.f32 %v10785_v24, %v10683_v17 }
0x1343   :  { %v10680_v9 = vpop.f32.mrf.mxu0 }
0x1345   :  { %v16659_v18 = vpop.f32.mrf.mxu0 }
0x135b   :  { %v11001_v57 = vpop.f32.mrf.mxu1 }
0x135d   :  { %v16718_v58 = vpop.f32.mrf.mxu1 }
0x135f   :  { %v10893_v26 = vpop.f32.mrf.mxu0  ;;  %v11004_v40 = vpop.f32.mrf.mxu1 }
0x1360   :  { %v10899_v25 = vadd.f32 %v10893_v26, %v10791_v14 }
0x1361   :  { %v16698_v60 = vpop.f32.mrf.mxu0  ;;  %v16719_v28 = vpop.f32.mrf.mxu1 }
0x1362   :  { %v11007_v16 = vadd.f32 %v11001_v57, %v10899_v25 }
0x1363   :  { %v10896_v1 = vpop.f32.mrf.mxu0 }
0x1365   :  { %v16699_v35 = vpop.f32.mrf.mxu0 }
0x137b   :  { %v11217_v30 = vpop.f32.mrf.mxu1 }
0x137d   :  { %v16758_v59 = vpop.f32.mrf.mxu1 }
0x137f   :  { %v11109_v56 = vpop.f32.mrf.mxu0  ;;  %v11220_v31 = vpop.f32.mrf.mxu1 }
0x1380   :  { %v11115_v20 = vadd.f32 %v11109_v56, %v11007_v16 }
0x1381   :  { %v16738_v7 = vpop.f32.mrf.mxu0  ;;  %v16759_v32 = vpop.f32.mrf.mxu1 }
0x1382   :  { %v11223_v39 = vadd.f32 %v11217_v30, %v11115_v20 }
0x1383   :  { %v11112_v46 = vpop.f32.mrf.mxu0 }
0x1385   :  { %v16739_v33 = vpop.f32.mrf.mxu0 }
0x139b   :  { %v11433_v52 = vpop.f32.mrf.mxu1 }
0x139d   :  { %v16798_v38 = vpop.f32.mrf.mxu1 }
0x139f   :  { %v11325_v8 = vpop.f32.mrf.mxu0  ;;  %v11436_v4 = vpop.f32.mrf.mxu1 }
0x13a0   :  { %v11331_v53 = vadd.f32 %v11325_v8, %v11223_v39 }
0x13a1   :  { %v16778_v0 = vpop.f32.mrf.mxu0  ;;  %v16799_v49 = vpop.f32.mrf.mxu1 }
0x13a2   :  { %v11439_v51 = vadd.f32 %v11433_v52, %v11331_v53 }
0x13a3   :  { %v11328_v47 = vpop.f32.mrf.mxu0 }
0x13a5   :  { %v16779_v61 = vpop.f32.mrf.mxu0 }
0x13bb   :  { %v11649_v50 = vpop.f32.mrf.mxu1 }
0x13bd   :  { %v16838_v2 = vpop.f32.mrf.mxu1 }
0x13bf   :  { %v11541_v63 = vpop.f32.mrf.mxu0  ;;  %v11652_v62 = vpop.f32.mrf.mxu1 }
0x13c0   :  { %v11547_v22 = vadd.f32 %v11541_v63, %v11439_v51 }
0x13c1   :  { %v16818_v37 = vpop.f32.mrf.mxu0  ;;  %v16839_v5 = vpop.f32.mrf.mxu1 }
0x13c2   :  { %v11655_v42 = vadd.f32 %v11649_v50, %v11547_v22 }
0x13c3   :  { %v11544_v29 = vpop.f32.mrf.mxu0 }
0x13c4   :  { %v11663_v12 = vadd.f32 %v13439_v6, %v11655_v42 }
0x13c5   :  { %v16819_v21 = vpop.f32.mrf.mxu0 }
0x13c6   :  { %11664 = vst [vmem:[%s22913_s8] sm:$0xff] %v11663_v12 }

</bundles_post_ra>
